<compile_context>
chip_gen: v6e
topology: v6e:2x2x1
jax: 0.10.0
libtpu: 0.0.40
codegen_flags: <defaults>
</compile_context>

<pallas_src>
import functools
import numpy as np
import jax
import jax.numpy as jnp
from jax.experimental import pallas as pl
from jax.experimental.pallas import tpu as pltpu

# Geometry fixed by the module (fc1 expects 1568 = 32*7*7 features -> 84x84 input).
OH1, OH2, OH3 = 20, 9, 7                          # conv1/conv2/conv3 output spatial side
S1, S2, S3 = OH1 * OH1, OH2 * OH2, OH3 * OH3      # 400, 81, 49
NT2, NT3 = 16, 9                                  # conv2 (4x4) / conv3 (3x3) tap counts
LP = 128                                          # per-tap / per-image lane-padded slot


# ----------------------------------------------------------------------------
# The single fused kernel: one grid step == TB images, everything VMEM-resident.
# ----------------------------------------------------------------------------
def _make_fused_kernel(TB):
    def kernel(cols1_ref, w1_ref, b1_ref,
               g2_ref, w2_ref, b2_ref,
               g3_ref, w3_ref, b3_ref,
               wfc1_ref, bfc1_ref,
               wout_ref, bout_ref,
               out_ref):
        f32, bf16 = jnp.float32, jnp.bfloat16

        # conv1 + ReLU: per image (32,256)@(256,400); batch stacked along sublanes.
        w1, b1 = w1_ref[...], b1_ref[...]
        y1 = jnp.concatenate(
            [jnp.maximum(jnp.dot(w1, cols1_ref[b], preferred_element_type=f32) + b1,
                         0.0).astype(bf16)
             for b in range(TB)], axis=0)                                   # (TB*32, 400)

        # conv2: ONE batched gather GEMM + ONE K-stacked channel GEMM (+ ReLU).
        c2 = jnp.dot(y1, g2_ref[...], preferred_element_type=f32).astype(bf16)   # (TB*32, 2048)
        cols2 = jnp.concatenate(
            [jnp.concatenate([c2[b * 32:(b + 1) * 32, t * LP:(t + 1) * LP]
                              for t in range(NT2)], axis=0)                # (512, 128) per img
             for b in range(TB)], axis=1)                                   # (512, TB*128)
        y2 = jnp.maximum(jnp.dot(w2_ref[...], cols2, preferred_element_type=f32)
                         + b2_ref[...], 0.0).astype(bf16)                   # (64, TB*128)
        y2 = jnp.concatenate([y2[:, b * LP:(b + 1) * LP] for b in range(TB)],
                             axis=0)                                        # (TB*64, 128)

        # conv3: same two-GEMM structure.  (Pad lanes are zeroed by the gather matrices.)
        c3 = jnp.dot(y2, g3_ref[...], preferred_element_type=f32).astype(bf16)   # (TB*64, 1152)
        cols3 = jnp.concatenate(
            [jnp.concatenate([c3[b * 64:(b + 1) * 64, t * LP:(t + 1) * LP]
                              for t in range(NT3)], axis=0)                # (576, 128) per img
             for b in range(TB)], axis=1)                                   # (576, TB*128)
        y3 = jnp.maximum(jnp.dot(w3_ref[...], cols3, preferred_element_type=f32)
                         + b3_ref[...], 0.0)                                # (32, TB*128) f32

        # dropout(0.2): identity at inference.
        # Flatten (torch .view order (c, s); each channel in its own 128-lane block,
        # fc1 weight rows were re-ordered/zero-padded to match) -> (TB, 4096).
        feats = jnp.concatenate(
            [jnp.concatenate([y3[c:c + 1, b * LP:(b + 1) * LP] for c in range(32)], axis=1)
             for b in range(TB)], axis=0).astype(bf16)                      # (TB, 4096)

        # fc1 (no activation in the reference), dropout identity, fcOut (padded to 128 lanes),
        # tanh / sigmoid head -- all fused; store the full lane-dense (TB, 128) block.
        h = jnp.dot(feats, wfc1_ref[...], preferred_element_type=f32) + bfc1_ref[...]       # (TB, 512)
        o = jnp.dot(h.astype(bf16), wout_ref[...], preferred_element_type=f32) + bout_ref[...]
        lane = jax.lax.broadcasted_iota(jnp.int32, o.shape, 1)
        out_ref[...] = jnp.where(lane == 0, jnp.tanh(o), jax.nn.sigmoid(o)).astype(out_ref.dtype)

    return kernel


# ----------------------------------------------------------------------------
# conv1 im2col on the raw input (plain-JAX glue; rows ordered (c, ki, kj) to match
# PyTorch's Conv2d weight flattening, columns ordered oh*20 + ow).
# ----------------------------------------------------------------------------
def _im2col_conv1(x):
    B = x.shape[0]
    taps = []
    for ki in range(8):
        for kj in range(8):
            taps.append(x[:, :, ki:ki + 4 * OH1:4, kj:kj + 4 * OH1:4])   # (B, 4, 20, 20)
    p = jnp.stack(taps, axis=2)                                          # (B, 4, 64, 20, 20)
    return p.reshape(B, 4 * 64, S1)                                      # (B, 256, 400)


# ----------------------------------------------------------------------------
# Merged 0/1 gather matrices: all taps of a layer concatenated along lanes,
# each tap in its own 128-lane slot (slot lanes beyond the valid spatial size are zero,
# and unused input rows of g3 are zero, so ReLU(bias) garbage in pad lanes never leaks).
# ----------------------------------------------------------------------------
def _gather_matrices():
    g2 = np.zeros((S1, NT2 * LP), np.float32)        # conv2: 20x20 -> 9x9, k=4, s=2
    for ki in range(4):
        for kj in range(4):
            t = ki * 4 + kj
            for a in range(OH2):
                for b in range(OH2):
                    g2[(2 * a + ki) * OH1 + (2 * b + kj), t * LP + a * OH2 + b] = 1.0
    g3 = np.zeros((LP, NT3 * LP), np.float32)        # conv3: 9x9 -> 7x7, k=3, s=1 (rows>=81 zero)
    for ki in range(3):
        for kj in range(3):
            t = ki * 3 + kj
            for a in range(OH3):
                for b in range(OH3):
                    g3[(a + ki) * OH2 + (b + kj), t * LP + a * OH3 + b] = 1.0
    return jnp.asarray(g2, jnp.bfloat16), jnp.asarray(g3, jnp.bfloat16)


# ----------------------------------------------------------------------------
# Deterministic parameter init (PyTorch-layout) + packing into kernel layout.
# ----------------------------------------------------------------------------
def _init_params(key, entrada=4, saida=3):
    def uni(k, shape, fan_in):
        bound = 1.0 / float(np.sqrt(fan_in))
        return jax.random.uniform(k, shape, jnp.float32, -bound, bound)

    ks = jax.random.split(key, 10)
    return {
        "conv1_w": uni(ks[0], (32, entrada, 8, 8), entrada * 64),
        "conv1_b": uni(ks[1], (32,), entrada * 64),
        "conv2_w": uni(ks[2], (64, 32, 4, 4), 32 * 16),
        "conv2_b": uni(ks[3], (64,), 32 * 16),
        "conv3_w": uni(ks[4], (32, 64, 3, 3), 64 * 9),
        "conv3_b": uni(ks[5], (32,), 64 * 9),
        "fc1_w":   uni(ks[6], (1568, 512), 1568),    # already (in, out) == torch weight.T
        "fc1_b":   uni(ks[7], (512,), 1568),
        "fcOut_w": uni(ks[8], (512, saida), 512),
        "fcOut_b": uni(ks[9], (saida,), 512),
    }


def pack_params(p):
    bf16, f32 = jnp.bfloat16, jnp.float32
    g2_all, g3_all = _gather_matrices()
    # Channel weights stacked along K in (tap, cin) order to match the in-kernel restack.
    w2_st = p["conv2_w"].transpose(2, 3, 1, 0).reshape(NT2 * 32, 64).T.astype(bf16)   # (64, 512)
    w3_st = p["conv3_w"].transpose(2, 3, 1, 0).reshape(NT3 * 64, 32).T.astype(bf16)   # (32, 576)
    # fc1 weight rows reordered to the 128-lane-padded flatten order (c*128 + s), zero pad rows.
    wfc1 = p["fc1_w"].reshape(32, S3, 512)
    wfc1 = jnp.pad(wfc1, ((0, 0), (0, LP - S3), (0, 0))).reshape(32 * LP, 512).astype(bf16)
    wout = jnp.zeros((512, LP), f32).at[:, :3].set(p["fcOut_w"]).astype(bf16)
    bout = jnp.zeros((1, LP), f32).at[0, :3].set(p["fcOut_b"])
    return {
        "w1":   p["conv1_w"].reshape(32, 256).astype(bf16),
        "b1":   p["conv1_b"].reshape(32, 1).astype(f32),
        "g2":   g2_all,
        "w2":   w2_st,
        "b2":   p["conv2_b"].reshape(64, 1).astype(f32),
        "g3":   g3_all,
        "w3":   w3_st,
        "b3":   p["conv3_b"].reshape(32, 1).astype(f32),
        "wfc1": wfc1,
        "bfc1": p["fc1_b"].reshape(1, 512).astype(f32),
        "wout": wout,
        "bout": bout,
    }


# ----------------------------------------------------------------------------
# Forward pass: one fused pallas_call, grid over batch tiles (parallel -> both v7x cores
# whenever B > TB; at the tiny test batch the grid degenerates to a single step).
# ----------------------------------------------------------------------------
@jax.jit
def forward(packed, x):
    B = x.shape[0]
    TB = min(8, B)                                   # batch tile (M-axis fill on the MXU)
    B_pad = ((B + TB - 1) // TB) * TB
    steps = B_pad // TB

    cols1 = _im2col_conv1(x.astype(jnp.bfloat16))    # (B, 256, 400) bf16 (cast BEFORE the stack)
    if B_pad != B:
        cols1 = jnp.pad(cols1, ((0, B_pad - B), (0, 0), (0, 0)))

    macs_per_step = (TB * 32 * 256 * S1                       # conv1
                     + TB * 32 * S1 * (NT2 * LP)              # conv2 gather
                     + 64 * (NT2 * 32) * (TB * LP)            # conv2 channel
                     + TB * 64 * LP * (NT3 * LP)              # conv3 gather
                     + 32 * (NT3 * 64) * (TB * LP)            # conv3 channel
                     + TB * 32 * LP * 512                     # fc1
                     + TB * 512 * LP)                         # fcOut
    weight_bytes = sum(int(np.prod(v.shape)) * np.dtype(v.dtype).itemsize
                       for v in packed.values())
    cost = pl.CostEstimate(flops=2 * macs_per_step * steps,
                           transcendentals=B_pad * 2 * LP,
                           bytes_accessed=int(np.prod(cols1.shape)) * 2
                                          + weight_bytes + B_pad * LP * 4)

    out_full = pl.pallas_call(
        _make_fused_kernel(TB),
        out_shape=jax.ShapeDtypeStruct((B_pad, LP), jnp.float32),
        grid=(steps,),
        in_specs=[
            pl.BlockSpec((TB, 256, S1),   lambda i: (i, 0, 0)),   # conv1 im2col patches
            pl.BlockSpec((32, 256),       lambda i: (0, 0)),      # w1
            pl.BlockSpec((32, 1),         lambda i: (0, 0)),      # b1
            pl.BlockSpec((S1, NT2 * LP),  lambda i: (0, 0)),      # merged conv2 gather matrix
            pl.BlockSpec((64, NT2 * 32),  lambda i: (0, 0)),      # w2 (K-stacked)
            pl.BlockSpec((64, 1),         lambda i: (0, 0)),      # b2
            pl.BlockSpec((LP, NT3 * LP),  lambda i: (0, 0)),      # merged conv3 gather matrix
            pl.BlockSpec((32, NT3 * 64),  lambda i: (0, 0)),      # w3 (K-stacked)
            pl.BlockSpec((32, 1),         lambda i: (0, 0)),      # b3
            pl.BlockSpec((32 * LP, 512),  lambda i: (0, 0)),      # fc1 weight (reordered+padded)
            pl.BlockSpec((1, 512),        lambda i: (0, 0)),      # fc1 bias
            pl.BlockSpec((512, LP),       lambda i: (0, 0)),      # fcOut weight (padded to 128)
            pl.BlockSpec((1, LP),         lambda i: (0, 0)),      # fcOut bias  (padded to 128)
        ],
        out_specs=pl.BlockSpec((TB, LP), lambda i: (i, 0)),
        compiler_params=pltpu.CompilerParams(
            dimension_semantics=("parallel",),
            vmem_limit_bytes=32 * 1024 * 1024),
        cost_estimate=cost,
    )(cols1,
      packed["w1"], packed["b1"],
      packed["g2"], packed["w2"], packed["b2"],
      packed["g3"], packed["w3"], packed["b3"],
      packed["wfc1"], packed["bfc1"],
      packed["wout"], packed["bout"])

    return out_full[:B, :3]


# ----------------------------------------------------------------------------
# Pure-JAX f32 reference (loose numerical self-check; kernel uses bf16 MXU operands).
# ----------------------------------------------------------------------------
@jax.jit
def _reference_forward(params, x):
    dn = ("NCHW", "OIHW", "NCHW")
    y = jax.lax.conv_general_dilated(x, params["conv1_w"], (4, 4), "VALID", dimension_numbers=dn)
    y = jax.nn.relu(y + params["conv1_b"][None, :, None, None])
    y = jax.lax.conv_general_dilated(y, params["conv2_w"], (2, 2), "VALID", dimension_numbers=dn)
    y = jax.nn.relu(y + params["conv2_b"][None, :, None, None])
    y = jax.lax.conv_general_dilated(y, params["conv3_w"], (1, 1), "VALID", dimension_numbers=dn)
    y = jax.nn.relu(y + params["conv3_b"][None, :, None, None])
    y = y.reshape(y.shape[0], -1)
    y = y @ params["fc1_w"] + params["fc1_b"]
    y = y @ params["fcOut_w"] + params["fcOut_b"]
    return jnp.concatenate([jnp.tanh(y[:, :1]), jax.nn.sigmoid(y[:, 1:])], axis=1)


if __name__ == "__main__":
    key = jax.random.PRNGKey(0)
    pkey, xkey = jax.random.split(key)
    params = _init_params(pkey, entrada=4, saida=3)
    packed = pack_params(params)

    # fc1 expects 1568 = 32*7*7 features, which forces the 84x84 (Atari) input size.
    x = jax.random.normal(xkey, (2, 4, 84, 84), dtype=jnp.float32)

    out = forward(packed, x)
    jax.block_until_ready(out)
    assert out.shape == (2, 3)

    ref = _reference_forward(params, x)
    max_err = float(jnp.max(jnp.abs(out - ref)))
    assert max_err < 5e-2, f"mismatch vs f32 reference: max abs err = {max_err}"

    print("KERNEL_OK")
</pallas_src>

<mosaic_0001>
module attributes {stable_mosaic.version = 11 : i64} {
  func.func @kernel(%arg0: i32, %arg1: memref<2x256x400xbf16, #tpu.memory_space<vmem>>, %arg2: memref<32x256xbf16, #tpu.memory_space<vmem>>, %arg3: memref<32x1xf32, #tpu.memory_space<vmem>>, %arg4: memref<400x2048xbf16, #tpu.memory_space<vmem>>, %arg5: memref<64x512xbf16, #tpu.memory_space<vmem>>, %arg6: memref<64x1xf32, #tpu.memory_space<vmem>>, %arg7: memref<128x1152xbf16, #tpu.memory_space<vmem>>, %arg8: memref<32x576xbf16, #tpu.memory_space<vmem>>, %arg9: memref<32x1xf32, #tpu.memory_space<vmem>>, %arg10: memref<4096x512xbf16, #tpu.memory_space<vmem>>, %arg11: memref<1x512xf32, #tpu.memory_space<vmem>>, %arg12: memref<512x128xbf16, #tpu.memory_space<vmem>>, %arg13: memref<1x128xf32, #tpu.memory_space<vmem>>, %arg14: memref<2x128xf32, #tpu.memory_space<vmem>>) attributes {dimension_semantics = [#tpu.dimension_semantics<parallel>], iteration_bounds = array<i64: 1>, scalar_prefetch = 0 : i64, scratch_operands = 0 : i64, tpu.core_type = #tpu.core_type<tc>, window_params = [{transform_indices = @transform_0, window_bounds = array<i64: 2, 256, 400>}, {pipeline_mode = #tpu.pipeline_mode<synchronous>, transform_indices = @transform_1, window_bounds = array<i64: 32, 256>}, {pipeline_mode = #tpu.pipeline_mode<synchronous>, transform_indices = @transform_2, window_bounds = array<i64: 32, 1>}, {pipeline_mode = #tpu.pipeline_mode<synchronous>, transform_indices = @transform_3, window_bounds = array<i64: 400, 2048>}, {pipeline_mode = #tpu.pipeline_mode<synchronous>, transform_indices = @transform_4, window_bounds = array<i64: 64, 512>}, {pipeline_mode = #tpu.pipeline_mode<synchronous>, transform_indices = @transform_5, window_bounds = array<i64: 64, 1>}, {pipeline_mode = #tpu.pipeline_mode<synchronous>, transform_indices = @transform_6, window_bounds = array<i64: 128, 1152>}, {pipeline_mode = #tpu.pipeline_mode<synchronous>, transform_indices = @transform_7, window_bounds = array<i64: 32, 576>}, {pipeline_mode = #tpu.pipeline_mode<synchronous>, transform_indices = @transform_8, window_bounds = array<i64: 32, 1>}, {pipeline_mode = #tpu.pipeline_mode<synchronous>, transform_indices = @transform_9, window_bounds = array<i64: 4096, 512>}, {pipeline_mode = #tpu.pipeline_mode<synchronous>, transform_indices = @transform_10, window_bounds = array<i64: 1, 512>}, {pipeline_mode = #tpu.pipeline_mode<synchronous>, transform_indices = @transform_11, window_bounds = array<i64: 512, 128>}, {pipeline_mode = #tpu.pipeline_mode<synchronous>, transform_indices = @transform_12, window_bounds = array<i64: 1, 128>}, {transform_indices = @transform_13, window_bounds = array<i64: 2, 128>}]} {
    %c0 = arith.constant 0 : index
    %c0_0 = arith.constant 0 : index
    %0 = vector.load %arg2[%c0, %c0_0] : memref<32x256xbf16, #tpu.memory_space<vmem>>, vector<32x256xbf16>
    %c0_1 = arith.constant 0 : index
    %c0_2 = arith.constant 0 : index
    %1 = vector.load %arg3[%c0_1, %c0_2] : memref<32x1xf32, #tpu.memory_space<vmem>>, vector<32x1xf32>
    %c0_3 = arith.constant 0 : index
    %c0_4 = arith.constant 0 : index
    %c0_5 = arith.constant 0 : index
    %2 = vector.load %arg1[%c0_3, %c0_4, %c0_5] : memref<2x256x400xbf16, #tpu.memory_space<vmem>>, vector<1x256x400xbf16>
    %3 = vector.shape_cast %2 : vector<1x256x400xbf16> to vector<256x400xbf16>
    %cst = arith.constant dense<0.000000e+00> : vector<32x400xf32>
    %4 = tpu.matmul %0, %3, %cst {dimension_numbers = #tpu.dot_dimension_numbers<[1], [0], [0], [1], [0, 0, 1, 1], [], []>} : vector<32x256xbf16>, vector<256x400xbf16>, vector<32x400xf32> -> vector<32x400xf32>
    %5 = vector.broadcast %1 : vector<32x1xf32> to vector<32x400xf32>
    %6 = arith.addf %4, %5 : vector<32x400xf32>
    %cst_6 = arith.constant 0.000000e+00 : f32
    %7 = vector.broadcast %cst_6 : f32 to vector<32x400xf32>
    %8 = arith.maximumf %6, %7 : vector<32x400xf32>
    %9 = arith.truncf %8 : vector<32x400xf32> to vector<32x400xbf16>
    %c1 = arith.constant 1 : index
    %c0_7 = arith.constant 0 : index
    %c0_8 = arith.constant 0 : index
    %10 = vector.load %arg1[%c1, %c0_7, %c0_8] : memref<2x256x400xbf16, #tpu.memory_space<vmem>>, vector<1x256x400xbf16>
    %11 = vector.shape_cast %10 : vector<1x256x400xbf16> to vector<256x400xbf16>
    %cst_9 = arith.constant dense<0.000000e+00> : vector<32x400xf32>
    %12 = tpu.matmul %0, %11, %cst_9 {dimension_numbers = #tpu.dot_dimension_numbers<[1], [0], [0], [1], [0, 0, 1, 1], [], []>} : vector<32x256xbf16>, vector<256x400xbf16>, vector<32x400xf32> -> vector<32x400xf32>
    %13 = vector.broadcast %1 : vector<32x1xf32> to vector<32x400xf32>
    %14 = arith.addf %12, %13 : vector<32x400xf32>
    %cst_10 = arith.constant 0.000000e+00 : f32
    %15 = vector.broadcast %cst_10 : f32 to vector<32x400xf32>
    %16 = arith.maximumf %14, %15 : vector<32x400xf32>
    %17 = arith.truncf %16 : vector<32x400xf32> to vector<32x400xbf16>
    %18 = tpu.concatenate %9, %17 in 0 : vector<32x400xbf16>, vector<32x400xbf16> -> vector<64x400xbf16>
    %c0_11 = arith.constant 0 : index
    %c0_12 = arith.constant 0 : index
    %19 = vector.load %arg4[%c0_11, %c0_12] : memref<400x2048xbf16, #tpu.memory_space<vmem>>, vector<400x2048xbf16>
    %cst_13 = arith.constant dense<0.000000e+00> : vector<64x2048xf32>
    %20 = tpu.matmul %18, %19, %cst_13 {dimension_numbers = #tpu.dot_dimension_numbers<[1], [0], [0], [1], [0, 0, 1, 1], [], []>} : vector<64x400xbf16>, vector<400x2048xbf16>, vector<64x2048xf32> -> vector<64x2048xf32>
    %21 = arith.truncf %20 : vector<64x2048xf32> to vector<64x2048xbf16>
    %22 = vector.extract_strided_slice %21 {offsets = [0, 0], sizes = [32, 128], strides = [1, 1]} : vector<64x2048xbf16> to vector<32x128xbf16>
    %23 = vector.extract_strided_slice %21 {offsets = [0, 128], sizes = [32, 128], strides = [1, 1]} : vector<64x2048xbf16> to vector<32x128xbf16>
    %24 = vector.extract_strided_slice %21 {offsets = [0, 256], sizes = [32, 128], strides = [1, 1]} : vector<64x2048xbf16> to vector<32x128xbf16>
    %25 = vector.extract_strided_slice %21 {offsets = [0, 384], sizes = [32, 128], strides = [1, 1]} : vector<64x2048xbf16> to vector<32x128xbf16>
    %26 = vector.extract_strided_slice %21 {offsets = [0, 512], sizes = [32, 128], strides = [1, 1]} : vector<64x2048xbf16> to vector<32x128xbf16>
    %27 = vector.extract_strided_slice %21 {offsets = [0, 640], sizes = [32, 128], strides = [1, 1]} : vector<64x2048xbf16> to vector<32x128xbf16>
    %28 = vector.extract_strided_slice %21 {offsets = [0, 768], sizes = [32, 128], strides = [1, 1]} : vector<64x2048xbf16> to vector<32x128xbf16>
    %29 = vector.extract_strided_slice %21 {offsets = [0, 896], sizes = [32, 128], strides = [1, 1]} : vector<64x2048xbf16> to vector<32x128xbf16>
    %30 = vector.extract_strided_slice %21 {offsets = [0, 1024], sizes = [32, 128], strides = [1, 1]} : vector<64x2048xbf16> to vector<32x128xbf16>
    %31 = vector.extract_strided_slice %21 {offsets = [0, 1152], sizes = [32, 128], strides = [1, 1]} : vector<64x2048xbf16> to vector<32x128xbf16>
    %32 = vector.extract_strided_slice %21 {offsets = [0, 1280], sizes = [32, 128], strides = [1, 1]} : vector<64x2048xbf16> to vector<32x128xbf16>
    %33 = vector.extract_strided_slice %21 {offsets = [0, 1408], sizes = [32, 128], strides = [1, 1]} : vector<64x2048xbf16> to vector<32x128xbf16>
    %34 = vector.extract_strided_slice %21 {offsets = [0, 1536], sizes = [32, 128], strides = [1, 1]} : vector<64x2048xbf16> to vector<32x128xbf16>
    %35 = vector.extract_strided_slice %21 {offsets = [0, 1664], sizes = [32, 128], strides = [1, 1]} : vector<64x2048xbf16> to vector<32x128xbf16>
    %36 = vector.extract_strided_slice %21 {offsets = [0, 1792], sizes = [32, 128], strides = [1, 1]} : vector<64x2048xbf16> to vector<32x128xbf16>
    %37 = vector.extract_strided_slice %21 {offsets = [0, 1920], sizes = [32, 128], strides = [1, 1]} : vector<64x2048xbf16> to vector<32x128xbf16>
    %38 = tpu.concatenate %22, %23, %24, %25, %26, %27, %28, %29, %30, %31, %32, %33, %34, %35, %36, %37 in 0 : vector<32x128xbf16>, vector<32x128xbf16>, vector<32x128xbf16>, vector<32x128xbf16>, vector<32x128xbf16>, vector<32x128xbf16>, vector<32x128xbf16>, vector<32x128xbf16>, vector<32x128xbf16>, vector<32x128xbf16>, vector<32x128xbf16>, vector<32x128xbf16>, vector<32x128xbf16>, vector<32x128xbf16>, vector<32x128xbf16>, vector<32x128xbf16> -> vector<512x128xbf16>
    %39 = vector.extract_strided_slice %21 {offsets = [32, 0], sizes = [32, 128], strides = [1, 1]} : vector<64x2048xbf16> to vector<32x128xbf16>
    %40 = vector.extract_strided_slice %21 {offsets = [32, 128], sizes = [32, 128], strides = [1, 1]} : vector<64x2048xbf16> to vector<32x128xbf16>
    %41 = vector.extract_strided_slice %21 {offsets = [32, 256], sizes = [32, 128], strides = [1, 1]} : vector<64x2048xbf16> to vector<32x128xbf16>
    %42 = vector.extract_strided_slice %21 {offsets = [32, 384], sizes = [32, 128], strides = [1, 1]} : vector<64x2048xbf16> to vector<32x128xbf16>
    %43 = vector.extract_strided_slice %21 {offsets = [32, 512], sizes = [32, 128], strides = [1, 1]} : vector<64x2048xbf16> to vector<32x128xbf16>
    %44 = vector.extract_strided_slice %21 {offsets = [32, 640], sizes = [32, 128], strides = [1, 1]} : vector<64x2048xbf16> to vector<32x128xbf16>
    %45 = vector.extract_strided_slice %21 {offsets = [32, 768], sizes = [32, 128], strides = [1, 1]} : vector<64x2048xbf16> to vector<32x128xbf16>
    %46 = vector.extract_strided_slice %21 {offsets = [32, 896], sizes = [32, 128], strides = [1, 1]} : vector<64x2048xbf16> to vector<32x128xbf16>
    %47 = vector.extract_strided_slice %21 {offsets = [32, 1024], sizes = [32, 128], strides = [1, 1]} : vector<64x2048xbf16> to vector<32x128xbf16>
    %48 = vector.extract_strided_slice %21 {offsets = [32, 1152], sizes = [32, 128], strides = [1, 1]} : vector<64x2048xbf16> to vector<32x128xbf16>
    %49 = vector.extract_strided_slice %21 {offsets = [32, 1280], sizes = [32, 128], strides = [1, 1]} : vector<64x2048xbf16> to vector<32x128xbf16>
    %50 = vector.extract_strided_slice %21 {offsets = [32, 1408], sizes = [32, 128], strides = [1, 1]} : vector<64x2048xbf16> to vector<32x128xbf16>
    %51 = vector.extract_strided_slice %21 {offsets = [32, 1536], sizes = [32, 128], strides = [1, 1]} : vector<64x2048xbf16> to vector<32x128xbf16>
    %52 = vector.extract_strided_slice %21 {offsets = [32, 1664], sizes = [32, 128], strides = [1, 1]} : vector<64x2048xbf16> to vector<32x128xbf16>
    %53 = vector.extract_strided_slice %21 {offsets = [32, 1792], sizes = [32, 128], strides = [1, 1]} : vector<64x2048xbf16> to vector<32x128xbf16>
    %54 = vector.extract_strided_slice %21 {offsets = [32, 1920], sizes = [32, 128], strides = [1, 1]} : vector<64x2048xbf16> to vector<32x128xbf16>
    %55 = tpu.concatenate %39, %40, %41, %42, %43, %44, %45, %46, %47, %48, %49, %50, %51, %52, %53, %54 in 0 : vector<32x128xbf16>, vector<32x128xbf16>, vector<32x128xbf16>, vector<32x128xbf16>, vector<32x128xbf16>, vector<32x128xbf16>, vector<32x128xbf16>, vector<32x128xbf16>, vector<32x128xbf16>, vector<32x128xbf16>, vector<32x128xbf16>, vector<32x128xbf16>, vector<32x128xbf16>, vector<32x128xbf16>, vector<32x128xbf16>, vector<32x128xbf16> -> vector<512x128xbf16>
    %56 = tpu.concatenate %38, %55 in 1 : vector<512x128xbf16>, vector<512x128xbf16> -> vector<512x256xbf16>
    %c0_14 = arith.constant 0 : index
    %c0_15 = arith.constant 0 : index
    %57 = vector.load %arg5[%c0_14, %c0_15] : memref<64x512xbf16, #tpu.memory_space<vmem>>, vector<64x512xbf16>
    %cst_16 = arith.constant dense<0.000000e+00> : vector<64x256xf32>
    %58 = tpu.matmul %57, %56, %cst_16 {dimension_numbers = #tpu.dot_dimension_numbers<[1], [0], [0], [1], [0, 0, 1, 1], [], []>} : vector<64x512xbf16>, vector<512x256xbf16>, vector<64x256xf32> -> vector<64x256xf32>
    %c0_17 = arith.constant 0 : index
    %c0_18 = arith.constant 0 : index
    %59 = vector.load %arg6[%c0_17, %c0_18] : memref<64x1xf32, #tpu.memory_space<vmem>>, vector<64x1xf32>
    %60 = vector.broadcast %59 : vector<64x1xf32> to vector<64x256xf32>
    %61 = arith.addf %58, %60 : vector<64x256xf32>
    %cst_19 = arith.constant 0.000000e+00 : f32
    %62 = vector.broadcast %cst_19 : f32 to vector<64x256xf32>
    %63 = arith.maximumf %61, %62 : vector<64x256xf32>
    %64 = arith.truncf %63 : vector<64x256xf32> to vector<64x256xbf16>
    %65 = vector.extract_strided_slice %64 {offsets = [0, 0], sizes = [64, 128], strides = [1, 1]} : vector<64x256xbf16> to vector<64x128xbf16>
    %66 = vector.extract_strided_slice %64 {offsets = [0, 128], sizes = [64, 128], strides = [1, 1]} : vector<64x256xbf16> to vector<64x128xbf16>
    %67 = tpu.concatenate %65, %66 in 0 : vector<64x128xbf16>, vector<64x128xbf16> -> vector<128x128xbf16>
    %c0_20 = arith.constant 0 : index
    %c0_21 = arith.constant 0 : index
    %68 = vector.load %arg7[%c0_20, %c0_21] : memref<128x1152xbf16, #tpu.memory_space<vmem>>, vector<128x1152xbf16>
    %cst_22 = arith.constant dense<0.000000e+00> : vector<128x1152xf32>
    %69 = tpu.matmul %67, %68, %cst_22 {dimension_numbers = #tpu.dot_dimension_numbers<[1], [0], [0], [1], [0, 0, 1, 1], [], []>} : vector<128x128xbf16>, vector<128x1152xbf16>, vector<128x1152xf32> -> vector<128x1152xf32>
    %70 = arith.truncf %69 : vector<128x1152xf32> to vector<128x1152xbf16>
    %71 = vector.extract_strided_slice %70 {offsets = [0, 0], sizes = [64, 128], strides = [1, 1]} : vector<128x1152xbf16> to vector<64x128xbf16>
    %72 = vector.extract_strided_slice %70 {offsets = [0, 128], sizes = [64, 128], strides = [1, 1]} : vector<128x1152xbf16> to vector<64x128xbf16>
    %73 = vector.extract_strided_slice %70 {offsets = [0, 256], sizes = [64, 128], strides = [1, 1]} : vector<128x1152xbf16> to vector<64x128xbf16>
    %74 = vector.extract_strided_slice %70 {offsets = [0, 384], sizes = [64, 128], strides = [1, 1]} : vector<128x1152xbf16> to vector<64x128xbf16>
    %75 = vector.extract_strided_slice %70 {offsets = [0, 512], sizes = [64, 128], strides = [1, 1]} : vector<128x1152xbf16> to vector<64x128xbf16>
    %76 = vector.extract_strided_slice %70 {offsets = [0, 640], sizes = [64, 128], strides = [1, 1]} : vector<128x1152xbf16> to vector<64x128xbf16>
    %77 = vector.extract_strided_slice %70 {offsets = [0, 768], sizes = [64, 128], strides = [1, 1]} : vector<128x1152xbf16> to vector<64x128xbf16>
    %78 = vector.extract_strided_slice %70 {offsets = [0, 896], sizes = [64, 128], strides = [1, 1]} : vector<128x1152xbf16> to vector<64x128xbf16>
    %79 = vector.extract_strided_slice %70 {offsets = [0, 1024], sizes = [64, 128], strides = [1, 1]} : vector<128x1152xbf16> to vector<64x128xbf16>
    %80 = tpu.concatenate %71, %72, %73, %74, %75, %76, %77, %78, %79 in 0 : vector<64x128xbf16>, vector<64x128xbf16>, vector<64x128xbf16>, vector<64x128xbf16>, vector<64x128xbf16>, vector<64x128xbf16>, vector<64x128xbf16>, vector<64x128xbf16>, vector<64x128xbf16> -> vector<576x128xbf16>
    %81 = vector.extract_strided_slice %70 {offsets = [64, 0], sizes = [64, 128], strides = [1, 1]} : vector<128x1152xbf16> to vector<64x128xbf16>
    %82 = vector.extract_strided_slice %70 {offsets = [64, 128], sizes = [64, 128], strides = [1, 1]} : vector<128x1152xbf16> to vector<64x128xbf16>
    %83 = vector.extract_strided_slice %70 {offsets = [64, 256], sizes = [64, 128], strides = [1, 1]} : vector<128x1152xbf16> to vector<64x128xbf16>
    %84 = vector.extract_strided_slice %70 {offsets = [64, 384], sizes = [64, 128], strides = [1, 1]} : vector<128x1152xbf16> to vector<64x128xbf16>
    %85 = vector.extract_strided_slice %70 {offsets = [64, 512], sizes = [64, 128], strides = [1, 1]} : vector<128x1152xbf16> to vector<64x128xbf16>
    %86 = vector.extract_strided_slice %70 {offsets = [64, 640], sizes = [64, 128], strides = [1, 1]} : vector<128x1152xbf16> to vector<64x128xbf16>
    %87 = vector.extract_strided_slice %70 {offsets = [64, 768], sizes = [64, 128], strides = [1, 1]} : vector<128x1152xbf16> to vector<64x128xbf16>
    %88 = vector.extract_strided_slice %70 {offsets = [64, 896], sizes = [64, 128], strides = [1, 1]} : vector<128x1152xbf16> to vector<64x128xbf16>
    %89 = vector.extract_strided_slice %70 {offsets = [64, 1024], sizes = [64, 128], strides = [1, 1]} : vector<128x1152xbf16> to vector<64x128xbf16>
    %90 = tpu.concatenate %81, %82, %83, %84, %85, %86, %87, %88, %89 in 0 : vector<64x128xbf16>, vector<64x128xbf16>, vector<64x128xbf16>, vector<64x128xbf16>, vector<64x128xbf16>, vector<64x128xbf16>, vector<64x128xbf16>, vector<64x128xbf16>, vector<64x128xbf16> -> vector<576x128xbf16>
    %91 = tpu.concatenate %80, %90 in 1 : vector<576x128xbf16>, vector<576x128xbf16> -> vector<576x256xbf16>
    %c0_23 = arith.constant 0 : index
    %c0_24 = arith.constant 0 : index
    %92 = vector.load %arg8[%c0_23, %c0_24] : memref<32x576xbf16, #tpu.memory_space<vmem>>, vector<32x576xbf16>
    %cst_25 = arith.constant dense<0.000000e+00> : vector<32x256xf32>
    %93 = tpu.matmul %92, %91, %cst_25 {dimension_numbers = #tpu.dot_dimension_numbers<[1], [0], [0], [1], [0, 0, 1, 1], [], []>} : vector<32x576xbf16>, vector<576x256xbf16>, vector<32x256xf32> -> vector<32x256xf32>
    %c0_26 = arith.constant 0 : index
    %c0_27 = arith.constant 0 : index
    %94 = vector.load %arg9[%c0_26, %c0_27] : memref<32x1xf32, #tpu.memory_space<vmem>>, vector<32x1xf32>
    %95 = vector.broadcast %94 : vector<32x1xf32> to vector<32x256xf32>
    %96 = arith.addf %93, %95 : vector<32x256xf32>
    %cst_28 = arith.constant 0.000000e+00 : f32
    %97 = vector.broadcast %cst_28 : f32 to vector<32x256xf32>
    %98 = arith.maximumf %96, %97 : vector<32x256xf32>
    %99 = vector.extract_strided_slice %98 {offsets = [0, 0], sizes = [1, 128], strides = [1, 1]} : vector<32x256xf32> to vector<1x128xf32>
    %100 = vector.extract_strided_slice %98 {offsets = [1, 0], sizes = [1, 128], strides = [1, 1]} : vector<32x256xf32> to vector<1x128xf32>
    %101 = vector.extract_strided_slice %98 {offsets = [2, 0], sizes = [1, 128], strides = [1, 1]} : vector<32x256xf32> to vector<1x128xf32>
    %102 = vector.extract_strided_slice %98 {offsets = [3, 0], sizes = [1, 128], strides = [1, 1]} : vector<32x256xf32> to vector<1x128xf32>
    %103 = vector.extract_strided_slice %98 {offsets = [4, 0], sizes = [1, 128], strides = [1, 1]} : vector<32x256xf32> to vector<1x128xf32>
    %104 = vector.extract_strided_slice %98 {offsets = [5, 0], sizes = [1, 128], strides = [1, 1]} : vector<32x256xf32> to vector<1x128xf32>
    %105 = vector.extract_strided_slice %98 {offsets = [6, 0], sizes = [1, 128], strides = [1, 1]} : vector<32x256xf32> to vector<1x128xf32>
    %106 = vector.extract_strided_slice %98 {offsets = [7, 0], sizes = [1, 128], strides = [1, 1]} : vector<32x256xf32> to vector<1x128xf32>
    %107 = vector.extract_strided_slice %98 {offsets = [8, 0], sizes = [1, 128], strides = [1, 1]} : vector<32x256xf32> to vector<1x128xf32>
    %108 = vector.extract_strided_slice %98 {offsets = [9, 0], sizes = [1, 128], strides = [1, 1]} : vector<32x256xf32> to vector<1x128xf32>
    %109 = vector.extract_strided_slice %98 {offsets = [10, 0], sizes = [1, 128], strides = [1, 1]} : vector<32x256xf32> to vector<1x128xf32>
    %110 = vector.extract_strided_slice %98 {offsets = [11, 0], sizes = [1, 128], strides = [1, 1]} : vector<32x256xf32> to vector<1x128xf32>
    %111 = vector.extract_strided_slice %98 {offsets = [12, 0], sizes = [1, 128], strides = [1, 1]} : vector<32x256xf32> to vector<1x128xf32>
    %112 = vector.extract_strided_slice %98 {offsets = [13, 0], sizes = [1, 128], strides = [1, 1]} : vector<32x256xf32> to vector<1x128xf32>
    %113 = vector.extract_strided_slice %98 {offsets = [14, 0], sizes = [1, 128], strides = [1, 1]} : vector<32x256xf32> to vector<1x128xf32>
    %114 = vector.extract_strided_slice %98 {offsets = [15, 0], sizes = [1, 128], strides = [1, 1]} : vector<32x256xf32> to vector<1x128xf32>
    %115 = vector.extract_strided_slice %98 {offsets = [16, 0], sizes = [1, 128], strides = [1, 1]} : vector<32x256xf32> to vector<1x128xf32>
    %116 = vector.extract_strided_slice %98 {offsets = [17, 0], sizes = [1, 128], strides = [1, 1]} : vector<32x256xf32> to vector<1x128xf32>
    %117 = vector.extract_strided_slice %98 {offsets = [18, 0], sizes = [1, 128], strides = [1, 1]} : vector<32x256xf32> to vector<1x128xf32>
    %118 = vector.extract_strided_slice %98 {offsets = [19, 0], sizes = [1, 128], strides = [1, 1]} : vector<32x256xf32> to vector<1x128xf32>
    %119 = vector.extract_strided_slice %98 {offsets = [20, 0], sizes = [1, 128], strides = [1, 1]} : vector<32x256xf32> to vector<1x128xf32>
    %120 = vector.extract_strided_slice %98 {offsets = [21, 0], sizes = [1, 128], strides = [1, 1]} : vector<32x256xf32> to vector<1x128xf32>
    %121 = vector.extract_strided_slice %98 {offsets = [22, 0], sizes = [1, 128], strides = [1, 1]} : vector<32x256xf32> to vector<1x128xf32>
    %122 = vector.extract_strided_slice %98 {offsets = [23, 0], sizes = [1, 128], strides = [1, 1]} : vector<32x256xf32> to vector<1x128xf32>
    %123 = vector.extract_strided_slice %98 {offsets = [24, 0], sizes = [1, 128], strides = [1, 1]} : vector<32x256xf32> to vector<1x128xf32>
    %124 = vector.extract_strided_slice %98 {offsets = [25, 0], sizes = [1, 128], strides = [1, 1]} : vector<32x256xf32> to vector<1x128xf32>
    %125 = vector.extract_strided_slice %98 {offsets = [26, 0], sizes = [1, 128], strides = [1, 1]} : vector<32x256xf32> to vector<1x128xf32>
    %126 = vector.extract_strided_slice %98 {offsets = [27, 0], sizes = [1, 128], strides = [1, 1]} : vector<32x256xf32> to vector<1x128xf32>
    %127 = vector.extract_strided_slice %98 {offsets = [28, 0], sizes = [1, 128], strides = [1, 1]} : vector<32x256xf32> to vector<1x128xf32>
    %128 = vector.extract_strided_slice %98 {offsets = [29, 0], sizes = [1, 128], strides = [1, 1]} : vector<32x256xf32> to vector<1x128xf32>
    %129 = vector.extract_strided_slice %98 {offsets = [30, 0], sizes = [1, 128], strides = [1, 1]} : vector<32x256xf32> to vector<1x128xf32>
    %130 = vector.extract_strided_slice %98 {offsets = [31, 0], sizes = [1, 128], strides = [1, 1]} : vector<32x256xf32> to vector<1x128xf32>
    %131 = tpu.concatenate %99, %100, %101, %102, %103, %104, %105, %106, %107, %108, %109, %110, %111, %112, %113, %114 in 1 : vector<1x128xf32>, vector<1x128xf32>, vector<1x128xf32>, vector<1x128xf32>, vector<1x128xf32>, vector<1x128xf32>, vector<1x128xf32>, vector<1x128xf32>, vector<1x128xf32>, vector<1x128xf32>, vector<1x128xf32>, vector<1x128xf32>, vector<1x128xf32>, vector<1x128xf32>, vector<1x128xf32>, vector<1x128xf32> -> vector<1x2048xf32>
    %132 = tpu.concatenate %115, %116, %117, %118, %119, %120, %121, %122, %123, %124, %125, %126, %127, %128, %129, %130 in 1 : vector<1x128xf32>, vector<1x128xf32>, vector<1x128xf32>, vector<1x128xf32>, vector<1x128xf32>, vector<1x128xf32>, vector<1x128xf32>, vector<1x128xf32>, vector<1x128xf32>, vector<1x128xf32>, vector<1x128xf32>, vector<1x128xf32>, vector<1x128xf32>, vector<1x128xf32>, vector<1x128xf32>, vector<1x128xf32> -> vector<1x2048xf32>
    %133 = tpu.concatenate %131, %132 in 1 : vector<1x2048xf32>, vector<1x2048xf32> -> vector<1x4096xf32>
    %134 = vector.extract_strided_slice %98 {offsets = [0, 128], sizes = [1, 128], strides = [1, 1]} : vector<32x256xf32> to vector<1x128xf32>
    %135 = vector.extract_strided_slice %98 {offsets = [1, 128], sizes = [1, 128], strides = [1, 1]} : vector<32x256xf32> to vector<1x128xf32>
    %136 = vector.extract_strided_slice %98 {offsets = [2, 128], sizes = [1, 128], strides = [1, 1]} : vector<32x256xf32> to vector<1x128xf32>
    %137 = vector.extract_strided_slice %98 {offsets = [3, 128], sizes = [1, 128], strides = [1, 1]} : vector<32x256xf32> to vector<1x128xf32>
    %138 = vector.extract_strided_slice %98 {offsets = [4, 128], sizes = [1, 128], strides = [1, 1]} : vector<32x256xf32> to vector<1x128xf32>
    %139 = vector.extract_strided_slice %98 {offsets = [5, 128], sizes = [1, 128], strides = [1, 1]} : vector<32x256xf32> to vector<1x128xf32>
    %140 = vector.extract_strided_slice %98 {offsets = [6, 128], sizes = [1, 128], strides = [1, 1]} : vector<32x256xf32> to vector<1x128xf32>
    %141 = vector.extract_strided_slice %98 {offsets = [7, 128], sizes = [1, 128], strides = [1, 1]} : vector<32x256xf32> to vector<1x128xf32>
    %142 = vector.extract_strided_slice %98 {offsets = [8, 128], sizes = [1, 128], strides = [1, 1]} : vector<32x256xf32> to vector<1x128xf32>
    %143 = vector.extract_strided_slice %98 {offsets = [9, 128], sizes = [1, 128], strides = [1, 1]} : vector<32x256xf32> to vector<1x128xf32>
    %144 = vector.extract_strided_slice %98 {offsets = [10, 128], sizes = [1, 128], strides = [1, 1]} : vector<32x256xf32> to vector<1x128xf32>
    %145 = vector.extract_strided_slice %98 {offsets = [11, 128], sizes = [1, 128], strides = [1, 1]} : vector<32x256xf32> to vector<1x128xf32>
    %146 = vector.extract_strided_slice %98 {offsets = [12, 128], sizes = [1, 128], strides = [1, 1]} : vector<32x256xf32> to vector<1x128xf32>
    %147 = vector.extract_strided_slice %98 {offsets = [13, 128], sizes = [1, 128], strides = [1, 1]} : vector<32x256xf32> to vector<1x128xf32>
    %148 = vector.extract_strided_slice %98 {offsets = [14, 128], sizes = [1, 128], strides = [1, 1]} : vector<32x256xf32> to vector<1x128xf32>
    %149 = vector.extract_strided_slice %98 {offsets = [15, 128], sizes = [1, 128], strides = [1, 1]} : vector<32x256xf32> to vector<1x128xf32>
    %150 = vector.extract_strided_slice %98 {offsets = [16, 128], sizes = [1, 128], strides = [1, 1]} : vector<32x256xf32> to vector<1x128xf32>
    %151 = vector.extract_strided_slice %98 {offsets = [17, 128], sizes = [1, 128], strides = [1, 1]} : vector<32x256xf32> to vector<1x128xf32>
    %152 = vector.extract_strided_slice %98 {offsets = [18, 128], sizes = [1, 128], strides = [1, 1]} : vector<32x256xf32> to vector<1x128xf32>
    %153 = vector.extract_strided_slice %98 {offsets = [19, 128], sizes = [1, 128], strides = [1, 1]} : vector<32x256xf32> to vector<1x128xf32>
    %154 = vector.extract_strided_slice %98 {offsets = [20, 128], sizes = [1, 128], strides = [1, 1]} : vector<32x256xf32> to vector<1x128xf32>
    %155 = vector.extract_strided_slice %98 {offsets = [21, 128], sizes = [1, 128], strides = [1, 1]} : vector<32x256xf32> to vector<1x128xf32>
    %156 = vector.extract_strided_slice %98 {offsets = [22, 128], sizes = [1, 128], strides = [1, 1]} : vector<32x256xf32> to vector<1x128xf32>
    %157 = vector.extract_strided_slice %98 {offsets = [23, 128], sizes = [1, 128], strides = [1, 1]} : vector<32x256xf32> to vector<1x128xf32>
    %158 = vector.extract_strided_slice %98 {offsets = [24, 128], sizes = [1, 128], strides = [1, 1]} : vector<32x256xf32> to vector<1x128xf32>
    %159 = vector.extract_strided_slice %98 {offsets = [25, 128], sizes = [1, 128], strides = [1, 1]} : vector<32x256xf32> to vector<1x128xf32>
    %160 = vector.extract_strided_slice %98 {offsets = [26, 128], sizes = [1, 128], strides = [1, 1]} : vector<32x256xf32> to vector<1x128xf32>
    %161 = vector.extract_strided_slice %98 {offsets = [27, 128], sizes = [1, 128], strides = [1, 1]} : vector<32x256xf32> to vector<1x128xf32>
    %162 = vector.extract_strided_slice %98 {offsets = [28, 128], sizes = [1, 128], strides = [1, 1]} : vector<32x256xf32> to vector<1x128xf32>
    %163 = vector.extract_strided_slice %98 {offsets = [29, 128], sizes = [1, 128], strides = [1, 1]} : vector<32x256xf32> to vector<1x128xf32>
    %164 = vector.extract_strided_slice %98 {offsets = [30, 128], sizes = [1, 128], strides = [1, 1]} : vector<32x256xf32> to vector<1x128xf32>
    %165 = vector.extract_strided_slice %98 {offsets = [31, 128], sizes = [1, 128], strides = [1, 1]} : vector<32x256xf32> to vector<1x128xf32>
    %166 = tpu.concatenate %134, %135, %136, %137, %138, %139, %140, %141, %142, %143, %144, %145, %146, %147, %148, %149 in 1 : vector<1x128xf32>, vector<1x128xf32>, vector<1x128xf32>, vector<1x128xf32>, vector<1x128xf32>, vector<1x128xf32>, vector<1x128xf32>, vector<1x128xf32>, vector<1x128xf32>, vector<1x128xf32>, vector<1x128xf32>, vector<1x128xf32>, vector<1x128xf32>, vector<1x128xf32>, vector<1x128xf32>, vector<1x128xf32> -> vector<1x2048xf32>
    %167 = tpu.concatenate %150, %151, %152, %153, %154, %155, %156, %157, %158, %159, %160, %161, %162, %163, %164, %165 in 1 : vector<1x128xf32>, vector<1x128xf32>, vector<1x128xf32>, vector<1x128xf32>, vector<1x128xf32>, vector<1x128xf32>, vector<1x128xf32>, vector<1x128xf32>, vector<1x128xf32>, vector<1x128xf32>, vector<1x128xf32>, vector<1x128xf32>, vector<1x128xf32>, vector<1x128xf32>, vector<1x128xf32>, vector<1x128xf32> -> vector<1x2048xf32>
    %168 = tpu.concatenate %166, %167 in 1 : vector<1x2048xf32>, vector<1x2048xf32> -> vector<1x4096xf32>
    %169 = tpu.concatenate %133, %168 in 0 : vector<1x4096xf32>, vector<1x4096xf32> -> vector<2x4096xf32>
    %170 = arith.truncf %169 : vector<2x4096xf32> to vector<2x4096xbf16>
    %c0_29 = arith.constant 0 : index
    %c0_30 = arith.constant 0 : index
    %171 = vector.load %arg10[%c0_29, %c0_30] : memref<4096x512xbf16, #tpu.memory_space<vmem>>, vector<4096x512xbf16>
    %cst_31 = arith.constant dense<0.000000e+00> : vector<2x512xf32>
    %172 = tpu.matmul %170, %171, %cst_31 {dimension_numbers = #tpu.dot_dimension_numbers<[1], [0], [0], [1], [0, 0, 1, 1], [], []>} : vector<2x4096xbf16>, vector<4096x512xbf16>, vector<2x512xf32> -> vector<2x512xf32>
    %c0_32 = arith.constant 0 : index
    %c0_33 = arith.constant 0 : index
    %173 = vector.load %arg11[%c0_32, %c0_33] : memref<1x512xf32, #tpu.memory_space<vmem>>, vector<1x512xf32>
    %174 = vector.broadcast %173 : vector<1x512xf32> to vector<2x512xf32>
    %175 = arith.addf %172, %174 : vector<2x512xf32>
    %176 = arith.truncf %175 : vector<2x512xf32> to vector<2x512xbf16>
    %c0_34 = arith.constant 0 : index
    %c0_35 = arith.constant 0 : index
    %177 = vector.load %arg12[%c0_34, %c0_35] : memref<512x128xbf16, #tpu.memory_space<vmem>>, vector<512x128xbf16>
    %cst_36 = arith.constant dense<0.000000e+00> : vector<2x128xf32>
    %178 = tpu.matmul %176, %177, %cst_36 {dimension_numbers = #tpu.dot_dimension_numbers<[1], [0], [0], [1], [0, 0, 1, 1], [], []>} : vector<2x512xbf16>, vector<512x128xbf16>, vector<2x128xf32> -> vector<2x128xf32>
    %c0_37 = arith.constant 0 : index
    %c0_38 = arith.constant 0 : index
    %179 = vector.load %arg13[%c0_37, %c0_38] : memref<1x128xf32, #tpu.memory_space<vmem>>, vector<1x128xf32>
    %180 = vector.broadcast %179 : vector<1x128xf32> to vector<2x128xf32>
    %181 = arith.addf %178, %180 : vector<2x128xf32>
    %182 = tpu.iota {dimensions = array<i32: 1>} : vector<2x128xi32>
    %c0_i32 = arith.constant 0 : i32
    %183 = vector.broadcast %c0_i32 : i32 to vector<2x128xi32>
    %184 = arith.cmpi eq, %182, %183 : vector<2x128xi32>
    %185 = math.tanh %181 : vector<2x128xf32>
    %186 = arith.negf %181 : vector<2x128xf32>
    %187 = math.exp %186 : vector<2x128xf32>
    %cst_39 = arith.constant 1.000000e+00 : f32
    %188 = vector.broadcast %cst_39 : f32 to vector<2x128xf32>
    %189 = arith.addf %188, %187 : vector<2x128xf32>
    %190 = arith.divf %188, %189 : vector<2x128xf32>
    %191 = arith.select %184, %185, %190 : vector<2x128xi1>, vector<2x128xf32>
    %c0_40 = arith.constant 0 : index
    %c0_41 = arith.constant 0 : index
    %192 = vector.load %arg14[%c0_40, %c0_41] : memref<2x128xf32, #tpu.memory_space<vmem>>, vector<2x128xf32>
    tpu.vector_store %arg14[%c0_40, %c0_41], %191 {strides = array<i32>} : memref<2x128xf32, #tpu.memory_space<vmem>>, vector<2x128xf32>,
    return
  }
  func.func @transform_0(%arg0: i32) -> (i32, i32, i32) {
    %c0_i32 = arith.constant 0 : i32
    %c0_i32_0 = arith.constant 0 : i32
    %c0_i32_1 = arith.constant 0 : i32
    return %arg0, %c0_i32, %c0_i32_0 : i32, i32, i32
  }
  func.func @transform_1(%arg0: i32) -> (i32, i32) {
    %c0_i32 = arith.constant 0 : i32
    %c0_i32_0 = arith.constant 0 : i32
    %c0_i32_1 = arith.constant 0 : i32
    return %c0_i32, %c0_i32_0 : i32, i32
  }
  func.func @transform_2(%arg0: i32) -> (i32, i32) {
    %c0_i32 = arith.constant 0 : i32
    %c0_i32_0 = arith.constant 0 : i32
    %c0_i32_1 = arith.constant 0 : i32
    return %c0_i32, %c0_i32_0 : i32, i32
  }
  func.func @transform_3(%arg0: i32) -> (i32, i32) {
    %c0_i32 = arith.constant 0 : i32
    %c0_i32_0 = arith.constant 0 : i32
    %c0_i32_1 = arith.constant 0 : i32
    return %c0_i32, %c0_i32_0 : i32, i32
  }
  func.func @transform_4(%arg0: i32) -> (i32, i32) {
    %c0_i32 = arith.constant 0 : i32
    %c0_i32_0 = arith.constant 0 : i32
    %c0_i32_1 = arith.constant 0 : i32
    return %c0_i32, %c0_i32_0 : i32, i32
  }
  func.func @transform_5(%arg0: i32) -> (i32, i32) {
    %c0_i32 = arith.constant 0 : i32
    %c0_i32_0 = arith.constant 0 : i32
    %c0_i32_1 = arith.constant 0 : i32
    return %c0_i32, %c0_i32_0 : i32, i32
  }
  func.func @transform_6(%arg0: i32) -> (i32, i32) {
    %c0_i32 = arith.constant 0 : i32
    %c0_i32_0 = arith.constant 0 : i32
    %c0_i32_1 = arith.constant 0 : i32
    return %c0_i32, %c0_i32_0 : i32, i32
  }
  func.func @transform_7(%arg0: i32) -> (i32, i32) {
    %c0_i32 = arith.constant 0 : i32
    %c0_i32_0 = arith.constant 0 : i32
    %c0_i32_1 = arith.constant 0 : i32
    return %c0_i32, %c0_i32_0 : i32, i32
  }
  func.func @transform_8(%arg0: i32) -> (i32, i32) {
    %c0_i32 = arith.constant 0 : i32
    %c0_i32_0 = arith.constant 0 : i32
    %c0_i32_1 = arith.constant 0 : i32
    return %c0_i32, %c0_i32_0 : i32, i32
  }
  func.func @transform_9(%arg0: i32) -> (i32, i32) {
    %c0_i32 = arith.constant 0 : i32
    %c0_i32_0 = arith.constant 0 : i32
    %c0_i32_1 = arith.constant 0 : i32
    return %c0_i32, %c0_i32_0 : i32, i32
  }
  func.func @transform_10(%arg0: i32) -> (i32, i32) {
    %c0_i32 = arith.constant 0 : i32
    %c0_i32_0 = arith.constant 0 : i32
    %c0_i32_1 = arith.constant 0 : i32
    return %c0_i32, %c0_i32_0 : i32, i32
  }
  func.func @transform_11(%arg0: i32) -> (i32, i32) {
    %c0_i32 = arith.constant 0 : i32
    %c0_i32_0 = arith.constant 0 : i32
    %c0_i32_1 = arith.constant 0 : i32
    return %c0_i32, %c0_i32_0 : i32, i32
  }
  func.func @transform_12(%arg0: i32) -> (i32, i32) {
    %c0_i32 = arith.constant 0 : i32
    %c0_i32_0 = arith.constant 0 : i32
    %c0_i32_1 = arith.constant 0 : i32
    return %c0_i32, %c0_i32_0 : i32, i32
  }
  func.func @transform_13(%arg0: i32) -> (i32, i32) {
    %c0_i32 = arith.constant 0 : i32
    %c0_i32_0 = arith.constant 0 : i32
    return %arg0, %c0_i32 : i32, i32
  }
}

</mosaic_0001>

<bundles_post_ra>
// kernel: forward.1
= control target key start
LH: loop header
LB: loop body
LE: loop exit
PB: predicated region body
PF: predicated region fallthrough
CT: control target
= control target key end

     0   :  { %v25225_v2 = vmov 0   ;;  %vm3523_vm0 = vcmask 130048   ;;  %s25211_s0 = inlined_call_operand.vmem [shape: bf16[2,256,400], index: 0, kind: input, shape index: {}]   ;;  %s25212_s1 = inlined_call_operand.vmem [shape: bf16[32,256], index: 1, kind: input, shape index: {}]   ;;  %s25213_s2 = inlined_call_operand.vmem [shape: f32[32,1], index: 2, kind: input, shape index: {}]   ;;  %s25214_s3 = inlined_call_operand.vmem [shape: bf16[400,2048], index: 3, kind: input, shape index: {}]   ;;  %s25215_s4 = inlined_call_operand.vmem [shape: bf16[64,512], index: 4, kind: input, shape index: {}]   ;;  %s25216_s5 = inlined_call_operand.vmem [shape: f32[64,1], index: 5, kind: input, shape index: {}]   ;;  %s25217_s6 = inlined_call_operand.vmem [shape: bf16[128,1152], index: 6, kind: input, shape index: {}]   ;;  %s25218_s7 = inlined_call_operand.vmem [shape: bf16[32,576], index: 7, kind: input, shape index: {}]   ;;  %s25219_s8 = inlined_call_operand.vmem [shape: f32[32,1], index: 8, kind: input, shape index: {}]   ;;  %s25220_s9 = inlined_call_operand.vmem [shape: bf16[4096,512], index: 9, kind: input, shape index: {}]   ;;  %s25221_s10 = inlined_call_operand.vmem [shape: f32[1,512], index: 10, kind: input, shape index: {}]   ;;  %s25222_s11 = inlined_call_operand.vmem [shape: bf16[512,128], index: 11, kind: input, shape index: {}]   ;;  %s25223_s12 = inlined_call_operand.vmem [shape: f32[1,128], index: 12, kind: input, shape index: {}]   ;;  %s25224_s13 = inlined_call_operand.hbm [shape: f32[2,128], index: 13, kind: output, shape index: {}]  }
   0x1   :  { %v16385_v0 = vld [vmem:[%s25211_s0 + $0xe4] ss:$16 sps:$4 sm:$0xff]   ;;  %v16387_v1 = vld [vmem:[%s25211_s0 + $0xec] ss:$16 sps:$4 sm:$0xff]   ;;  %16383 = vset.pattern.permute.xlu0 %v25225_v2  ;;  %16384 = vset.pattern.permute.xlu1 %v25225_v2  ;;  %v16389_v3 = vld [vmem:[%s25211_s0 + $0xe0] ss:$16 sps:$4 sm:$0xff]  }
   0x2   :  { %478 = vmatprep.subr.bf16.mxu0 %v16385_v0  ;;  %v16390_v4 = vld [vmem:[%s25211_s0 + $0xe8] ss:$16 sps:$4 sm:$0xff]   ;;  %531 = vmatprep.subr.bf16.mxu1 %v16387_v1  ;;  %v16391_v5 = vld [vmem:[%s25211_s0 + $0xc4] ss:$16 sps:$4 sm:$0xff]   ;;  %v16393_v6 = vld [vmem:[%s25211_s0 + $0xcc] ss:$16 sps:$4 sm:$0xff]  }
   0x3   :  { %479 = vmatpush1.bf16.msra.mxu0 %v16389_v3  ;;  %532 = vmatpush1.bf16.msra.mxu1 %v16390_v4  ;;  %v16395_v7 = vld [vmem:[%s25211_s0 + $0xc0] ss:$16 sps:$4 sm:$0xff]   ;;  %v16396_v8 = vld [vmem:[%s25211_s0 + $0xc8] ss:$16 sps:$4 sm:$0xff]   ;;  %v16397_v9 = vld [vmem:[%s25211_s0 + $0xa4] ss:$16 sps:$4 sm:$0xff]  }
   0x4   :  { %480 = vmatprep.subr.bf16.mxu0 %v16391_v5  ;;  %533 = vmatprep.subr.bf16.mxu1 %v16393_v6  ;;  %v16399_v10 = vld [vmem:[%s25211_s0 + $0xac] ss:$16 sps:$4 sm:$0xff]   ;;  %v16401_v11 = vld [vmem:[%s25211_s0 + $0xa0] ss:$16 sps:$4 sm:$0xff]   ;;  %v16402_v12 = vld [vmem:[%s25211_s0 + $0xa8] ss:$16 sps:$4 sm:$0xff]  }
   0x5   :  { %v16403_v13 = vld [vmem:[%s25211_s0 + $0x84] ss:$16 sps:$4 sm:$0xff]   ;;  %v16405_v14 = vld [vmem:[%s25211_s0 + $0x8c] ss:$16 sps:$4 sm:$0xff]   ;;  %v16407_v15 = vld [vmem:[%s25211_s0 + $0x80] ss:$16 sps:$4 sm:$0xff]  }
   0x6   :  { %v16408_v16 = vld [vmem:[%s25211_s0 + $0x88] ss:$16 sps:$4 sm:$0xff]   ;;  %v16409_v17 = vld [vmem:[%s25211_s0 + $0x64] ss:$16 sps:$4 sm:$0xff]   ;;  %v16411_v18 = vld [vmem:[%s25211_s0 + $0x6c] ss:$16 sps:$4 sm:$0xff]  }
   0x7   :  { %481 = vmatpush1.bf16.msra.mxu0 %v16395_v7  ;;  %534 = vmatpush1.bf16.msra.mxu1 %v16396_v8  ;;  %v16413_v19 = vld [vmem:[%s25211_s0 + $0x60] ss:$16 sps:$4 sm:$0xff]   ;;  %v16414_v20 = vld [vmem:[%s25211_s0 + $0x68] ss:$16 sps:$4 sm:$0xff]   ;;  %v16415_v21 = vld [vmem:[%s25211_s0 + $0x44] ss:$16 sps:$4 sm:$0xff]  }
   0x8   :  { %482 = vmatprep.subr.bf16.mxu0 %v16397_v9  ;;  %535 = vmatprep.subr.bf16.mxu1 %v16399_v10  ;;  %v16417_v22 = vld [vmem:[%s25211_s0 + $0x4c] ss:$16 sps:$4 sm:$0xff]   ;;  %v16419_v23 = vld [vmem:[%s25211_s0 + $0x40] ss:$16 sps:$4 sm:$0xff]   ;;  %v16420_v24 = vld [vmem:[%s25211_s0 + $0x48] ss:$16 sps:$4 sm:$0xff]  }
   0x9   :  { %v16421_v25 = vld [vmem:[%s25211_s0 + $0x24] ss:$16 sps:$4 sm:$0xff]   ;;  %v16423_v26 = vld [vmem:[%s25211_s0 + $0x2c] ss:$16 sps:$4 sm:$0xff]   ;;  %v16425_v27 = vld [vmem:[%s25211_s0 + $0x20] ss:$16 sps:$4 sm:$0xff]  }
   0xa   :  { %v16426_v28 = vld [vmem:[%s25211_s0 + $0x28] ss:$16 sps:$4 sm:$0xff]   ;;  %v16427_v29 = vld [vmem:[%s25211_s0 + $0x4] ss:$16 sps:$4 sm:$0xff]   ;;  %v16429_v30 = vld [vmem:[%s25211_s0 + $0xc] ss:$16 sps:$4 sm:$0xff]  }
   0xb   :  { %483 = vmatpush1.bf16.msra.mxu0 %v16401_v11  ;;  %536 = vmatpush1.bf16.msra.mxu1 %v16402_v12  ;;  %v16431_v31 = vld [vmem:[%s25211_s0] ss:$16 sps:$4 sm:$0xff]   ;;  %v16432_v32 = vld [vmem:[%s25211_s0 + $0x8] ss:$16 sps:$4 sm:$0xff]   ;;  %v16433_v33 = vld [vmem:[%s25211_s0 + $0x1e4] ss:$16 sps:$4 sm:$0xff]  }
   0xc   :  { %484 = vmatprep.subr.bf16.mxu0 %v16403_v13  ;;  %537 = vmatprep.subr.bf16.mxu1 %v16405_v14  ;;  %v16435_v34 = vld [vmem:[%s25211_s0 + $0x1ec] ss:$16 sps:$4 sm:$0xff]   ;;  %v16437_v35 = vld [vmem:[%s25211_s0 + $0x1e0] ss:$16 sps:$4 sm:$0xff]   ;;  %v16438_v36 = vld [vmem:[%s25211_s0 + $0x1e8] ss:$16 sps:$4 sm:$0xff]  }
   0xd   :  { %v16439_v37 = vld [vmem:[%s25211_s0 + $0x1c4] ss:$16 sps:$4 sm:$0xff]   ;;  %v16441_v38 = vld [vmem:[%s25211_s0 + $0x1cc] ss:$16 sps:$4 sm:$0xff]   ;;  %v16443_v39 = vld [vmem:[%s25211_s0 + $0x1c0] ss:$16 sps:$4 sm:$0xff]  }
   0xe   :  { %v16444_v40 = vld [vmem:[%s25211_s0 + $0x1c8] ss:$16 sps:$4 sm:$0xff]   ;;  %v16445_v41 = vld [vmem:[%s25211_s0 + $0x1a4] ss:$16 sps:$4 sm:$0xff]   ;;  %v16447_v42 = vld [vmem:[%s25211_s0 + $0x1ac] ss:$16 sps:$4 sm:$0xff]  }
   0xf   :  { %485 = vmatpush1.bf16.msra.mxu0 %v16407_v15  ;;  %538 = vmatpush1.bf16.msra.mxu1 %v16408_v16  ;;  %v16449_v43 = vld [vmem:[%s25211_s0 + $0x1a0] ss:$16 sps:$4 sm:$0xff]   ;;  %v16450_v44 = vld [vmem:[%s25211_s0 + $0x1a8] ss:$16 sps:$4 sm:$0xff]   ;;  %v16451_v45 = vld [vmem:[%s25211_s0 + $0x184] ss:$16 sps:$4 sm:$0xff]  }
  0x10   :  { %486 = vmatprep.subr.bf16.mxu0 %v16409_v17  ;;  %539 = vmatprep.subr.bf16.mxu1 %v16411_v18  ;;  %v16453_v46 = vld [vmem:[%s25211_s0 + $0x18c] ss:$16 sps:$4 sm:$0xff]   ;;  %v16455_v47 = vld [vmem:[%s25211_s0 + $0x180] ss:$16 sps:$4 sm:$0xff]   ;;  %v16456_v48 = vld [vmem:[%s25211_s0 + $0x188] ss:$16 sps:$4 sm:$0xff]  }
  0x11   :  { %v18543_v49 = vld [vmem:[%s25212_s1 + $0x4] ss:$8 sps:$4 sm:$0xff]   ;;  %v16461_v52 = vld [vmem:[%s25211_s0 + $0x160] ss:$16 sps:$4 sm:$0xff]   ;;  %v16462_v53 = vld [vmem:[%s25211_s0 + $0x168] ss:$16 sps:$4 sm:$0xff]  }
  0x12   :  { %v16457_v50 = vld [vmem:[%s25211_s0 + $0x164] ss:$16 sps:$4 sm:$0xff]   ;;  %v16459_v51 = vld [vmem:[%s25211_s0 + $0x16c] ss:$16 sps:$4 sm:$0xff]   ;;  %510 = vmatprep.mubr.bf16.mxu0 %v18543_v49  ;;  %563 = vmatprep.mubr.bf16.mxu1 %v18543_v49  ;;  %v16467_v56 = vld [vmem:[%s25211_s0 + $0x140] ss:$16 sps:$4 sm:$0xff]  }
  0x13   :  { %487 = vmatpush1.bf16.msra.mxu0 %v16413_v19  ;;  %540 = vmatpush1.bf16.msra.mxu1 %v16414_v20  ;;  %v16463_v54 = vld [vmem:[%s25211_s0 + $0x144] ss:$16 sps:$4 sm:$0xff]   ;;  %v16465_v55 = vld [vmem:[%s25211_s0 + $0x14c] ss:$16 sps:$4 sm:$0xff]   ;;  %v16468_v57 = vld [vmem:[%s25211_s0 + $0x148] ss:$16 sps:$4 sm:$0xff]  }
  0x14   :  { %488 = vmatprep.subr.bf16.mxu0 %v16415_v21  ;;  %541 = vmatprep.subr.bf16.mxu1 %v16417_v22  ;;  %v16469_v58 = vld [vmem:[%s25211_s0 + $0x124] ss:$16 sps:$4 sm:$0xff]   ;;  %v16471_v59 = vld [vmem:[%s25211_s0 + $0x12c] ss:$16 sps:$4 sm:$0xff]   ;;  %v16473_v60 = vld [vmem:[%s25211_s0 + $0x120] ss:$16 sps:$4 sm:$0xff]  }
  0x15   :  { %v16474_v61 = vld [vmem:[%s25211_s0 + $0x128] ss:$16 sps:$4 sm:$0xff]   ;;  %v16475_v62 = vld [vmem:[%s25211_s0 + $0x104] ss:$16 sps:$4 sm:$0xff]   ;;  %v16477_v63 = vld [vmem:[%s25211_s0 + $0x10c] ss:$16 sps:$4 sm:$0xff]  }
  0x16   :  { %v16479_v0 = vld [vmem:[%s25211_s0 + $0x100] ss:$16 sps:$4 sm:$0xff]   ;;  %v16480_v1 = vld [vmem:[%s25211_s0 + $0x108] ss:$16 sps:$4 sm:$0xff]   ;;  %v16486_v3 = vld [vmem:[%s25211_s0 + $0x2e4] ss:$16 sps:$4 sm:$0xff]  }
  0x17   :  { %489 = vmatpush1.bf16.msra.mxu0 %v16419_v23  ;;  %542 = vmatpush1.bf16.msra.mxu1 %v16420_v24  ;;  %v16489_v4 = vld [vmem:[%s25211_s0 + $0x2ec] ss:$16 sps:$4 sm:$0xff]   ;;  %v18604_v5 = vld [vmem:[%s25212_s1] ss:$8 sps:$4 sm:$0xff]   ;;  %v16492_v8 = vld [vmem:[%s25211_s0 + $0x2c4] ss:$16 sps:$4 sm:$0xff]  }
  0x18   :  { %490 = vmatprep.subr.bf16.mxu0 %v16421_v25  ;;  %543 = vmatprep.subr.bf16.mxu1 %v16423_v26  ;;  %v16484_v6 = vld [vmem:[%s25211_s0 + $0x2e0] ss:$16 sps:$4 sm:$0xff]   ;;  %v16487_v7 = vld [vmem:[%s25211_s0 + $0x2e8] ss:$16 sps:$4 sm:$0xff]   ;;  %v16495_v9 = vld [vmem:[%s25211_s0 + $0x2cc] ss:$16 sps:$4 sm:$0xff]  }
  0x19   :  { %v16490_v10 = vld [vmem:[%s25211_s0 + $0x2c0] ss:$16 sps:$4 sm:$0xff]   ;;  %v16493_v11 = vld [vmem:[%s25211_s0 + $0x2c8] ss:$16 sps:$4 sm:$0xff]   ;;  %v16498_v12 = vld [vmem:[%s25211_s0 + $0x2a4] ss:$16 sps:$4 sm:$0xff]  }
  0x1a   :  { %v16501_v13 = vld [vmem:[%s25211_s0 + $0x2ac] ss:$16 sps:$4 sm:$0xff]   ;;  %v16496_v14 = vld [vmem:[%s25211_s0 + $0x2a0] ss:$16 sps:$4 sm:$0xff]   ;;  %v16499_v15 = vld [vmem:[%s25211_s0 + $0x2a8] ss:$16 sps:$4 sm:$0xff]  }
  0x1b   :  { %491 = vmatpush1.bf16.msra.mxu0 %v16425_v27  ;;  %544 = vmatpush1.bf16.msra.mxu1 %v16426_v28  ;;  %v16504_v16 = vld [vmem:[%s25211_s0 + $0x284] ss:$16 sps:$4 sm:$0xff]   ;;  %v16507_v17 = vld [vmem:[%s25211_s0 + $0x28c] ss:$16 sps:$4 sm:$0xff]   ;;  %v16502_v18 = vld [vmem:[%s25211_s0 + $0x280] ss:$16 sps:$4 sm:$0xff]  }
  0x1c   :  { %492 = vmatprep.subr.bf16.mxu0 %v16427_v29  ;;  %545 = vmatprep.subr.bf16.mxu1 %v16429_v30  ;;  %v18650_v19 = vld [vmem:[%s25212_s1 + $0x14] ss:$8 sps:$4 sm:$0xff]   ;;  %v16505_v20 = vld [vmem:[%s25211_s0 + $0x288] ss:$16 sps:$4 sm:$0xff]   ;;  %v16508_v24 = vld [vmem:[%s25211_s0 + $0x260] ss:$16 sps:$4 sm:$0xff]  }
  0x1d   :  { %v18658_v21 = vld [vmem:[%s25212_s1 + $0x10] ss:$8 sps:$4 sm:$0xff]   ;;  %v16510_v22 = vld [vmem:[%s25211_s0 + $0x264] ss:$16 sps:$4 sm:$0xff]   ;;  %v16513_v23 = vld [vmem:[%s25211_s0 + $0x26c] ss:$16 sps:$4 sm:$0xff]  }
  0x1e   :  { %v16511_v25 = vld [vmem:[%s25211_s0 + $0x268] ss:$16 sps:$4 sm:$0xff]   ;;  %v16516_v26 = vld [vmem:[%s25211_s0 + $0x244] ss:$16 sps:$4 sm:$0xff]   ;;  %v16519_v27 = vld [vmem:[%s25211_s0 + $0x24c] ss:$16 sps:$4 sm:$0xff]  }
  0x1f   :  { %493 = vmatpush1.bf16.msra.mxu0 %v16431_v31  ;;  %546 = vmatpush1.bf16.msra.mxu1 %v16432_v32  ;;  %v16514_v28 = vld [vmem:[%s25211_s0 + $0x240] ss:$16 sps:$4 sm:$0xff]   ;;  %v16517_v29 = vld [vmem:[%s25211_s0 + $0x248] ss:$16 sps:$4 sm:$0xff]   ;;  %v16522_v30 = vld [vmem:[%s25211_s0 + $0x224] ss:$16 sps:$4 sm:$0xff]  }
  0x20   :  { %494 = vmatprep.subr.bf16.mxu0 %v16433_v33  ;;  %547 = vmatprep.subr.bf16.mxu1 %v16435_v34  ;;  %v16525_v31 = vld [vmem:[%s25211_s0 + $0x22c] ss:$16 sps:$4 sm:$0xff]   ;;  %v50_v32 = vld [vmem:[%s25213_s2] sm:$0xff]  ;;  %v16523_v34 = vld [vmem:[%s25211_s0 + $0x228] ss:$16 sps:$4 sm:$0xff]  }
  0x21   :  { %120 = vperm.xlu0 %16383, %v50_v32   ;;  %v16520_v33 = vld [vmem:[%s25211_s0 + $0x220] ss:$16 sps:$4 sm:$0xff]  }
  0x22   :  { %v1227_v32 = vld [vmem:[%s25214_s3 + $0x340] sm:$0xff] }
  0x23   :  { %495 = vmatpush2.bf16.msra.mxu0 %v16437_v35  ;;  %548 = vmatpush2.bf16.msra.mxu1 %v16438_v36  ;;  %v51_v35 = vld [vmem:[%s25213_s2 + $0x8] sm:$0xff]  ;;  %v16528_v36 = vld [vmem:[%s25211_s0 + $0x204] ss:$16 sps:$4 sm:$0xff]  }
  0x24   :  { %496 = vmatprep.subr.bf16.mxu0 %v16439_v37  ;;  %549 = vmatprep.subr.bf16.mxu1 %v16441_v38  ;;  %v16531_v37 = vld [vmem:[%s25211_s0 + $0x20c] ss:$16 sps:$4 sm:$0xff]   ;;  %v52_v38 = vld [vmem:[%s25213_s2 + $0x10] sm:$0xff] }
  0x25   :  { %125 = vperm.xlu0 %16383, %v51_v35   ;;  %130 = vperm.xlu1 %16384, %v52_v38   ;;  %v1483_v35 = vld [vmem:[%s25214_s3 + $0xb40] sm:$0xff] }
  0x27   :  { %497 = vmatpush2.bf16.msra.mxu0 %v16443_v39  ;;  %550 = vmatpush2.bf16.msra.mxu1 %v16444_v40  ;;  %v4784_v39 = vld [vmem:[%s25216_s5] sm:$0xff] }
  0x28   :  { %498 = vmatprep.subr.bf16.mxu0 %v16445_v41  ;;  %551 = vmatprep.subr.bf16.mxu1 %v16447_v42  ;;  %v16526_v40 = vld [vmem:[%s25211_s0 + $0x200] ss:$16 sps:$4 sm:$0xff]   ;;  %v16529_v41 = vld [vmem:[%s25211_s0 + $0x208] ss:$16 sps:$4 sm:$0xff]  }
  0x29   :  { %v53_v42 = vld [vmem:[%s25213_s2 + $0x18] sm:$0xff]  ;;  %4794 = vperm.xlu0 %16383, %v4784_v39   ;;  %v1203_v39 = vld [vmem:[%s25214_s3 + $0x280] sm:$0xff] }
  0x2a   :  { %135 = vperm.xlu1 %16384, %v53_v42   ;;  %v1459_v42 = vld [vmem:[%s25214_s3 + $0xa80] sm:$0xff] }
  0x2b   :  { %499 = vmatpush2.bf16.msra.mxu0 %v16449_v43  ;;  %552 = vmatpush2.bf16.msra.mxu1 %v16450_v44  ;;  %v16534_v43 = vld [vmem:[%s25211_s0 + $0x3e4] ss:$16 sps:$4 sm:$0xff]   ;;  %v16537_v44 = vld [vmem:[%s25211_s0 + $0x3ec] ss:$16 sps:$4 sm:$0xff]  }
  0x2c   :  { %500 = vmatprep.subr.bf16.mxu0 %v16451_v45  ;;  %553 = vmatprep.subr.bf16.mxu1 %v16453_v46  ;;  %v4786_v45 = vld [vmem:[%s25216_s5 + $0x10] sm:$0xff] }
  0x2d   :  { %v16532_v46 = vld [vmem:[%s25211_s0 + $0x3e0] ss:$16 sps:$4 sm:$0xff]   ;;  %4804 = vperm.xlu0 %16383, %v4786_v45  }
  0x2f   :  { %501 = vmatpush2.bf16.msra.mxu0 %v16455_v47  ;;  %554 = vmatpush2.bf16.msra.mxu1 %v16456_v48  ;;  %v16535_v47 = vld [vmem:[%s25211_s0 + $0x3e8] ss:$16 sps:$4 sm:$0xff]  }
  0x30   :  { %502 = vmatprep.subr.bf16.mxu0 %v16457_v50  ;;  %555 = vmatprep.subr.bf16.mxu1 %v16459_v51  ;;  %v4785_v48 = vld [vmem:[%s25216_s5 + $0x8] sm:$0xff]  ;;  %v4788_v51 = vld [vmem:[%s25216_s5 + $0x20] sm:$0xff] }
  0x31   :  { %v16543_v50 = vld [vmem:[%s25211_s0 + $0x3cc] ss:$16 sps:$4 sm:$0xff]   ;;  %4799 = vperm.xlu1 %16384, %v4785_v48   ;;  %4814 = vperm.xlu0 %16383, %v4788_v51  }
  0x33   :  { %503 = vmatpush2.bf16.msra.mxu0 %v16461_v52  ;;  %556 = vmatpush2.bf16.msra.mxu1 %v16462_v53  ;;  %v16538_v52 = vld [vmem:[%s25211_s0 + $0x3c0] ss:$16 sps:$4 sm:$0xff]   ;;  %v16541_v53 = vld [vmem:[%s25211_s0 + $0x3c8] ss:$16 sps:$4 sm:$0xff]  }
  0x34   :  { %504 = vmatprep.subr.bf16.mxu0 %v16463_v54  ;;  %557 = vmatprep.subr.bf16.mxu1 %v16465_v55  ;;  %v4787_v54 = vld [vmem:[%s25216_s5 + $0x18] sm:$0xff]  ;;  %v16546_v55 = vld [vmem:[%s25211_s0 + $0x3a4] ss:$16 sps:$4 sm:$0xff]  }
  0x35   :  { %4809 = vperm.xlu1 %16384, %v4787_v54   ;;  %v1179_v54 = vld [vmem:[%s25214_s3 + $0x1c0] sm:$0xff] }
  0x37   :  { %505 = vmatpush2.bf16.msra.mxu0 %v16467_v56  ;;  %558 = vmatpush2.bf16.msra.mxu1 %v16468_v57  ;;  %v16549_v56 = vld [vmem:[%s25211_s0 + $0x3ac] ss:$16 sps:$4 sm:$0xff]   ;;  %v4790_v57 = vld [vmem:[%s25216_s5 + $0x30] sm:$0xff] }
  0x38   :  { %506 = vmatprep.subr.bf16.mxu0 %v16469_v58  ;;  %559 = vmatprep.subr.bf16.mxu1 %v16471_v59  ;;  %v16544_v58 = vld [vmem:[%s25211_s0 + $0x3a0] ss:$16 sps:$4 sm:$0xff]   ;;  %v16547_v59 = vld [vmem:[%s25211_s0 + $0x3a8] ss:$16 sps:$4 sm:$0xff]  }
  0x39   :  { %4824 = vperm.xlu0 %16383, %v4790_v57   ;;  %v1435_v57 = vld [vmem:[%s25214_s3 + $0x9c0] sm:$0xff] }
  0x3b   :  { %507 = vmatpush2.bf16.msra.mxu0 %v16473_v60  ;;  %560 = vmatpush2.bf16.msra.mxu1 %v16474_v61  ;;  %v4789_v60 = vld [vmem:[%s25216_s5 + $0x28] sm:$0xff]  ;;  %v16555_v61 = vld [vmem:[%s25211_s0 + $0x384] ss:$16 sps:$4 sm:$0xff]  }
  0x3c   :  { %508 = vmatprep.subr.bf16.mxu0 %v16475_v62  ;;  %561 = vmatprep.subr.bf16.mxu1 %v16477_v63  ;;  %v16558_v62 = vld [vmem:[%s25211_s0 + $0x38c] ss:$16 sps:$4 sm:$0xff]   ;;  %v6163_v63 = vld [vmem:[%s25219_s8] sm:$0xff] }
  0x3d   :  { %4819 = vperm.xlu1 %16384, %v4789_v60   ;;  %6169 = vperm.xlu0 %16383, %v6163_v63   ;;  %v1163_v60 = vld [vmem:[%s25214_s3 + $0x140] sm:$0xff] }
  0x3f   :  { %509 = vmatpush2.bf16.msra.mxu0 %v16479_v0  ;;  %562 = vmatpush2.bf16.msra.mxu1 %v16480_v1  ;;  %v16553_v0 = vld [vmem:[%s25211_s0 + $0x380] ss:$16 sps:$4 sm:$0xff]   ;;  %v16556_v1 = vld [vmem:[%s25211_s0 + $0x388] ss:$16 sps:$4 sm:$0xff]  }
  0x40   :  { %993 = vmatprep.subr.bf16.mxu0 %v16486_v3  ;;  %1046 = vmatprep.subr.bf16.mxu1 %v16489_v4  ;;  %v4791_v3 = vld [vmem:[%s25216_s5 + $0x38] sm:$0xff]  ;;  %v16561_v4 = vld [vmem:[%s25211_s0 + $0x364] ss:$16 sps:$4 sm:$0xff]  }
  0x41   :  { %4829 = vperm.xlu1 %16384, %v4791_v3   ;;  %v1139_v3 = vld [vmem:[%s25214_s3 + $0x80] sm:$0xff] }
  0x42   :  { %511 = vmatmul.mubr.bf16.vlgmr.msra.gmra.mxu0 %v18604_v5  ;;  %564 = vmatmul.mubr.bf16.vlgmr.msra.gmra.mxu1 %v18604_v5 }
  0x43   :  { %994 = vmatpush1.bf16.msra.mxu0 %v16484_v6  ;;  %1047 = vmatpush1.bf16.msra.mxu1 %v16487_v7  ;;  %v16564_v6 = vld [vmem:[%s25211_s0 + $0x36c] ss:$16 sps:$4 sm:$0xff]   ;;  %v6165_v7 = vld [vmem:[%s25219_s8 + $0x10] sm:$0xff] }
  0x44   :  { %995 = vmatprep.subr.bf16.mxu0 %v16492_v8  ;;  %1048 = vmatprep.subr.bf16.mxu1 %v16495_v9  ;;  %v16559_v8 = vld [vmem:[%s25211_s0 + $0x360] ss:$16 sps:$4 sm:$0xff]   ;;  %v16562_v9 = vld [vmem:[%s25211_s0 + $0x368] ss:$16 sps:$4 sm:$0xff]  }
  0x45   :  { %520 = vmatprep.mubr.bf16.mxu0 %v18650_v19  ;;  %573 = vmatprep.mubr.bf16.mxu1 %v18650_v19 }
  0x46   :  { %6179 = vperm.xlu0 %16383, %v6165_v7   ;;  %v18945_v7 = vld [vmem:[%s25214_s3 + $0x388] sm:$0xff] }
  0x47   :  { %996 = vmatpush1.bf16.msra.mxu0 %v16490_v10  ;;  %1049 = vmatpush1.bf16.msra.mxu1 %v16493_v11  ;;  %v6164_v10 = vld [vmem:[%s25219_s8 + $0x8] sm:$0xff]  ;;  %v16567_v11 = vld [vmem:[%s25211_s0 + $0x344] ss:$16 sps:$4 sm:$0xff]  }
  0x48   :  { %997 = vmatprep.subr.bf16.mxu0 %v16498_v12  ;;  %1050 = vmatprep.subr.bf16.mxu1 %v16501_v13  ;;  %v16570_v12 = vld [vmem:[%s25211_s0 + $0x34c] ss:$16 sps:$4 sm:$0xff]   ;;  %v16565_v13 = vld [vmem:[%s25211_s0 + $0x340] ss:$16 sps:$4 sm:$0xff]  }
  0x49   :  { %6174 = vperm.xlu1 %16384, %v6164_v10  }
  0x4a   :  { %521 = vmatmul.mubr.bf16.gmra.mxu0 %v18658_v21  ;;  %574 = vmatmul.mubr.bf16.gmra.mxu1 %v18658_v21 }
  0x4b   :  { %998 = vmatpush1.bf16.msra.mxu0 %v16496_v14  ;;  %1051 = vmatpush1.bf16.msra.mxu1 %v16499_v15  ;;  %v16568_v14 = vld [vmem:[%s25211_s0 + $0x348] ss:$16 sps:$4 sm:$0xff]  }
  0x4c   :  { %999 = vmatprep.subr.bf16.mxu0 %v16504_v16  ;;  %1052 = vmatprep.subr.bf16.mxu1 %v16507_v17  ;;  %v6166_v15 = vld [vmem:[%s25219_s8 + $0x18] sm:$0xff]  ;;  %v16573_v16 = vld [vmem:[%s25211_s0 + $0x324] ss:$16 sps:$4 sm:$0xff]  }
  0x4d   :  { %1025 = vmatprep.mubr.bf16.mxu0 %v18543_v49  ;;  %1078 = vmatprep.mubr.bf16.mxu1 %v18543_v49  ;;  %v16540_v49 = vld [vmem:[%s25211_s0 + $0x3c4] ss:$16 sps:$4 sm:$0xff]   ;;  %v16576_v17 = vld [vmem:[%s25211_s0 + $0x32c] ss:$16 sps:$4 sm:$0xff]  }
  0x4e   :  { %6184 = vperm.xlu1 %16384, %v6166_v15   ;;  %v1123_v15 = vld [vmem:[%s25214_s3] sm:$0xff] }
  0x4f   :  { %1000 = vmatpush1.bf16.msra.mxu0 %v16502_v18  ;;  %1053 = vmatpush1.bf16.msra.mxu1 %v16505_v20  ;;  %v16571_v18 = vld [vmem:[%s25211_s0 + $0x320] ss:$16 sps:$4 sm:$0xff]   ;;  %v16574_v20 = vld [vmem:[%s25211_s0 + $0x328] ss:$16 sps:$4 sm:$0xff]  }
  0x50   :  { %1001 = vmatprep.subr.bf16.mxu0 %v16510_v22  ;;  %1054 = vmatprep.subr.bf16.mxu1 %v16513_v23  ;;  %v16579_v22 = vld [vmem:[%s25211_s0 + $0x304] ss:$16 sps:$4 sm:$0xff]   ;;  %v16582_v23 = vld [vmem:[%s25211_s0 + $0x30c] ss:$16 sps:$4 sm:$0xff]  }
  0x53   :  { %1002 = vmatpush1.bf16.msra.mxu0 %v16508_v24  ;;  %1055 = vmatpush1.bf16.msra.mxu1 %v16511_v25  ;;  %v1235_v24 = vld [vmem:[%s25214_s3 + $0x380] sm:$0xff] }
  0x54   :  { %1003 = vmatprep.subr.bf16.mxu0 %v16516_v26  ;;  %1056 = vmatprep.subr.bf16.mxu1 %v16519_v27  ;;  %v1243_v25 = vld [vmem:[%s25214_s3 + $0x3c0] sm:$0xff] }
  0x55   :  { %v1491_v26 = vld [vmem:[%s25214_s3 + $0xb80] sm:$0xff] }
  0x56   :  { %v1499_v27 = vld [vmem:[%s25214_s3 + $0xbc0] sm:$0xff] }
  0x57   :  { %1004 = vmatpush1.bf16.msra.mxu0 %v16514_v28  ;;  %1057 = vmatpush1.bf16.msra.mxu1 %v16517_v29  ;;  %v16577_v28 = vld [vmem:[%s25211_s0 + $0x300] ss:$16 sps:$4 sm:$0xff]   ;;  %v16580_v29 = vld [vmem:[%s25211_s0 + $0x308] ss:$16 sps:$4 sm:$0xff]  }
  0x58   :  { %1005 = vmatprep.subr.bf16.mxu0 %v16522_v30  ;;  %1058 = vmatprep.subr.bf16.mxu1 %v16525_v31  ;;  %v14788_v30 = vcombine.high %v1235_v24, %v1243_v25  ;;  %v1219_v31 = vld [vmem:[%s25214_s3 + $0x300] sm:$0xff] }
  0x59   :  { %v14772_v38 = vcombine.high %v1219_v31, %v1227_v32 }
  0x5b   :  { %1006 = vmatpush1.bf16.msra.mxu0 %v16520_v33  ;;  %1059 = vmatpush1.bf16.msra.mxu1 %v16523_v34  ;;  %v15044_v33 = vcombine.high %v1491_v26, %v1499_v27  ;;  %v1475_v34 = vld [vmem:[%s25214_s3 + $0xb00] sm:$0xff] }
  0x5c   :  { %1007 = vmatprep.subr.bf16.mxu0 %v16528_v36  ;;  %1060 = vmatprep.subr.bf16.mxu1 %v16531_v37  ;;  %v14787_v36 = vcombine.low %v1235_v24, %v1243_v25  ;;  %v15043_v37 = vcombine.low %v1491_v26, %v1499_v27  ;;  %v15027_v45 = vcombine.low %v1475_v34, %v1483_v35  ;;  %v1363_v25 = vld [vmem:[%s25214_s3 + $0x780] sm:$0xff] }
  0x5d   :  { %v1371_v26 = vld [vmem:[%s25214_s3 + $0x7c0] sm:$0xff] }
  0x5f   :  { %1008 = vmatpush1.bf16.msra.mxu0 %v16526_v40  ;;  %1061 = vmatpush1.bf16.msra.mxu1 %v16529_v41  ;;  %v1211_v40 = vld [vmem:[%s25214_s3 + $0x2c0] sm:$0xff]  ;;  %v15028_v41 = vcombine.high %v1475_v34, %v1483_v35  ;;  %v14916_v34 = vcombine.high %v1363_v25, %v1371_v26 }
  0x60   :  { %1009 = vmatprep.subr.bf16.mxu0 %v16534_v43  ;;  %1062 = vmatprep.subr.bf16.mxu1 %v16537_v44  ;;  %v1467_v43 = vld [vmem:[%s25214_s3 + $0xac0] sm:$0xff]  ;;  %v14771_v44 = vcombine.low %v1219_v31, %v1227_v32 }
  0x61   :  { %v15012_v48 = vcombine.high %v1459_v42, %v1467_v43  ;;  %v15011_v51 = vcombine.low %v1459_v42, %v1467_v43  ;;  %v1515_v31 = vld [vmem:[%s25214_s3 + $0xc40] sm:$0xff] }
  0x62   :  { %v1347_v35 = vld [vmem:[%s25214_s3 + $0x700] sm:$0xff] }
  0x63   :  { %1010 = vmatpush2.bf16.msra.mxu0 %v16532_v46  ;;  %1063 = vmatpush2.bf16.msra.mxu1 %v16535_v47  ;;  %v14756_v46 = vcombine.high %v1203_v39, %v1211_v40  ;;  %v1187_v47 = vld [vmem:[%s25214_s3 + $0x200] sm:$0xff] }
  0x64   :  { %1011 = vmatprep.subr.bf16.mxu0 %v16540_v49  ;;  %1064 = vmatprep.subr.bf16.mxu1 %v16543_v50  ;;  %v1451_v49 = vld [vmem:[%s25214_s3 + $0xa40] sm:$0xff]  ;;  %v14755_v50 = vcombine.low %v1203_v39, %v1211_v40 }
  0x65   :  { %v1339_v42 = vld [vmem:[%s25214_s3 + $0x6c0] sm:$0xff] }
  0x67   :  { %1012 = vmatpush2.bf16.msra.mxu0 %v16538_v52  ;;  %1065 = vmatpush2.bf16.msra.mxu1 %v16541_v53  ;;  %v1171_v53 = vld [vmem:[%s25214_s3 + $0x180] sm:$0xff] }
  0x68   :  { %1013 = vmatprep.subr.bf16.mxu0 %v16546_v55  ;;  %1066 = vmatprep.subr.bf16.mxu1 %v16549_v56  ;;  %v1427_v56 = vld [vmem:[%s25214_s3 + $0x980] sm:$0xff]  ;;  %v14724_v63 = vcombine.high %v1171_v53, %v1179_v54 }
  0x6b   :  { %1014 = vmatpush2.bf16.msra.mxu0 %v16544_v58  ;;  %1067 = vmatpush2.bf16.msra.mxu1 %v16547_v59  ;;  %v1155_v59 = vld [vmem:[%s25214_s3 + $0x100] sm:$0xff] }
  0x6c   :  { %1015 = vmatprep.subr.bf16.mxu0 %v16555_v61  ;;  %1068 = vmatprep.subr.bf16.mxu1 %v16558_v62  ;;  %v1419_v62 = vld [vmem:[%s25214_s3 + $0x940] sm:$0xff] }
  0x6f   :  { %1016 = vmatpush2.bf16.msra.mxu0 %v16553_v0  ;;  %1069 = vmatpush2.bf16.msra.mxu1 %v16556_v1  ;;  %v14980_v0 = vcombine.high %v1427_v56, %v1435_v57  ;;  %v14723_v1 = vcombine.low %v1171_v53, %v1179_v54 }
  0x70   :  { %1017 = vmatprep.subr.bf16.mxu0 %v16561_v4  ;;  %1070 = vmatprep.subr.bf16.mxu1 %v16564_v6  ;;  %v1147_v4 = vld [vmem:[%s25214_s3 + $0xc0] sm:$0xff]  ;;  %v14979_v6 = vcombine.low %v1427_v56, %v1435_v57 }
  0x71   :  { %v14691_v24 = vcombine.low %v1139_v3, %v1147_v4  ;;  %v1291_v56 = vld [vmem:[%s25214_s3 + $0x540] sm:$0xff] }
  0x73   :  { %1018 = vmatpush2.bf16.msra.mxu0 %v16559_v8  ;;  %1071 = vmatpush2.bf16.msra.mxu1 %v16562_v9  ;;  %v18950_v8 = vld [vmem:[%s25214_s3 + $0x3c8] sm:$0xff]  ;;  %v14708_v9 = vcombine.high %v1155_v59, %v1163_v60 }
  0x74   :  { %1019 = vmatprep.subr.bf16.mxu0 %v16567_v11  ;;  %1072 = vmatprep.subr.bf16.mxu1 %v16570_v12  ;;  %v1395_v11 = vld [vmem:[%s25214_s3 + $0x880] sm:$0xff]  ;;  %v14790_v43 = vcombine.high %v18945_v7, %v18950_v8 }
  0x75   :  { %v1403_v12 = vld [vmem:[%s25214_s3 + $0x8c0] sm:$0xff] }
  0x76   :  { %v14947_v27 = vcombine.low %v1395_v11, %v1403_v12 }
  0x77   :  { %1020 = vmatpush2.bf16.msra.mxu0 %v16565_v13  ;;  %1073 = vmatpush2.bf16.msra.mxu1 %v16568_v14  ;;  %v14789_v13 = vcombine.low %v18945_v7, %v18950_v8  ;;  %v14707_v14 = vcombine.low %v1155_v59, %v1163_v60  ;;  %v1275_v59 = vld [vmem:[%s25214_s3 + $0x4c0] sm:$0xff]  ;;  %v1196_v7 = vld [vmem:[%s25214_s3 + $0x248] sm:$0xff] }
  0x78   :  { %1021 = vmatprep.subr.bf16.mxu0 %v16573_v16  ;;  %1074 = vmatprep.subr.bf16.mxu1 %v16576_v17  ;;  %v1131_v16 = vld [vmem:[%s25214_s3 + $0x40] sm:$0xff] }
  0x79   :  { %v14675_v32 = vcombine.low %v1123_v15, %v1131_v16 }
  0x7b   :  { %1022 = vmatpush2.bf16.msra.mxu0 %v16571_v18  ;;  %1075 = vmatpush2.bf16.msra.mxu1 %v16574_v20  ;;  %v14692_v18 = vcombine.high %v1139_v3, %v1147_v4  ;;  %v14948_v20 = vcombine.high %v1395_v11, %v1403_v12 }
  0x7c   :  { %1023 = vmatprep.subr.bf16.mxu0 %v16579_v22  ;;  %1076 = vmatprep.subr.bf16.mxu1 %v16582_v23  ;;  %v1379_v22 = vld [vmem:[%s25214_s3 + $0x800] sm:$0xff] }
  0x7d   :  { %v1387_v23 = vld [vmem:[%s25214_s3 + $0x840] sm:$0xff] }
  0x7f   :  { %1024 = vmatpush2.bf16.msra.mxu0 %v16577_v28  ;;  %1077 = vmatpush2.bf16.msra.mxu1 %v16580_v29  ;;  %v14676_v28 = vcombine.high %v1123_v15, %v1131_v16  ;;  %v14932_v29 = vcombine.high %v1379_v22, %v1387_v23 }
  0x80   :  { %3536 = vmatprep.subr.bf16.mxu0 %v14788_v30  ;;  %3609 = vmatprep.subr.bf16.mxu1 %v15044_v33  ;;  %v1507_v30 = vld [vmem:[%s25214_s3 + $0xc00] sm:$0xff]  ;;  %v14931_v33 = vcombine.low %v1379_v22, %v1387_v23 }
  0x81   :  { %v15059_v39 = vcombine.low %v1507_v30, %v1515_v31 }
  0x82   :  { %1026 = vmatmul.mubr.bf16.vlgmr.msra.gmra.mxu0 %v18604_v5  ;;  %1079 = vmatmul.mubr.bf16.vlgmr.msra.gmra.mxu1 %v18604_v5  ;;  %v1195_v5 = vld [vmem:[%s25214_s3 + $0x240] sm:$0xff] }
  0x83   :  { %1035 = vmatprep.mubr.bf16.mxu0 %v18650_v19  ;;  %1088 = vmatprep.mubr.bf16.mxu1 %v18650_v19  ;;  %v1443_v19 = vld [vmem:[%s25214_s3 + $0xa00] sm:$0xff]  ;;  %v14740_v52 = vcombine.high %v1187_v47, %v1195_v5  ;;  %v14739_v58 = vcombine.low %v1187_v47, %v1195_v5 }
  0x84   :  { %3537 = vmatpush1.bf16.msra.mxu0 %v14787_v36  ;;  %3610 = vmatpush1.bf16.msra.mxu1 %v15043_v37  ;;  %v14996_v55 = vcombine.high %v1443_v19, %v1451_v49  ;;  %v14995_v61 = vcombine.low %v1443_v19, %v1451_v49  ;;  %v1355_v36 = vld [vmem:[%s25214_s3 + $0x740] sm:$0xff]  ;;  %v15060_v37 = vcombine.high %v1507_v30, %v1515_v31 }
  0x85   :  { %3538 = vmatprep.subr.bf16.mxu0 %v14772_v38  ;;  %3611 = vmatprep.subr.bf16.mxu1 %v15028_v41  ;;  %v14915_v38 = vcombine.low %v1363_v25, %v1371_v26  ;;  %v14900_v40 = vcombine.high %v1347_v35, %v1355_v36  ;;  %v1331_v41 = vld [vmem:[%s25214_s3 + $0x680] sm:$0xff] }
  0x86   :  { %v1323_v47 = vld [vmem:[%s25214_s3 + $0x640] sm:$0xff]  ;;  %v14883_v5 = vcombine.low %v1331_v41, %v1339_v42 }
  0x87   :  { %v1299_v19 = vld [vmem:[%s25214_s3 + $0x580] sm:$0xff] }
  0x88   :  { %3539 = vmatpush1.bf16.msra.mxu0 %v14771_v44  ;;  %3612 = vmatpush1.bf16.msra.mxu1 %v15027_v45  ;;  %v14899_v44 = vcombine.low %v1347_v35, %v1355_v36  ;;  %v14884_v45 = vcombine.high %v1331_v41, %v1339_v42  ;;  %v1307_v49 = vld [vmem:[%s25214_s3 + $0x5c0] sm:$0xff] }
  0x89   :  { %3540 = vmatprep.subr.bf16.mxu0 %v14756_v46  ;;  %3613 = vmatprep.subr.bf16.mxu1 %v15012_v48  ;;  %v1315_v46 = vld [vmem:[%s25214_s3 + $0x600] sm:$0xff]  ;;  %v14852_v54 = vcombine.high %v1299_v19, %v1307_v49  ;;  %v14851_v57 = vcombine.low %v1299_v19, %v1307_v49 }
  0x8a   :  { %1036 = vmatmul.mubr.bf16.gmra.mxu0 %v18658_v21  ;;  %1089 = vmatmul.mubr.bf16.gmra.mxu1 %v18658_v21  ;;  %v1411_v21 = vld [vmem:[%s25214_s3 + $0x900] sm:$0xff]  ;;  %v14868_v48 = vcombine.high %v1315_v46, %v1323_v47  ;;  %v14867_v53 = vcombine.low %v1315_v46, %v1323_v47  ;;  %v1204_v47 = vld [vmem:[%s25214_s3 + $0x288] sm:$0xff] }
  0x8b   :  { %v14964_v10 = vcombine.high %v1411_v21, %v1419_v62  ;;  %v14963_v17 = vcombine.low %v1411_v21, %v1419_v62  ;;  %v1251_v21 = vld [vmem:[%s25214_s3 + $0x400] sm:$0xff] }
  0x8c   :  { %3541 = vmatpush1.bf16.msra.mxu0 %v14755_v50  ;;  %3614 = vmatpush1.bf16.msra.mxu1 %v15011_v51  ;;  %v19013_v50 = vld [vmem:[%s25214_s3 + $0xb88] sm:$0xff]  ;;  %v1259_v62 = vld [vmem:[%s25214_s3 + $0x440] sm:$0xff] }
  0x8d   :  { %3542 = vmatprep.subr.bf16.mxu0 %v14740_v52  ;;  %3615 = vmatprep.subr.bf16.mxu1 %v14996_v55  ;;  %v19018_v51 = vld [vmem:[%s25214_s3 + $0xbc8] sm:$0xff]  ;;  %v1283_v55 = vld [vmem:[%s25214_s3 + $0x500] sm:$0xff]  ;;  %v14803_v3 = vcombine.low %v1251_v21, %v1259_v62 }
  0x8e   :  { %v15045_v52 = vcombine.low %v19013_v50, %v19018_v51  ;;  %v14836_v60 = vcombine.high %v1283_v55, %v1291_v56  ;;  %v15046_v4 = vcombine.high %v19013_v50, %v19018_v51  ;;  %v1444_v50 = vld [vmem:[%s25214_s3 + $0xa08] sm:$0xff] }
  0x90   :  { %3543 = vmatpush1.bf16.msra.mxu0 %v14739_v58  ;;  %3616 = vmatpush1.bf16.msra.mxu1 %v14995_v61  ;;  %v1267_v58 = vld [vmem:[%s25214_s3 + $0x480] sm:$0xff]  ;;  %v14835_v61 = vcombine.low %v1283_v55, %v1291_v56  ;;  %v1468_v55 = vld [vmem:[%s25214_s3 + $0xac8] sm:$0xff] }
  0x91   :  { %3544 = vmatprep.subr.bf16.mxu0 %v14724_v63  ;;  %3617 = vmatprep.subr.bf16.mxu1 %v14980_v0  ;;  %v14820_v63 = vcombine.high %v1267_v58, %v1275_v59  ;;  %v14819_v0 = vcombine.low %v1267_v58, %v1275_v59 }
  0x94   :  { %3545 = vmatpush1.bf16.msra.mxu0 %v14723_v1  ;;  %3618 = vmatpush1.bf16.msra.mxu1 %v14979_v6  ;;  %v14804_v1 = vcombine.high %v1251_v21, %v1259_v62 }
  0x95   :  { %3546 = vmatprep.subr.bf16.mxu0 %v14708_v9  ;;  %3619 = vmatprep.subr.bf16.mxu1 %v14964_v10 }
  0x98   :  { %3547 = vmatpush1.bf16.msra.mxu0 %v14707_v14  ;;  %3620 = vmatpush1.bf16.msra.mxu1 %v14963_v17 }
  0x99   :  { %3548 = vmatprep.subr.bf16.mxu0 %v14692_v18  ;;  %3621 = vmatprep.subr.bf16.mxu1 %v14948_v20 }
  0x9c   :  { %3549 = vmatpush1.bf16.msra.mxu0 %v14691_v24  ;;  %3622 = vmatpush1.bf16.msra.mxu1 %v14947_v27  ;;  %v19042_v6 = vpop.permute.xlu0 %120 }
  0x9d   :  { %3550 = vmatprep.subr.bf16.mxu0 %v14676_v28  ;;  %3623 = vmatprep.subr.bf16.mxu1 %v14932_v29  ;;  %v1220_v29 = vld [vmem:[%s25214_s3 + $0x308] sm:$0xff] }
  0xa0   :  { %3551 = vmatpush1.bf16.msra.mxu0 %v14675_v32  ;;  %3624 = vmatpush1.bf16.msra.mxu1 %v14931_v33  ;;  %v19044_v14 = vpop.permute.xlu0 %125  ;;  %v1228_v32 = vld [vmem:[%s25214_s3 + $0x348] sm:$0xff] }
  0xa1   :  { %3552 = vmatprep.subr.bf16.mxu0 %v14916_v34  ;;  %3639 = vmatprep.subr.bf16.mxu1 %v15060_v37  ;;  %v1476_v33 = vld [vmem:[%s25214_s3 + $0xb08] sm:$0xff]  ;;  %v14774_v46 = vcombine.high %v1220_v29, %v1228_v32  ;;  %v14773_v56 = vcombine.low %v1220_v29, %v1228_v32 }
  0xa2   :  { %v1484_v34 = vld [vmem:[%s25214_s3 + $0xb48] sm:$0xff] }
  0xa3   :  { %v15030_v49 = vcombine.high %v1476_v33, %v1484_v34  ;;  %v15029_v62 = vcombine.low %v1476_v33, %v1484_v34 }
  0xa4   :  { %3553 = vmatpush2.bf16.msra.mxu0 %v14915_v38  ;;  %3640 = vmatpush2.bf16.msra.mxu1 %v15059_v39  ;;  %v19066_v39 = vpop.permute.xlu1 %130 }
  0xa5   :  { %3554 = vmatprep.subr.bf16.mxu0 %v14900_v40  ;;  %3682 = vmatprep.subr.bf16.mxu1 %v14790_v43 }
  0xa8   :  { %3555 = vmatpush2.bf16.msra.mxu0 %v14899_v44 }
  0xa9   :  { %3556 = vmatprep.subr.bf16.mxu0 %v14884_v45 }
  0xac   :  { %3557 = vmatpush2.bf16.msra.mxu0 %v14883_v5  ;;  %v1212_v5 = vld [vmem:[%s25214_s3 + $0x2c8] sm:$0xff] }
  0xad   :  { %3558 = vmatprep.subr.bf16.mxu0 %v14868_v48  ;;  %v14757_v51 = vcombine.low %v1204_v47, %v1212_v5 }
  0xb0   :  { %3559 = vmatpush2.bf16.msra.mxu0 %v14867_v53  ;;  %v1460_v53 = vld [vmem:[%s25214_s3 + $0xa88] sm:$0xff] }
  0xb1   :  { %3560 = vmatprep.subr.bf16.mxu0 %v14852_v54 }
  0xb4   :  { %3561 = vmatpush2.bf16.msra.mxu0 %v14851_v57 }
  0xb5   :  { %3562 = vmatprep.subr.bf16.mxu0 %v14836_v60  ;;  %v19098_v60 = vpop.permute.xlu1 %135 }
  0xb8   :  { %3563 = vmatpush2.bf16.msra.mxu0 %v14835_v61 }
  0xb9   :  { %3564 = vmatprep.subr.bf16.mxu0 %v14820_v63  ;;  %v14758_v63 = vcombine.high %v1204_v47, %v1212_v5  ;;  %v1412_v47 = vld [vmem:[%s25214_s3 + $0x908] sm:$0xff] }
  0xba   :  { %v1420_v5 = vld [vmem:[%s25214_s3 + $0x948] sm:$0xff] }
  0xbc   :  { %3565 = vmatpush2.bf16.msra.mxu0 %v14819_v0  ;;  %v1188_v0 = vld [vmem:[%s25214_s3 + $0x208] sm:$0xff] }
  0xbd   :  { %3566 = vmatprep.subr.bf16.mxu0 %v14804_v1  ;;  %v15014_v1 = vcombine.high %v1460_v53, %v1468_v55  ;;  %v14741_v32 = vcombine.low %v1188_v0, %v1196_v7 }
  0xc0   :  { %3567 = vmatpush2.bf16.msra.mxu0 %v14803_v3 }
  0xc1   :  { %3755 = vmatprep.subr.bf16.mxu0 %v15046_v4 }
 0x102   :  { %v512_v9 = vpop.f32.mrf.mxu0  ;;  %v565_v10 = vpop.f32.mrf.mxu1 }
 0x103   :  { %v513_v23 = vadd.f32 %v512_v9, %v19042_v6  ;;  %v566_v24 = vadd.f32 %v565_v10, %v19042_v6  ;;  %v1452_v9 = vld [vmem:[%s25214_s3 + $0xa48] sm:$0xff] }
 0x104   :  { %v514_v11 = vpop.f32.mrf.mxu0  ;;  %v567_v12 = vpop.f32.mrf.mxu1 }
 0x105   :  { %v515_v17 = vadd.f32 %v514_v11, %v19042_v6  ;;  %v568_v18 = vadd.f32 %v567_v12, %v19042_v6  ;;  %v584_v40 = vmax.f32 %v513_v23, 0.0  ;;  %v586_v41 = vmax.f32 %v566_v24, 0.0 }
 0x106   :  { %v516_v15 = vpop.f32.mrf.mxu0  ;;  %v569_v16 = vpop.f32.mrf.mxu1  ;;  %v14742_v24 = vcombine.high %v1188_v0, %v1196_v7  ;;  %v1380_v0 = vld [vmem:[%s25214_s3 + $0x808] sm:$0xff] }
 0x107   :  { %v517_v20 = vadd.f32 %v516_v15, %v19044_v14  ;;  %v570_v22 = vadd.f32 %v569_v16, %v19044_v14  ;;  %v585_v35 = vmax.f32 %v515_v17, 0.0  ;;  %v587_v36 = vmax.f32 %v568_v18, 0.0  ;;  %v1388_v7 = vld [vmem:[%s25214_s3 + $0x848] sm:$0xff] }
 0x108   :  { %v518_v25 = vpop.f32.mrf.mxu0  ;;  %v571_v26 = vpop.f32.mrf.mxu1  ;;  %v15013_v17 = vcombine.low %v1460_v53, %v1468_v55  ;;  %v1140_v53 = vld [vmem:[%s25214_s3 + $0x88] sm:$0xff]  ;;  %v14966_v55 = vcombine.high %v1412_v47, %v1420_v5 }
 0x109   :  { %v519_v27 = vadd.f32 %v518_v25, %v19044_v14  ;;  %v572_v28 = vadd.f32 %v571_v26, %v19044_v14  ;;  %v588_v30 = vmax.f32 %v517_v20, 0.0  ;;  %v590_v31 = vmax.f32 %v570_v22, 0.0  ;;  %v1172_v25 = vld [vmem:[%s25214_s3 + $0x188] sm:$0xff] }
 0x10a   :  { %v522_v48 = vpop.f32.mrf.mxu0  ;;  %v575_v19 = vpop.f32.mrf.mxu1  ;;  %v1180_v26 = vld [vmem:[%s25214_s3 + $0x1c8] sm:$0xff] }
 0x10b   :  { %v589_v37 = vmax.f32 %v519_v27, 0.0  ;;  %v591_v38 = vmax.f32 %v572_v28, 0.0  ;;  %v19072_v44 = vpack.c.bf16 %v588_v30, %v584_v40  ;;  %v19074_v45 = vpack.c.bf16 %v590_v31, %v586_v41  ;;  %v1428_v28 = vld [vmem:[%s25214_s3 + $0x988] sm:$0xff] }
 0x10c   :  { %v523_v54 = vadd.f32 %v522_v48, %v19066_v39  ;;  %v576_v57 = vadd.f32 %v575_v19, %v19066_v39  ;;  %v524_v58 = vpop.f32.mrf.mxu0  ;;  %v577_v59 = vpop.f32.mrf.mxu1  ;;  %v14998_v27 = vcombine.high %v1444_v50, %v1452_v9  ;;  %v1436_v31 = vld [vmem:[%s25214_s3 + $0x9c8] sm:$0xff]  ;;  %v14725_v48 = vcombine.low %v1172_v25, %v1180_v26 }
 0x10d   :  { %v19068_v42 = vpack.c.bf16 %v589_v37, %v585_v35  ;;  %v19070_v43 = vpack.c.bf16 %v591_v38, %v587_v36  ;;  %v525_v61 = vadd.f32 %v524_v58, %v19066_v39  ;;  %v578_v21 = vadd.f32 %v577_v59, %v19066_v39  ;;  %v1156_v40 = vld [vmem:[%s25214_s3 + $0x108] sm:$0xff] }
 0x10e   :  { %v526_v8 = vpop.f32.mrf.mxu0  ;;  %v594_v10 = vmax.f32 %v576_v57, 0.0  ;;  %v14997_v37 = vcombine.low %v1444_v50, %v1452_v9  ;;  %v14726_v38 = vcombine.high %v1172_v25, %v1180_v26  ;;  %v1164_v41 = vld [vmem:[%s25214_s3 + $0x148] sm:$0xff]  ;;  %v14981_v19 = vcombine.low %v1428_v28, %v1436_v31 }
 0x10f   :  { %3568 = vmatprep.mubr.bf16.mxu0 %v19068_v42  ;;  %15075 = vmatprep.mubr.msk.bf16.mxu1 %vm3523_vm0, %v19070_v43  ;;  %v527_v3 = vadd.f32 %v526_v8, %v19098_v60  ;;  %v593_v11 = vmax.f32 %v525_v61, 0.0  ;;  %v595_v12 = vmax.f32 %v578_v21, 0.0  ;;  %v1404_v57 = vld [vmem:[%s25214_s3 + $0x8c8] sm:$0xff]  ;;  %v14709_v58 = vcombine.low %v1156_v40, %v1164_v41 }
 0x110   :  { %3569 = vmatmul.mubr.bf16.vlgmr.msra.gmra.mxu0 %v19072_v44  ;;  %3642 = vmatmul.mubr.bf16.vlgmr.msra.gmra.mxu1 %v19074_v45  ;;  %v528_v15 = vpop.f32.mrf.mxu0  ;;  %v14965_v59 = vcombine.low %v1412_v47, %v1420_v5  ;;  %v1124_v21 = vld [vmem:[%s25214_s3 + $0x8] sm:$0xff] }
 0x111   :  { %3683 = vmatpush1.bf16.msra.mxu1 %v14789_v13  ;;  %3756 = vmatpush1.bf16.msra.mxu0 %v15045_v52  ;;  %v579_v13 = vpop.f32.mrf.mxu1  ;;  %v592_v52 = vmax.f32 %v523_v54, 0.0  ;;  %v596_v18 = vmax.f32 %v527_v3, 0.0  ;;  %v529_v22 = vadd.f32 %v528_v15, %v19098_v60  ;;  %v1148_v54 = vld [vmem:[%s25214_s3 + $0xc8] sm:$0xff] }
 0x112   :  { %3684 = vmatprep.subr.bf16.mxu1 %v14774_v46  ;;  %3757 = vmatprep.subr.bf16.mxu0 %v15030_v49  ;;  %v580_v4 = vadd.f32 %v579_v13, %v19098_v60  ;;  %v14982_v46 = vcombine.high %v1428_v28, %v1436_v31  ;;  %v14710_v49 = vcombine.high %v1156_v40, %v1164_v41  ;;  %v1364_v50 = vld [vmem:[%s25214_s3 + $0x788] sm:$0xff] }
 0x113   :  { %v581_v16 = vpop.f32.mrf.mxu1  ;;  %v597_v29 = vmax.f32 %v529_v22, 0.0  ;;  %v19133_v33 = vpack.c.bf16 %v596_v18, %v592_v52  ;;  %v14694_v61 = vcombine.high %v1140_v53, %v1148_v54  ;;  %v14693_v8 = vcombine.low %v1140_v53, %v1148_v54  ;;  %v1508_v3 = vld [vmem:[%s25214_s3 + $0xc08] sm:$0xff]  ;;  %v19208_v18 = vld [vmem:[%s25214_s3 + $0x3d0] sm:$0xff] }
 0x114   :  { %v598_v20 = vmax.f32 %v580_v4, 0.0  ;;  %v582_v23 = vadd.f32 %v581_v16, %v19098_v60  ;;  %v14934_v52 = vcombine.high %v1380_v0, %v1388_v7  ;;  %v1516_v4 = vld [vmem:[%s25214_s3 + $0xc48] sm:$0xff] }
 0x115   :  { %3685 = vmatpush1.bf16.msra.mxu1 %v14773_v56  ;;  %3758 = vmatpush1.bf16.msra.mxu0 %v15029_v62  ;;  %v19137_v35 = vpack.c.bf16 %v597_v29, %v593_v11  ;;  %v1396_v56 = vld [vmem:[%s25214_s3 + $0x888] sm:$0xff]  ;;  %v15062_v16 = vcombine.high %v1508_v3, %v1516_v4  ;;  %v15061_v22 = vcombine.low %v1508_v3, %v1516_v4 }
 0x116   :  { %3686 = vmatprep.subr.bf16.mxu1 %v14758_v63  ;;  %3759 = vmatprep.subr.bf16.mxu0 %v15014_v1  ;;  %v599_v30 = vmax.f32 %v582_v23, 0.0  ;;  %v19135_v34 = vpack.c.bf16 %v598_v20, %v594_v10  ;;  %v1132_v62 = vld [vmem:[%s25214_s3 + $0x48] sm:$0xff]  ;;  %v14950_v63 = vcombine.high %v1396_v56, %v1404_v57  ;;  %v14949_v13 = vcombine.low %v1396_v56, %v1404_v57 }
 0x117   :  { %3578 = vmatprep.mubr.bf16.mxu0 %v19137_v35  ;;  %v14678_v1 = vcombine.high %v1124_v21, %v1132_v62  ;;  %v14677_v9 = vcombine.low %v1124_v21, %v1132_v62  ;;  %v14933_v10 = vcombine.low %v1380_v0, %v1388_v7  ;;  %v1356_v15 = vld [vmem:[%s25214_s3 + $0x748] sm:$0xff] }
 0x118   :  { %25269 = vst [vmem:[#allocation5_spill] sm:$0xff] %v19135_v34  ;;  %v19139_v36 = vpack.c.bf16 %v599_v30, %v595_v12  ;;  %3579 = vmatmul.mubr.bf16.gmra.mxu0 %v19133_v33  ;;  %v1348_v12 = vld [vmem:[%s25214_s3 + $0x708] sm:$0xff] }
 0x119   :  { %3687 = vmatpush1.bf16.msra.mxu1 %v14757_v51  ;;  %3760 = vmatpush1.bf16.msra.mxu0 %v15013_v17  ;;  %v1372_v51 = vld [vmem:[%s25214_s3 + $0x7c8] sm:$0xff]  ;;  %v19203_v17 = vld [vmem:[%s25214_s3 + $0x390] sm:$0xff]  ;;  %v14902_v23 = vcombine.high %v1348_v12, %v1356_v15 }
 0x11a   :  { %3688 = vmatprep.subr.bf16.mxu1 %v14742_v24  ;;  %3761 = vmatprep.subr.bf16.mxu0 %v14998_v27  ;;  %v14918_v11 = vcombine.high %v1364_v50, %v1372_v51  ;;  %v14917_v20 = vcombine.low %v1364_v50, %v1372_v51  ;;  %v1332_v24 = vld [vmem:[%s25214_s3 + $0x688] sm:$0xff]  ;;  %v14792_v25 = vcombine.high %v19203_v17, %v19208_v18  ;;  %v19255_v50 = vld [vmem:[%s25214_s3 + $0xb90] sm:$0xff] }
 0x11b   :  { %15076 = vmatprep.mubr.msk.bf16.mxu1 %vm3523_vm0, %v19139_v36  ;;  %v1340_v26 = vld [vmem:[%s25214_s3 + $0x6c8] sm:$0xff]  ;;  %v14901_v27 = vcombine.low %v1348_v12, %v1356_v15  ;;  %v19260_v51 = vld [vmem:[%s25214_s3 + $0xbd0] sm:$0xff] }
 0x11c   :  { %3652 = vmatmul.mubr.bf16.gmra.mxu1 %v19135_v34  ;;  %v14886_v28 = vcombine.high %v1332_v24, %v1340_v26  ;;  %v1316_v29 = vld [vmem:[%s25214_s3 + $0x608] sm:$0xff]  ;;  %v14885_v31 = vcombine.low %v1332_v24, %v1340_v26 }
 0x11d   :  { %3689 = vmatpush1.bf16.msra.mxu1 %v14741_v32  ;;  %3762 = vmatpush1.bf16.msra.mxu0 %v14997_v37  ;;  %v1324_v30 = vld [vmem:[%s25214_s3 + $0x648] sm:$0xff] }
 0x11e   :  { %3690 = vmatprep.subr.bf16.mxu1 %v14726_v38  ;;  %3763 = vmatprep.subr.bf16.mxu0 %v14982_v46  ;;  %v14870_v32 = vcombine.high %v1316_v29, %v1324_v30  ;;  %v1300_v37 = vld [vmem:[%s25214_s3 + $0x588] sm:$0xff]  ;;  %v14869_v40 = vcombine.low %v1316_v29, %v1324_v30 }
 0x11f   :  { %v1308_v38 = vld [vmem:[%s25214_s3 + $0x5c8] sm:$0xff] }
 0x120   :  { %v14854_v41 = vcombine.high %v1300_v37, %v1308_v38  ;;  %v1284_v46 = vld [vmem:[%s25214_s3 + $0x508] sm:$0xff]  ;;  %v14853_v5 = vcombine.low %v1300_v37, %v1308_v38 }
 0x121   :  { %3691 = vmatpush1.bf16.msra.mxu1 %v14725_v48  ;;  %3764 = vmatpush1.bf16.msra.mxu0 %v14981_v19  ;;  %v1292_v47 = vld [vmem:[%s25214_s3 + $0x548] sm:$0xff] }
 0x122   :  { %3692 = vmatprep.subr.bf16.mxu1 %v14710_v49  ;;  %3765 = vmatprep.subr.bf16.mxu0 %v14966_v55  ;;  %v14838_v48 = vcombine.high %v1284_v46, %v1292_v47  ;;  %v1268_v19 = vld [vmem:[%s25214_s3 + $0x488] sm:$0xff]  ;;  %v14837_v53 = vcombine.low %v1284_v46, %v1292_v47 }
 0x123   :  { %v1276_v49 = vld [vmem:[%s25214_s3 + $0x4c8] sm:$0xff] }
 0x124   :  { %v14822_v56 = vcombine.high %v1268_v19, %v1276_v49  ;;  %v1252_v57 = vld [vmem:[%s25214_s3 + $0x408] sm:$0xff]  ;;  %v14821_v21 = vcombine.low %v1268_v19, %v1276_v49 }
 0x125   :  { %3693 = vmatpush1.bf16.msra.mxu1 %v14709_v58  ;;  %3766 = vmatpush1.bf16.msra.mxu0 %v14965_v59  ;;  %v1260_v58 = vld [vmem:[%s25214_s3 + $0x448] sm:$0xff] }
 0x126   :  { %3694 = vmatprep.subr.bf16.mxu1 %v14694_v61  ;;  %3767 = vmatprep.subr.bf16.mxu0 %v14950_v63  ;;  %v14806_v0 = vcombine.high %v1252_v57, %v1260_v58  ;;  %v14805_v12 = vcombine.low %v1252_v57, %v1260_v58 }
 0x129   :  { %3695 = vmatpush1.bf16.msra.mxu1 %v14693_v8  ;;  %3768 = vmatpush1.bf16.msra.mxu0 %v14949_v13 }
 0x12a   :  { %3696 = vmatprep.subr.bf16.mxu1 %v14678_v1  ;;  %3769 = vmatprep.subr.bf16.mxu0 %v14934_v52 }
 0x12d   :  { %3697 = vmatpush1.bf16.msra.mxu1 %v14677_v9  ;;  %3770 = vmatpush1.bf16.msra.mxu0 %v14933_v10 }
 0x12e   :  { %3698 = vmatprep.subr.bf16.mxu1 %v14918_v11  ;;  %3785 = vmatprep.subr.bf16.mxu0 %v15062_v16 }
 0x131   :  { %3699 = vmatpush2.bf16.msra.mxu1 %v14917_v20  ;;  %3786 = vmatpush2.bf16.msra.mxu0 %v15061_v22 }
 0x132   :  { %3700 = vmatprep.subr.bf16.mxu1 %v14902_v23  ;;  %3828 = vmatprep.subr.bf16.mxu0 %v14792_v25  ;;  %v15048_v23 = vcombine.high %v19255_v50, %v19260_v51 }
 0x135   :  { %3701 = vmatpush2.bf16.msra.mxu1 %v14901_v27 }
 0x136   :  { %3702 = vmatprep.subr.bf16.mxu1 %v14886_v28 }
 0x139   :  { %3703 = vmatpush2.bf16.msra.mxu1 %v14885_v31 }
 0x13a   :  { %3704 = vmatprep.subr.bf16.mxu1 %v14870_v32 }
 0x13d   :  { %3705 = vmatpush2.bf16.msra.mxu1 %v14869_v40 }
 0x13e   :  { %3706 = vmatprep.subr.bf16.mxu1 %v14854_v41 }
 0x141   :  { %3707 = vmatpush2.bf16.msra.mxu1 %v14853_v5 }
 0x142   :  { %v1027_v54 = vpop.f32.mrf.mxu0  ;;  %v1080_v55 = vpop.f32.mrf.mxu1  ;;  %3708 = vmatprep.subr.bf16.mxu1 %v14838_v48 }
 0x143   :  { %v1028_v52 = vadd.f32 %v1027_v54, %v19042_v6  ;;  %v1081_v3 = vadd.f32 %v1080_v55, %v19042_v6 }
 0x144   :  { %v1029_v59 = vpop.f32.mrf.mxu0  ;;  %v1082_v61 = vpop.f32.mrf.mxu1 }
 0x145   :  { %3709 = vmatpush2.bf16.msra.mxu1 %v14837_v53  ;;  %v1030_v7 = vadd.f32 %v1029_v59, %v19042_v6  ;;  %v1083_v8 = vadd.f32 %v1082_v61, %v19042_v6  ;;  %v1099_v27 = vmax.f32 %v1028_v52, 0.0  ;;  %v1101_v28 = vmax.f32 %v1081_v3, 0.0  ;;  %v1485_v52 = vld [vmem:[%s25214_s3 + $0xb50] sm:$0xff] }
 0x146   :  { %v1031_v62 = vpop.f32.mrf.mxu0  ;;  %v1084_v63 = vpop.f32.mrf.mxu1  ;;  %3710 = vmatprep.subr.bf16.mxu1 %v14822_v56  ;;  %v14791_v3 = vcombine.low %v19203_v17, %v19208_v18  ;;  %v1469_v17 = vld [vmem:[%s25214_s3 + $0xad0] sm:$0xff] }
 0x147   :  { %v1032_v13 = vadd.f32 %v1031_v62, %v19044_v14  ;;  %v1085_v1 = vadd.f32 %v1084_v63, %v19044_v14  ;;  %v1100_v24 = vmax.f32 %v1030_v7, 0.0  ;;  %v1102_v25 = vmax.f32 %v1083_v8, 0.0 }
 0x148   :  { %v1033_v4 = vpop.f32.mrf.mxu0  ;;  %v1086_v9 = vpop.f32.mrf.mxu1 }
 0x149   :  { %v1034_v10 = vadd.f32 %v1033_v4, %v19044_v14  ;;  %v1087_v11 = vadd.f32 %v1086_v9, %v19044_v14  ;;  %3711 = vmatpush2.bf16.msra.mxu1 %v14821_v21  ;;  %v1103_v15 = vmax.f32 %v1032_v13, 0.0  ;;  %v1105_v16 = vmax.f32 %v1085_v1, 0.0  ;;  %v1229_v13 = vld [vmem:[%s25214_s3 + $0x350] sm:$0xff] }
 0x14a   :  { %v1037_v20 = vpop.f32.mrf.mxu0  ;;  %v1090_v22 = vpop.f32.mrf.mxu1  ;;  %3712 = vmatprep.subr.bf16.mxu1 %v14806_v0  ;;  %v1477_v1 = vld [vmem:[%s25214_s3 + $0xb10] sm:$0xff]  ;;  %v15047_v4 = vcombine.low %v19255_v50, %v19260_v51 }
 0x14b   :  { %v1104_v26 = vmax.f32 %v1034_v10, 0.0  ;;  %v1106_v6 = vmax.f32 %v1087_v11, 0.0  ;;  %v19272_v32 = vpack.c.bf16 %v1103_v15, %v1099_v27  ;;  %v19274_v37 = vpack.c.bf16 %v1105_v16, %v1101_v28  ;;  %v1205_v9 = vld [vmem:[%s25214_s3 + $0x290] sm:$0xff] }
 0x14c   :  { %v1039_v29 = vpop.f32.mrf.mxu0  ;;  %v1092_v30 = vpop.f32.mrf.mxu1  ;;  %v1038_v48 = vadd.f32 %v1037_v20, %v19066_v39  ;;  %v1091_v19 = vadd.f32 %v1090_v22, %v19066_v39  ;;  %v15032_v11 = vcombine.high %v1477_v1, %v1485_v52  ;;  %v1461_v15 = vld [vmem:[%s25214_s3 + $0xa90] sm:$0xff]  ;;  %v15031_v50 = vcombine.low %v1477_v1, %v1485_v52 }
 0x14d   :  { %v19268_v31 = vpack.c.bf16 %v1104_v26, %v1100_v24  ;;  %v19270_v14 = vpack.c.bf16 %v1106_v6, %v1102_v25  ;;  %3713 = vmatpush2.bf16.msra.mxu1 %v14805_v12  ;;  %25271 = vst [vmem:[#allocation7_spill] sm:$0xff] %v19274_v37  ;;  %v1040_v38 = vadd.f32 %v1039_v29, %v19066_v39  ;;  %v1213_v12 = vld [vmem:[%s25214_s3 + $0x2d0] sm:$0xff] }
 0x14e   :  { %v1041_v40 = vpop.f32.mrf.mxu0  ;;  %v1094_v41 = vpop.f32.mrf.mxu1  ;;  %3901 = vmatprep.subr.bf16.mxu1 %v15048_v23  ;;  %v1093_v46 = vadd.f32 %v1092_v30, %v19066_v39  ;;  %v1107_v62 = vmax.f32 %v1038_v48, 0.0  ;;  %v1109_v63 = vmax.f32 %v1091_v19, 0.0  ;;  %v14760_v51 = vcombine.high %v1205_v9, %v1213_v12  ;;  %v1189_v20 = vld [vmem:[%s25214_s3 + $0x210] sm:$0xff] }
 0x14f   :  { %25270 = vst [vmem:[#allocation6_spill] sm:$0xff] %v19270_v14  ;;  %v1042_v47 = vadd.f32 %v1041_v40, %v19098_v60  ;;  %v1095_v5 = vadd.f32 %v1094_v41, %v19098_v60  ;;  %3588 = vmatprep.mubr.bf16.mxu0 %v19268_v31  ;;  %15077 = vmatprep.mubr.msk.bf16.mxu1 %vm3523_vm0, %v19270_v14  ;;  %v1108_v58 = vmax.f32 %v1040_v38, 0.0  ;;  %v1197_v22 = vld [vmem:[%s25214_s3 + $0x250] sm:$0xff] }
 0x150   :  { %v1043_v49 = vpop.f32.mrf.mxu0  ;;  %v1096_v53 = vpop.f32.mrf.mxu1  ;;  %3589 = vmatmul.mubr.bf16.gmra.mxu0 %v19272_v32  ;;  %3662 = vmatmul.mubr.bf16.gmra.mxu1 %v19274_v37  ;;  %v1110_v59 = vmax.f32 %v1093_v46, 0.0  ;;  %v15016_v16 = vcombine.high %v1461_v15, %v1469_v17  ;;  %v1445_v23 = vld [vmem:[%s25214_s3 + $0xa10] sm:$0xff]  ;;  %v14759_v25 = vcombine.low %v1205_v9, %v1213_v12  ;;  %v15015_v26 = vcombine.low %v1461_v15, %v1469_v17 }
 0x151   :  { %v1044_v54 = vadd.f32 %v1043_v49, %v19098_v60  ;;  %v1097_v55 = vadd.f32 %v1096_v53, %v19098_v60  ;;  %v1111_v56 = vmax.f32 %v1042_v47, 0.0  ;;  %v1113_v57 = vmax.f32 %v1095_v5, 0.0  ;;  %v1221_v60 = vld [vmem:[%s25214_s3 + $0x310] sm:$0xff] }
 0x152   :  { %v14776_v10 = vcombine.high %v1221_v60, %v1229_v13  ;;  %v14775_v18 = vcombine.low %v1221_v60, %v1229_v13  ;;  %v1453_v24 = vld [vmem:[%s25214_s3 + $0xa50] sm:$0xff]  ;;  %v14744_v27 = vcombine.high %v1189_v20, %v1197_v22  ;;  %v14743_v40 = vcombine.low %v1189_v20, %v1197_v22 }
 0x153   :  { %v1112_v61 = vmax.f32 %v1044_v54, 0.0  ;;  %v1114_v21 = vmax.f32 %v1097_v55, 0.0  ;;  %v19293_v7 = vpack.c.bf16 %v1111_v56, %v1107_v62  ;;  %v19295_v8 = vpack.c.bf16 %v1113_v57, %v1109_v63  ;;  %v1173_v6 = vld [vmem:[%s25214_s3 + $0x190] sm:$0xff] }
 0x154   :  { %v15000_v28 = vcombine.high %v1445_v23, %v1453_v24  ;;  %v1181_v29 = vld [vmem:[%s25214_s3 + $0x1d0] sm:$0xff]  ;;  %v14999_v41 = vcombine.low %v1445_v23, %v1453_v24  ;;  %v1238_v24 = vld [vmem:[%s25214_s3 + $0x398] sm:$0xff] }
 0x155   :  { %v19289_v0 = vpack.c.bf16 %v1112_v61, %v1108_v58  ;;  %v19291_v39 = vpack.c.bf16 %v1114_v21, %v1110_v59  ;;  %v1429_v30 = vld [vmem:[%s25214_s3 + $0x990] sm:$0xff]  ;;  %v14728_v46 = vcombine.high %v1173_v6, %v1181_v29  ;;  %v14727_v53 = vcombine.low %v1173_v6, %v1181_v29 }
 0x156   :  { %v1437_v38 = vld [vmem:[%s25214_s3 + $0x9d0] sm:$0xff] }
 0x157   :  { %25272 = vst [vmem:[#allocation8_spill] sm:$0xff] %v19291_v39  ;;  %3598 = vmatprep.mubr.bf16.mxu0 %v19289_v0  ;;  %15078 = vmatprep.mubr.msk.bf16.mxu1 %vm3523_vm0, %v19291_v39  ;;  %v14984_v47 = vcombine.high %v1429_v30, %v1437_v38  ;;  %v1157_v5 = vld [vmem:[%s25214_s3 + $0x110] sm:$0xff]  ;;  %v14983_v54 = vcombine.low %v1429_v30, %v1437_v38  ;;  %v1222_v38 = vld [vmem:[%s25214_s3 + $0x318] sm:$0xff] }
 0x158   :  { %3599 = vmatmul.mubr.bf16.gmra.mxu0 %v19293_v7  ;;  %3672 = vmatmul.mubr.bf16.gmra.mxu1 %v19295_v8  ;;  %v1165_v48 = vld [vmem:[%s25214_s3 + $0x150] sm:$0xff] }
 0x159   :  { %3714 = vmatprep.mubr.bf16.mxu1 %v19068_v42  ;;  %15079 = vmatprep.mubr.msk.bf16.mxu0 %vm3523_vm0, %v19070_v43  ;;  %v1413_v19 = vld [vmem:[%s25214_s3 + $0x910] sm:$0xff]  ;;  %v14712_v56 = vcombine.high %v1157_v5, %v1165_v48  ;;  %v14711_v21 = vcombine.low %v1157_v5, %v1165_v48 }
 0x15a   :  { %v1421_v49 = vld [vmem:[%s25214_s3 + $0x950] sm:$0xff] }
 0x15b   :  { %v1141_v55 = vld [vmem:[%s25214_s3 + $0x90] sm:$0xff]  ;;  %v14968_v57 = vcombine.high %v1413_v19, %v1421_v49  ;;  %v14967_v62 = vcombine.low %v1413_v19, %v1421_v49  ;;  %v1206_v49 = vld [vmem:[%s25214_s3 + $0x298] sm:$0xff] }
 0x15c   :  { %v1149_v58 = vld [vmem:[%s25214_s3 + $0xd0] sm:$0xff] }
 0x15d   :  { %v1397_v59 = vld [vmem:[%s25214_s3 + $0x890] sm:$0xff]  ;;  %v14696_v63 = vcombine.high %v1141_v55, %v1149_v58 }
 0x15e   :  { %v1405_v61 = vld [vmem:[%s25214_s3 + $0x8d0] sm:$0xff] }
 0x15f   :  { %v14952_v60 = vcombine.high %v1397_v59, %v1405_v61  ;;  %v1125_v13 = vld [vmem:[%s25214_s3 + $0x10] sm:$0xff]  ;;  %v14951_v9 = vcombine.low %v1397_v59, %v1405_v61  ;;  %v1190_v61 = vld [vmem:[%s25214_s3 + $0x218] sm:$0xff] }
 0x160   :  { %3715 = vmatmul.mubr.bf16.vlgmr.msra.gmra.mxu1 %v19072_v44  ;;  %3788 = vmatmul.mubr.bf16.vlgmr.msra.gmra.mxu0 %v19074_v45  ;;  %v1133_v1 = vld [vmem:[%s25214_s3 + $0x50] sm:$0xff] }
 0x161   :  { %3829 = vmatpush1.bf16.msra.mxu0 %v14791_v3  ;;  %3902 = vmatpush1.bf16.msra.mxu1 %v15047_v4  ;;  %v1381_v52 = vld [vmem:[%s25214_s3 + $0x810] sm:$0xff]  ;;  %v14695_v4 = vcombine.low %v1141_v55, %v1149_v58 }
 0x162   :  { %3724 = vmatprep.mubr.bf16.mxu1 %v19137_v35  ;;  %15080 = vmatprep.mubr.msk.bf16.mxu0 %vm3523_vm0, %v19139_v36  ;;  %v1389_v3 = vld [vmem:[%s25214_s3 + $0x850] sm:$0xff] }
 0x163   :  { %3830 = vmatprep.subr.bf16.mxu0 %v14776_v10  ;;  %3903 = vmatprep.subr.bf16.mxu1 %v15032_v11  ;;  %v1365_v10 = vld [vmem:[%s25214_s3 + $0x790] sm:$0xff]  ;;  %v14680_v11 = vcombine.high %v1125_v13, %v1133_v1  ;;  %v14936_v12 = vcombine.high %v1381_v52, %v1389_v3 }
 0x164   :  { %v1373_v15 = vld [vmem:[%s25214_s3 + $0x7d0] sm:$0xff] }
 0x165   :  { %3831 = vmatpush1.bf16.msra.mxu0 %v14775_v18  ;;  %3904 = vmatpush1.bf16.msra.mxu1 %v15031_v50  ;;  %v1509_v17 = vld [vmem:[%s25214_s3 + $0xc10] sm:$0xff]  ;;  %v14679_v50 = vcombine.low %v1125_v13, %v1133_v1  ;;  %v14920_v20 = vcombine.high %v1365_v10, %v1373_v15 }
 0x166   :  { %3832 = vmatprep.subr.bf16.mxu0 %v14760_v51  ;;  %3905 = vmatprep.subr.bf16.mxu1 %v15016_v16  ;;  %v1517_v18 = vld [vmem:[%s25214_s3 + $0xc50] sm:$0xff]  ;;  %v14935_v51 = vcombine.low %v1381_v52, %v1389_v3  ;;  %v1174_v3 = vld [vmem:[%s25214_s3 + $0x198] sm:$0xff] }
 0x167   :  { %v1349_v16 = vld [vmem:[%s25214_s3 + $0x710] sm:$0xff]  ;;  %v15064_v22 = vcombine.high %v1509_v17, %v1517_v18  ;;  %v15063_v6 = vcombine.low %v1509_v17, %v1517_v18  ;;  %v1158_v18 = vld [vmem:[%s25214_s3 + $0x118] sm:$0xff] }
 0x168   :  { %3725 = vmatmul.mubr.bf16.gmra.mxu1 %v19133_v33  ;;  %3798 = vmatmul.mubr.bf16.gmra.mxu0 %v19135_v34  ;;  %v1357_v23 = vld [vmem:[%s25214_s3 + $0x750] sm:$0xff] }
 0x169   :  { %3833 = vmatpush1.bf16.msra.mxu0 %v14759_v25  ;;  %3906 = vmatpush1.bf16.msra.mxu1 %v15015_v26  ;;  %v1246_v25 = vld [vmem:[%s25214_s3 + $0x3d8] sm:$0xff]  ;;  %v14919_v26 = vcombine.low %v1365_v10, %v1373_v15  ;;  %v1333_v29 = vld [vmem:[%s25214_s3 + $0x690] sm:$0xff] }
 0x16a   :  { %3734 = vmatprep.mubr.bf16.mxu1 %v19268_v31  ;;  %15081 = vmatprep.mubr.msk.bf16.mxu0 %vm3523_vm0, %v19270_v14  ;;  %v1341_v30 = vld [vmem:[%s25214_s3 + $0x6d0] sm:$0xff] }
 0x16b   :  { %3834 = vmatprep.subr.bf16.mxu0 %v14744_v27  ;;  %3907 = vmatprep.subr.bf16.mxu1 %v15000_v28  ;;  %v14904_v27 = vcombine.high %v1349_v16, %v1357_v23  ;;  %v14794_v28 = vcombine.high %v1238_v24, %v1246_v25  ;;  %v1317_v48 = vld [vmem:[%s25214_s3 + $0x610] sm:$0xff] }
 0x16c   :  { %v1325_v19 = vld [vmem:[%s25214_s3 + $0x650] sm:$0xff] }
 0x16d   :  { %3835 = vmatpush1.bf16.msra.mxu0 %v14743_v40  ;;  %3908 = vmatpush1.bf16.msra.mxu1 %v14999_v41  ;;  %v1230_v40 = vld [vmem:[%s25214_s3 + $0x358] sm:$0xff]  ;;  %v14903_v41 = vcombine.low %v1349_v16, %v1357_v23  ;;  %v1301_v58 = vld [vmem:[%s25214_s3 + $0x590] sm:$0xff] }
 0x16e   :  { %3836 = vmatprep.subr.bf16.mxu0 %v14728_v46  ;;  %3909 = vmatprep.subr.bf16.mxu1 %v14984_v47  ;;  %v14793_v46 = vcombine.low %v1238_v24, %v1246_v25  ;;  %v14888_v47 = vcombine.high %v1333_v29, %v1341_v30  ;;  %v14778_v5 = vcombine.high %v1222_v38, %v1230_v40  ;;  %v1309_v59 = vld [vmem:[%s25214_s3 + $0x5d0] sm:$0xff]  ;;  %v1142_v25 = vld [vmem:[%s25214_s3 + $0x98] sm:$0xff] }
 0x16f   :  { %v14777_v55 = vcombine.low %v1222_v38, %v1230_v40  ;;  %v1285_v1 = vld [vmem:[%s25214_s3 + $0x510] sm:$0xff]  ;;  %v1494_v38 = vld [vmem:[%s25214_s3 + $0xb98] sm:$0xff] }
 0x170   :  { %3735 = vmatmul.mubr.bf16.gmra.mxu1 %v19272_v32  ;;  %3808 = vmatmul.mubr.bf16.gmra.mxu0 %v19274_v37  ;;  %v1293_v52 = vld [vmem:[%s25214_s3 + $0x550] sm:$0xff]  ;;  %v1502_v40 = vld [vmem:[%s25214_s3 + $0xbd8] sm:$0xff] }
 0x171   :  { %3837 = vmatpush1.bf16.msra.mxu0 %v14727_v53  ;;  %3910 = vmatpush1.bf16.msra.mxu1 %v14983_v54  ;;  %v1214_v53 = vld [vmem:[%s25214_s3 + $0x2d8] sm:$0xff]  ;;  %v14887_v54 = vcombine.low %v1333_v29, %v1341_v30  ;;  %v1269_v15 = vld [vmem:[%s25214_s3 + $0x490] sm:$0xff] }
 0x172   :  { %3744 = vmatprep.mubr.bf16.mxu1 %v19289_v0  ;;  %15082 = vmatprep.mubr.msk.bf16.mxu0 %vm3523_vm0, %v19291_v39  ;;  %v1277_v17 = vld [vmem:[%s25214_s3 + $0x4d0] sm:$0xff]  ;;  %v1126_v30 = vld [vmem:[%s25214_s3 + $0x18] sm:$0xff] }
 0x173   :  { %3838 = vmatprep.subr.bf16.mxu0 %v14712_v56  ;;  %3911 = vmatprep.subr.bf16.mxu1 %v14968_v57  ;;  %v14872_v56 = vcombine.high %v1317_v48, %v1325_v19  ;;  %v14762_v57 = vcombine.high %v1206_v49, %v1214_v53  ;;  %v1253_v23 = vld [vmem:[%s25214_s3 + $0x410] sm:$0xff] }
 0x174   :  { %v1261_v24 = vld [vmem:[%s25214_s3 + $0x450] sm:$0xff] }
 0x175   :  { %3839 = vmatpush1.bf16.msra.mxu0 %v14711_v21  ;;  %3912 = vmatpush1.bf16.msra.mxu1 %v14967_v62  ;;  %v1198_v21 = vld [vmem:[%s25214_s3 + $0x258] sm:$0xff]  ;;  %v14871_v62 = vcombine.low %v1317_v48, %v1325_v19 }
 0x176   :  { %3840 = vmatprep.subr.bf16.mxu0 %v14696_v63  ;;  %3913 = vmatprep.subr.bf16.mxu1 %v14952_v60  ;;  %v14761_v63 = vcombine.low %v1206_v49, %v1214_v53  ;;  %v14856_v60 = vcombine.high %v1301_v58, %v1309_v59  ;;  %v14746_v13 = vcombine.high %v1190_v61, %v1198_v21  ;;  %v1366_v19 = vld [vmem:[%s25214_s3 + $0x798] sm:$0xff] }
 0x177   :  { %v14745_v10 = vcombine.low %v1190_v61, %v1198_v21  ;;  %v1478_v49 = vld [vmem:[%s25214_s3 + $0xb18] sm:$0xff] }
 0x178   :  { %3745 = vmatmul.mubr.bf16.gmra.mxu1 %v19293_v7  ;;  %3818 = vmatmul.mubr.bf16.gmra.mxu0 %v19295_v8  ;;  %v1486_v53 = vld [vmem:[%s25214_s3 + $0xb58] sm:$0xff] }
 0x179   :  { %3841 = vmatpush1.bf16.msra.mxu0 %v14695_v4  ;;  %3914 = vmatpush1.bf16.msra.mxu1 %v14951_v9  ;;  %v1182_v4 = vld [vmem:[%s25214_s3 + $0x1d8] sm:$0xff]  ;;  %v14855_v9 = vcombine.low %v1301_v58, %v1309_v59 }
 0x17a   :  { %3860 = vmatprep.mubr.bf16.mxu0 %v19068_v42  ;;  %15083 = vmatprep.mubr.msk.bf16.mxu1 %vm3523_vm0, %v19070_v43  ;;  %v14729_v16 = vcombine.low %v1174_v3, %v1182_v4  ;;  %v1350_v59 = vld [vmem:[%s25214_s3 + $0x718] sm:$0xff] }
 0x17b   :  { %3842 = vmatprep.subr.bf16.mxu0 %v14680_v11  ;;  %3915 = vmatprep.subr.bf16.mxu1 %v14936_v12  ;;  %v14840_v11 = vcombine.high %v1285_v1, %v1293_v52  ;;  %v14730_v12 = vcombine.high %v1174_v3, %v1182_v4  ;;  %v1462_v61 = vld [vmem:[%s25214_s3 + $0xa98] sm:$0xff] }
 0x17c   :  { %v1470_v21 = vld [vmem:[%s25214_s3 + $0xad8] sm:$0xff] }
 0x17d   :  { %3843 = vmatpush1.bf16.msra.mxu0 %v14679_v50  ;;  %3916 = vmatpush1.bf16.msra.mxu1 %v14935_v51  ;;  %v1166_v50 = vld [vmem:[%s25214_s3 + $0x158] sm:$0xff]  ;;  %v14839_v51 = vcombine.low %v1285_v1, %v1293_v52 }
 0x17e   :  { %3844 = vmatprep.subr.bf16.mxu0 %v14920_v20  ;;  %3931 = vmatprep.subr.bf16.mxu1 %v15064_v22  ;;  %v14824_v20 = vcombine.high %v1269_v15, %v1277_v17  ;;  %v14714_v22 = vcombine.high %v1158_v18, %v1166_v50  ;;  %v1334_v52 = vld [vmem:[%s25214_s3 + $0x698] sm:$0xff] }
 0x17f   :  { %v1446_v3 = vld [vmem:[%s25214_s3 + $0xa18] sm:$0xff] }
 0x180   :  { %v1454_v4 = vld [vmem:[%s25214_s3 + $0xa58] sm:$0xff] }
 0x181   :  { %3845 = vmatpush2.bf16.msra.mxu0 %v14919_v26  ;;  %3932 = vmatpush2.bf16.msra.mxu1 %v15063_v6  ;;  %v1150_v26 = vld [vmem:[%s25214_s3 + $0xd8] sm:$0xff]  ;;  %v14823_v6 = vcombine.low %v1269_v15, %v1277_v17 }
 0x182   :  { %3846 = vmatprep.subr.bf16.mxu0 %v14904_v27  ;;  %3974 = vmatprep.subr.bf16.mxu1 %v14794_v28  ;;  %v14713_v27 = vcombine.low %v1158_v18, %v1166_v50  ;;  %v14808_v28 = vcombine.high %v1253_v23, %v1261_v24  ;;  %v14698_v29 = vcombine.high %v1142_v25, %v1150_v26  ;;  %v1318_v17 = vld [vmem:[%s25214_s3 + $0x618] sm:$0xff] }
 0x183   :  { %v1430_v18 = vld [vmem:[%s25214_s3 + $0x998] sm:$0xff] }
 0x184   :  { %3934 = vmatmul.mubr.bf16.vlgmr.msra.gmra.mxu1 %v19074_v45  ;;  %v1438_v50 = vld [vmem:[%s25214_s3 + $0x9d8] sm:$0xff] }
 0x185   :  { %3847 = vmatpush2.bf16.msra.mxu0 %v14903_v41  ;;  %15084 = vmatprep.mubr.msk.bf16.mxu1 %vm3523_vm0, %v19139_v36  ;;  %v1134_v41 = vld [vmem:[%s25214_s3 + $0x58] sm:$0xff] }
 0x186   :  { %3975 = vmatpush1.bf16.msra.mxu1 %v14793_v46  ;;  %3848 = vmatprep.subr.bf16.mxu0 %v14888_v47  ;;  %v14807_v46 = vcombine.low %v1253_v23, %v1261_v24  ;;  %v14697_v47 = vcombine.low %v1142_v25, %v1150_v26  ;;  %v14682_v48 = vcombine.high %v1126_v30, %v1134_v41  ;;  %v1302_v26 = vld [vmem:[%s25214_s3 + $0x598] sm:$0xff] }
 0x187   :  { %3976 = vmatprep.subr.bf16.mxu1 %v14778_v5  ;;  %v15050_v5 = vcombine.high %v1494_v38, %v1502_v40  ;;  %v14986_v24 = vcombine.high %v1430_v18, %v1438_v50 }
 0x189   :  { %3849 = vmatpush2.bf16.msra.mxu0 %v14887_v54  ;;  %v1374_v54 = vld [vmem:[%s25214_s3 + $0x7d8] sm:$0xff] }
 0x18a   :  { %3977 = vmatpush1.bf16.msra.mxu1 %v14777_v55  ;;  %3850 = vmatprep.subr.bf16.mxu0 %v14872_v56  ;;  %v15049_v55 = vcombine.low %v1494_v38, %v1502_v40  ;;  %v14681_v56 = vcombine.low %v1126_v30, %v1134_v41  ;;  %v14922_v58 = vcombine.high %v1366_v19, %v1374_v54  ;;  %v1286_v41 = vld [vmem:[%s25214_s3 + $0x518] sm:$0xff] }
 0x18b   :  { %3978 = vmatprep.subr.bf16.mxu1 %v14762_v57  ;;  %v15034_v57 = vcombine.high %v1478_v49, %v1486_v53 }
 0x18c   :  { %3944 = vmatmul.mubr.bf16.gmra.mxu1 %v19135_v34 }
 0x18d   :  { %3851 = vmatpush2.bf16.msra.mxu0 %v14871_v62  ;;  %15085 = vmatprep.mubr.msk.bf16.mxu1 %vm3523_vm0, %v19270_v14  ;;  %v1358_v62 = vld [vmem:[%s25214_s3 + $0x758] sm:$0xff] }
 0x18e   :  { %3979 = vmatpush1.bf16.msra.mxu1 %v14761_v63  ;;  %3852 = vmatprep.subr.bf16.mxu0 %v14856_v60  ;;  %v15033_v63 = vcombine.low %v1478_v49, %v1486_v53  ;;  %v14921_v60 = vcombine.low %v1366_v19, %v1374_v54  ;;  %v14906_v1 = vcombine.high %v1350_v59, %v1358_v62  ;;  %v1270_v54 = vld [vmem:[%s25214_s3 + $0x498] sm:$0xff] }
 0x18f   :  { %3980 = vmatprep.subr.bf16.mxu1 %v14746_v13  ;;  %v15018_v13 = vcombine.high %v1462_v61, %v1470_v21 }
 0x191   :  { %3853 = vmatpush2.bf16.msra.mxu0 %v14855_v9  ;;  %v1342_v9 = vld [vmem:[%s25214_s3 + $0x6d8] sm:$0xff] }
 0x192   :  { %3981 = vmatpush1.bf16.msra.mxu1 %v14745_v10  ;;  %3854 = vmatprep.subr.bf16.mxu0 %v14840_v11  ;;  %v15017_v10 = vcombine.low %v1462_v61, %v1470_v21  ;;  %v14905_v11 = vcombine.low %v1350_v59, %v1358_v62  ;;  %v14890_v15 = vcombine.high %v1334_v52, %v1342_v9  ;;  %v1254_v62 = vld [vmem:[%s25214_s3 + $0x418] sm:$0xff] }
 0x193   :  { %3982 = vmatprep.subr.bf16.mxu1 %v14730_v12  ;;  %v15002_v12 = vcombine.high %v1446_v3, %v1454_v4  ;;  %v14889_v23 = vcombine.low %v1334_v52, %v1342_v9  ;;  %v1495_v9 = vld [vmem:[%s25214_s3 + $0xba0] sm:$0xff] }
 0x194   :  { %3954 = vmatmul.mubr.bf16.gmra.mxu1 %v19274_v37 }
 0x195   :  { %3855 = vmatpush2.bf16.msra.mxu0 %v14839_v51  ;;  %15086 = vmatprep.mubr.msk.bf16.mxu1 %vm3523_vm0, %v19291_v39  ;;  %v1326_v51 = vld [vmem:[%s25214_s3 + $0x658] sm:$0xff] }
 0x196   :  { %3983 = vmatpush1.bf16.msra.mxu1 %v14729_v16  ;;  %3856 = vmatprep.subr.bf16.mxu0 %v14824_v20  ;;  %v15001_v16 = vcombine.low %v1446_v3, %v1454_v4  ;;  %v1414_v20 = vld [vmem:[%s25214_s3 + $0x918] sm:$0xff]  ;;  %v14874_v25 = vcombine.high %v1318_v17, %v1326_v51  ;;  %v14873_v30 = vcombine.low %v1318_v17, %v1326_v51  ;;  %v1479_v51 = vld [vmem:[%s25214_s3 + $0xb20] sm:$0xff] }
 0x197   :  { %3984 = vmatprep.subr.bf16.mxu1 %v14714_v22  ;;  %v1422_v22 = vld [vmem:[%s25214_s3 + $0x958] sm:$0xff] }
 0x198   :  { %v14970_v38 = vcombine.high %v1414_v20, %v1422_v22 }
 0x199   :  { %3857 = vmatpush2.bf16.msra.mxu0 %v14823_v6  ;;  %v1310_v6 = vld [vmem:[%s25214_s3 + $0x5d8] sm:$0xff] }
 0x19a   :  { %3985 = vmatpush1.bf16.msra.mxu1 %v14713_v27  ;;  %3858 = vmatprep.subr.bf16.mxu0 %v14808_v28  ;;  %v14985_v27 = vcombine.low %v1430_v18, %v1438_v50  ;;  %v1398_v28 = vld [vmem:[%s25214_s3 + $0x898] sm:$0xff]  ;;  %v14858_v40 = vcombine.high %v1302_v26, %v1310_v6  ;;  %v14857_v19 = vcombine.low %v1302_v26, %v1310_v6  ;;  %v1223_v18 = vld [vmem:[%s25214_s3 + $0x320] sm:$0xff] }
 0x19b   :  { %3986 = vmatprep.subr.bf16.mxu1 %v14698_v29  ;;  %v1406_v29 = vld [vmem:[%s25214_s3 + $0x8d8] sm:$0xff]  ;;  %v1231_v50 = vld [vmem:[%s25214_s3 + $0x360] sm:$0xff] }
 0x19c   :  { %3964 = vmatmul.mubr.bf16.gmra.mxu1 %v19295_v8  ;;  %v14954_v49 = vcombine.high %v1398_v28, %v1406_v29  ;;  %v1215_v26 = vld [vmem:[%s25214_s3 + $0x2e0] sm:$0xff] }
 0x19d   :  { %3859 = vmatpush2.bf16.msra.mxu0 %v14807_v46  ;;  %4006 = vmatprep.mubr.bf16.mxu1 %v19068_v42  ;;  %v1294_v46 = vld [vmem:[%s25214_s3 + $0x558] sm:$0xff]  ;;  %v1463_v6 = vld [vmem:[%s25214_s3 + $0xaa0] sm:$0xff] }
 0x19e   :  { %3987 = vmatpush1.bf16.msra.mxu1 %v14697_v47  ;;  %4047 = vmatprep.subr.bf16.mxu0 %v15050_v5  ;;  %v14969_v47 = vcombine.low %v1414_v20, %v1422_v22  ;;  %v1382_v5 = vld [vmem:[%s25214_s3 + $0x818] sm:$0xff]  ;;  %v14842_v53 = vcombine.high %v1286_v41, %v1294_v46  ;;  %v14841_v59 = vcombine.low %v1286_v41, %v1294_v46  ;;  %v1199_v41 = vld [vmem:[%s25214_s3 + $0x260] sm:$0xff] }
 0x19f   :  { %3988 = vmatprep.subr.bf16.mxu1 %v14682_v48  ;;  %v1390_v48 = vld [vmem:[%s25214_s3 + $0x858] sm:$0xff]  ;;  %v1447_v46 = vld [vmem:[%s25214_s3 + $0xa20] sm:$0xff] }
 0x1a0   :  { %3861 = vmatmul.mubr.bf16.vlgmr.msra.gmra.mxu0 %v19072_v44  ;;  %v14938_v61 = vcombine.high %v1382_v5, %v1390_v48 }
 0x1a1   :  { %3870 = vmatprep.mubr.bf16.mxu0 %v19137_v35  ;;  %4048 = vmatpush1.bf16.msra.mxu0 %v15049_v55  ;;  %v1278_v55 = vld [vmem:[%s25214_s3 + $0x4d8] sm:$0xff] }
 0x1a2   :  { %3989 = vmatpush1.bf16.msra.mxu1 %v14681_v56  ;;  %4049 = vmatprep.subr.bf16.mxu0 %v15034_v57  ;;  %v14953_v56 = vcombine.low %v1398_v28, %v1406_v29  ;;  %v1510_v57 = vld [vmem:[%s25214_s3 + $0xc18] sm:$0xff]  ;;  %v14826_v21 = vcombine.high %v1270_v54, %v1278_v55  ;;  %v14825_v52 = vcombine.low %v1270_v54, %v1278_v55  ;;  %v1183_v54 = vld [vmem:[%s25214_s3 + $0x1e0] sm:$0xff] }
 0x1a3   :  { %3990 = vmatprep.subr.bf16.mxu1 %v14922_v58  ;;  %v1518_v58 = vld [vmem:[%s25214_s3 + $0xc58] sm:$0xff]  ;;  %v14779_v28 = vcombine.low %v1223_v18, %v1231_v50  ;;  %v1431_v55 = vld [vmem:[%s25214_s3 + $0x9a0] sm:$0xff] }
 0x1a4   :  { %v15066_v3 = vcombine.high %v1510_v57, %v1518_v58 }
 0x1a5   :  { %4050 = vmatpush1.bf16.msra.mxu0 %v15033_v63  ;;  %v1262_v63 = vld [vmem:[%s25214_s3 + $0x458] sm:$0xff] }
 0x1a6   :  { %3991 = vmatpush2.bf16.msra.mxu1 %v14921_v60  ;;  %4051 = vmatprep.subr.bf16.mxu0 %v15018_v13  ;;  %v14937_v60 = vcombine.low %v1382_v5, %v1390_v48  ;;  %v1239_v13 = vld [vmem:[%s25214_s3 + $0x3a0] sm:$0xff]  ;;  %v14810_v4 = vcombine.high %v1254_v62, %v1262_v63 }
 0x1a7   :  { %3992 = vmatprep.subr.bf16.mxu1 %v14906_v1  ;;  %v1247_v1 = vld [vmem:[%s25214_s3 + $0x3e0] sm:$0xff] }
 0x1a8   :  { %3871 = vmatmul.mubr.bf16.gmra.mxu0 %v19133_v33  ;;  %v14795_v20 = vcombine.low %v1239_v13, %v1247_v1 }
 0x1a9   :  { %3880 = vmatprep.mubr.bf16.mxu0 %v19268_v31  ;;  %4052 = vmatpush1.bf16.msra.mxu0 %v15017_v10  ;;  %v1503_v10 = vld [vmem:[%s25214_s3 + $0xbe0] sm:$0xff] }
 0x1aa   :  { %3993 = vmatpush2.bf16.msra.mxu1 %v14905_v11  ;;  %4053 = vmatprep.subr.bf16.mxu0 %v15002_v12  ;;  %v15065_v11 = vcombine.low %v1510_v57, %v1518_v58  ;;  %v14809_v12 = vcombine.low %v1254_v62, %v1262_v63  ;;  %v15052_v17 = vcombine.high %v1495_v9, %v1503_v10  ;;  %v1159_v63 = vld [vmem:[%s25214_s3 + $0x120] sm:$0xff] }
 0x1ab   :  { %3994 = vmatprep.subr.bf16.mxu1 %v14890_v15  ;;  %v14796_v15 = vcombine.high %v1239_v13, %v1247_v1  ;;  %v15051_v22 = vcombine.low %v1495_v9, %v1503_v10  ;;  %v1415_v13 = vld [vmem:[%s25214_s3 + $0x920] sm:$0xff] }
 0x1ad   :  { %4054 = vmatpush1.bf16.msra.mxu0 %v15001_v16  ;;  %v1487_v16 = vld [vmem:[%s25214_s3 + $0xb60] sm:$0xff] }
 0x1ae   :  { %3995 = vmatpush2.bf16.msra.mxu1 %v14889_v23  ;;  %4055 = vmatprep.subr.bf16.mxu0 %v14986_v24  ;;  %v14780_v23 = vcombine.high %v1223_v18, %v1231_v50  ;;  %v15036_v24 = vcombine.high %v1479_v51, %v1487_v16  ;;  %v15035_v29 = vcombine.low %v1479_v51, %v1487_v16  ;;  %v1143_v50 = vld [vmem:[%s25214_s3 + $0xa0] sm:$0xff] }
 0x1af   :  { %3996 = vmatprep.subr.bf16.mxu1 %v14874_v25  ;;  %v1207_v25 = vld [vmem:[%s25214_s3 + $0x2a0] sm:$0xff] }
 0x1b0   :  { %3881 = vmatmul.mubr.bf16.gmra.mxu0 %v19272_v32  ;;  %v14763_v5 = vcombine.low %v1207_v25, %v1215_v26  ;;  %v1151_v51 = vld [vmem:[%s25214_s3 + $0xe0] sm:$0xff] }
 0x1b1   :  { %3890 = vmatprep.mubr.bf16.mxu0 %v19289_v0  ;;  %4056 = vmatpush1.bf16.msra.mxu0 %v14985_v27  ;;  %v1471_v27 = vld [vmem:[%s25214_s3 + $0xae0] sm:$0xff] }
 0x1b2   :  { %3997 = vmatpush2.bf16.msra.mxu1 %v14873_v30  ;;  %4057 = vmatprep.subr.bf16.mxu0 %v14970_v38  ;;  %v14764_v30 = vcombine.high %v1207_v25, %v1215_v26  ;;  %v15020_v38 = vcombine.high %v1463_v6, %v1471_v27  ;;  %v15019_v48 = vcombine.low %v1463_v6, %v1471_v27  ;;  %v1399_v16 = vld [vmem:[%s25214_s3 + $0x8a0] sm:$0xff] }
 0x1b3   :  { %3998 = vmatprep.subr.bf16.mxu1 %v14858_v40  ;;  %v1191_v40 = vld [vmem:[%s25214_s3 + $0x220] sm:$0xff]  ;;  %v14700_v26 = vcombine.high %v1143_v50, %v1151_v51 }
 0x1b4   :  { %v14747_v57 = vcombine.low %v1191_v40, %v1199_v41  ;;  %v1127_v27 = vld [vmem:[%s25214_s3 + $0x20] sm:$0xff] }
 0x1b5   :  { %4058 = vmatpush1.bf16.msra.mxu0 %v14969_v47  ;;  %v1455_v47 = vld [vmem:[%s25214_s3 + $0xa60] sm:$0xff] }
 0x1b6   :  { %3999 = vmatpush2.bf16.msra.mxu1 %v14857_v19  ;;  %4059 = vmatprep.subr.bf16.mxu0 %v14954_v49  ;;  %v14748_v19 = vcombine.high %v1191_v40, %v1199_v41  ;;  %v15004_v49 = vcombine.high %v1447_v46, %v1455_v47  ;;  %v15003_v58 = vcombine.low %v1447_v46, %v1455_v47 }
 0x1b7   :  { %4000 = vmatprep.subr.bf16.mxu1 %v14842_v53  ;;  %v1175_v53 = vld [vmem:[%s25214_s3 + $0x1a0] sm:$0xff]  ;;  %v14699_v41 = vcombine.low %v1143_v50, %v1151_v51 }
 0x1b8   :  { %3891 = vmatmul.mubr.bf16.gmra.mxu0 %v19293_v7  ;;  %v14731_v9 = vcombine.low %v1175_v53, %v1183_v54  ;;  %v1335_v51 = vld [vmem:[%s25214_s3 + $0x6a0] sm:$0xff] }
 0x1b9   :  { %4060 = vmatpush1.bf16.msra.mxu0 %v14953_v56  ;;  %15087 = vmatprep.mubr.msk.bf16.mxu0 %vm3523_vm0, %v19070_v43  ;;  %v1439_v56 = vld [vmem:[%s25214_s3 + $0x9e0] sm:$0xff] }
 0x1ba   :  { %4001 = vmatpush2.bf16.msra.mxu1 %v14841_v59  ;;  %4061 = vmatprep.subr.bf16.mxu0 %v14938_v61  ;;  %v14732_v59 = vcombine.high %v1175_v53, %v1183_v54  ;;  %v14988_v62 = vcombine.high %v1431_v55, %v1439_v56 }
 0x1bb   :  { %4002 = vmatprep.subr.bf16.mxu1 %v14826_v21 }
 0x1bd   :  { %4062 = vmatpush1.bf16.msra.mxu0 %v14937_v60  ;;  %v1167_v60 = vld [vmem:[%s25214_s3 + $0x160] sm:$0xff] }
 0x1be   :  { %4003 = vmatpush2.bf16.msra.mxu1 %v14825_v52  ;;  %4077 = vmatprep.subr.bf16.mxu0 %v15066_v3  ;;  %v1423_v52 = vld [vmem:[%s25214_s3 + $0x960] sm:$0xff] }
 0x1bf   :  { %4004 = vmatprep.subr.bf16.mxu1 %v14810_v4  ;;  %v14972_v18 = vcombine.high %v1415_v13, %v1423_v52  ;;  %v14971_v25 = vcombine.low %v1415_v13, %v1423_v52  ;;  %v1359_v13 = vld [vmem:[%s25214_s3 + $0x760] sm:$0xff]  ;;  %v1240_v52 = vld [vmem:[%s25214_s3 + $0x3a8] sm:$0xff] }
 0x1c1   :  { %4078 = vmatpush2.bf16.msra.mxu0 %v15065_v11  ;;  %v14987_v11 = vcombine.low %v1431_v55, %v1439_v56  ;;  %v1519_v55 = vld [vmem:[%s25214_s3 + $0xc60] sm:$0xff] }
 0x1c2   :  { %4005 = vmatpush2.bf16.msra.mxu1 %v14809_v12  ;;  %4120 = vmatprep.subr.bf16.mxu0 %v14796_v15  ;;  %v14716_v12 = vcombine.high %v1159_v63, %v1167_v60 }
 0x1c3   :  { %4193 = vmatprep.subr.bf16.mxu1 %v15052_v17 }
 0x1c4   :  { %4080 = vmatmul.mubr.bf16.vlgmr.msra.gmra.mxu0 %v19074_v45 }
 0x1c5   :  { %4007 = vmatmul.mubr.bf16.vlgmr.msra.gmra.mxu1 %v19072_v44  ;;  %15088 = vmatprep.mubr.msk.bf16.mxu0 %vm3523_vm0, %v19139_v36 }
 0x1c6   :  { %4016 = vmatprep.mubr.bf16.mxu1 %v19137_v35  ;;  %4121 = vmatpush1.bf16.msra.mxu0 %v14795_v20 }
 0x1c7   :  { %4194 = vmatpush1.bf16.msra.mxu1 %v15051_v22  ;;  %4122 = vmatprep.subr.bf16.mxu0 %v14780_v23  ;;  %v1407_v22 = vld [vmem:[%s25214_s3 + $0x8e0] sm:$0xff]  ;;  %v14715_v23 = vcombine.low %v1159_v63, %v1167_v60 }
 0x1c8   :  { %4195 = vmatprep.subr.bf16.mxu1 %v15036_v24  ;;  %v14956_v6 = vcombine.high %v1399_v16, %v1407_v22  ;;  %v14955_v46 = vcombine.low %v1399_v16, %v1407_v22  ;;  %v1351_v60 = vld [vmem:[%s25214_s3 + $0x720] sm:$0xff]  ;;  %v1224_v22 = vld [vmem:[%s25214_s3 + $0x328] sm:$0xff]  ;;  %v1465_v24 = vld [vmem:[%s25214_s3 + $0xab0] sm:$0xff] }
 0x1c9   :  { %v1343_v16 = vld [vmem:[%s25214_s3 + $0x6e0] sm:$0xff] }
 0x1ca   :  { %4123 = vmatpush1.bf16.msra.mxu0 %v14779_v28  ;;  %v1135_v28 = vld [vmem:[%s25214_s3 + $0x60] sm:$0xff] }
 0x1cb   :  { %4196 = vmatpush1.bf16.msra.mxu1 %v15035_v29  ;;  %4124 = vmatprep.subr.bf16.mxu0 %v14764_v30  ;;  %v1383_v29 = vld [vmem:[%s25214_s3 + $0x820] sm:$0xff]  ;;  %v14684_v47 = vcombine.high %v1127_v27, %v1135_v28 }
 0x1cc   :  { %4090 = vmatmul.mubr.bf16.gmra.mxu0 %v19135_v34  ;;  %4197 = vmatprep.subr.bf16.mxu1 %v15020_v38  ;;  %v1391_v30 = vld [vmem:[%s25214_s3 + $0x860] sm:$0xff] }
 0x1cd   :  { %4017 = vmatmul.mubr.bf16.gmra.mxu1 %v19133_v33  ;;  %15089 = vmatprep.mubr.msk.bf16.mxu0 %vm3523_vm0, %v19270_v14 }
 0x1ce   :  { %4026 = vmatprep.mubr.bf16.mxu1 %v19268_v31  ;;  %4125 = vmatpush1.bf16.msra.mxu0 %v14763_v5  ;;  %v14940_v5 = vcombine.high %v1383_v29, %v1391_v30 }
 0x1cf   :  { %4198 = vmatpush1.bf16.msra.mxu1 %v15019_v48  ;;  %4126 = vmatprep.subr.bf16.mxu0 %v14748_v19  ;;  %v1367_v48 = vld [vmem:[%s25214_s3 + $0x7a0] sm:$0xff] }
 0x1d0   :  { %4199 = vmatprep.subr.bf16.mxu1 %v15004_v49  ;;  %v3570_v61 = vpop.f32.mrf.mxu0  ;;  %v3643_v21 = vpop.f32.mrf.mxu1  ;;  %v1375_v19 = vld [vmem:[%s25214_s3 + $0x7e0] sm:$0xff] }
 0x1d1   :  { %v19716_v1 = vadd.f32 %v3643_v21, %v3570_v61  ;;  %v1511_v49 = vld [vmem:[%s25214_s3 + $0xc20] sm:$0xff]  ;;  %v14939_v61 = vcombine.low %v1383_v29, %v1391_v30  ;;  %v14924_v21 = vcombine.high %v1367_v48, %v1375_v19  ;;  %v1208_v30 = vld [vmem:[%s25214_s3 + $0x2a8] sm:$0xff] }
 0x1d2   :  { %4127 = vmatpush1.bf16.msra.mxu0 %v14747_v57  ;;  %v3572_v3 = vpop.f32.mrf.mxu0  ;;  %v3645_v4 = vpop.f32.mrf.mxu1  ;;  %v14683_v57 = vcombine.low %v1127_v27, %v1135_v28  ;;  %v15068_v63 = vcombine.high %v1511_v49, %v1519_v55  ;;  %v1319_v28 = vld [vmem:[%s25214_s3 + $0x620] sm:$0xff] }
 0x1d3   :  { %25273 = vst [vmem:[#allocation9_spill] sm:$0xff] %v19716_v1  ;;  %4200 = vmatpush1.bf16.msra.mxu1 %v15003_v58  ;;  %v19721_v10 = vadd.f32 %v3645_v4, %v3572_v3  ;;  %4128 = vmatprep.subr.bf16.mxu0 %v14732_v59  ;;  %v1327_v29 = vld [vmem:[%s25214_s3 + $0x660] sm:$0xff] }
 0x1d4   :  { %4100 = vmatmul.mubr.bf16.gmra.mxu0 %v19274_v37  ;;  %4201 = vmatprep.subr.bf16.mxu1 %v14988_v62  ;;  %v3574_v15 = vpop.f32.mrf.mxu0  ;;  %v3647_v17 = vpop.f32.mrf.mxu1 }
 0x1d5   :  { %25274 = vst [vmem:[#allocation10_spill] sm:$0xff] %v19721_v10  ;;  %4027 = vmatmul.mubr.bf16.gmra.mxu1 %v19272_v32  ;;  %v19734_v20 = vadd.f32 %v3647_v17, %v3574_v15  ;;  %15090 = vmatprep.mubr.msk.bf16.mxu0 %vm3523_vm0, %v19291_v39  ;;  %v15067_v15 = vcombine.low %v1511_v49, %v1519_v55  ;;  %v1311_v49 = vld [vmem:[%s25214_s3 + $0x5e0] sm:$0xff] }
 0x1d6   :  { %4036 = vmatprep.mubr.bf16.mxu1 %v19289_v0  ;;  %4129 = vmatpush1.bf16.msra.mxu0 %v14731_v9  ;;  %v19756_v38 = vpop.f32.mrf.mxu0  ;;  %v19758_v40 = vpop.f32.mrf.mxu1  ;;  %v1248_v9 = vld [vmem:[%s25214_s3 + $0x3e8] sm:$0xff]  ;;  %v14908_v17 = vcombine.high %v1351_v60, %v1359_v13  ;;  %v14875_v55 = vcombine.low %v1319_v28, %v1327_v29 }
 0x1d7   :  { %25275 = vst [vmem:[#allocation11_spill] sm:$0xff] %v19734_v20  ;;  %4202 = vmatpush1.bf16.msra.mxu1 %v14987_v11  ;;  %4130 = vmatprep.subr.bf16.mxu0 %v14716_v12  ;;  %25276 = vst [vmem:[#allocation12_spill] sm:$0xff] %v19756_v38  ;;  %v14923_v12 = vcombine.low %v1367_v48, %v1375_v19  ;;  %v14798_v50 = vcombine.high %v1240_v52, %v1248_v9  ;;  %v1303_v19 = vld [vmem:[%s25214_s3 + $0x5a0] sm:$0xff]  ;;  %v1417_v20 = vld [vmem:[%s25214_s3 + $0x930] sm:$0xff] }
 0x1d8   :  { %4203 = vmatprep.subr.bf16.mxu1 %v14972_v18  ;;  %25277 = vst [vmem:[#allocation13_spill] sm:$0xff] %v19758_v40  ;;  %v3580_v53 = vpop.f32.mrf.mxu0  ;;  %v1449_v18 = vld [vmem:[%s25214_s3 + $0xa30] sm:$0xff] }
 0x1d9   :  { %v1345_v38 = vld [vmem:[%s25214_s3 + $0x6f0] sm:$0xff] }
 0x1da   :  { %4131 = vmatpush1.bf16.msra.mxu0 %v14715_v23  ;;  %v3582_v58 = vpop.f32.mrf.mxu0  ;;  %v1232_v23 = vld [vmem:[%s25214_s3 + $0x368] sm:$0xff] }
 0x1db   :  { %4204 = vmatpush1.bf16.msra.mxu1 %v14971_v25  ;;  %4132 = vmatprep.subr.bf16.mxu0 %v14700_v26  ;;  %v14907_v25 = vcombine.low %v1351_v60, %v1359_v13  ;;  %v14797_v26 = vcombine.low %v1240_v52, %v1248_v9  ;;  %v14782_v27 = vcombine.high %v1224_v22, %v1232_v23  ;;  %v1184_v60 = vld [vmem:[%s25214_s3 + $0x1e8] sm:$0xff]  ;;  %v1271_v9 = vld [vmem:[%s25214_s3 + $0x4a0] sm:$0xff] }
 0x1dc   :  { %4110 = vmatmul.mubr.bf16.gmra.mxu0 %v19295_v8  ;;  %4205 = vmatprep.subr.bf16.mxu1 %v14956_v6  ;;  %v3653_v54 = vpop.f32.mrf.mxu1  ;;  %v3584_v3 = vpop.f32.mrf.mxu0  ;;  %v14892_v6 = vcombine.high %v1335_v51, %v1343_v16  ;;  %v14859_v13 = vcombine.low %v1303_v19, %v1311_v49 }
 0x1dd   :  { %4037 = vmatmul.mubr.bf16.gmra.mxu1 %v19293_v7  ;;  %4152 = vmatprep.mubr.bf16.mxu0 %v19068_v42  ;;  %v19775_v56 = vadd.f32 %v3653_v54, %v3580_v53  ;;  %v1192_v53 = vld [vmem:[%s25214_s3 + $0x228] sm:$0xff] }
 0x1de   :  { %4133 = vmatpush1.bf16.msra.mxu0 %v14699_v41  ;;  %15091 = vmatprep.mubr.msk.bf16.mxu1 %vm3523_vm0, %v19070_v43  ;;  %v3655_v59 = vpop.f32.mrf.mxu1  ;;  %v1216_v41 = vld [vmem:[%s25214_s3 + $0x2e8] sm:$0xff] }
 0x1df   :  { %25278 = vst [vmem:[#allocation14_spill] sm:$0xff] %v19775_v56  ;;  %4206 = vmatpush1.bf16.msra.mxu1 %v14955_v46  ;;  %4134 = vmatprep.subr.bf16.mxu0 %v14684_v47  ;;  %v19779_v62 = vadd.f32 %v3655_v59, %v3582_v58  ;;  %v14891_v46 = vcombine.low %v1335_v51, %v1343_v16  ;;  %v1200_v54 = vld [vmem:[%s25214_s3 + $0x268] sm:$0xff] }
 0x1e0   :  { %4207 = vmatprep.subr.bf16.mxu1 %v14940_v5  ;;  %v3657_v4 = vpop.f32.mrf.mxu1  ;;  %v14781_v47 = vcombine.low %v1224_v22, %v1232_v23  ;;  %v14876_v5 = vcombine.high %v1319_v28, %v1327_v29  ;;  %v14766_v48 = vcombine.high %v1208_v30, %v1216_v41  ;;  %v14860_v58 = vcombine.high %v1303_v19, %v1311_v49  ;;  %v1255_v23 = vld [vmem:[%s25214_s3 + $0x420] sm:$0xff] }
 0x1e1   :  { %25279 = vst [vmem:[#allocation15_spill] sm:$0xff] %v19779_v62  ;;  %v19793_v11 = vadd.f32 %v3657_v4, %v3584_v3  ;;  %v14750_v59 = vcombine.high %v1192_v53, %v1200_v54  ;;  %v14749_v52 = vcombine.low %v1192_v53, %v1200_v54  ;;  %v1368_v54 = vld [vmem:[%s25214_s3 + $0x7a8] sm:$0xff] }
 0x1e2   :  { %4135 = vmatpush1.bf16.msra.mxu0 %v14683_v57  ;;  %v14765_v57 = vcombine.low %v1208_v30, %v1216_v41  ;;  %v1128_v41 = vld [vmem:[%s25214_s3 + $0x28] sm:$0xff] }
 0x1e3   :  { %25280 = vst [vmem:[#allocation16_spill] sm:$0xff] %v19793_v11  ;;  %4208 = vmatpush1.bf16.msra.mxu1 %v14939_v61  ;;  %4136 = vmatprep.subr.bf16.mxu0 %v14924_v21  ;;  %v1287_v61 = vld [vmem:[%s25214_s3 + $0x520] sm:$0xff]  ;;  %v1385_v11 = vld [vmem:[%s25214_s3 + $0x830] sm:$0xff] }
 0x1e4   :  { %4223 = vmatprep.subr.bf16.mxu1 %v15068_v63  ;;  %v1295_v21 = vld [vmem:[%s25214_s3 + $0x560] sm:$0xff]  ;;  %v1176_v63 = vld [vmem:[%s25214_s3 + $0x1a8] sm:$0xff] }
 0x1e5   :  { %v14844_v3 = vcombine.high %v1287_v61, %v1295_v21  ;;  %v14734_v4 = vcombine.high %v1176_v63, %v1184_v60  ;;  %v14733_v51 = vcombine.low %v1176_v63, %v1184_v60  ;;  %v1352_v60 = vld [vmem:[%s25214_s3 + $0x728] sm:$0xff] }
 0x1e6   :  { %4137 = vmatpush2.bf16.msra.mxu0 %v14923_v12  ;;  %v1279_v12 = vld [vmem:[%s25214_s3 + $0x4e0] sm:$0xff] }
 0x1e7   :  { %4224 = vmatpush2.bf16.msra.mxu1 %v15067_v15  ;;  %4138 = vmatprep.subr.bf16.mxu0 %v14908_v17  ;;  %v1160_v15 = vld [vmem:[%s25214_s3 + $0x128] sm:$0xff]  ;;  %v14828_v16 = vcombine.high %v1271_v9, %v1279_v12 }
 0x1e8   :  { %4266 = vmatprep.subr.bf16.mxu1 %v14798_v50  ;;  %v1168_v17 = vld [vmem:[%s25214_s3 + $0x168] sm:$0xff]  ;;  %v14843_v50 = vcombine.low %v1287_v61, %v1295_v21 }
 0x1e9   :  { %v14718_v22 = vcombine.high %v1160_v15, %v1168_v17  ;;  %v14717_v28 = vcombine.low %v1160_v15, %v1168_v17  ;;  %v1336_v17 = vld [vmem:[%s25214_s3 + $0x6a8] sm:$0xff] }
 0x1ea   :  { %4226 = vmatmul.mubr.bf16.vlgmr.msra.gmra.mxu1 %v19074_v45  ;;  %4139 = vmatpush2.bf16.msra.mxu0 %v14907_v25  ;;  %v1263_v25 = vld [vmem:[%s25214_s3 + $0x460] sm:$0xff] }
 0x1eb   :  { %15092 = vmatprep.mubr.msk.bf16.mxu1 %vm3523_vm0, %v19139_v36  ;;  %4267 = vmatpush1.bf16.msra.mxu1 %v14797_v26  ;;  %v1144_v26 = vld [vmem:[%s25214_s3 + $0xa8] sm:$0xff]  ;;  %v14812_v29 = vcombine.high %v1255_v23, %v1263_v25 }
 0x1ec   :  { %4140 = vmatprep.subr.bf16.mxu0 %v14892_v6  ;;  %4268 = vmatprep.subr.bf16.mxu1 %v14782_v27  ;;  %v1152_v6 = vld [vmem:[%s25214_s3 + $0xe8] sm:$0xff]  ;;  %v14827_v27 = vcombine.low %v1271_v9, %v1279_v12 }
 0x1ed   :  { %v14702_v30 = vcombine.high %v1144_v26, %v1152_v6  ;;  %v14701_v19 = vcombine.low %v1144_v26, %v1152_v6 }
 0x1ee   :  { %4141 = vmatpush2.bf16.msra.mxu0 %v14891_v46  ;;  %v1136_v46 = vld [vmem:[%s25214_s3 + $0x68] sm:$0xff] }
 0x1ef   :  { %4269 = vmatpush1.bf16.msra.mxu1 %v14781_v47  ;;  %4142 = vmatprep.subr.bf16.mxu0 %v14876_v5  ;;  %v1496_v47 = vld [vmem:[%s25214_s3 + $0xba8] sm:$0xff]  ;;  %v14686_v49 = vcombine.high %v1128_v41, %v1136_v46  ;;  %v14685_v61 = vcombine.low %v1128_v41, %v1136_v46  ;;  %v19945_v41 = vpop.f32.mrf.mxu1 }
 0x1f0   :  { %4270 = vmatprep.subr.bf16.mxu1 %v14766_v48  ;;  %v1504_v5 = vld [vmem:[%s25214_s3 + $0xbe8] sm:$0xff]  ;;  %v14811_v48 = vcombine.low %v1255_v23, %v1263_v25  ;;  %25282 = vst [vmem:[#allocation18_spill] sm:$0xff] %v19945_v41 }
 0x1f1   :  { %v15054_v53 = vcombine.high %v1496_v47, %v1504_v5  ;;  %v1432_v23 = vld [vmem:[%s25214_s3 + $0x9a8] sm:$0xff] }
 0x1f2   :  { %4236 = vmatmul.mubr.bf16.gmra.mxu1 %v19135_v34  ;;  %4143 = vmatpush2.bf16.msra.mxu0 %v14875_v55  ;;  %v1480_v55 = vld [vmem:[%s25214_s3 + $0xb28] sm:$0xff] }
 0x1f3   :  { %15093 = vmatprep.mubr.msk.bf16.mxu1 %vm3523_vm0, %v19270_v14  ;;  %4271 = vmatpush1.bf16.msra.mxu1 %v14765_v57  ;;  %v1488_v57 = vld [vmem:[%s25214_s3 + $0xb68] sm:$0xff] }
 0x1f4   :  { %4144 = vmatprep.subr.bf16.mxu0 %v14860_v58  ;;  %4272 = vmatprep.subr.bf16.mxu1 %v14750_v59  ;;  %v1376_v58 = vld [vmem:[%s25214_s3 + $0x7e8] sm:$0xff]  ;;  %v15053_v59 = vcombine.low %v1496_v47, %v1504_v5  ;;  %v15038_v21 = vcombine.high %v1480_v55, %v1488_v57 }
 0x1f5   :  { %v14926_v63 = vcombine.high %v1368_v54, %v1376_v58  ;;  %v14925_v9 = vcombine.low %v1368_v54, %v1376_v58  ;;  %v1440_v25 = vld [vmem:[%s25214_s3 + $0x9e8] sm:$0xff] }
 0x1f6   :  { %4145 = vmatpush2.bf16.msra.mxu0 %v14859_v13  ;;  %v1464_v13 = vld [vmem:[%s25214_s3 + $0xaa8] sm:$0xff] }
 0x1f7   :  { %4273 = vmatpush1.bf16.msra.mxu1 %v14749_v52  ;;  %4146 = vmatprep.subr.bf16.mxu0 %v14844_v3  ;;  %v1472_v52 = vld [vmem:[%s25214_s3 + $0xae8] sm:$0xff] }
 0x1f8   :  { %4274 = vmatprep.subr.bf16.mxu1 %v14734_v4  ;;  %v1360_v3 = vld [vmem:[%s25214_s3 + $0x768] sm:$0xff]  ;;  %v15037_v4 = vcombine.low %v1480_v55, %v1488_v57  ;;  %v15022_v12 = vcombine.high %v1464_v13, %v1472_v52 }
 0x1f9   :  { %v14910_v15 = vcombine.high %v1352_v60, %v1360_v3  ;;  %v14909_v26 = vcombine.low %v1352_v60, %v1360_v3  ;;  %v1416_v47 = vld [vmem:[%s25214_s3 + $0x928] sm:$0xff] }
 0x1fa   :  { %4246 = vmatmul.mubr.bf16.gmra.mxu1 %v19274_v37  ;;  %4147 = vmatpush2.bf16.msra.mxu0 %v14843_v50  ;;  %v1448_v50 = vld [vmem:[%s25214_s3 + $0xa28] sm:$0xff] }
 0x1fb   :  { %15094 = vmatprep.mubr.msk.bf16.mxu1 %vm3523_vm0, %v19291_v39  ;;  %4275 = vmatpush1.bf16.msra.mxu1 %v14733_v51  ;;  %v1456_v51 = vld [vmem:[%s25214_s3 + $0xa68] sm:$0xff] }
 0x1fc   :  { %4148 = vmatprep.subr.bf16.mxu0 %v14828_v16  ;;  %4276 = vmatprep.subr.bf16.mxu1 %v14718_v22  ;;  %v1344_v16 = vld [vmem:[%s25214_s3 + $0x6e8] sm:$0xff]  ;;  %v15021_v22 = vcombine.low %v1464_v13, %v1472_v52  ;;  %v15006_v6 = vcombine.high %v1448_v50, %v1456_v51  ;;  %v15005_v46 = vcombine.low %v1448_v50, %v1456_v51 }
 0x1fd   :  { %v1424_v5 = vld [vmem:[%s25214_s3 + $0x968] sm:$0xff] }
 0x1fe   :  { %4149 = vmatpush2.bf16.msra.mxu0 %v14827_v27  ;;  %v1320_v27 = vld [vmem:[%s25214_s3 + $0x628] sm:$0xff]  ;;  %v14974_v3 = vcombine.high %v1416_v47, %v1424_v5 }
 0x1ff   :  { %4277 = vmatpush1.bf16.msra.mxu1 %v14717_v28  ;;  %4150 = vmatprep.subr.bf16.mxu0 %v14812_v29  ;;  %v1328_v28 = vld [vmem:[%s25214_s3 + $0x668] sm:$0xff]  ;;  %v14894_v29 = vcombine.high %v1336_v17, %v1344_v16 }
 0x200   :  { %4278 = vmatprep.subr.bf16.mxu1 %v14702_v30  ;;  %v19943_v30 = vpop.f32.mrf.mxu0  ;;  %v14878_v57 = vcombine.high %v1320_v27, %v1328_v28  ;;  %v1408_v60 = vld [vmem:[%s25214_s3 + $0x8e8] sm:$0xff]  ;;  %v14877_v52 = vcombine.low %v1320_v27, %v1328_v28 }
 0x201   :  { %25281 = vst [vmem:[#allocation17_spill] sm:$0xff] %v19943_v30  ;;  %v1272_v28 = vld [vmem:[%s25214_s3 + $0x4a8] sm:$0xff]  ;;  %v1162_v30 = vld [vmem:[%s25214_s3 + $0x138] sm:$0xff] }
 0x202   :  { %4256 = vmatmul.mubr.bf16.gmra.mxu1 %v19295_v8  ;;  %4151 = vmatpush2.bf16.msra.mxu0 %v14811_v48  ;;  %v14893_v48 = vcombine.low %v1336_v17, %v1344_v16 }
 0x203   :  { %4279 = vmatpush1.bf16.msra.mxu1 %v14701_v19  ;;  %4298 = vmatprep.mubr.bf16.mxu1 %v19068_v42  ;;  %v14990_v19 = vcombine.high %v1432_v23, %v1440_v25 }
 0x204   :  { %4280 = vmatprep.subr.bf16.mxu1 %v14686_v49  ;;  %4339 = vmatprep.subr.bf16.mxu0 %v15054_v53  ;;  %v1304_v49 = vld [vmem:[%s25214_s3 + $0x5a8] sm:$0xff] }
 0x205   :  { %4153 = vmatmul.mubr.bf16.vlgmr.msra.gmra.mxu0 %v19072_v44  ;;  %v1312_v53 = vld [vmem:[%s25214_s3 + $0x5e8] sm:$0xff] }
 0x206   :  { %4162 = vmatprep.mubr.bf16.mxu0 %v19137_v35  ;;  %4340 = vmatpush1.bf16.msra.mxu0 %v15053_v59  ;;  %v14862_v17 = vcombine.high %v1304_v49, %v1312_v53 }
 0x207   :  { %4281 = vmatpush1.bf16.msra.mxu1 %v14685_v61  ;;  %4341 = vmatprep.subr.bf16.mxu0 %v15038_v21  ;;  %v14989_v21 = vcombine.low %v1432_v23, %v1440_v25  ;;  %v1384_v23 = vld [vmem:[%s25214_s3 + $0x828] sm:$0xff] }
 0x208   :  { %4282 = vmatprep.subr.bf16.mxu1 %v14926_v63  ;;  %v1400_v63 = vld [vmem:[%s25214_s3 + $0x8a8] sm:$0xff] }
 0x209   :  { %v1392_v25 = vld [vmem:[%s25214_s3 + $0x868] sm:$0xff]  ;;  %v14958_v27 = vcombine.high %v1400_v63, %v1408_v60 }
 0x20a   :  { %4342 = vmatpush1.bf16.msra.mxu0 %v15037_v4  ;;  %v1288_v4 = vld [vmem:[%s25214_s3 + $0x528] sm:$0xff] }
 0x20b   :  { %4283 = vmatpush2.bf16.msra.mxu1 %v14925_v9  ;;  %4343 = vmatprep.subr.bf16.mxu0 %v15022_v12  ;;  %v1296_v9 = vld [vmem:[%s25214_s3 + $0x568] sm:$0xff] }
 0x20c   :  { %4284 = vmatprep.subr.bf16.mxu1 %v14910_v15 }
 0x20d   :  { %4163 = vmatmul.mubr.bf16.gmra.mxu0 %v19133_v33 }
 0x20e   :  { %4172 = vmatprep.mubr.bf16.mxu0 %v19268_v31  ;;  %4344 = vmatpush1.bf16.msra.mxu0 %v15021_v22  ;;  %v14973_v22 = vcombine.low %v1416_v47, %v1424_v5  ;;  %v14846_v5 = vcombine.high %v1288_v4, %v1296_v9 }
 0x20f   :  { %4285 = vmatpush2.bf16.msra.mxu1 %v14909_v26  ;;  %4345 = vmatprep.subr.bf16.mxu0 %v15006_v6  ;;  %v14861_v6 = vcombine.low %v1304_v49, %v1312_v53  ;;  %v14957_v49 = vcombine.low %v1400_v63, %v1408_v60  ;;  %v1512_v53 = vld [vmem:[%s25214_s3 + $0xc28] sm:$0xff] }
 0x210   :  { %4286 = vmatprep.subr.bf16.mxu1 %v14894_v29  ;;  %v3590_v54 = vpop.f32.mrf.mxu0  ;;  %v3663_v55 = vpop.f32.mrf.mxu1  ;;  %v1280_v29 = vld [vmem:[%s25214_s3 + $0x4e8] sm:$0xff] }
 0x211   :  { %v19960_v58 = vadd.f32 %v3663_v55, %v3590_v54  ;;  %v1520_v55 = vld [vmem:[%s25214_s3 + $0xc68] sm:$0xff] }
 0x212   :  { %4346 = vmatpush1.bf16.msra.mxu0 %v15005_v46  ;;  %v3592_v59 = vpop.f32.mrf.mxu0  ;;  %v3665_v61 = vpop.f32.mrf.mxu1  ;;  %v1264_v63 = vld [vmem:[%s25214_s3 + $0x468] sm:$0xff] }
 0x213   :  { %25283 = vst [vmem:[#allocation19_spill] sm:$0xff] %v19960_v58  ;;  %4287 = vmatpush2.bf16.msra.mxu1 %v14893_v48  ;;  %v19968_v13 = vadd.f32 %v3665_v61, %v3592_v59  ;;  %4347 = vmatprep.subr.bf16.mxu0 %v14990_v19  ;;  %v14845_v59 = vcombine.low %v1288_v4, %v1296_v9 }
 0x214   :  { %4288 = vmatprep.subr.bf16.mxu1 %v14878_v57  ;;  %v3594_v12 = vpop.f32.mrf.mxu0  ;;  %v3667_v15 = vpop.f32.mrf.mxu1  ;;  %v14942_v61 = vcombine.high %v1384_v23, %v1392_v25 }
 0x215   :  { %25284 = vst [vmem:[#allocation20_spill] sm:$0xff] %v19968_v13  ;;  %4173 = vmatmul.mubr.bf16.gmra.mxu0 %v19272_v32  ;;  %v19977_v50 = vadd.f32 %v3667_v15, %v3594_v12  ;;  %v14941_v15 = vcombine.low %v1384_v23, %v1392_v25  ;;  %v1505_v23 = vld [vmem:[%s25214_s3 + $0xbf0] sm:$0xff] }
 0x216   :  { %4182 = vmatprep.mubr.bf16.mxu0 %v19289_v0  ;;  %4348 = vmatpush1.bf16.msra.mxu0 %v14989_v21  ;;  %v19980_v51 = vpop.f32.mrf.mxu0  ;;  %v19982_v16 = vpop.f32.mrf.mxu1  ;;  %v1256_v21 = vld [vmem:[%s25214_s3 + $0x428] sm:$0xff] }
 0x217   :  { %25285 = vst [vmem:[#allocation21_spill] sm:$0xff] %v19977_v50  ;;  %25286 = vst [vmem:[#allocation22_spill] sm:$0xff] %v19980_v51  ;;  %4289 = vmatpush2.bf16.msra.mxu1 %v14877_v52  ;;  %4349 = vmatprep.subr.bf16.mxu0 %v14974_v3  ;;  %v14830_v3 = vcombine.high %v1272_v28, %v1280_v29  ;;  %v1297_v51 = vld [vmem:[%s25214_s3 + $0x570] sm:$0xff] }
 0x218   :  { %25287 = vst [vmem:[#allocation23_spill] sm:$0xff] %v19982_v16  ;;  %4290 = vmatprep.subr.bf16.mxu1 %v14862_v17  ;;  %v3600_v46 = vpop.f32.mrf.mxu0  ;;  %v3673_v47 = vpop.f32.mrf.mxu1  ;;  %v1241_v17 = vld [vmem:[%s25214_s3 + $0x3b0] sm:$0xff]  ;;  %v1194_v16 = vld [vmem:[%s25214_s3 + $0x238] sm:$0xff] }
 0x219   :  { %v19998_v48 = vadd.f32 %v3673_v47, %v3600_v46  ;;  %v15070_v46 = vcombine.high %v1512_v53, %v1520_v55  ;;  %v1497_v47 = vld [vmem:[%s25214_s3 + $0xbb0] sm:$0xff] }
 0x21a   :  { %4350 = vmatpush1.bf16.msra.mxu0 %v14973_v22  ;;  %v3602_v19 = vpop.f32.mrf.mxu0  ;;  %v3675_v54 = vpop.f32.mrf.mxu1  ;;  %v1249_v22 = vld [vmem:[%s25214_s3 + $0x3f0] sm:$0xff] }
 0x21b   :  { %25288 = vst [vmem:[#allocation24_spill] sm:$0xff] %v19998_v48  ;;  %4291 = vmatpush2.bf16.msra.mxu1 %v14861_v6  ;;  %v20006_v57 = vadd.f32 %v3675_v54, %v3602_v19  ;;  %4351 = vmatprep.subr.bf16.mxu0 %v14958_v27  ;;  %v14829_v27 = vcombine.low %v1272_v28, %v1280_v29 }
 0x21c   :  { %4292 = vmatprep.subr.bf16.mxu1 %v14846_v5  ;;  %v3604_v60 = vpop.f32.mrf.mxu0  ;;  %v3677_v52 = vpop.f32.mrf.mxu1  ;;  %v14814_v19 = vcombine.high %v1256_v21, %v1264_v63  ;;  %v15069_v28 = vcombine.low %v1512_v53, %v1520_v55  ;;  %v1481_v53 = vld [vmem:[%s25214_s3 + $0xb30] sm:$0xff] }
 0x21d   :  { %25289 = vst [vmem:[#allocation25_spill] sm:$0xff] %v20006_v57  ;;  %4183 = vmatmul.mubr.bf16.gmra.mxu0 %v19293_v7  ;;  %v20015_v12 = vadd.f32 %v3677_v52, %v3604_v60  ;;  %v14800_v60 = vcombine.high %v1241_v17, %v1249_v22  ;;  %v1225_v52 = vld [vmem:[%s25214_s3 + $0x330] sm:$0xff] }
 0x21e   :  { %4352 = vmatpush1.bf16.msra.mxu0 %v14957_v49  ;;  %15095 = vmatprep.mubr.msk.bf16.mxu0 %vm3523_vm0, %v19070_v43  ;;  %v20019_v4 = vpop.f32.mrf.mxu0  ;;  %v20021_v9 = vpop.f32.mrf.mxu1  ;;  %v1489_v55 = vld [vmem:[%s25214_s3 + $0xb70] sm:$0xff] }
 0x21f   :  { %25290 = vst [vmem:[#allocation26_spill] sm:$0xff] %v20015_v12  ;;  %25291 = vst [vmem:[#allocation27_spill] sm:$0xff] %v20019_v4  ;;  %4293 = vmatpush2.bf16.msra.mxu1 %v14845_v59  ;;  %4353 = vmatprep.subr.bf16.mxu0 %v14942_v61  ;;  %v14813_v61 = vcombine.low %v1256_v21, %v1264_v63 }
 0x220   :  { %25292 = vst [vmem:[#allocation28_spill] sm:$0xff] %v20021_v9  ;;  %4294 = vmatprep.subr.bf16.mxu1 %v14830_v3  ;;  %v3716_v25 = vpop.f32.mrf.mxu1  ;;  %v3789_v5 = vpop.f32.mrf.mxu0  ;;  %v1233_v3 = vld [vmem:[%s25214_s3 + $0x370] sm:$0xff] }
 0x221   :  { %v20037_v54 = vadd.f32 %v3789_v5, %v3716_v25  ;;  %v15056_v5 = vcombine.high %v1497_v47, %v1505_v23  ;;  %v14784_v2 = vcombine.high %v1225_v52, %v1233_v3 }
 0x222   :  { %4354 = vmatpush1.bf16.msra.mxu0 %v14941_v15  ;;  %v3718_v49 = vpop.f32.mrf.mxu1  ;;  %v3791_v59 = vpop.f32.mrf.mxu0 }
 0x223   :  { %25293 = vst [vmem:[#allocation29_spill] sm:$0xff] %v20037_v54  ;;  %4295 = vmatpush2.bf16.msra.mxu1 %v14829_v27  ;;  %v20039_v29 = vadd.f32 %v3791_v59, %v3718_v49  ;;  %4369 = vmatprep.subr.bf16.mxu0 %v15070_v46  ;;  %v1209_v49 = vld [vmem:[%s25214_s3 + $0x2b0] sm:$0xff] }
 0x224   :  { %4296 = vmatprep.subr.bf16.mxu1 %v14814_v19  ;;  %v3720_v25 = vpop.f32.mrf.mxu1  ;;  %v3793_v15 = vpop.f32.mrf.mxu0  ;;  %v14799_v19 = vcombine.low %v1241_v17, %v1249_v22  ;;  %v1217_v59 = vld [vmem:[%s25214_s3 + $0x2f0] sm:$0xff] }
 0x225   :  { %v20053_v21 = vadd.f32 %v3793_v15, %v3720_v25  ;;  %v15055_v25 = vcombine.low %v1497_v47, %v1505_v23  ;;  %v1473_v17 = vld [vmem:[%s25214_s3 + $0xaf0] sm:$0xff]  ;;  %v14783_v23 = vcombine.low %v1225_v52, %v1233_v3  ;;  %v14768_v26 = vcombine.high %v1209_v49, %v1217_v59 }
 0x226   :  { %4370 = vmatpush2.bf16.msra.mxu0 %v15069_v28  ;;  %v20055_v63 = vpop.f32.mrf.mxu1  ;;  %v20057_v27 = vpop.f32.mrf.mxu0  ;;  %v1457_v52 = vld [vmem:[%s25214_s3 + $0xa70] sm:$0xff]  ;;  %v15024_v3 = vcombine.high %v1465_v24, %v1473_v17  ;;  %v14767_v6 = vcombine.low %v1209_v49, %v1217_v59 }
 0x227   :  { %25294 = vst [vmem:[#allocation30_spill] sm:$0xff] %v20053_v21  ;;  %4297 = vmatpush2.bf16.msra.mxu1 %v14813_v61  ;;  %4412 = vmatprep.subr.bf16.mxu0 %v14800_v60  ;;  %v15040_v61 = vcombine.high %v1481_v53, %v1489_v55  ;;  %v1193_v60 = vld [vmem:[%s25214_s3 + $0x230] sm:$0xff]  ;;  %v15008_v59 = vcombine.high %v1449_v18, %v1457_v52 }
 0x228   :  { %4485 = vmatprep.subr.bf16.mxu1 %v15056_v5  ;;  %v3726_v28 = vpop.f32.mrf.mxu1  ;;  %v3799_v15 = vpop.f32.mrf.mxu0  ;;  %v1201_v5 = vld [vmem:[%s25214_s3 + $0x270] sm:$0xff] }
 0x229   :  { %4372 = vmatmul.mubr.bf16.vlgmr.msra.gmra.mxu0 %v19074_v45  ;;  %v20074_v22 = vadd.f32 %v3799_v15, %v3726_v28  ;;  %v15039_v28 = vcombine.low %v1481_v53, %v1489_v55  ;;  %v1185_v53 = vld [vmem:[%s25214_s3 + $0x1f0] sm:$0xff]  ;;  %v15023_v55 = vcombine.low %v1465_v24, %v1473_v17  ;;  %v14752_v46 = vcombine.high %v1193_v60, %v1201_v5 }
 0x22a   :  { %4299 = vmatmul.mubr.bf16.vlgmr.msra.gmra.mxu1 %v19072_v44  ;;  %15096 = vmatprep.mubr.msk.bf16.mxu0 %vm3523_vm0, %v19139_v36  ;;  %v20079_v47 = vpop.f32.mrf.mxu1  ;;  %v1441_v49 = vld [vmem:[%s25214_s3 + $0x9f0] sm:$0xff] }
 0x22b   :  { %25295 = vst [vmem:[#allocation31_spill] sm:$0xff] %v20074_v22  ;;  %4308 = vmatprep.mubr.bf16.mxu1 %v19137_v35  ;;  %4413 = vmatpush1.bf16.msra.mxu0 %v14799_v19  ;;  %v1161_v17 = vld [vmem:[%s25214_s3 + $0x130] sm:$0xff] }
 0x22c   :  { %4486 = vmatpush1.bf16.msra.mxu1 %v15055_v25  ;;  %4414 = vmatprep.subr.bf16.mxu0 %v14784_v2  ;;  %v20088_v15 = vpop.f32.mrf.mxu1  ;;  %v1177_v2 = vld [vmem:[%s25214_s3 + $0x1b0] sm:$0xff] }
 0x22d   :  { %4487 = vmatprep.subr.bf16.mxu1 %v15040_v61  ;;  %v1433_v61 = vld [vmem:[%s25214_s3 + $0x9b0] sm:$0xff]  ;;  %v14736_v1 = vcombine.high %v1177_v2, %v1185_v53 }
 0x22e   :  { %v20096_v19 = vpop.f32.mrf.mxu1 }
 0x22f   :  { %4415 = vmatpush1.bf16.msra.mxu0 %v14783_v23  ;;  %v1169_v23 = vld [vmem:[%s25214_s3 + $0x170] sm:$0xff] }
 0x230   :  { %4488 = vmatpush1.bf16.msra.mxu1 %v15039_v28  ;;  %4416 = vmatprep.subr.bf16.mxu0 %v14768_v26  ;;  %v20104_v25 = vpop.f32.mrf.mxu1  ;;  %v14751_v26 = vcombine.low %v1193_v60, %v1201_v5  ;;  %v15007_v28 = vcombine.low %v1449_v18, %v1457_v52  ;;  %v14992_v60 = vcombine.high %v1433_v61, %v1441_v49  ;;  %v20133_v5 = vpop.f32.mrf.mxu0  ;;  %v1145_v18 = vld [vmem:[%s25214_s3 + $0xb0] sm:$0xff] }
 0x231   :  { %4382 = vmatmul.mubr.bf16.gmra.mxu0 %v19135_v34  ;;  %4489 = vmatprep.subr.bf16.mxu1 %v15024_v3  ;;  %v1153_v52 = vld [vmem:[%s25214_s3 + $0xf0] sm:$0xff]  ;;  %v14720_v50 = vcombine.high %v1161_v17, %v1169_v23 }
 0x232   :  { %4309 = vmatmul.mubr.bf16.gmra.mxu1 %v19133_v33  ;;  %15097 = vmatprep.mubr.msk.bf16.mxu0 %vm3523_vm0, %v19270_v14  ;;  %v20116_v24 = vpop.f32.mrf.mxu1  ;;  %v20152_v56 = vpop.f32.mrf.mxu0  ;;  %v14703_v12 = vcombine.low %v1145_v18, %v1153_v52 }
 0x233   :  { %4318 = vmatprep.mubr.bf16.mxu1 %v19268_v31  ;;  %4417 = vmatpush1.bf16.msra.mxu0 %v14767_v6  ;;  %v1425_v6 = vld [vmem:[%s25214_s3 + $0x970] sm:$0xff] }
 0x234   :  { %4490 = vmatpush1.bf16.msra.mxu1 %v15023_v55  ;;  %4418 = vmatprep.subr.bf16.mxu0 %v14752_v46  ;;  %v20125_v3 = vpop.f32.mrf.mxu1  ;;  %v14735_v46 = vcombine.low %v1177_v2, %v1185_v53  ;;  %v14991_v55 = vcombine.low %v1433_v61, %v1441_v49  ;;  %v1409_v2 = vld [vmem:[%s25214_s3 + $0x8f0] sm:$0xff]  ;;  %v20172_v48 = vpop.f32.mrf.mxu0 }
 0x235   :  { %4491 = vmatprep.subr.bf16.mxu1 %v15008_v59  ;;  %v1401_v59 = vld [vmem:[%s25214_s3 + $0x8b0] sm:$0xff] }
 0x236   :  { %v20135_v58 = vpop.f32.mrf.mxu1  ;;  %v1129_v61 = vld [vmem:[%s25214_s3 + $0x30] sm:$0xff]  ;;  %v20189_v10 = vpop.f32.mrf.mxu0 }
 0x237   :  { %4419 = vmatpush1.bf16.msra.mxu0 %v14751_v26  ;;  %v14976_v26 = vcombine.high %v1417_v20, %v1425_v6  ;;  %v1137_v49 = vld [vmem:[%s25214_s3 + $0x70] sm:$0xff]  ;;  %25296 = vst [vmem:[#allocation32_spill] sm:$0xff] %v20189_v10 }
 0x238   :  { %4492 = vmatpush1.bf16.msra.mxu1 %v15007_v28  ;;  %4420 = vmatprep.subr.bf16.mxu0 %v14736_v1  ;;  %v20150_v53 = vpop.f32.mrf.mxu1  ;;  %v14719_v1 = vcombine.low %v1161_v17, %v1169_v23  ;;  %v14975_v28 = vcombine.low %v1417_v20, %v1425_v6  ;;  %v1393_v17 = vld [vmem:[%s25214_s3 + $0x870] sm:$0xff]  ;;  %v14959_v6 = vcombine.low %v1401_v59, %v1409_v2  ;;  %v20209_v62 = vpop.f32.mrf.mxu0 }
 0x239   :  { %4392 = vmatmul.mubr.bf16.gmra.mxu0 %v19274_v37  ;;  %4493 = vmatprep.subr.bf16.mxu1 %v14992_v60  ;;  %v14704_v60 = vcombine.high %v1145_v18, %v1153_v52  ;;  %v1369_v20 = vld [vmem:[%s25214_s3 + $0x7b0] sm:$0xff] }
 0x23a   :  { %4319 = vmatmul.mubr.bf16.gmra.mxu1 %v19272_v32  ;;  %15098 = vmatprep.mubr.msk.bf16.mxu0 %vm3523_vm0, %v19291_v39  ;;  %v20170_v23 = vpop.f32.mrf.mxu1  ;;  %v1521_v18 = vld [vmem:[%s25214_s3 + $0xc70] sm:$0xff] }
 0x23b   :  { %4328 = vmatprep.mubr.bf16.mxu1 %v19289_v0  ;;  %4421 = vmatpush1.bf16.msra.mxu0 %v14735_v46  ;;  %v14960_v46 = vcombine.high %v1401_v59, %v1409_v2  ;;  %v14687_v59 = vcombine.low %v1129_v61, %v1137_v49  ;;  %v1353_v2 = vld [vmem:[%s25214_s3 + $0x730] sm:$0xff] }
 0x23c   :  { %4494 = vmatpush1.bf16.msra.mxu1 %v14991_v55  ;;  %4422 = vmatprep.subr.bf16.mxu0 %v14720_v50  ;;  %v1377_v50 = vld [vmem:[%s25214_s3 + $0x7f0] sm:$0xff]  ;;  %v14688_v55 = vcombine.high %v1129_v61, %v1137_v49  ;;  %v20186_v52 = vpop.f32.mrf.mxu1  ;;  %v1250_v61 = vld [vmem:[%s25214_s3 + $0x3f8] sm:$0xff] }
 0x23d   :  { %4495 = vmatprep.subr.bf16.mxu1 %v14976_v26  ;;  %v1513_v26 = vld [vmem:[%s25214_s3 + $0xc30] sm:$0xff] }
 0x23e   :  { %v20207_v49 = vpop.f32.mrf.mxu1  ;;  %v15072_v13 = vcombine.high %v1513_v26, %v1521_v18 }
 0x23f   :  { %4423 = vmatpush1.bf16.msra.mxu0 %v14719_v1  ;;  %v14944_v1 = vcombine.high %v1385_v11, %v1393_v17 }
 0x240   :  { %4496 = vmatpush1.bf16.msra.mxu1 %v14975_v28  ;;  %4424 = vmatprep.subr.bf16.mxu0 %v14704_v60  ;;  %v1361_v28 = vld [vmem:[%s25214_s3 + $0x770] sm:$0xff]  ;;  %v14943_v60 = vcombine.low %v1385_v11, %v1393_v17  ;;  %v15071_v11 = vcombine.low %v1513_v26, %v1521_v18  ;;  %v20225_v26 = vpop.f32.mrf.mxu0 }
 0x241   :  { %4402 = vmatmul.mubr.bf16.gmra.mxu0 %v19295_v8  ;;  %4497 = vmatprep.subr.bf16.mxu1 %v14960_v46  ;;  %v14928_v46 = vcombine.high %v1369_v20, %v1377_v50  ;;  %v14912_v17 = vcombine.high %v1353_v2, %v1361_v28 }
 0x242   :  { %4329 = vmatmul.mubr.bf16.gmra.mxu1 %v19293_v7  ;;  %4444 = vmatprep.mubr.bf16.mxu0 %v19068_v42 }
 0x243   :  { %4425 = vmatpush1.bf16.msra.mxu0 %v14703_v12  ;;  %15099 = vmatprep.mubr.msk.bf16.mxu1 %vm3523_vm0, %v19070_v43  ;;  %v1242_v12 = vld [vmem:[%s25214_s3 + $0x3b8] sm:$0xff] }
 0x244   :  { %4498 = vmatpush1.bf16.msra.mxu1 %v14959_v6  ;;  %4426 = vmatprep.subr.bf16.mxu0 %v14688_v55  ;;  %v20211_v40 = vpop.f32.mrf.mxu1  ;;  %v14927_v6 = vcombine.low %v1369_v20, %v1377_v50  ;;  %v1337_v55 = vld [vmem:[%s25214_s3 + $0x6b0] sm:$0xff]  ;;  %v1234_v20 = vld [vmem:[%s25214_s3 + $0x378] sm:$0xff]  ;;  %v14802_v50 = vcombine.high %v1242_v12, %v1250_v61  ;;  %v14801_v54 = vcombine.low %v1242_v12, %v1250_v61 }
 0x245   :  { %4499 = vmatprep.subr.bf16.mxu1 %v14944_v1  ;;  %v1226_v1 = vld [vmem:[%s25214_s3 + $0x338] sm:$0xff]  ;;  %v14896_v21 = vcombine.high %v1337_v55, %v1345_v38 }
 0x246   :  { %v20227_v18 = vpop.f32.mrf.mxu1  ;;  %v14786_v57 = vcombine.high %v1226_v1, %v1234_v20  ;;  %v14785_v12 = vcombine.low %v1226_v1, %v1234_v20 }
 0x247   :  { %4427 = vmatpush1.bf16.msra.mxu0 %v14687_v59  ;;  %v14911_v59 = vcombine.low %v1353_v2, %v1361_v28  ;;  %v1218_v2 = vld [vmem:[%s25214_s3 + $0x2f8] sm:$0xff]  ;;  %v20241_v28 = vpop.f32.mrf.mxu0 }
 0x248   :  { %4500 = vmatpush1.bf16.msra.mxu1 %v14943_v60  ;;  %4428 = vmatprep.subr.bf16.mxu0 %v14928_v46  ;;  %v1321_v60 = vld [vmem:[%s25214_s3 + $0x630] sm:$0xff] }
 0x249   :  { %4515 = vmatprep.subr.bf16.mxu1 %v15072_v13  ;;  %v1329_v46 = vld [vmem:[%s25214_s3 + $0x670] sm:$0xff]  ;;  %v1210_v13 = vld [vmem:[%s25214_s3 + $0x2b8] sm:$0xff] }
 0x24a   :  { %v14880_v61 = vcombine.high %v1321_v60, %v1329_v46  ;;  %v14879_v20 = vcombine.low %v1321_v60, %v1329_v46  ;;  %v14769_v41 = vcombine.low %v1210_v13, %v1218_v2  ;;  %v1186_v60 = vld [vmem:[%s25214_s3 + $0x1f8] sm:$0xff] }
 0x24b   :  { %4429 = vmatpush2.bf16.msra.mxu0 %v14927_v6  ;;  %v20243_v6 = vpop.f32.mrf.mxu1 }
 0x24c   :  { %4516 = vmatpush2.bf16.msra.mxu1 %v15071_v11  ;;  %4430 = vmatprep.subr.bf16.mxu0 %v14912_v17  ;;  %v14895_v11 = vcombine.low %v1337_v55, %v1345_v38  ;;  %v1305_v17 = vld [vmem:[%s25214_s3 + $0x5b0] sm:$0xff]  ;;  %v1202_v38 = vld [vmem:[%s25214_s3 + $0x278] sm:$0xff]  ;;  %v20260_v55 = vpop.f32.mrf.mxu0 }
 0x24d   :  { %4558 = vmatprep.subr.bf16.mxu1 %v14802_v50  ;;  %v1313_v50 = vld [vmem:[%s25214_s3 + $0x5f0] sm:$0xff]  ;;  %v20262_v1 = vpop.f32.mrf.mxu1 }
 0x24e   :  { %25297 = vst [vmem:[#allocation33_spill] sm:$0xff] %v20262_v1  ;;  %v14754_v1 = vcombine.high %v1194_v16, %v1202_v38  ;;  %v20276_v46 = vpop.f32.mrf.mxu0 }
 0x24f   :  { %4518 = vmatmul.mubr.bf16.vlgmr.msra.gmra.mxu1 %v19074_v45  ;;  %4431 = vmatpush2.bf16.msra.mxu0 %v14911_v59  ;;  %v1289_v59 = vld [vmem:[%s25214_s3 + $0x530] sm:$0xff] }
 0x250   :  { %15100 = vmatprep.mubr.msk.bf16.mxu1 %vm3523_vm0, %v19139_v36  ;;  %4559 = vmatpush1.bf16.msra.mxu1 %v14801_v54  ;;  %v14770_v54 = vcombine.high %v1210_v13, %v1218_v2  ;;  %v14753_v13 = vcombine.low %v1194_v16, %v1202_v38  ;;  %v14848_v2 = vcombine.high %v1289_v59, %v1297_v51  ;;  %v20295_v16 = vpop.f32.mrf.mxu0 }
 0x251   :  { %4432 = vmatprep.subr.bf16.mxu0 %v14896_v21  ;;  %4560 = vmatprep.subr.bf16.mxu1 %v14786_v57  ;;  %v1178_v57 = vld [vmem:[%s25214_s3 + $0x1b8] sm:$0xff]  ;;  %v14864_v21 = vcombine.high %v1305_v17, %v1313_v50  ;;  %v14847_v38 = vcombine.low %v1289_v59, %v1297_v51 }
 0x252   :  { %v14737_v9 = vcombine.low %v1178_v57, %v1186_v60  ;;  %v1154_v51 = vld [vmem:[%s25214_s3 + $0xf8] sm:$0xff]  ;;  %v20311_v59 = vpop.f32.mrf.mxu0 }
 0x253   :  { %4433 = vmatpush2.bf16.msra.mxu0 %v14895_v11  ;;  %v20278_v11 = vpop.f32.mrf.mxu1 }
 0x254   :  { %4561 = vmatpush1.bf16.msra.mxu1 %v14785_v12  ;;  %4434 = vmatprep.subr.bf16.mxu0 %v14880_v61  ;;  %v14863_v12 = vcombine.low %v1305_v17, %v1313_v50  ;;  %v1273_v61 = vld [vmem:[%s25214_s3 + $0x4b0] sm:$0xff]  ;;  %v1170_v17 = vld [vmem:[%s25214_s3 + $0x178] sm:$0xff] }
 0x255   :  { %4562 = vmatprep.subr.bf16.mxu1 %v14770_v54  ;;  %v1281_v54 = vld [vmem:[%s25214_s3 + $0x4f0] sm:$0xff]  ;;  %v20297_v50 = vpop.f32.mrf.mxu1  ;;  %v14722_v4 = vcombine.high %v1162_v30, %v1170_v17 }
 0x257   :  { %4528 = vmatmul.mubr.bf16.gmra.mxu1 %v19135_v34  ;;  %4435 = vmatpush2.bf16.msra.mxu0 %v14879_v20  ;;  %v1257_v20 = vld [vmem:[%s25214_s3 + $0x430] sm:$0xff]  ;;  %v1138_v34 = vld [vmem:[%s25214_s3 + $0x78] sm:$0xff] }
 0x258   :  { %15101 = vmatprep.mubr.msk.bf16.mxu1 %vm3523_vm0, %v19270_v14  ;;  %4563 = vmatpush1.bf16.msra.mxu1 %v14769_v41  ;;  %v14738_v41 = vcombine.high %v1178_v57, %v1186_v60  ;;  %v1265_v14 = vld [vmem:[%s25214_s3 + $0x470] sm:$0xff]  ;;  %v14721_v60 = vcombine.low %v1162_v30, %v1170_v17 }
 0x259   :  { %4436 = vmatprep.subr.bf16.mxu0 %v14864_v21  ;;  %4564 = vmatprep.subr.bf16.mxu1 %v14754_v1  ;;  %v1146_v1 = vld [vmem:[%s25214_s3 + $0xb8] sm:$0xff]  ;;  %v14832_v21 = vcombine.high %v1273_v61, %v1281_v54 }
 0x25a   :  { %v14706_v30 = vcombine.high %v1146_v1, %v1154_v51  ;;  %v14705_v10 = vcombine.low %v1146_v1, %v1154_v51  ;;  %v1490_v1 = vld [vmem:[%s25214_s3 + $0xb78] sm:$0xff] }
 0x25b   :  { %4437 = vmatpush2.bf16.msra.mxu0 %v14863_v12  ;;  %v20313_v12 = vpop.f32.mrf.mxu1 }
 0x25c   :  { %4565 = vmatpush1.bf16.msra.mxu1 %v14753_v13  ;;  %4438 = vmatprep.subr.bf16.mxu0 %v14848_v2  ;;  %v14831_v13 = vcombine.low %v1273_v61, %v1281_v54  ;;  %v14816_v2 = vcombine.high %v1257_v20, %v1265_v14  ;;  %v1506_v61 = vld [vmem:[%s25214_s3 + $0xbf8] sm:$0xff] }
 0x25d   :  { %4566 = vmatprep.subr.bf16.mxu1 %v14738_v41  ;;  %v1130_v41 = vld [vmem:[%s25214_s3 + $0x38] sm:$0xff]  ;;  %v20333_v17 = vpop.f32.mrf.mxu1 }
 0x25f   :  { %4538 = vmatmul.mubr.bf16.gmra.mxu1 %v19274_v37  ;;  %4439 = vmatpush2.bf16.msra.mxu0 %v14847_v38  ;;  %v1498_v38 = vld [vmem:[%s25214_s3 + $0xbb8] sm:$0xff]  ;;  %v14815_v37 = vcombine.low %v1257_v20, %v1265_v14  ;;  %v14690_v14 = vcombine.high %v1130_v41, %v1138_v34 }
 0x260   :  { %15102 = vmatprep.mubr.msk.bf16.mxu1 %vm3523_vm0, %v19291_v39  ;;  %4567 = vmatpush1.bf16.msra.mxu1 %v14737_v9  ;;  %v3862_v57 = vpop.f32.mrf.mxu0  ;;  %v15058_v20 = vcombine.high %v1498_v38, %v1506_v61 }
 0x261   :  { %v20331_v9 = vadd.f32 %v20211_v40, %v3862_v57  ;;  %4440 = vmatprep.subr.bf16.mxu0 %v14832_v21  ;;  %4568 = vmatprep.subr.bf16.mxu1 %v14722_v4  ;;  %v1370_v40 = vld [vmem:[%s25214_s3 + $0x7b8] sm:$0xff] }
 0x262   :  { %v3864_v54 = vpop.f32.mrf.mxu0  ;;  %v1378_v4 = vld [vmem:[%s25214_s3 + $0x7f8] sm:$0xff] }
 0x263   :  { %25298 = vst [vmem:[#allocation34_spill] sm:$0xff] %v20331_v9  ;;  %4441 = vmatpush2.bf16.msra.mxu0 %v14831_v13  ;;  %v20336_v39 = vadd.f32 %v20227_v18, %v3864_v54  ;;  %v1482_v21 = vld [vmem:[%s25214_s3 + $0xb38] sm:$0xff]  ;;  %v3955_v13 = vpop.f32.mrf.mxu1 }
 0x264   :  { %4569 = vmatpush1.bf16.msra.mxu1 %v14721_v60  ;;  %v3866_v22 = vpop.f32.mrf.mxu0  ;;  %4442 = vmatprep.subr.bf16.mxu0 %v14816_v2  ;;  %v15057_v60 = vcombine.low %v1498_v38, %v1506_v61  ;;  %v15042_v54 = vcombine.high %v1482_v21, %v1490_v1  ;;  %v1354_v57 = vld [vmem:[%s25214_s3 + $0x738] sm:$0xff]  ;;  %v14930_v61 = vcombine.high %v1370_v40, %v1378_v4 }
 0x265   :  { %25299 = vst [vmem:[#allocation35_spill] sm:$0xff] %v20336_v39  ;;  %v20348_v18 = vadd.f32 %v20243_v6, %v3866_v22  ;;  %4570 = vmatprep.subr.bf16.mxu1 %v14706_v30  ;;  %v1466_v22 = vld [vmem:[%s25214_s3 + $0xab8] sm:$0xff]  ;;  %v14689_v30 = vcombine.low %v1130_v41, %v1138_v34  ;;  %v15041_v41 = vcombine.low %v1482_v21, %v1490_v1 }
 0x266   :  { %v20353_v51 = vpop.f32.mrf.mxu0  ;;  %v1474_v6 = vld [vmem:[%s25214_s3 + $0xaf8] sm:$0xff] }
 0x267   :  { %25300 = vst [vmem:[#allocation36_spill] sm:$0xff] %v20348_v18  ;;  %4548 = vmatmul.mubr.bf16.gmra.mxu1 %v19295_v8  ;;  %4443 = vmatpush2.bf16.msra.mxu0 %v14815_v37  ;;  %v1362_v37 = vld [vmem:[%s25214_s3 + $0x778] sm:$0xff] }
 0x268   :  { %4571 = vmatpush1.bf16.msra.mxu1 %v14705_v10  ;;  %4590 = vmatprep.mubr.bf16.mxu1 %v19068_v42  ;;  %v3872_v2 = vpop.f32.mrf.mxu0  ;;  %v3957_v10 = vpop.f32.mrf.mxu1  ;;  %v1450_v9 = vld [vmem:[%s25214_s3 + $0xa38] sm:$0xff]  ;;  %v14914_v1 = vcombine.high %v1354_v57, %v1362_v37 }
 0x269   :  { %v20372_v38 = vadd.f32 %v20278_v11, %v3872_v2  ;;  %4572 = vmatprep.subr.bf16.mxu1 %v14690_v14  ;;  %4631 = vmatprep.subr.bf16.mxu0 %v15058_v20  ;;  %v1458_v11 = vld [vmem:[%s25214_s3 + $0xa78] sm:$0xff]  ;;  %v14929_v20 = vcombine.low %v1370_v40, %v1378_v4  ;;  %v15026_v2 = vcombine.high %v1466_v22, %v1474_v6 }
 0x26a   :  { %4445 = vmatmul.mubr.bf16.vlgmr.msra.gmra.mxu0 %v19072_v44  ;;  %v3874_v42 = vpop.f32.mrf.mxu0  ;;  %v15025_v4 = vcombine.low %v1466_v22, %v1474_v6  ;;  %v1442_v18 = vld [vmem:[%s25214_s3 + $0x9f8] sm:$0xff] }
 0x26b   :  { %25301 = vst [vmem:[#allocation37_spill] sm:$0xff] %v20372_v38  ;;  %4454 = vmatprep.mubr.bf16.mxu0 %v19137_v35  ;;  %4632 = vmatpush1.bf16.msra.mxu0 %v15057_v60  ;;  %v20377_v34 = vadd.f32 %v20297_v50, %v3874_v42  ;;  %v1338_v60 = vld [vmem:[%s25214_s3 + $0x6b8] sm:$0xff] }
 0x26c   :  { %4573 = vmatpush1.bf16.msra.mxu1 %v14689_v30  ;;  %v3876_v14 = vpop.f32.mrf.mxu0  ;;  %4633 = vmatprep.subr.bf16.mxu0 %v15042_v54  ;;  %v1346_v50 = vld [vmem:[%s25214_s3 + $0x6f8] sm:$0xff]  ;;  %v3959_v30 = vpop.f32.mrf.mxu1 }
 0x26d   :  { %25302 = vst [vmem:[#allocation38_spill] sm:$0xff] %v20377_v34  ;;  %v20392_v21 = vadd.f32 %v20313_v12, %v3876_v14  ;;  %4574 = vmatprep.subr.bf16.mxu1 %v14930_v61  ;;  %v1434_v54 = vld [vmem:[%s25214_s3 + $0x9b8] sm:$0xff]  ;;  %v14913_v61 = vcombine.low %v1354_v57, %v1362_v37  ;;  %v15010_v14 = vcombine.high %v1450_v9, %v1458_v11 }
 0x26e   :  { %v20394_v42 = vpop.f32.mrf.mxu0  ;;  %v1322_v39 = vld [vmem:[%s25214_s3 + $0x638] sm:$0xff]  ;;  %v15009_v37 = vcombine.low %v1450_v9, %v1458_v11 }
 0x26f   :  { %25303 = vst [vmem:[#allocation39_spill] sm:$0xff] %v20392_v21  ;;  %4634 = vmatpush1.bf16.msra.mxu0 %v15041_v41  ;;  %v1330_v22 = vld [vmem:[%s25214_s3 + $0x678] sm:$0xff]  ;;  %v14898_v41 = vcombine.high %v1338_v60, %v1346_v50 }
 0x270   :  { %4575 = vmatpush2.bf16.msra.mxu1 %v14929_v20  ;;  %v3882_v12 = vpop.f32.mrf.mxu0  ;;  %4635 = vmatprep.subr.bf16.mxu0 %v15026_v2  ;;  %v20413_v20 = vpop.f32.mrf.mxu1 }
 0x271   :  { %v20410_v6 = vadd.f32 %v3955_v13, %v3882_v12  ;;  %4576 = vmatprep.subr.bf16.mxu1 %v14914_v1 }
 0x272   :  { %4455 = vmatmul.mubr.bf16.gmra.mxu0 %v19133_v33  ;;  %v3884_v40 = vpop.f32.mrf.mxu0 }
 0x273   :  { %25304 = vst [vmem:[#allocation40_spill] sm:$0xff] %v20410_v6  ;;  %4464 = vmatprep.mubr.bf16.mxu0 %v19268_v31  ;;  %4636 = vmatpush1.bf16.msra.mxu0 %v15025_v4  ;;  %v20416_v57 = vadd.f32 %v3957_v10, %v3884_v40 }
 0x275   :  { %25305 = vst [vmem:[#allocation41_spill] sm:$0xff] %v20416_v57 }
 0x276   :  { %18 = vsyncpa [#allocation3], 0  ;;  %4577 = vmatpush2.bf16.msra.mxu1 %v14913_v61  ;;  %v3886_v2 = vpop.f32.mrf.mxu0  ;;  %v14897_v38 = vcombine.low %v1338_v60, %v1346_v50  ;;  %4637 = vmatprep.subr.bf16.mxu0 %v15010_v14  ;;  %v14994_v13 = vcombine.high %v1434_v54, %v1442_v18  ;;  %v14882_v1 = vcombine.high %v1322_v39, %v1330_v22  ;;  %v1418_v21 = vld [vmem:[%s25214_s3 + $0x938] sm:$0xff]  ;;  %v20434_v60 = vpop.f32.mrf.mxu1  ;;  %vm6237_vm1 = vcmask 523264   ;;  %s18323_s19 = smov [#allocation2]  }
 0x277   :  { %v20418_v12 = vadd.f32 %v3959_v30, %v3886_v2  ;;  %4578 = vmatprep.subr.bf16.mxu1 %v14898_v41  ;;  %v1426_v10 = vld [vmem:[%s25214_s3 + $0x978] sm:$0xff]  ;;  %25307 = vst [vmem:[#allocation43_spill] sm:$0xff] %v20434_v60  ;;  %4638 = vmatpush1.bf16.msra.mxu0 %v15009_v37  ;;  %v14993_v30 = vcombine.low %v1434_v54, %v1442_v18  ;;  %vm6563_vm2 = vcmask 1040384   ;;  %s14471_s20 = sshll.u32 %s18323_s19, 4  ;;  %s14472_s20 = int_to_ptr.vmem [resolvable:$true] %s14471_s20 }
 0x278   :  { %v20426_v40 = vpop.f32.mrf.mxu0  ;;  %v1306_v9 = vld [vmem:[%s25214_s3 + $0x5b8] sm:$0xff]  ;;  %v14881_v61 = vcombine.low %v1322_v39, %v1330_v22  ;;  %4639 = vmatprep.subr.bf16.mxu0 %v14994_v13  ;;  %v14978_v14 = vcombine.high %v1418_v21, %v1426_v10  ;;  %v14977_v54 = vcombine.low %v1418_v21, %v1426_v10  ;;  %v3826_v57 = vadd.f32 %v20311_v59, %v20207_v49  ;;  %p18305_p1 = scmp.lt.s32.totalorder %s14472_s20, %s14472_s20 }
 0x279   :  { %25306 = vst [vmem:[#allocation42_spill] sm:$0xff] %v20418_v12  ;;  %v1314_v11 = vld [vmem:[%s25214_s3 + $0x5f8] sm:$0xff]  ;;  %v3806_v49 = vadd.f32 %v20172_v48, %v20096_v19  ;;  %v3796_v19 = vadd.f32 %v20057_v27, %v20055_v63 }
 0x27a   :  { %4579 = vmatpush2.bf16.msra.mxu1 %v14897_v38  ;;  %v20438_v4 = vpop.f32.mrf.mxu0  ;;  %v14866_v41 = vcombine.high %v1306_v9, %v1314_v11  ;;  %v1402_v2 = vld [vmem:[%s25214_s3 + $0x8b8] sm:$0xff]  ;;  %4465 = vmatmul.mubr.bf16.gmra.mxu0 %v19272_v32  ;;  %v20455_v38 = vpop.f32.mrf.mxu1  ;;  %v14865_v22 = vcombine.low %v1306_v9, %v1314_v11 }
 0x27b   :  { %25308 = vst [vmem:[#allocation44_spill] sm:$0xff] %v20438_v4  ;;  %4580 = vmatprep.subr.bf16.mxu1 %v14882_v1  ;;  %v1410_v60 = vld [vmem:[%s25214_s3 + $0x8f8] sm:$0xff]  ;;  %4474 = vmatprep.mubr.bf16.mxu0 %v19289_v0 }
 0x27c   :  { %v20447_v37 = vpop.f32.mrf.mxu0  ;;  %v1290_v39 = vld [vmem:[%s25214_s3 + $0x538] sm:$0xff]  ;;  %4640 = vmatpush1.bf16.msra.mxu0 %v14993_v30  ;;  %v14962_v13 = vcombine.high %v1402_v2, %v1410_v60  ;;  %v20472_v9 = vpop.f32.mrf.mxu1  ;;  %v14961_v11 = vcombine.low %v1402_v2, %v1410_v60 }
 0x27d   :  { %v1298_v18 = vld [vmem:[%s25214_s3 + $0x578] sm:$0xff]  ;;  %4641 = vmatprep.subr.bf16.mxu0 %v14978_v14  ;;  %25310 = vst [vmem:[#allocation46_spill] sm:$0xff] %v20472_v9 }
 0x27e   :  { %4581 = vmatpush2.bf16.msra.mxu1 %v14881_v61  ;;  %v14850_v1 = vcombine.high %v1290_v39, %v1298_v18  ;;  %v1386_v50 = vld [vmem:[%s25214_s3 + $0x838] sm:$0xff]  ;;  %v20464_v12 = vpop.f32.mrf.mxu0  ;;  %v14849_v30 = vcombine.low %v1290_v39, %v1298_v18  ;;  %v20489_v39 = vpop.f32.mrf.mxu1 }
 0x27f   :  { %4582 = vmatprep.subr.bf16.mxu1 %v14866_v41  ;;  %v1394_v6 = vld [vmem:[%s25214_s3 + $0x878] sm:$0xff]  ;;  %25309 = vst [vmem:[#allocation45_spill] sm:$0xff] %v20464_v12 }
 0x280   :  { %v1274_v21 = vld [vmem:[%s25214_s3 + $0x4b8] sm:$0xff]  ;;  %4642 = vmatpush1.bf16.msra.mxu0 %v14977_v54  ;;  %v14946_v61 = vcombine.high %v1386_v50, %v1394_v6  ;;  %v20480_v12 = vpop.f32.mrf.mxu0  ;;  %v14945_v18 = vcombine.low %v1386_v50, %v1394_v6  ;;  %v3822_v6 = vadd.f32 %v20276_v46, %v20170_v23  ;;  %v3802_v23 = vadd.f32 %v20133_v5, %v20079_v47 }
 0x281   :  { %v1282_v10 = vld [vmem:[%s25214_s3 + $0x4f8] sm:$0xff]  ;;  %4643 = vmatprep.subr.bf16.mxu0 %v14962_v13  ;;  %v3824_v47 = vadd.f32 %v20295_v16, %v20186_v52 }
 0x282   :  { %4583 = vmatpush2.bf16.msra.mxu1 %v14865_v22  ;;  %v14834_v14 = vcombine.high %v1274_v21, %v1282_v10  ;;  %v1514_v41 = vld [vmem:[%s25214_s3 + $0xc38] sm:$0xff]  ;;  %4475 = vmatmul.mubr.bf16.gmra.mxu0 %v19293_v7  ;;  %v14833_v22 = vcombine.low %v1274_v21, %v1282_v10  ;;  %v4755_v59 = vpack.c.bf16 %v3826_v57, %v3822_v6  ;;  %v25318_v6 = vld [vmem:[#allocation18_spill] sm:$0xff] }
 0x283   :  { %4584 = vmatprep.subr.bf16.mxu1 %v14850_v1  ;;  %v1522_v4 = vld [vmem:[%s25214_s3 + $0xc78] sm:$0xff]  ;;  %15103 = vmatprep.mubr.msk.bf16.mxu0 %vm3523_vm0, %v19070_v43  ;;  %v4723_v57 = vpack.c.bf16 %v3806_v49, %v3802_v23 }
 0x284   :  { %v1258_v60 = vld [vmem:[%s25214_s3 + $0x438] sm:$0xff]  ;;  %4644 = vmatpush1.bf16.msra.mxu0 %v14961_v11  ;;  %v20493_v54 = vpop.f32.mrf.mxu0  ;;  %v15074_v13 = vcombine.high %v1514_v41, %v1522_v4  ;;  %v15073_v43 = vcombine.low %v1514_v41, %v1522_v4  ;;  %v3816_v4 = vadd.f32 %v20241_v28, %v20135_v58 }
 0x285   :  { %v1266_v2 = vld [vmem:[%s25214_s3 + $0x478] sm:$0xff]  ;;  %4645 = vmatprep.subr.bf16.mxu0 %v14946_v61  ;;  %v20495_v1 = vpop.f32.mrf.mxu1 }
 0x286   :  { %4585 = vmatpush2.bf16.msra.mxu1 %v14849_v30  ;;  %v14818_v9 = vcombine.high %v1258_v60, %v1266_v2  ;;  %v20499_v34 = vpop.f32.mrf.mxu0  ;;  %v14817_v21 = vcombine.low %v1258_v60, %v1266_v2  ;;  %v25312_v41 = vld [vmem:[#allocation31_spill] sm:$0xff]  ;;  %v25313_v60 = vld [vmem:[#allocation5_spill] sm:$0xff]  ;;  %v25315_v2 = vld [vmem:[#allocation28_spill] sm:$0xff] }
 0x287   :  { %4586 = vmatprep.subr.bf16.mxu1 %v14834_v14  ;;  %v20501_v11 = vpop.f32.mrf.mxu1  ;;  %v25311_v14 = vld [vmem:[#allocation32_spill] sm:$0xff] }
 0x288   :  { %4646 = vmatpush1.bf16.msra.mxu0 %v14945_v18  ;;  %v20505_v50 = vpop.f32.mrf.mxu0 }
 0x289   :  { %4661 = vmatprep.subr.bf16.mxu0 %v15074_v13  ;;  %v20507_v10 = vpop.f32.mrf.mxu1 }
 0x28a   :  { %4587 = vmatpush2.bf16.msra.mxu1 %v14833_v22  ;;  %v20511_v30 = vpop.f32.mrf.mxu0 }
 0x28b   :  { %4588 = vmatprep.subr.bf16.mxu1 %v14818_v9  ;;  %v20515_v61 = vpop.f32.mrf.mxu1  ;;  %v3812_v9 = vadd.f32 %v20209_v62, %v20116_v24  ;;  %v4707_v24 = vpack.c.bf16 %v3796_v19, %v20039_v29 }
 0x28c   :  { %4662 = vmatpush2.bf16.msra.mxu0 %v15073_v43  ;;  %v20519_v46 = vpop.f32.mrf.mxu0  ;;  %v25317_v43 = vld [vmem:[#allocation17_spill] sm:$0xff] }
 0x28d   :  { %4912 = vmatprep.subr.bf16.mxu0 %v4755_v59  ;;  %v20523_v48 = vpop.f32.mrf.mxu1  ;;  %v4739_v28 = vpack.c.bf16 %v3816_v4, %v3812_v9  ;;  %v25319_v59 = vld [vmem:[#allocation22_spill] sm:$0xff]  ;;  %v25320_v4 = vld [vmem:[#allocation23_spill] sm:$0xff]  ;;  %v25321_v9 = vld [vmem:[#allocation25_spill] sm:$0xff] }
 0x28e   :  { %4589 = vmatpush2.bf16.msra.mxu1 %v14817_v21  ;;  %v20528_v58 = vpop.f32.mrf.mxu0  ;;  %v3660_v21 = vadd.f32 %v25318_v6, %v25317_v43  ;;  %v3670_v23 = vadd.f32 %v25320_v4, %v25319_v59  ;;  %v16585_v6 = vld [vmem:[%s25215_s4 + $0x4] ss:$16 sps:$4 sm:$0xff]   ;;  %v25333_v4 = vld [vmem:[#allocation24_spill] sm:$0xff] }
 0x28f   :  { %4664 = vmatmul.mubr.bf16.vlgmr.msra.gmra.mxu0 %v19074_v45  ;;  %v20535_v62 = vpop.f32.mrf.mxu1  ;;  %v3820_v45 = vadd.f32 %v20260_v55, %v20150_v53  ;;  %v3810_v53 = vadd.f32 %v25311_v14, %v20104_v25 }
 0x290   :  { %15104 = vmatprep.mubr.msk.bf16.mxu0 %vm3523_vm0, %v19139_v36  ;;  %4913 = vmatpush1.bf16.msra.mxu0 %v4723_v57  ;;  %v20538_v63 = vpop.f32.mrf.mxu0  ;;  %v3814_v36 = vadd.f32 %v20225_v26, %v20125_v3  ;;  %v25316_v26 = vld [vmem:[#allocation6_spill] sm:$0xff] }
 0x291   :  { %4591 = vmatmul.mubr.bf16.vlgmr.msra.gmra.mxu1 %v19072_v44  ;;  %4914 = vmatprep.subr.bf16.mxu0 %v4739_v28  ;;  %v20542_v27 = vpop.f32.mrf.mxu1  ;;  %v3804_v44 = vadd.f32 %v20152_v56, %v20088_v15  ;;  %v4754_v52 = vpack.c.bf16 %v3824_v47, %v3820_v45  ;;  %v25314_v15 = vld [vmem:[#allocation27_spill] sm:$0xff]  ;;  %v25322_v57 = vld [vmem:[#allocation30_spill] sm:$0xff]  ;;  %v25323_v28 = vld [vmem:[#allocation29_spill] sm:$0xff] }
 0x292   :  { %4600 = vmatprep.mubr.bf16.mxu1 %v19137_v35  ;;  %v4097_v5 = vpop.f32.mrf.mxu0  ;;  %v3680_v18 = vadd.f32 %v25315_v2, %v25314_v15  ;;  %v4738_v3 = vpack.c.bf16 %v3814_v36, %v3810_v53  ;;  %v25324_v47 = vpack.c.bf16 %v25322_v57, %v25323_v28  ;;  %v25328_v53 = vld [vmem:[#allocation7_spill] sm:$0xff]  ;;  %v25330_v15 = vld [vmem:[#allocation8_spill] sm:$0xff] }
 0x293   :  { %v4024_v35 = vpop.f32.mrf.mxu1  ;;  %v4722_v29 = vpack.c.bf16 %v3804_v44, %v25312_v41  ;;  %v25326_v44 = vld [vmem:[#allocation13_spill] sm:$0xff] }
 0x294   :  { %4915 = vmatpush1.bf16.msra.mxu0 %v4707_v24  ;;  %v20549_v16 = vpop.f32.mrf.mxu0  ;;  %v4753_v19 = vpack.c.bf16 %v3680_v18, %v25321_v9  ;;  %v25325_v24 = vld [vmem:[#allocation12_spill] sm:$0xff] }
 0x295   :  { %4916 = vmatprep.subr.bf16.mxu0 %v4754_v52  ;;  %v20553_v55 = vpop.f32.mrf.mxu1  ;;  %v3650_v36 = vadd.f32 %v25326_v44, %v25325_v24  ;;  %v25327_v52 = vld [vmem:[#allocation15_spill] sm:$0xff]  ;;  %v25335_v9 = vld [vmem:[#allocation16_spill] sm:$0xff] }
 0x296   :  { %v4103_v56 = vpop.f32.mrf.mxu0  ;;  %v4721_v14 = vpack.c.bf16 %v3660_v21, %v25327_v52  ;;  %v25339_v24 = vld [vmem:[#allocation19_spill] sm:$0xff] }
 0x297   :  { %4674 = vmatmul.mubr.bf16.gmra.mxu0 %v25313_v60  ;;  %v4030_v22 = vpop.f32.mrf.mxu1 }
 0x298   :  { %15105 = vmatprep.mubr.msk.bf16.mxu0 %vm3523_vm0, %v25316_v26  ;;  %4917 = vmatpush1.bf16.msra.mxu0 %v4722_v29  ;;  %v4105_v25 = vpop.f32.mrf.mxu0  ;;  %v25329_v29 = vld [vmem:[#allocation20_spill] sm:$0xff]  ;;  %v25331_v26 = vld [vmem:[#allocation10_spill] sm:$0xff] }
 0x299   :  { %4601 = vmatmul.mubr.bf16.gmra.mxu1 %v19133_v33  ;;  %4918 = vmatprep.subr.bf16.mxu0 %v4738_v3  ;;  %v4032_v13 = vpop.f32.mrf.mxu1  ;;  %v4737_v60 = vpack.c.bf16 %v3670_v23, %v25329_v29  ;;  %v4705_v43 = vpack.c.bf16 %v3650_v36, %v25331_v26  ;;  %v4098_v36 = vadd.f32 %v4097_v5, %v4024_v35  ;;  %v25341_v29 = vld [vmem:[#allocation11_spill] sm:$0xff] }
 0x29a   :  { %4610 = vmatprep.mubr.bf16.mxu1 %v19268_v31  ;;  %v4107_v49 = vpop.f32.mrf.mxu0  ;;  %v4084_v5 = vadd.f32 %v20499_v34, %v20501_v11  ;;  %v4086_v34 = vadd.f32 %v20505_v50, %v20507_v10  ;;  %v3962_v50 = vadd.f32 %v20413_v20, %v20426_v40  ;;  %v25351_v20 = vld [vmem:[#allocation35_spill] sm:$0xff] }
 0x29b   :  { %v4034_v33 = vpop.f32.mrf.mxu1 }
 0x29c   :  { %4919 = vmatpush1.bf16.msra.mxu0 %v25324_v47  ;;  %v4111_v45 = vpop.f32.mrf.mxu0  ;;  %v25338_v47 = vld [vmem:[#allocation21_spill] sm:$0xff]  ;;  %v4108_v52 = vadd.f32 %v4107_v49, %v4034_v33  ;;  %v4106_v33 = vadd.f32 %v4105_v25, %v4032_v13 }
 0x29d   :  { %4920 = vmatprep.subr.bf16.mxu0 %v4753_v19  ;;  %v4038_v31 = vpop.f32.mrf.mxu1  ;;  %v25336_v19 = vld [vmem:[#allocation14_spill] sm:$0xff]  ;;  %v25340_v44 = vpack.c.bf16 %v25338_v47, %v25339_v24  ;;  %v25346_v25 = vld [vmem:[#allocation41_spill] sm:$0xff]  ;;  %v25357_v47 = vld [vmem:[#allocation40_spill] sm:$0xff] }
 0x29e   :  { %v4113_v41 = vpop.f32.mrf.mxu0  ;;  %v25337_v57 = vpack.c.bf16 %v25335_v9, %v25336_v19  ;;  %v4112_v49 = vadd.f32 %v4111_v45, %v4038_v31  ;;  %v3972_v45 = vadd.f32 %v20489_v39, %v20480_v12  ;;  %v25344_v39 = vld [vmem:[#allocation33_spill] sm:$0xff]  ;;  %v4741_v13 = vpack.c.bf16 %v3962_v50, %v25346_v25 }
 0x29f   :  { %4684 = vmatmul.mubr.bf16.gmra.mxu0 %v25328_v53  ;;  %v4040_v2 = vpop.f32.mrf.mxu1  ;;  %v4094_v53 = vadd.f32 %v20528_v58, %v20535_v62  ;;  %v4096_v62 = vadd.f32 %v20538_v63, %v20542_v27  ;;  %v4082_v63 = vadd.f32 %v20493_v54, %v20495_v1  ;;  %v3942_v54 = vadd.f32 %v25344_v39, %v20353_v51  ;;  %v25345_v1 = vld [vmem:[#allocation38_spill] sm:$0xff]  ;;  %v25354_v9 = vld [vmem:[#allocation37_spill] sm:$0xff] }
 0x2a0   :  { %15106 = vmatprep.mubr.msk.bf16.mxu0 %vm3523_vm0, %v25330_v15  ;;  %4921 = vmatpush1.bf16.msra.mxu0 %v4721_v14  ;;  %v4115_v18 = vpop.f32.mrf.mxu0  ;;  %v4114_v28 = vadd.f32 %v4113_v41, %v4040_v2  ;;  %v4104_v15 = vadd.f32 %v4103_v56, %v4030_v22  ;;  %v4088_v41 = vadd.f32 %v20511_v30, %v20515_v61  ;;  %v16594_v50 = vld [vmem:[%s25215_s4 + $0x64] ss:$16 sps:$4 sm:$0xff]  }
 0x2a1   :  { %4611 = vmatmul.mubr.bf16.gmra.mxu1 %v19272_v32  ;;  %4922 = vmatprep.subr.bf16.mxu0 %v4737_v60  ;;  %v4042_v3 = vpop.f32.mrf.mxu1  ;;  %v25332_v32 = vld [vmem:[#allocation26_spill] sm:$0xff]  ;;  %v25342_v60 = vld [vmem:[#allocation9_spill] sm:$0xff]  ;;  %v4727_v2 = vpack.c.bf16 %v4098_v36, %v4094_v53  ;;  %v4092_v22 = vadd.f32 %v20519_v46, %v20523_v48  ;;  %v4102_v61 = vadd.f32 %v20549_v16, %v20553_v55 }
 0x2a2   :  { %4620 = vmatprep.mubr.bf16.mxu1 %v19289_v0  ;;  %v4117_v59 = vpop.f32.mrf.mxu0  ;;  %v25334_v23 = vpack.c.bf16 %v25332_v32, %v25333_v4  ;;  %v4743_v26 = vpack.c.bf16 %v4108_v52, %v4104_v15  ;;  %v4711_v58 = vpack.c.bf16 %v4088_v41, %v4084_v5  ;;  %v3968_v46 = vadd.f32 %v20455_v38, %v20447_v37  ;;  %v25347_v37 = vld [vmem:[#allocation45_spill] sm:$0xff]  ;;  %v25348_v38 = vld [vmem:[#allocation46_spill] sm:$0xff] }
 0x2a3   :  { %v4044_v21 = vpop.f32.mrf.mxu1  ;;  %v4726_v11 = vpack.c.bf16 %v4096_v62, %v4092_v22  ;;  %v4742_v31 = vpack.c.bf16 %v4106_v33, %v4102_v61  ;;  %v3952_v48 = vadd.f32 %v20333_v17, %v20394_v42  ;;  %v4710_v16 = vpack.c.bf16 %v4086_v34, %v4082_v63  ;;  %v25349_v17 = vld [vmem:[#allocation44_spill] sm:$0xff]  ;;  %v25350_v42 = vld [vmem:[#allocation43_spill] sm:$0xff] }
 0x2a4   :  { %4923 = vmatpush1.bf16.msra.mxu0 %v4705_v43  ;;  %v4118_v0 = vadd.f32 %v4117_v59, %v4044_v21  ;;  %v4116_v43 = vadd.f32 %v4115_v18, %v4042_v3  ;;  %v4757_v10 = vpack.c.bf16 %v3972_v45, %v3968_v46  ;;  %v3970_v18 = vadd.f32 %v25348_v38, %v25347_v37  ;;  %v16588_v15 = vld [vmem:[%s25215_s4 + $0x24] ss:$16 sps:$4 sm:$0xff]   ;;  %v16586_v62 = vld [vmem:[%s25215_s4 + $0x20] ss:$16 sps:$4 sm:$0xff]  }
 0x2a5   :  { %4924 = vmatprep.subr.bf16.mxu0 %v25334_v23  ;;  %v4725_v55 = vpack.c.bf16 %v3952_v48, %v25345_v1  ;;  %v4709_v40 = vpack.c.bf16 %v3942_v54, %v25351_v20  ;;  %v16591_v22 = vld [vmem:[%s25215_s4 + $0x44] ss:$16 sps:$4 sm:$0xff]   ;;  %v16589_v46 = vld [vmem:[%s25215_s4 + $0x40] ss:$16 sps:$4 sm:$0xff]   ;;  %v25366_v37 = vmov 0  }
 0x2a6   :  { %v4759_v14 = vpack.c.bf16 %v4118_v0, %v4114_v28  ;;  %v4758_v56 = vpack.c.bf16 %v4116_v43, %v4112_v49  ;;  %v25353_v0 = vld [vmem:[#allocation39_spill] sm:$0xff]  ;;  %v25356_v28 = vld [vmem:[#allocation42_spill] sm:$0xff] }
 0x2a7   :  { %4694 = vmatmul.mubr.bf16.gmra.mxu0 %v19295_v8  ;;  %v25355_v19 = vpack.c.bf16 %v25353_v0, %v25354_v9  ;;  %v25358_v24 = vpack.c.bf16 %v25356_v28, %v25357_v47  ;;  %v16592_v1 = vld [vmem:[%s25215_s4 + $0x60] ss:$16 sps:$4 sm:$0xff]  }
 0x2a8   :  { %4944 = vmatprep.mubr.bf16.mxu0 %v16585_v6  ;;  %4925 = vmatpush1.bf16.msra.mxu0 %v25337_v57  ;;  %v3966_v6 = vadd.f32 %v25350_v42, %v25349_v17 }
 0x2a9   :  { %4621 = vmatmul.mubr.bf16.gmra.mxu1 %v19293_v7  ;;  %4926 = vmatprep.subr.bf16.mxu0 %v25340_v44  ;;  %v25343_v7 = vpack.c.bf16 %v25341_v29, %v25342_v60  ;;  %v25360_v29 = vld [vmem:[#allocation36_spill] sm:$0xff]  ;;  %v25361_v60 = vld [vmem:[#allocation34_spill] sm:$0xff] }
 0x2aa   :  { %v4227_v8 = vpop.f32.mrf.mxu1  ;;  %v4756_v21 = vpack.c.bf16 %v3970_v18, %v3966_v6 }
 0x2ac   :  { %4927 = vmatpush1.bf16.msra.mxu0 %v25343_v7  ;;  %v4229_v35 = vpop.f32.mrf.mxu1  ;;  %v25362_v7 = vpack.c.bf16 %v25360_v29, %v25361_v60 }
 0x2ad   :  { %4928 = vmatprep.subr.bf16.mxu0 %v4759_v14  ;;  %v16583_v14 = vld [vmem:[%s25215_s4] ss:$16 sps:$4 sm:$0xff]  }
 0x2ae   :  { %v4231_v30 = vpop.f32.mrf.mxu1 }
 0x2b0   :  { %4929 = vmatpush2.bf16.msra.mxu0 %v4727_v2  ;;  %v20616_v27 = vpop.f32.mrf.mxu1 }
 0x2b1   :  { %4930 = vmatprep.subr.bf16.mxu0 %v4743_v26 }
 0x2b2   :  { %v4237_v12 = vpop.f32.mrf.mxu1 }
 0x2b4   :  { %4931 = vmatpush2.bf16.msra.mxu0 %v4711_v58  ;;  %v4239_v3 = vpop.f32.mrf.mxu1 }
 0x2b5   :  { %4932 = vmatprep.subr.bf16.mxu0 %v4758_v56 }
 0x2b6   :  { %v4241_v59 = vpop.f32.mrf.mxu1 }
 0x2b8   :  { %4933 = vmatpush2.bf16.msra.mxu0 %v4726_v11  ;;  %v20635_v23 = vpop.f32.mrf.mxu1 }
 0x2b9   :  { %4934 = vmatprep.subr.bf16.mxu0 %v4742_v31 }
 0x2ba   :  { %v4247_v53 = vpop.f32.mrf.mxu1 }
 0x2bc   :  { %4935 = vmatpush2.bf16.msra.mxu0 %v4710_v16  ;;  %v20662_v43 = vpop.f32.mrf.mxu1 }
 0x2bd   :  { %4936 = vmatprep.subr.bf16.mxu0 %v4757_v10 }
 0x2be   :  { %v4251_v33 = vpop.f32.mrf.mxu1 }
 0x2c0   :  { %4937 = vmatpush2.bf16.msra.mxu0 %v4725_v55  ;;  %v20682_v11 = vpop.f32.mrf.mxu1 }
 0x2c1   :  { %4938 = vmatprep.subr.bf16.mxu0 %v4741_v13 }
 0x2c2   :  { %v20691_v48 = vpop.f32.mrf.mxu1 }
 0x2c4   :  { %4939 = vmatpush2.bf16.msra.mxu0 %v4709_v40  ;;  %v20702_v39 = vpop.f32.mrf.mxu1 }
 0x2c5   :  { %4940 = vmatprep.subr.bf16.mxu0 %v4756_v21  ;;  %v4154_v51 = vpop.f32.mrf.mxu0 }
 0x2c6   :  { %v20633_v32 = vadd.f32 %v4227_v8, %v4154_v51  ;;  %v20709_v55 = vpop.f32.mrf.mxu1 }
 0x2c7   :  { %v4156_v4 = vpop.f32.mrf.mxu0 }
 0x2c8   :  { %25352 = vst [vmem:[#allocation32_spill] sm:$0xff] %v20633_v32  ;;  %4941 = vmatpush2.bf16.msra.mxu0 %v25355_v19  ;;  %v20640_v57 = vadd.f32 %v4229_v35, %v4156_v4  ;;  %v20713_v13 = vpop.f32.mrf.mxu1 }
 0x2c9   :  { %4942 = vmatprep.subr.bf16.mxu0 %v25358_v24  ;;  %v4158_v44 = vpop.f32.mrf.mxu0 }
 0x2ca   :  { %v20645_v36 = vadd.f32 %v4231_v30, %v4158_v44 }
 0x2cb   :  { %v20647_v52 = vpop.f32.mrf.mxu0 }
 0x2cc   :  { %25359 = vst [vmem:[#allocation31_spill] sm:$0xff] %v20645_v36  ;;  %4943 = vmatpush2.bf16.msra.mxu0 %v25362_v7 }
 0x2cd   :  { %v4164_v41 = vpop.f32.mrf.mxu0 }
 0x2ce   :  { %v20660_v2 = vadd.f32 %v4237_v12, %v4164_v41 }
 0x2cf   :  { %4945 = vmatmul.mubr.bf16.vlgmr.msra.gmra.mxu0 %v16583_v14  ;;  %v4166_v26 = vpop.f32.mrf.mxu0 }
 0x2d0   :  { %25363 = vst [vmem:[#allocation5_spill] sm:$0xff] %v20660_v2  ;;  %v20664_v5 = vadd.f32 %v4239_v3, %v4166_v26  ;;  %4954 = vmatprep.mubr.bf16.mxu0 %v16588_v15 }
 0x2d1   :  { %v4168_v35 = vpop.f32.mrf.mxu0 }
 0x2d2   :  { %v20666_v49 = vadd.f32 %v4241_v59, %v4168_v35 }
 0x2d3   :  { %v20668_v58 = vpop.f32.mrf.mxu0 }
 0x2d5   :  { %v4174_v30 = vpop.f32.mrf.mxu0 }
 0x2d6   :  { %v20678_v61 = vadd.f32 %v4247_v53, %v4174_v30 }
 0x2d7   :  { %4955 = vmatmul.mubr.bf16.gmra.mxu0 %v16586_v62  ;;  %v20680_v34 = vpop.f32.mrf.mxu0 }
 0x2d8   :  { %25364 = vst [vmem:[#allocation27_spill] sm:$0xff] %v20678_v61  ;;  %4964 = vmatprep.mubr.bf16.mxu0 %v16591_v22 }
 0x2d9   :  { %v4178_v45 = vpop.f32.mrf.mxu0 }
 0x2da   :  { %v20684_v31 = vadd.f32 %v4251_v33, %v4178_v45 }
 0x2db   :  { %v20686_v63 = vpop.f32.mrf.mxu0 }
 0x2dc   :  { %25365 = vst [vmem:[#allocation28_spill] sm:$0xff] %v20684_v31 }
 0x2dd   :  { %v20698_v10 = vpop.f32.mrf.mxu0 }
 0x2df   :  { %4965 = vmatmul.mubr.bf16.gmra.mxu0 %v16589_v46  ;;  %v20700_v12 = vpop.f32.mrf.mxu0 }
 0x2e0   :  { %4974 = vmatprep.mubr.bf16.mxu0 %v16594_v50 }
 0x2e1   :  { %v20704_v54 = vpop.f32.mrf.mxu0 }
 0x2e3   :  { %v20711_v25 = vpop.f32.mrf.mxu0 }
 0x2e7   :  { %4975 = vmatmul.mubr.bf16.gmra.mxu0 %v16592_v1 }
 0x2e8   :  { %5562 = vmatprep.mubr.bf16.mxu0 %v25366_v37 }
 0x2e9   :  { %v20716_v38 = vpop.f32.mrf.mxu0 }
 0x2ea   :  { %v20718_v18 = vpop.f32.mrf.mxu1 }
 0x2eb   :  { %v4375_v3 = vpop.f32.mrf.mxu0 }
 0x2ec   :  { %v4302_v17 = vpop.f32.mrf.mxu1 }
 0x2ed   :  { %v4377_v42 = vpop.f32.mrf.mxu0  ;;  %v4376_v31 = vadd.f32 %v4375_v3, %v4302_v17  ;;  %v4374_v17 = vadd.f32 %v20716_v38, %v20718_v18  ;;  %v25369_v38 = vld [vmem:[#allocation28_spill] sm:$0xff] }
 0x2ee   :  { %v4304_v6 = vpop.f32.mrf.mxu1 }
 0x2ef   :  { %v4379_v20 = vpop.f32.mrf.mxu0 }
 0x2f0   :  { %v4306_v40 = vpop.f32.mrf.mxu1 }
 0x2f1   :  { %v4383_v21 = vpop.f32.mrf.mxu0  ;;  %v4380_v37 = vadd.f32 %v4379_v20, %v4306_v40  ;;  %v25372_v40 = vld [vmem:[#allocation31_spill] sm:$0xff] }
 0x2f2   :  { %v4310_v59 = vpop.f32.mrf.mxu1 }
 0x2f3   :  { %v4385_v51 = vpop.f32.mrf.mxu0 }
 0x2f4   :  { %v4312_v4 = vpop.f32.mrf.mxu1 }
 0x2f5   :  { %v4387_v0 = vpop.f32.mrf.mxu0  ;;  %v4386_v8 = vadd.f32 %v4385_v51, %v4312_v4  ;;  %v4384_v4 = vadd.f32 %v4383_v21, %v4310_v59 }
 0x2f6   :  { %v4314_v9 = vpop.f32.mrf.mxu1 }
 0x2f7   :  { %v4389_v19 = vpop.f32.mrf.mxu0 }
 0x2f8   :  { %v4316_v28 = vpop.f32.mrf.mxu1 }
 0x2f9   :  { %v4393_v47 = vpop.f32.mrf.mxu0  ;;  %v4390_v30 = vadd.f32 %v4389_v19, %v4316_v28  ;;  %v16597_v19 = vld [vmem:[%s25215_s4 + $0xc] ss:$16 sps:$4 sm:$0xff]   ;;  %v4715_v28 = vpack.c.bf16 %v4380_v37, %v4376_v31  ;;  %v4254_v37 = vadd.f32 %v20682_v11, %v20686_v63  ;;  %v4258_v11 = vadd.f32 %v20691_v48, %v20698_v10 }
 0x2fa   :  { %v4320_v24 = vpop.f32.mrf.mxu1  ;;  %5017 = vmatprep.mubr.bf16.mxu1 %v16597_v19  ;;  %v25373_v48 = vld [vmem:[#allocation32_spill] sm:$0xff] }
 0x2fb   :  { %v4395_v44 = vpop.f32.mrf.mxu0  ;;  %v4731_v32 = vpack.c.bf16 %v4390_v30, %v4386_v8  ;;  %v4394_v8 = vadd.f32 %v4393_v47, %v4320_v24  ;;  %v25374_v10 = vpack.c.bf16 %v25372_v40, %v25373_v48  ;;  %v16609_v47 = vld [vmem:[%s25217_s6 + $0x1fc] ss:$36 sps:$4 sm:$0xff]  }
 0x2fc   :  { %v4322_v14 = vpop.f32.mrf.mxu1  ;;  %5530 = vmatprep.subr.bf16.mxu0 %v16609_v47 }
 0x2fd   :  { %v4397_v53 = vpop.f32.mrf.mxu0  ;;  %v4396_v16 = vadd.f32 %v4395_v44, %v4322_v14  ;;  %v16615_v44 = vld [vmem:[%s25217_s6 + $0x1b4] ss:$36 sps:$4 sm:$0xff]  }
 0x2fe   :  { %v4324_v29 = vpop.f32.mrf.mxu1 }
 0x2ff   :  { %v4399_v60 = vpop.f32.mrf.mxu0 }
 0x300   :  { %v4326_v7 = vpop.f32.mrf.mxu1 }
 0x301   :  { %v4403_v15 = vpop.f32.mrf.mxu0  ;;  %v4400_v46 = vadd.f32 %v4399_v60, %v4326_v7  ;;  %v4388_v60 = vadd.f32 %v4387_v0, %v4314_v9  ;;  %v4398_v7 = vadd.f32 %v4397_v53, %v4324_v29 }
 0x302   :  { %v4330_v41 = vpop.f32.mrf.mxu1 }
 0x303   :  { %v4405_v26 = vpop.f32.mrf.mxu0  ;;  %v4747_v36 = vpack.c.bf16 %v4400_v46, %v4396_v16  ;;  %v4404_v2 = vadd.f32 %v4403_v15, %v4330_v41  ;;  %v4378_v16 = vadd.f32 %v4377_v42, %v4304_v6  ;;  %v16613_v15 = vld [vmem:[%s25217_s6 + $0x1b0] ss:$36 sps:$4 sm:$0xff]  }
 0x304   :  { %v4332_v35 = vpop.f32.mrf.mxu1 }
 0x305   :  { %v4407_v62 = vpop.f32.mrf.mxu0  ;;  %v4406_v50 = vadd.f32 %v4405_v26, %v4332_v35  ;;  %v4714_v31 = vpack.c.bf16 %v4378_v16, %v4374_v17  ;;  %v16621_v35 = vld [vmem:[%s25217_s6 + $0x16c] ss:$36 sps:$4 sm:$0xff]  }
 0x306   :  { %v4334_v33 = vpop.f32.mrf.mxu1 }
 0x307   :  { %v4409_v22 = vpop.f32.mrf.mxu0  ;;  %v4408_v61 = vadd.f32 %v4407_v62, %v4334_v33 }
 0x308   :  { %v4336_v45 = vpop.f32.mrf.mxu1 }
 0x309   :  { %v4410_v1 = vadd.f32 %v4409_v22, %v4336_v45  ;;  %v4762_v26 = vpack.c.bf16 %v4408_v61, %v4404_v2  ;;  %v4260_v2 = vadd.f32 %v20702_v39, %v20700_v12  ;;  %v4244_v61 = vadd.f32 %v20635_v23, %v20668_v58  ;;  %v16619_v45 = vld [vmem:[%s25217_s6 + $0x168] ss:$36 sps:$4 sm:$0xff]  }
 0x30a   :  { %v4262_v23 = vadd.f32 %v20709_v55, %v20704_v54  ;;  %v25370_v54 = vld [vmem:[#allocation27_spill] sm:$0xff] }
 0x30b   :  { %v4763_v56 = vpack.c.bf16 %v4410_v1, %v4406_v50  ;;  %v4729_v12 = vpack.c.bf16 %v4244_v61, %v20664_v5  ;;  %v25371_v55 = vpack.c.bf16 %v25369_v38, %v25370_v54  ;;  %v16627_v50 = vld [vmem:[%s25217_s6 + $0x124] ss:$36 sps:$4 sm:$0xff]  }
 0x30d   :  { %4985 = vmatprep.subr.bf16.mxu1 %v4763_v56  ;;  %v4730_v56 = vpack.c.bf16 %v4388_v60, %v4384_v4 }
 0x30e   :  { %4986 = vmatpush1.bf16.msra.mxu1 %v4731_v32  ;;  %v4264_v32 = vadd.f32 %v20713_v13, %v20711_v25  ;;  %v4250_v25 = vadd.f32 %v20662_v43, %v20680_v34  ;;  %v4234_v13 = vadd.f32 %v20616_v27, %v20647_v52  ;;  %v4760_v43 = vpack.c.bf16 %v4262_v23, %v4258_v11  ;;  %v25367_v52 = vld [vmem:[#allocation5_spill] sm:$0xff] }
 0x30f   :  { %4987 = vmatprep.subr.bf16.mxu1 %v4747_v36  ;;  %v4519_v51 = vpop.f32.mrf.mxu1  ;;  %v4746_v36 = vpack.c.bf16 %v4398_v7, %v4394_v8  ;;  %v25368_v5 = vpack.c.bf16 %v20666_v49, %v25367_v52  ;;  %v16607_v49 = vld [vmem:[%s25217_s6 + $0x1f8] ss:$36 sps:$4 sm:$0xff]   ;;  %v16625_v7 = vld [vmem:[%s25217_s6 + $0x120] ss:$36 sps:$4 sm:$0xff]  }
 0x310   :  { %v4761_v42 = vpack.c.bf16 %v4264_v32, %v4260_v2  ;;  %v4745_v39 = vpack.c.bf16 %v4254_v37, %v4250_v25  ;;  %v4713_v63 = vpack.c.bf16 %v4234_v13, %v20640_v57  ;;  %5531 = vmatpush1.bf16.msra.mxu0 %v16607_v49 }
 0x311   :  { %v4521_v3 = vpop.f32.mrf.mxu1  ;;  %5532 = vmatprep.subr.bf16.mxu0 %v16615_v44 }
 0x312   :  { %4988 = vmatpush1.bf16.msra.mxu1 %v4715_v28 }
 0x313   :  { %4989 = vmatprep.subr.bf16.mxu1 %v4762_v26  ;;  %v4523_v6 = vpop.f32.mrf.mxu1 }
 0x314   :  { %5533 = vmatpush1.bf16.msra.mxu0 %v16613_v15 }
 0x315   :  { %v20740_v58 = vpop.f32.mrf.mxu1  ;;  %5534 = vmatprep.subr.bf16.mxu0 %v16621_v35 }
 0x316   :  { %4990 = vmatpush1.bf16.msra.mxu1 %v4730_v56  ;;  %v16631_v56 = vld [vmem:[%s25217_s6 + $0xd8] ss:$36 sps:$4 sm:$0xff]  }
 0x317   :  { %4991 = vmatprep.subr.bf16.mxu1 %v4746_v36  ;;  %v4529_v34 = vpop.f32.mrf.mxu1  ;;  %v16639_v36 = vld [vmem:[%s25217_s6 + $0x94] ss:$36 sps:$4 sm:$0xff]  }
 0x318   :  { %5535 = vmatpush1.bf16.msra.mxu0 %v16619_v45 }
 0x319   :  { %v4531_v27 = vpop.f32.mrf.mxu1  ;;  %5536 = vmatprep.subr.bf16.mxu0 %v16627_v50 }
 0x31a   :  { %4992 = vmatpush1.bf16.msra.mxu1 %v4714_v31  ;;  %v16637_v31 = vld [vmem:[%s25217_s6 + $0x90] ss:$36 sps:$4 sm:$0xff]  }
 0x31b   :  { %4993 = vmatprep.subr.bf16.mxu1 %v4761_v42  ;;  %v4533_v18 = vpop.f32.mrf.mxu1 }
 0x31c   :  { %5537 = vmatpush1.bf16.msra.mxu0 %v16625_v7 }
 0x31d   :  { %v20756_v59 = vpop.f32.mrf.mxu1 }
 0x31e   :  { %4994 = vmatpush1.bf16.msra.mxu1 %v4729_v12 }
 0x31f   :  { %4995 = vmatprep.subr.bf16.mxu1 %v4745_v39  ;;  %v4539_v53 = vpop.f32.mrf.mxu1 }
 0x321   :  { %v20783_v22 = vpop.f32.mrf.mxu1 }
 0x322   :  { %4996 = vmatpush1.bf16.msra.mxu1 %v4713_v63 }
 0x323   :  { %4997 = vmatprep.subr.bf16.mxu1 %v4760_v43  ;;  %v4543_v28 = vpop.f32.mrf.mxu1 }
 0x325   :  { %v20809_v16 = vpop.f32.mrf.mxu1 }
 0x326   :  { %4998 = vmatpush1.bf16.msra.mxu1 %v25368_v5 }
 0x327   :  { %4999 = vmatprep.subr.bf16.mxu1 %v25371_v55  ;;  %v20821_v2 = vpop.f32.mrf.mxu1 }
 0x328   :  { %25382 = vst [vmem:[#allocation29_spill] sm:$0xff] %v20821_v2 }
 0x32a   :  { %v4446_v20 = vpop.f32.mrf.mxu0  ;;  %5000 = vmatpush1.bf16.msra.mxu1 %v25374_v10 }
 0x32b   :  { %v20754_v57 = vadd.f32 %v4519_v51, %v4446_v20  ;;  %v16633_v51 = vld [vmem:[%s25217_s6 + $0xdc] ss:$36 sps:$4 sm:$0xff]  }
 0x32c   :  { %v4448_v21 = vpop.f32.mrf.mxu0  ;;  %5538 = vmatprep.subr.bf16.mxu0 %v16633_v51 }
 0x32d   :  { %25375 = vst [vmem:[#allocation6_spill] sm:$0xff] %v20754_v57  ;;  %v20758_v0 = vadd.f32 %v4521_v3, %v4448_v21  ;;  %5539 = vmatpush1.bf16.msra.mxu0 %v16631_v56 }
 0x32e   :  { %v4450_v9 = vpop.f32.mrf.mxu0  ;;  %5540 = vmatprep.subr.bf16.mxu0 %v16639_v36 }
 0x32f   :  { %25376 = vst [vmem:[#allocation17_spill] sm:$0xff] %v20758_v0  ;;  %v20766_v24 = vadd.f32 %v4523_v6, %v4450_v9  ;;  %v20832_v6 = vpop.f32.mrf.mxu1 }
 0x330   :  { %v20771_v14 = vpop.f32.mrf.mxu0 }
 0x331   :  { %25377 = vst [vmem:[#allocation18_spill] sm:$0xff] %v20766_v24  ;;  %5541 = vmatpush1.bf16.msra.mxu0 %v16637_v31  ;;  %v20836_v13 = vpop.f32.mrf.mxu1 }
 0x332   :  { %v4456_v41 = vpop.f32.mrf.mxu0 }
 0x333   :  { %v20781_v62 = vadd.f32 %v4529_v34, %v4456_v41  ;;  %v4555_v39 = vpop.f32.mrf.mxu1 }
 0x334   :  { %v4458_v33 = vpop.f32.mrf.mxu0 }
 0x335   :  { %25378 = vst [vmem:[#allocation22_spill] sm:$0xff] %v20781_v62  ;;  %v20785_v30 = vadd.f32 %v4531_v27, %v4458_v33 }
 0x336   :  { %v4460_v46 = vpop.f32.mrf.mxu0 }
 0x337   :  { %v20793_v1 = vadd.f32 %v4533_v18, %v4460_v46 }
 0x338   :  { %v20795_v19 = vpop.f32.mrf.mxu0 }
 0x339   :  { %25379 = vst [vmem:[#allocation23_spill] sm:$0xff] %v20793_v1 }
 0x33a   :  { %v4466_v26 = vpop.f32.mrf.mxu0 }
 0x33b   :  { %v20805_v4 = vadd.f32 %v4539_v53, %v4466_v26 }
 0x33c   :  { %v20807_v8 = vpop.f32.mrf.mxu0 }
 0x33d   :  { %25380 = vst [vmem:[#allocation25_spill] sm:$0xff] %v20805_v4 }
 0x33e   :  { %v4470_v32 = vpop.f32.mrf.mxu0 }
 0x33f   :  { %v20817_v3 = vadd.f32 %v4543_v28, %v4470_v32 }
 0x340   :  { %v20819_v17 = vpop.f32.mrf.mxu0 }
 0x341   :  { %25381 = vst [vmem:[#allocation30_spill] sm:$0xff] %v20817_v3 }
 0x342   :  { %v20828_v37 = vpop.f32.mrf.mxu0 }
 0x344   :  { %v20830_v42 = vpop.f32.mrf.mxu0 }
 0x346   :  { %v20834_v25 = vpop.f32.mrf.mxu0 }
 0x348   :  { %v4482_v12 = vpop.f32.mrf.mxu0 }
 0x34f   :  { %v4665_v23 = vpop.f32.mrf.mxu0 }
 0x351   :  { %v4592_v11 = vpop.f32.mrf.mxu1  ;;  %v4667_v63 = vpop.f32.mrf.mxu0 }
 0x353   :  { %v4594_v43 = vpop.f32.mrf.mxu1  ;;  %v4669_v34 = vpop.f32.mrf.mxu0 }
 0x354   :  { %v4668_v3 = vadd.f32 %v4667_v63, %v4594_v43  ;;  %v16616_v63 = vld [vmem:[%s25217_s6 + $0x1b8] ss:$36 sps:$4 sm:$0xff]  }
 0x355   :  { %v4596_v27 = vpop.f32.mrf.mxu1  ;;  %v4671_v52 = vpop.f32.mrf.mxu0  ;;  %v16624_v43 = vld [vmem:[%s25217_s6 + $0x174] ss:$36 sps:$4 sm:$0xff]  }
 0x357   :  { %v4598_v5 = vpop.f32.mrf.mxu1  ;;  %v4675_v38 = vpop.f32.mrf.mxu0 }
 0x358   :  { %v4672_v60 = vadd.f32 %v4671_v52, %v4598_v5  ;;  %v4666_v5 = vadd.f32 %v4665_v23, %v4592_v11  ;;  %v16610_v23 = vld [vmem:[%s25217_s6 + $0x200] ss:$36 sps:$4 sm:$0xff]  }
 0x359   :  { %v4602_v54 = vpop.f32.mrf.mxu1  ;;  %v4677_v55 = vpop.f32.mrf.mxu0  ;;  %v16618_v11 = vld [vmem:[%s25217_s6 + $0x1bc] ss:$36 sps:$4 sm:$0xff]  }
 0x35a   :  { %v4719_v1 = vpack.c.bf16 %v4672_v60, %v4668_v3  ;;  %v4526_v60 = vadd.f32 %v20740_v58, %v20771_v14  ;;  %v25388_v58 = vld [vmem:[#allocation30_spill] sm:$0xff]  ;;  %v25389_v14 = vld [vmem:[#allocation25_spill] sm:$0xff] }
 0x35b   :  { %v4604_v18 = vpop.f32.mrf.mxu1  ;;  %v4679_v20 = vpop.f32.mrf.mxu0 }
 0x35c   :  { %v4678_v31 = vadd.f32 %v4677_v55, %v4604_v18  ;;  %v4670_v55 = vadd.f32 %v4669_v34, %v4596_v27  ;;  %v16598_v34 = vld [vmem:[%s25215_s4 + $0x28] ss:$16 sps:$4 sm:$0xff]   ;;  %v16603_v27 = vld [vmem:[%s25215_s4 + $0x4c] ss:$16 sps:$4 sm:$0xff]  }
 0x35d   :  { %v4606_v40 = vpop.f32.mrf.mxu1  ;;  %v4681_v48 = vpop.f32.mrf.mxu0 }
 0x35e   :  { %v4680_v0 = vadd.f32 %v4679_v20, %v4606_v40  ;;  %v16628_v20 = vld [vmem:[%s25217_s6 + $0x128] ss:$36 sps:$4 sm:$0xff]  }
 0x35f   :  { %v4608_v10 = vpop.f32.mrf.mxu1  ;;  %v4685_v21 = vpop.f32.mrf.mxu0  ;;  %v16636_v40 = vld [vmem:[%s25217_s6 + $0xe4] ss:$36 sps:$4 sm:$0xff]  }
 0x360   :  { %v4682_v26 = vadd.f32 %v4681_v48, %v4608_v10  ;;  %v4676_v10 = vadd.f32 %v4675_v38, %v4602_v54  ;;  %v16622_v38 = vld [vmem:[%s25217_s6 + $0x170] ss:$36 sps:$4 sm:$0xff]  }
 0x361   :  { %v4612_v9 = vpop.f32.mrf.mxu1  ;;  %v4687_v49 = vpop.f32.mrf.mxu0  ;;  %v16630_v54 = vld [vmem:[%s25217_s6 + $0x12c] ss:$36 sps:$4 sm:$0xff]  }
 0x362   :  { %v4735_v57 = vpack.c.bf16 %v4682_v26, %v4678_v31  ;;  %v4734_v18 = vpack.c.bf16 %v4680_v0, %v4676_v10  ;;  %v4542_v0 = vadd.f32 %v20783_v22, %v20807_v8  ;;  %v25385_v22 = vld [vmem:[#allocation23_spill] sm:$0xff]  ;;  %v25386_v8 = vld [vmem:[#allocation22_spill] sm:$0xff]  ;;  %v16649_v26 = vld [vmem:[%s25217_s6] ss:$36 sps:$4 sm:$0xff]  }
 0x363   :  { %v4614_v47 = vpop.f32.mrf.mxu1  ;;  %v4689_v44 = vpop.f32.mrf.mxu0 }
 0x364   :  { %v4688_v29 = vadd.f32 %v4687_v49, %v4614_v47  ;;  %v4556_v49 = vadd.f32 %v4555_v39, %v4482_v12  ;;  %v16600_v39 = vld [vmem:[%s25215_s4 + $0x2c] ss:$16 sps:$4 sm:$0xff]   ;;  %v16634_v47 = vld [vmem:[%s25217_s6 + $0xe0] ss:$36 sps:$4 sm:$0xff]  }
 0x365   :  { %v4616_v53 = vpop.f32.mrf.mxu1  ;;  %v4691_v15 = vpop.f32.mrf.mxu0 }
 0x366   :  { %v4690_v2 = vadd.f32 %v4689_v44, %v4616_v53  ;;  %v16642_v44 = vld [vmem:[%s25217_s6 + $0x9c] ss:$36 sps:$4 sm:$0xff]  }
 0x367   :  { %v4618_v41 = vpop.f32.mrf.mxu1  ;;  %v4695_v35 = vpop.f32.mrf.mxu0  ;;  %v16640_v53 = vld [vmem:[%s25217_s6 + $0x98] ss:$36 sps:$4 sm:$0xff]  }
 0x368   :  { %v4692_v56 = vadd.f32 %v4691_v15, %v4618_v41  ;;  %v4686_v15 = vadd.f32 %v4685_v21, %v4612_v9  ;;  %v16601_v21 = vld [vmem:[%s25215_s4 + $0x48] ss:$16 sps:$4 sm:$0xff]   ;;  %v16606_v9 = vld [vmem:[%s25215_s4 + $0x6c] ss:$16 sps:$4 sm:$0xff]  }
 0x369   :  { %v4622_v33 = vpop.f32.mrf.mxu1  ;;  %v4697_v45 = vpop.f32.mrf.mxu0  ;;  %v16604_v41 = vld [vmem:[%s25215_s4 + $0x68] ss:$16 sps:$4 sm:$0xff]  }
 0x36a   :  { %v4751_v24 = vpack.c.bf16 %v4692_v56, %v4688_v29  ;;  %v4696_v62 = vadd.f32 %v4695_v35, %v4622_v33  ;;  %v4750_v52 = vpack.c.bf16 %v4690_v2, %v4686_v15  ;;  %v4552_v29 = vadd.f32 %v20832_v6, %v20830_v42  ;;  %v16612_v6 = vld [vmem:[%s25217_s6 + $0x204] ss:$36 sps:$4 sm:$0xff]   ;;  %v16645_v33 = vld [vmem:[%s25217_s6 + $0x4c] ss:$36 sps:$4 sm:$0xff]  }
 0x36b   :  { %v4624_v46 = vpop.f32.mrf.mxu1  ;;  %v4699_v50 = vpop.f32.mrf.mxu0  ;;  %v4554_v2 = vadd.f32 %v20836_v13, %v20834_v25  ;;  %v25387_v42 = vpack.c.bf16 %v25385_v22, %v25386_v8  ;;  %v25391_v25 = vld [vmem:[#allocation18_spill] sm:$0xff]  ;;  %v25394_v35 = vmov 0   ;;  %5542 = vmatprep.subr.bf16.mxu0 %v16645_v33  ;;  %v16666_v33 = vld [vmem:[%s25217_s6 + $0x134] ss:$36 sps:$4 sm:$0xff]  }
 0x36c   :  { %v4698_v32 = vadd.f32 %v4697_v45, %v4624_v46  ;;  %v25392_v13 = vld [vmem:[#allocation6_spill] sm:$0xff]  ;;  %v16648_v45 = vld [vmem:[%s25217_s6 + $0x54] ss:$36 sps:$4 sm:$0xff]  }
 0x36d   :  { %v4626_v28 = vpop.f32.mrf.mxu1  ;;  %v4701_v7 = vpop.f32.mrf.mxu0  ;;  %v25393_v12 = vpack.c.bf16 %v25391_v25, %v25392_v13  ;;  %v16643_v46 = vld [vmem:[%s25217_s6 + $0x48] ss:$36 sps:$4 sm:$0xff]  }
 0x36e   :  { %v4700_v4 = vadd.f32 %v4699_v50, %v4626_v28  ;;  %v16646_v50 = vld [vmem:[%s25217_s6 + $0x50] ss:$36 sps:$4 sm:$0xff]   ;;  %5543 = vmatpush1.bf16.msra.mxu0 %v16643_v46  ;;  %v16651_v28 = vld [vmem:[%s25217_s6 + $0x4] ss:$36 sps:$4 sm:$0xff]  }
 0x36f   :  { %v4628_v51 = vpop.f32.mrf.mxu1  ;;  %5544 = vmatprep.subr.bf16.mxu0 %v16651_v28  ;;  %v16657_v56 = vld [vmem:[%s25217_s6 + $0x20c] ss:$36 sps:$4 sm:$0xff]   ;;  %v16684_v28 = vld [vmem:[%s25217_s6 + $0x13c] ss:$36 sps:$4 sm:$0xff]  }
 0x370   :  { %v4702_v36 = vadd.f32 %v4701_v7, %v4628_v51  ;;  %v4766_v48 = vpack.c.bf16 %v4700_v4, %v4696_v62  ;;  %v4546_v62 = vadd.f32 %v20809_v16, %v20819_v17  ;;  %v25384_v16 = vld [vmem:[#allocation17_spill] sm:$0xff]  ;;  %v16654_v7 = vld [vmem:[%s25217_s6 + $0xc] ss:$36 sps:$4 sm:$0xff]  }
 0x371   :  { %v4717_v17 = vpack.c.bf16 %v4526_v60, %v25384_v16  ;;  %v16652_v51 = vld [vmem:[%s25217_s6 + $0x8] ss:$36 sps:$4 sm:$0xff]  }
 0x372   :  { %v4767_v61 = vpack.c.bf16 %v4702_v36, %v4698_v32  ;;  %v4749_v3 = vpack.c.bf16 %v4546_v62, %v4542_v0  ;;  %5545 = vmatpush1.bf16.msra.mxu0 %v16649_v26  ;;  %v16672_v32 = vld [vmem:[%s25217_s6 + $0x214] ss:$36 sps:$4 sm:$0xff]   ;;  %v16655_v22 = vld [vmem:[%s25217_s6 + $0x208] ss:$36 sps:$4 sm:$0xff]  }
 0x373   :  { %5756 = vmatprep.subr.bf16.mxu0 %v16657_v56  ;;  %v16675_v13 = vld [vmem:[%s25217_s6 + $0x1cc] ss:$36 sps:$4 sm:$0xff]  }
 0x374   :  { %5001 = vmatprep.subr.bf16.mxu1 %v4767_v61  ;;  %v16664_v56 = vld [vmem:[%s25217_s6 + $0x130] ss:$36 sps:$4 sm:$0xff]  }
 0x375   :  { %5002 = vmatpush2.bf16.msra.mxu1 %v4735_v57  ;;  %v4536_v57 = vadd.f32 %v20756_v59, %v20795_v19  ;;  %v25383_v59 = vld [vmem:[#allocation29_spill] sm:$0xff] }
 0x376   :  { %5003 = vmatprep.subr.bf16.mxu1 %v4751_v24  ;;  %v4718_v24 = vpack.c.bf16 %v4670_v55, %v4666_v5  ;;  %v4550_v19 = vadd.f32 %v25383_v59, %v20828_v37  ;;  %v16595_v37 = vld [vmem:[%s25215_s4 + $0x8] ss:$16 sps:$4 sm:$0xff]  }
 0x377   :  { %v4733_v4 = vpack.c.bf16 %v4536_v57, %v20785_v30  ;;  %v25390_v30 = vpack.c.bf16 %v25388_v58, %v25389_v14  ;;  %v16660_v58 = vld [vmem:[%s25217_s6 + $0x1c4] ss:$36 sps:$4 sm:$0xff]  }
 0x378   :  { %v4764_v61 = vpack.c.bf16 %v4554_v2, %v4550_v19 }
 0x379   :  { %5004 = vmatpush2.bf16.msra.mxu1 %v4719_v1  ;;  %v4765_v1 = vpack.c.bf16 %v4556_v49, %v4552_v29 }
 0x37a   :  { %5005 = vmatprep.subr.bf16.mxu1 %v4766_v48 }
 0x37d   :  { %5006 = vmatpush2.bf16.msra.mxu1 %v4734_v18 }
 0x37e   :  { %5007 = vmatprep.subr.bf16.mxu1 %v4750_v52  ;;  %v20959_v52 = vpop.permute.xlu0 %4794 }
 0x381   :  { %5008 = vmatpush2.bf16.msra.mxu1 %v4718_v24  ;;  %v20962_v24 = vpop.permute.xlu1 %4799 }
 0x382   :  { %5009 = vmatprep.subr.bf16.mxu1 %v4765_v1  ;;  %v20971_v59 = vpop.permute.xlu0 %4804 }
 0x385   :  { %5010 = vmatpush2.bf16.msra.mxu1 %v4733_v4  ;;  %v20982_v14 = vpop.permute.xlu1 %4809 }
 0x386   :  { %5011 = vmatprep.subr.bf16.mxu1 %v4749_v3 }
 0x389   :  { %5012 = vmatpush2.bf16.msra.mxu1 %v4717_v17 }
 0x38a   :  { %5013 = vmatprep.subr.bf16.mxu1 %v4764_v61 }
 0x38d   :  { %5014 = vmatpush2.bf16.msra.mxu1 %v25387_v42 }
 0x38e   :  { %5015 = vmatprep.subr.bf16.mxu1 %v25390_v30 }
 0x38f   :  { %v4946_v36 = vpop.f32.mrf.mxu0 }
 0x390   :  { %v4947_v57 = vadd.f32 %v4946_v36, %v20959_v52  ;;  %v16669_v36 = vld [vmem:[%s25217_s6 + $0xec] ss:$36 sps:$4 sm:$0xff]  }
 0x391   :  { %5016 = vmatpush2.bf16.msra.mxu1 %v25393_v12  ;;  %v20951_v31 = vpop.f32.mrf.mxu0 }
 0x392   :  { %5643 = vmatprep.subr.bf16.mxu1 %v16612_v6  ;;  %v16670_v6 = vld [vmem:[%s25217_s6 + $0x210] ss:$36 sps:$4 sm:$0xff]  }
 0x393   :  { %v4950_v48 = vpop.f32.mrf.mxu0 }
 0x394   :  { %5018 = vmatmul.mubr.bf16.vlgmr.msra.gmra.mxu1 %v16595_v37  ;;  %v4951_v1 = vadd.f32 %v4950_v48, %v20962_v24  ;;  %v16682_v48 = vld [vmem:[%s25217_s6 + $0x138] ss:$36 sps:$4 sm:$0xff]  }
 0x395   :  { %5027 = vmatprep.mubr.bf16.mxu1 %v16600_v39  ;;  %5644 = vmatpush1.bf16.msra.mxu1 %v16610_v23  ;;  %v20953_v10 = vpop.f32.mrf.mxu0  ;;  %v16658_v23 = vld [vmem:[%s25217_s6 + $0x1c0] ss:$36 sps:$4 sm:$0xff]  }
 0x396   :  { %5645 = vmatprep.subr.bf16.mxu1 %v16618_v11 }
 0x397   :  { %v4956_v15 = vpop.f32.mrf.mxu0 }
 0x398   :  { %v4957_v8 = vadd.f32 %v4956_v15, %v20971_v59 }
 0x399   :  { %5646 = vmatpush1.bf16.msra.mxu1 %v16616_v63  ;;  %v20955_v55 = vpop.f32.mrf.mxu0  ;;  %v16663_v63 = vld [vmem:[%s25217_s6 + $0x17c] ss:$36 sps:$4 sm:$0xff]  }
 0x39a   :  { %5647 = vmatprep.subr.bf16.mxu1 %v16624_v43 }
 0x39b   :  { %v4960_v18 = vpop.f32.mrf.mxu0 }
 0x39c   :  { %5028 = vmatmul.mubr.bf16.gmra.mxu1 %v16598_v34  ;;  %v4961_v37 = vadd.f32 %v4960_v18, %v20982_v14  ;;  %v16673_v34 = vld [vmem:[%s25217_s6 + $0x1c8] ss:$36 sps:$4 sm:$0xff]  }
 0x39d   :  { %5037 = vmatprep.mubr.bf16.mxu1 %v16603_v27  ;;  %5648 = vmatpush1.bf16.msra.mxu1 %v16622_v38  ;;  %v20957_v49 = vpop.f32.mrf.mxu0  ;;  %v21010_v27 = vpop.permute.xlu0 %4814 }
 0x39e   :  { %5649 = vmatprep.subr.bf16.mxu1 %v16630_v54 }
 0x39f   :  { %v4966_v5 = vpop.f32.mrf.mxu0 }
 0x3a1   :  { %5650 = vmatpush1.bf16.msra.mxu1 %v16628_v20  ;;  %v20967_v60 = vpop.f32.mrf.mxu0  ;;  %v21052_v15 = vpop.permute.xlu0 %4824 }
 0x3a2   :  { %5651 = vmatprep.subr.bf16.mxu1 %v16636_v40 }
 0x3a3   :  { %v4970_v17 = vpop.f32.mrf.mxu0 }
 0x3a4   :  { %5038 = vmatmul.mubr.bf16.gmra.mxu1 %v16601_v21  ;;  %v4967_v21 = vadd.f32 %v4966_v5, %v21010_v27 }
 0x3a5   :  { %5047 = vmatprep.mubr.bf16.mxu1 %v16606_v9  ;;  %5652 = vmatpush1.bf16.msra.mxu1 %v16634_v47  ;;  %v20995_v12 = vpop.f32.mrf.mxu0  ;;  %v16661_v47 = vld [vmem:[%s25217_s6 + $0x178] ss:$36 sps:$4 sm:$0xff]  }
 0x3a6   :  { %5653 = vmatprep.subr.bf16.mxu1 %v16642_v44  ;;  %v16681_v44 = vld [vmem:[%s25217_s6 + $0x184] ss:$36 sps:$4 sm:$0xff]  }
 0x3a7   :  { %v4976_v20 = vpop.f32.mrf.mxu0 }
 0x3a9   :  { %5654 = vmatpush1.bf16.msra.mxu1 %v16640_v53  ;;  %v21021_v53 = vpop.permute.xlu1 %4819 }
 0x3aa   :  { %5655 = vmatprep.subr.bf16.mxu1 %v16648_v45  ;;  %v16679_v45 = vld [vmem:[%s25217_s6 + $0x180] ss:$36 sps:$4 sm:$0xff]   ;;  %v4971_v46 = vadd.f32 %v4970_v17, %v21021_v53 }
 0x3ab   :  { %v16678_v17 = vld [vmem:[%s25217_s6 + $0xa4] ss:$36 sps:$4 sm:$0xff]  }
 0x3ac   :  { %5048 = vmatmul.mubr.bf16.gmra.mxu1 %v16604_v41 }
 0x3ad   :  { %5675 = vmatprep.mubr.bf16.mxu1 %v25394_v35  ;;  %5656 = vmatpush1.bf16.msra.mxu1 %v16646_v50 }
 0x3ae   :  { %5657 = vmatprep.subr.bf16.mxu1 %v16654_v7  ;;  %v21037_v7 = vpop.f32.mrf.mxu0 }
 0x3b1   :  { %5658 = vmatpush1.bf16.msra.mxu1 %v16652_v51 }
 0x3b2   :  { %5869 = vmatprep.subr.bf16.mxu1 %v16672_v32 }
 0x454   :  { %v5019_v29 = vpop.f32.mrf.mxu1 }
 0x455   :  { %v5020_v0 = vadd.f32 %v5019_v29, %v4947_v57  ;;  %v4980_v29 = vpop.f32.mrf.mxu0 }
 0x456   :  { %v20964_v62 = vpop.f32.mrf.mxu1 }
 0x457   :  { %v5058_v19 = vmax.f32 %v5020_v0, 0.0 }
 0x458   :  { %v5023_v4 = vpop.f32.mrf.mxu1 }
 0x459   :  { %v5024_v3 = vadd.f32 %v5023_v4, %v4951_v1  ;;  %v4977_v1 = vadd.f32 %v4976_v20, %v21052_v15  ;;  %v16667_v4 = vld [vmem:[%s25217_s6 + $0xe8] ss:$36 sps:$4 sm:$0xff]   ;;  %v16685_v20 = vld [vmem:[%s25217_s6 + $0x58] ss:$36 sps:$4 sm:$0xff]  }
 0x45a   :  { %v20969_v2 = vpop.f32.mrf.mxu1 }
 0x45b   :  { %v5060_v16 = vmax.f32 %v5024_v3, 0.0  ;;  %v16690_v3 = vld [vmem:[%s25217_s6 + $0xf4] ss:$36 sps:$4 sm:$0xff]  }
 0x45c   :  { %v5029_v61 = vpop.f32.mrf.mxu1 }
 0x45d   :  { %v20977_v42 = vpack.c.bf16 %v5060_v16, %v5058_v19  ;;  %v5030_v25 = vadd.f32 %v5029_v61, %v4957_v8  ;;  %v21063_v19 = vpop.permute.xlu1 %4829  ;;  %v16688_v61 = vld [vmem:[%s25217_s6 + $0xf0] ss:$36 sps:$4 sm:$0xff]  }
 0x45e   :  { %v20984_v30 = vpop.f32.mrf.mxu1 }
 0x45f   :  { %5563 = vmatmul.mubr.bf16.vlgmr.msra.gmra.mxu0 %v20977_v42  ;;  %5676 = vmatmul.mubr.bf16.vlgmr.msra.gmra.mxu1 %v20977_v42  ;;  %v5062_v38 = vmax.f32 %v5030_v25, 0.0  ;;  %v16676_v25 = vld [vmem:[%s25217_s6 + $0xa0] ss:$36 sps:$4 sm:$0xff]  }
 0x460   :  { %5757 = vmatpush1.bf16.msra.mxu0 %v16655_v22  ;;  %v5033_v39 = vpop.f32.mrf.mxu1  ;;  %5572 = vmatprep.mubr.bf16.mxu0 %v25394_v35  ;;  %v4981_v22 = vadd.f32 %v4980_v29, %v21063_v19  ;;  %v16706_v29 = vld [vmem:[%s25217_s6 + $0x140] ss:$36 sps:$4 sm:$0xff]  }
 0x461   :  { %v5034_v11 = vadd.f32 %v5033_v39, %v4961_v37  ;;  %5685 = vmatprep.mubr.bf16.mxu1 %v25394_v35  ;;  %5758 = vmatprep.subr.bf16.mxu0 %v16660_v58  ;;  %v16693_v58 = vld [vmem:[%s25217_s6 + $0xac] ss:$36 sps:$4 sm:$0xff]  }
 0x462   :  { %v21005_v43 = vpop.f32.mrf.mxu1  ;;  %5870 = vmatpush1.bf16.msra.mxu1 %v16670_v6  ;;  %v16691_v39 = vld [vmem:[%s25217_s6 + $0xa8] ss:$36 sps:$4 sm:$0xff]  }
 0x463   :  { %v5064_v54 = vmax.f32 %v5034_v11, 0.0  ;;  %5871 = vmatprep.subr.bf16.mxu1 %v16675_v13  ;;  %v16687_v13 = vld [vmem:[%s25217_s6 + $0x5c] ss:$36 sps:$4 sm:$0xff]  }
 0x464   :  { %v5039_v40 = vpop.f32.mrf.mxu1  ;;  %5759 = vmatpush1.bf16.msra.mxu0 %v16658_v23  ;;  %v4953_v23 = vadd.f32 %v20953_v10, %v20962_v24  ;;  %v16696_v10 = vld [vmem:[%s25217_s6 + $0x14] ss:$36 sps:$4 sm:$0xff]   ;;  %v16702_v24 = vld [vmem:[%s25217_s6 + $0x1c] ss:$36 sps:$4 sm:$0xff]  }
 0x465   :  { %v21013_v9 = vpack.c.bf16 %v5064_v54, %v5062_v38  ;;  %5760 = vmatprep.subr.bf16.mxu0 %v16663_v63  ;;  %v5040_v50 = vadd.f32 %v5039_v40, %v4967_v21  ;;  %v16699_v40 = vld [vmem:[%s25217_s6 + $0x64] ss:$36 sps:$4 sm:$0xff]   ;;  %v16694_v21 = vld [vmem:[%s25217_s6 + $0x10] ss:$36 sps:$4 sm:$0xff]  }
 0x466   :  { %v21023_v41 = vpop.f32.mrf.mxu1  ;;  %5872 = vmatpush1.bf16.msra.mxu1 %v16673_v34  ;;  %v4949_v34 = vadd.f32 %v20951_v31, %v20959_v52  ;;  %v5026_v38 = vadd.f32 %v20969_v2, %v4953_v23  ;;  %v16697_v31 = vld [vmem:[%s25217_s6 + $0x60] ss:$36 sps:$4 sm:$0xff]  }
 0x467   :  { %5573 = vmatmul.mubr.bf16.gmra.mxu0 %v21013_v9  ;;  %5686 = vmatmul.mubr.bf16.gmra.mxu1 %v21013_v9  ;;  %v5066_v18 = vmax.f32 %v5040_v50, 0.0 }
 0x468   :  { %v5043_v26 = vpop.f32.mrf.mxu1  ;;  %5582 = vmatprep.mubr.bf16.mxu0 %v25394_v35  ;;  %5695 = vmatprep.mubr.bf16.mxu1 %v25394_v35  ;;  %v5022_v52 = vadd.f32 %v20964_v62, %v4949_v34  ;;  %v5061_v2 = vmax.f32 %v5026_v38, 0.0  ;;  %v16700_v62 = vld [vmem:[%s25217_s6 + $0x18] ss:$36 sps:$4 sm:$0xff]  }
 0x469   :  { %v5044_v51 = vadd.f32 %v5043_v26, %v4971_v46  ;;  %5761 = vmatpush1.bf16.msra.mxu0 %v16661_v47  ;;  %5873 = vmatprep.subr.bf16.mxu1 %v16681_v44  ;;  %v16703_v47 = vld [vmem:[%s25217_s6 + $0x218] ss:$36 sps:$4 sm:$0xff]   ;;  %v4963_v44 = vadd.f32 %v20957_v49, %v20982_v14  ;;  %v4969_v14 = vadd.f32 %v20967_v60, %v21010_v27 }
 0x46a   :  { %v21044_v32 = vpop.f32.mrf.mxu1  ;;  %5762 = vmatprep.subr.bf16.mxu0 %v16666_v33  ;;  %5874 = vmatpush1.bf16.msra.mxu1 %v16679_v45  ;;  %v5059_v33 = vmax.f32 %v5022_v52, 0.0  ;;  %v4959_v45 = vadd.f32 %v20955_v55, %v20971_v59  ;;  %v4973_v55 = vadd.f32 %v20995_v12, %v21021_v53  ;;  %v4979_v27 = vadd.f32 %v21037_v7, %v21052_v15  ;;  %v16704_v7 = vld [vmem:[%s25217_s6 + $0x1d0] ss:$36 sps:$4 sm:$0xff]   ;;  %v16705_v15 = vld [vmem:[%s25217_s6 + $0x188] ss:$36 sps:$4 sm:$0xff]  }
 0x46b   :  { %v5068_v5 = vmax.f32 %v5044_v51, 0.0  ;;  %5875 = vmatprep.subr.bf16.mxu1 %v16684_v28  ;;  %v5036_v50 = vadd.f32 %v21005_v43, %v4963_v44  ;;  %v5042_v26 = vadd.f32 %v21023_v41, %v4969_v14  ;;  %v4982_v51 = vpop.f32.mrf.mxu0 }
 0x46c   :  { %v5049_v57 = vpop.f32.mrf.mxu1  ;;  %v21130_v46 = vpack.c.bf16 %v5061_v2, %v5059_v33  ;;  %v5032_v28 = vadd.f32 %v20984_v30, %v4959_v45  ;;  %v5046_v30 = vadd.f32 %v21044_v32, %v4973_v55 }
 0x46d   :  { %v21055_v0 = vpack.c.bf16 %v5068_v5, %v5066_v18  ;;  %5763 = vmatpush1.bf16.msra.mxu0 %v16664_v56  ;;  %v5050_v8 = vadd.f32 %v5049_v57, %v4977_v1  ;;  %v5065_v49 = vmax.f32 %v5036_v50, 0.0  ;;  %v4983_v56 = vadd.f32 %v4982_v51, %v21063_v19  ;;  %v16707_v57 = vld [vmem:[%s25217_s6 + $0xf8] ss:$36 sps:$4 sm:$0xff]   ;;  %v16708_v1 = vld [vmem:[%s25217_s6 + $0xb0] ss:$36 sps:$4 sm:$0xff]  }
 0x46e   :  { %v21065_v16 = vpop.f32.mrf.mxu1  ;;  %5764 = vmatprep.subr.bf16.mxu0 %v16669_v36  ;;  %5876 = vmatpush1.bf16.msra.mxu1 %v16682_v48  ;;  %v5063_v59 = vmax.f32 %v5032_v28, 0.0  ;;  %v5069_v12 = vmax.f32 %v5046_v30, 0.0  ;;  %v5067_v60 = vmax.f32 %v5042_v26, 0.0  ;;  %v16713_v19 = vld [vmem:[%s25218_s7 + $0x4] ss:$20 sps:$4 sm:$0xff]  }
 0x46f   :  { %5583 = vmatmul.mubr.bf16.gmra.mxu0 %v21055_v0  ;;  %5696 = vmatmul.mubr.bf16.gmra.mxu1 %v21055_v0  ;;  %v5070_v11 = vmax.f32 %v5050_v8, 0.0  ;;  %v5052_v36 = vadd.f32 %v21065_v16, %v4979_v27 }
 0x470   :  { %v5053_v6 = vpop.f32.mrf.mxu1  ;;  %5592 = vmatprep.mubr.bf16.mxu0 %v25394_v35  ;;  %5705 = vmatprep.mubr.bf16.mxu1 %v25394_v35  ;;  %v21142_v43 = vpack.c.bf16 %v5065_v49, %v5063_v59  ;;  %v21153_v32 = vpack.c.bf16 %v5069_v12, %v5067_v60 }
 0x471   :  { %v5054_v37 = vadd.f32 %v5053_v6, %v4981_v22  ;;  %5765 = vmatpush1.bf16.msra.mxu0 %v16667_v4  ;;  %5877 = vmatprep.subr.bf16.mxu1 %v16690_v3  ;;  %v5071_v18 = vmax.f32 %v5052_v36, 0.0  ;;  %v16709_v4 = vld [vmem:[%s25217_s6 + $0x68] ss:$36 sps:$4 sm:$0xff]   ;;  %v16710_v3 = vld [vmem:[%s25217_s6 + $0x20] ss:$36 sps:$4 sm:$0xff]  }
 0x472   :  { %5766 = vmatprep.subr.bf16.mxu0 %v16678_v17  ;;  %5878 = vmatpush1.bf16.msra.mxu1 %v16688_v61  ;;  %v5055_v53 = vpop.f32.mrf.mxu1 }
 0x473   :  { %v5072_v63 = vmax.f32 %v5054_v37, 0.0  ;;  %5879 = vmatprep.subr.bf16.mxu1 %v16693_v58  ;;  %v5056_v41 = vadd.f32 %v5055_v53, %v4983_v56 }
 0x475   :  { %v21095_v54 = vpack.c.bf16 %v5072_v63, %v5070_v11  ;;  %5767 = vmatpush1.bf16.msra.mxu0 %v16676_v25  ;;  %v5073_v48 = vmax.f32 %v5056_v41, 0.0 }
 0x476   :  { %5768 = vmatprep.subr.bf16.mxu0 %v16687_v13  ;;  %5880 = vmatpush1.bf16.msra.mxu1 %v16691_v39 }
 0x477   :  { %5593 = vmatmul.mubr.bf16.gmra.mxu0 %v21095_v54  ;;  %5706 = vmatmul.mubr.bf16.gmra.mxu1 %v21095_v54  ;;  %v21160_v5 = vpack.c.bf16 %v5073_v48, %v5071_v18 }
 0x478   :  { %5602 = vmatprep.mubr.bf16.mxu0 %v25394_v35  ;;  %5715 = vmatprep.mubr.bf16.mxu1 %v25394_v35 }
 0x479   :  { %5769 = vmatpush1.bf16.msra.mxu0 %v16685_v20  ;;  %5881 = vmatprep.subr.bf16.mxu1 %v16699_v40 }
 0x47a   :  { %5770 = vmatprep.subr.bf16.mxu0 %v16696_v10  ;;  %5882 = vmatpush1.bf16.msra.mxu1 %v16697_v31 }
 0x47b   :  { %5883 = vmatprep.subr.bf16.mxu1 %v16702_v24 }
 0x47d   :  { %5771 = vmatpush1.bf16.msra.mxu0 %v16694_v21 }
 0x47e   :  { %5884 = vmatpush1.bf16.msra.mxu1 %v16700_v62  ;;  %16349 = vmatprep.subr.bf16.mxu0 %v16703_v47 }
 0x47f   :  { %5603 = vmatmul.mubr.bf16.gmra.mxu0 %v21130_v46  ;;  %5716 = vmatmul.mubr.bf16.gmra.mxu1 %v21130_v46 }
 0x480   :  { %5612 = vmatprep.mubr.bf16.mxu0 %v25394_v35  ;;  %5725 = vmatprep.mubr.bf16.mxu1 %v25394_v35 }
 0x487   :  { %5613 = vmatmul.mubr.bf16.gmra.mxu0 %v21142_v43  ;;  %5726 = vmatmul.mubr.bf16.gmra.mxu1 %v21142_v43 }
 0x488   :  { %5622 = vmatprep.mubr.bf16.mxu0 %v25394_v35  ;;  %5735 = vmatprep.mubr.bf16.mxu1 %v25394_v35 }
 0x48f   :  { %5623 = vmatmul.mubr.bf16.gmra.mxu0 %v21153_v32  ;;  %5736 = vmatmul.mubr.bf16.gmra.mxu1 %v21153_v32 }
 0x490   :  { %5632 = vmatprep.mubr.bf16.mxu0 %v25394_v35  ;;  %5745 = vmatprep.mubr.bf16.mxu1 %v25394_v35 }
 0x497   :  { %5633 = vmatmul.mubr.bf16.gmra.mxu0 %v21160_v5  ;;  %5746 = vmatmul.mubr.bf16.gmra.mxu1 %v21160_v5 }
 0x498   :  { %5788 = vmatprep.mubr.bf16.mxu0 %v25394_v35  ;;  %5901 = vmatprep.mubr.bf16.mxu1 %v25394_v35 }
 0x49f   :  { %5789 = vmatmul.mubr.bf16.vlgmr.msra.gmra.mxu0 %v20977_v42  ;;  %5902 = vmatmul.mubr.bf16.vlgmr.msra.gmra.mxu1 %v20977_v42 }
 0x4a0   :  { %5798 = vmatprep.mubr.bf16.mxu0 %v25394_v35  ;;  %5911 = vmatprep.mubr.bf16.mxu1 %v25394_v35 }
 0x4a1   :  { %16350 = vmatpush3.bf16.msra.mxu0 %v16703_v47 }
 0x4a2   :  { %16351 = vmatprep.subr.bf16.mxu0 %v16704_v7 }
 0x4a5   :  { %16352 = vmatpush3.bf16.msra.mxu0 %v16704_v7 }
 0x4a6   :  { %16353 = vmatprep.subr.bf16.mxu0 %v16705_v15 }
 0x4a7   :  { %5799 = vmatmul.mubr.bf16.gmra.mxu0 %v21013_v9  ;;  %5912 = vmatmul.mubr.bf16.gmra.mxu1 %v21013_v9 }
 0x4a8   :  { %5808 = vmatprep.mubr.bf16.mxu0 %v25394_v35  ;;  %5921 = vmatprep.mubr.bf16.mxu1 %v25394_v35 }
 0x4a9   :  { %16354 = vmatpush3.bf16.msra.mxu0 %v16705_v15 }
 0x4aa   :  { %16355 = vmatprep.subr.bf16.mxu0 %v16706_v29 }
 0x4ad   :  { %16356 = vmatpush3.bf16.msra.mxu0 %v16706_v29 }
 0x4ae   :  { %16357 = vmatprep.subr.bf16.mxu0 %v16707_v57 }
 0x4af   :  { %5809 = vmatmul.mubr.bf16.gmra.mxu0 %v21055_v0  ;;  %5922 = vmatmul.mubr.bf16.gmra.mxu1 %v21055_v0 }
 0x4b0   :  { %5818 = vmatprep.mubr.bf16.mxu0 %v25394_v35  ;;  %5931 = vmatprep.mubr.bf16.mxu1 %v25394_v35 }
 0x4b1   :  { %16358 = vmatpush3.bf16.msra.mxu0 %v16707_v57 }
 0x4b2   :  { %16359 = vmatprep.subr.bf16.mxu0 %v16708_v1 }
 0x4b5   :  { %16360 = vmatpush3.bf16.msra.mxu0 %v16708_v1 }
 0x4b6   :  { %16361 = vmatprep.subr.bf16.mxu0 %v16709_v4 }
 0x4b7   :  { %5819 = vmatmul.mubr.bf16.gmra.mxu0 %v21095_v54  ;;  %5932 = vmatmul.mubr.bf16.gmra.mxu1 %v21095_v54 }
 0x4b8   :  { %5828 = vmatprep.mubr.bf16.mxu0 %v25394_v35  ;;  %5941 = vmatprep.mubr.bf16.mxu1 %v25394_v35 }
 0x4b9   :  { %16362 = vmatpush3.bf16.msra.mxu0 %v16709_v4 }
 0x4ba   :  { %16363 = vmatprep.subr.bf16.mxu0 %v16710_v3 }
 0x4bd   :  { %16364 = vmatpush3.bf16.msra.mxu0 %v16710_v3 }
 0x4bf   :  { %5829 = vmatmul.mubr.bf16.gmra.mxu0 %v21130_v46  ;;  %5942 = vmatmul.mubr.bf16.gmra.mxu1 %v21130_v46 }
 0x4c0   :  { %5838 = vmatprep.mubr.bf16.mxu0 %v25394_v35  ;;  %5951 = vmatprep.mubr.bf16.mxu1 %v25394_v35 }
 0x4c7   :  { %5839 = vmatmul.mubr.bf16.gmra.mxu0 %v21142_v43  ;;  %5952 = vmatmul.mubr.bf16.gmra.mxu1 %v21142_v43 }
 0x4c8   :  { %5848 = vmatprep.mubr.bf16.mxu0 %v25394_v35  ;;  %5961 = vmatprep.mubr.bf16.mxu1 %v25394_v35 }
 0x4cf   :  { %5849 = vmatmul.mubr.bf16.gmra.mxu0 %v21153_v32  ;;  %5962 = vmatmul.mubr.bf16.gmra.mxu1 %v21153_v32 }
 0x4d0   :  { %5858 = vmatprep.mubr.bf16.mxu0 %v25394_v35  ;;  %5971 = vmatprep.mubr.bf16.mxu1 %v25394_v35 }
 0x4d7   :  { %5859 = vmatmul.mubr.bf16.gmra.mxu0 %v21160_v5  ;;  %5972 = vmatmul.mubr.bf16.gmra.mxu1 %v21160_v5 }
 0x4d8   :  { %16365 = vmatprep.mubr.bf16.mxu0 %v20977_v42  ;;  %6276 = vmatprep.mubr.bf16.mxu1 %v16713_v19 }
 0x4df   :  { %16366 = vmatmul.mubr.bf16.vlgmr.msra.gmra.mxu0 %v21013_v9 }
 0x4e0   :  { %16369 = vmatprep.mubr.bf16.mxu0 %v21055_v0 }
 0x4e7   :  { %16370 = vmatmul.mubr.bf16.gmra.mxu0 %v21095_v54 }
 0x4e8   :  { %16373 = vmatprep.mubr.bf16.mxu0 %v21130_v46 }
 0x4ef   :  { %16374 = vmatmul.mubr.bf16.gmra.mxu0 %v21142_v43 }
 0x4f0   :  { %16377 = vmatprep.mubr.bf16.mxu0 %v21153_v32 }
 0x4f7   :  { %16378 = vmatmul.mubr.bf16.gmra.mxu0 %v21160_v5 }
 0x51f   :  { %v21228_v16 = vpop.f32.mrf.mxu0  ;;  %v21230_v42 = vpop.f32.mrf.mxu1 }
 0x520   :  { %25395 = vst [vmem:[#allocation12_spill] sm:$0xff] %v21230_v42  ;;  %v16720_v42 = vld [vmem:[%s25218_s7 + $0xc] ss:$20 sps:$4 sm:$0xff]  }
 0x521   :  { %v21232_v9 = vpop.f32.mrf.mxu0  ;;  %v21234_v0 = vpop.f32.mrf.mxu1  ;;  %6329 = vmatprep.mubr.bf16.mxu0 %v16720_v42 }
 0x523   :  { %v21236_v17 = vpop.f32.mrf.mxu0  ;;  %v21238_v61 = vpop.f32.mrf.mxu1 }
 0x524   :  { %25396 = vst [vmem:[#allocation13_spill] sm:$0xff] %v21238_v61 }
 0x525   :  { %v21244_v58 = vpop.f32.mrf.mxu0  ;;  %v21246_v6 = vpop.f32.mrf.mxu1 }
 0x527   :  { %v21248_v37 = vpop.f32.mrf.mxu0  ;;  %v21250_v25 = vpop.f32.mrf.mxu1 }
 0x528   :  { %25397 = vst [vmem:[#allocation15_spill] sm:$0xff] %v21250_v25 }
 0x529   :  { %v21252_v13 = vpop.f32.mrf.mxu0  ;;  %v21254_v39 = vpop.f32.mrf.mxu1 }
 0x52b   :  { %v21256_v23 = vpop.f32.mrf.mxu0  ;;  %v21258_v11 = vpop.f32.mrf.mxu1 }
 0x52c   :  { %25398 = vst [vmem:[#allocation7_spill] sm:$0xff] %v21258_v11 }
 0x52d   :  { %v21264_v38 = vpop.f32.mrf.mxu0  ;;  %v21266_v54 = vpop.f32.mrf.mxu1 }
 0x52f   :  { %v21268_v20 = vpop.f32.mrf.mxu0  ;;  %v21270_v40 = vpop.f32.mrf.mxu1 }
 0x530   :  { %25399 = vst [vmem:[#allocation20_spill] sm:$0xff] %v21270_v40 }
 0x531   :  { %v21272_v10 = vpop.f32.mrf.mxu0  ;;  %v21274_v31 = vpop.f32.mrf.mxu1 }
 0x533   :  { %v21276_v52 = vpop.f32.mrf.mxu0  ;;  %v21278_v24 = vpop.f32.mrf.mxu1 }
 0x534   :  { %25400 = vst [vmem:[#allocation8_spill] sm:$0xff] %v21278_v24 }
 0x535   :  { %v5590_v21 = vpop.f32.mrf.mxu0  ;;  %v21282_v62 = vpop.f32.mrf.mxu1 }
 0x537   :  { %v21284_v47 = vpop.f32.mrf.mxu0  ;;  %v21286_v44 = vpop.f32.mrf.mxu1 }
 0x539   :  { %v5596_v33 = vpop.f32.mrf.mxu0  ;;  %v21288_v45 = vpop.f32.mrf.mxu1 }
 0x53b   :  { %v21290_v46 = vpop.f32.mrf.mxu0  ;;  %v21292_v50 = vpop.f32.mrf.mxu1 }
 0x53d   :  { %v5600_v28 = vpop.f32.mrf.mxu0  ;;  %v21294_v49 = vpop.f32.mrf.mxu1 }
 0x53e   :  { %v6107_v25 = vpack.c.bf16 %v5600_v28, %v5596_v33 }
 0x53f   :  { %v21296_v55 = vpop.f32.mrf.mxu0  ;;  %v21298_v59 = vpop.f32.mrf.mxu1 }
 0x540   :  { %25401 = vst [vmem:[#allocation10_spill] sm:$0xff] %v21298_v59 }
 0x541   :  { %v5606_v14 = vpop.f32.mrf.mxu0  ;;  %v21300_v43 = vpop.f32.mrf.mxu1 }
 0x543   :  { %v21302_v30 = vpop.f32.mrf.mxu0  ;;  %v21304_v26 = vpop.f32.mrf.mxu1 }
 0x544   :  { %25402 = vst [vmem:[#allocation26_spill] sm:$0xff] %v21304_v26 }
 0x545   :  { %v5610_v51 = vpop.f32.mrf.mxu0  ;;  %v21306_v12 = vpop.f32.mrf.mxu1 }
 0x546   :  { %v6116_v28 = vpack.c.bf16 %v5610_v51, %v5606_v14 }
 0x547   :  { %v21308_v53 = vpop.f32.mrf.mxu0  ;;  %v21310_v56 = vpop.f32.mrf.mxu1 }
 0x548   :  { %25403 = vst [vmem:[#allocation24_spill] sm:$0xff] %v21310_v56 }
 0x549   :  { %v5616_v60 = vpop.f32.mrf.mxu0  ;;  %v21312_v27 = vpop.f32.mrf.mxu1 }
 0x54b   :  { %v21314_v32 = vpop.f32.mrf.mxu0  ;;  %v21316_v41 = vpop.f32.mrf.mxu1 }
 0x54c   :  { %25404 = vst [vmem:[#allocation16_spill] sm:$0xff] %v21316_v41  ;;  %v6098_v41 = vpack.c.bf16 %v5590_v21, %v21272_v10 }
 0x54d   :  { %v5620_v36 = vpop.f32.mrf.mxu0  ;;  %v21318_v48 = vpop.f32.mrf.mxu1 }
 0x54f   :  { %v21320_v18 = vpop.f32.mrf.mxu0  ;;  %v21322_v5 = vpop.f32.mrf.mxu1 }
 0x551   :  { %v5626_v7 = vpop.f32.mrf.mxu0  ;;  %v21324_v15 = vpop.f32.mrf.mxu1 }
 0x553   :  { %v5628_v29 = vpop.f32.mrf.mxu0  ;;  %v21326_v57 = vpop.f32.mrf.mxu1 }
 0x554   :  { %25405 = vst [vmem:[#allocation14_spill] sm:$0xff] %v21326_v57 }
 0x555   :  { %v5630_v1 = vpop.f32.mrf.mxu0  ;;  %v21328_v4 = vpop.f32.mrf.mxu1 }
 0x556   :  { %v6134_v59 = vpack.c.bf16 %v5630_v1, %v5626_v7 }
 0x557   :  { %v5634_v3 = vpop.f32.mrf.mxu0  ;;  %v21330_v19 = vpop.f32.mrf.mxu1 }
 0x559   :  { %v5636_v8 = vpop.f32.mrf.mxu0  ;;  %v21332_v34 = vpop.f32.mrf.mxu1 }
 0x55b   :  { %v5638_v2 = vpop.f32.mrf.mxu0  ;;  %v21334_v22 = vpop.f32.mrf.mxu1 }
 0x55c   :  { %v6142_v1 = vpack.c.bf16 %v5638_v2, %v5634_v3  ;;  %v6133_v2 = vpack.c.bf16 %v5628_v29, %v21320_v18 }
 0x55d   :  { %v5640_v63 = vpop.f32.mrf.mxu0  ;;  %v21336_v35 = vpop.f32.mrf.mxu1 }
 0x55e   :  { %v6143_v61 = vpack.c.bf16 %v5640_v63, %v5636_v8  ;;  %v6125_v8 = vpack.c.bf16 %v5620_v36, %v5616_v60  ;;  %v6080_v36 = vpack.c.bf16 %v21244_v58, %v21232_v9  ;;  %v6106_v9 = vpack.c.bf16 %v21290_v46, %v21284_v47  ;;  %v25418_v63 = vld [vmem:[#allocation10_spill] sm:$0xff] }
 0x55f   :  { %v21341_v11 = vpop.f32.mrf.mxu0  ;;  %v21343_v26 = vpop.f32.mrf.mxu1  ;;  %v6124_v47 = vpack.c.bf16 %v21314_v32, %v21308_v53  ;;  %v25410_v53 = vpack.c.bf16 %v21256_v23, %v21248_v37  ;;  %v6109_v37 = vpack.c.bf16 %v21294_v49, %v21288_v45  ;;  %v6127_v45 = vpack.c.bf16 %v21318_v48, %v21312_v27 }
 0x560   :  { %25406 = vst [vmem:[#allocation21_spill] sm:$0xff] %v21343_v26  ;;  %6244 = vmatprep.subr.bf16.mxu1 %v6143_v61  ;;  %v6082_v27 = vpack.c.bf16 %v21246_v6, %v21234_v0  ;;  %v25421_v26 = vld [vmem:[#allocation15_spill] sm:$0xff] }
 0x561   :  { %v21345_v40 = vpop.f32.mrf.mxu0  ;;  %v21347_v24 = vpop.f32.mrf.mxu1  ;;  %6245 = vmatpush1.bf16.msra.mxu1 %v6107_v25  ;;  %v6089_v25 = vpack.c.bf16 %v21264_v38, %v21252_v13 }
 0x562   :  { %6246 = vmatprep.subr.bf16.mxu1 %v6134_v59 }
 0x563   :  { %v21350_v56 = vpop.f32.mrf.mxu0  ;;  %v21352_v57 = vpop.f32.mrf.mxu1 }
 0x564   :  { %25407 = vst [vmem:[#allocation19_spill] sm:$0xff] %v21352_v57 }
 0x565   :  { %v21358_v61 = vpop.f32.mrf.mxu0  ;;  %v21360_v33 = vpop.f32.mrf.mxu1  ;;  %6247 = vmatpush1.bf16.msra.mxu1 %v6098_v41 }
 0x566   :  { %6248 = vmatprep.subr.bf16.mxu1 %v6125_v8 }
 0x567   :  { %v21364_v10 = vpop.f32.mrf.mxu0  ;;  %v21366_v21 = vpop.f32.mrf.mxu1 }
 0x568   :  { %25408 = vst [vmem:[#allocation11_spill] sm:$0xff] %v21366_v21 }
 0x569   :  { %v21368_v59 = vpop.f32.mrf.mxu0  ;;  %v21370_v60 = vpop.f32.mrf.mxu1  ;;  %6249 = vmatpush1.bf16.msra.mxu1 %v6089_v25 }
 0x56a   :  { %6250 = vmatprep.subr.bf16.mxu1 %v6116_v28  ;;  %v6097_v28 = vpack.c.bf16 %v21276_v52, %v21268_v20  ;;  %v6115_v20 = vpack.c.bf16 %v21302_v30, %v21296_v55  ;;  %v25411_v55 = vpack.c.bf16 %v21236_v17, %v21228_v16  ;;  %v6100_v16 = vpack.c.bf16 %v21282_v62, %v21274_v31 }
 0x56b   :  { %v21374_v7 = vpop.f32.mrf.mxu0  ;;  %v21376_v41 = vpop.f32.mrf.mxu1 }
 0x56c   :  { %25409 = vst [vmem:[#allocation9_spill] sm:$0xff] %v21376_v41 }
 0x56d   :  { %v21382_v14 = vpop.f32.mrf.mxu0  ;;  %v21384_v51 = vpop.f32.mrf.mxu1  ;;  %6251 = vmatpush1.bf16.msra.mxu1 %v6080_v36 }
 0x56e   :  { %6252 = vmatprep.subr.bf16.mxu1 %v6142_v1 }
 0x56f   :  { %v21388_v58 = vpop.f32.mrf.mxu0  ;;  %v21390_v8 = vpop.f32.mrf.mxu1 }
 0x571   :  { %v21393_v3 = vpop.f32.mrf.mxu0  ;;  %v21395_v25 = vpop.f32.mrf.mxu1  ;;  %6253 = vmatpush1.bf16.msra.mxu1 %v6106_v9 }
 0x572   :  { %6254 = vmatprep.subr.bf16.mxu1 %v6133_v2 }
 0x573   :  { %v21399_v36 = vpop.f32.mrf.mxu0  ;;  %v21401_v1 = vpop.f32.mrf.mxu1 }
 0x575   :  { %v21407_v18 = vpop.f32.mrf.mxu0  ;;  %v21409_v29 = vpop.f32.mrf.mxu1  ;;  %6255 = vmatpush1.bf16.msra.mxu1 %v6097_v28 }
 0x576   :  { %6256 = vmatprep.subr.bf16.mxu1 %v6124_v47  ;;  %v6145_v47 = vpack.c.bf16 %v21336_v35, %v21332_v34 }
 0x577   :  { %v21411_v9 = vpop.f32.mrf.mxu0  ;;  %v21413_v2 = vpop.f32.mrf.mxu1 }
 0x579   :  { %v21417_v52 = vpop.f32.mrf.mxu0  ;;  %v21419_v42 = vpop.f32.mrf.mxu1  ;;  %6257 = vmatpush1.bf16.msra.mxu1 %v25410_v53 }
 0x57a   :  { %6258 = vmatprep.subr.bf16.mxu1 %v6115_v20  ;;  %v6136_v20 = vpack.c.bf16 %v21328_v4, %v21324_v15  ;;  %v6091_v15 = vpack.c.bf16 %v21266_v54, %v21254_v39  ;;  %v6108_v54 = vpack.c.bf16 %v21292_v50, %v21286_v44 }
 0x57b   :  { %v21424_v32 = vpop.f32.mrf.mxu0  ;;  %v21426_v28 = vpop.f32.mrf.mxu1 }
 0x57d   :  { %v21430_v38 = vpop.f32.mrf.mxu0  ;;  %v21432_v46 = vpop.f32.mrf.mxu1  ;;  %6259 = vmatpush1.bf16.msra.mxu1 %v25411_v55  ;;  %v6144_v55 = vpack.c.bf16 %v21334_v22, %v21330_v19  ;;  %v25413_v22 = vld [vmem:[#allocation24_spill] sm:$0xff] }
 0x57e   :  { %6260 = vmatprep.subr.bf16.mxu1 %v6145_v47  ;;  %v6118_v47 = vpack.c.bf16 %v21306_v12, %v21300_v43  ;;  %v25412_v12 = vld [vmem:[#allocation14_spill] sm:$0xff]  ;;  %v25414_v19 = vld [vmem:[#allocation16_spill] sm:$0xff] }
 0x57f   :  { %v21439_v23 = vpop.f32.mrf.mxu0  ;;  %v21441_v30 = vpop.f32.mrf.mxu1 }
 0x581   :  { %v21445_v35 = vpop.f32.mrf.mxu0  ;;  %v21447_v34 = vpop.f32.mrf.mxu1  ;;  %6261 = vmatpush2.bf16.msra.mxu1 %v6109_v37 }
 0x582   :  { %6262 = vmatprep.subr.bf16.mxu1 %v6136_v20  ;;  %v6135_v20 = vpack.c.bf16 %v25412_v12, %v21322_v5  ;;  %v25419_v5 = vld [vmem:[#allocation26_spill] sm:$0xff] }
 0x583   :  { %v21451_v17 = vpop.f32.mrf.mxu0  ;;  %v21455_v49 = vpop.f32.mrf.mxu1  ;;  %v6117_v12 = vpack.c.bf16 %v25419_v5, %v25418_v63  ;;  %v16716_v63 = vld [vmem:[%s25218_s7 + $0x2c] ss:$20 sps:$4 sm:$0xff]  }
 0x585   :  { %v21457_v53 = vpop.f32.mrf.mxu0  ;;  %6263 = vmatpush2.bf16.msra.mxu1 %v6100_v16  ;;  %v21465_v31 = vpop.f32.mrf.mxu1 }
 0x586   :  { %6264 = vmatprep.subr.bf16.mxu1 %v6127_v45  ;;  %v6126_v45 = vpack.c.bf16 %v25414_v19, %v25413_v22  ;;  %v16711_v19 = vld [vmem:[%s25218_s7] ss:$20 sps:$4 sm:$0xff]  }
 0x587   :  { %v21461_v4 = vpop.f32.mrf.mxu0  ;;  %v21473_v37 = vpop.f32.mrf.mxu1 }
 0x589   :  { %v5842_v62 = vpop.f32.mrf.mxu0  ;;  %6265 = vmatpush2.bf16.msra.mxu1 %v6091_v15  ;;  %v21481_v16 = vpop.f32.mrf.mxu1 }
 0x58a   :  { %6266 = vmatprep.subr.bf16.mxu1 %v6118_v47 }
 0x58b   :  { %v21469_v48 = vpop.f32.mrf.mxu0  ;;  %v21485_v15 = vpop.f32.mrf.mxu1 }
 0x58d   :  { %v5846_v39 = vpop.f32.mrf.mxu0  ;;  %6267 = vmatpush2.bf16.msra.mxu1 %v6082_v27  ;;  %v25415_v27 = vld [vmem:[#allocation8_spill] sm:$0xff]  ;;  %v21492_v13 = vpop.f32.mrf.mxu1 }
 0x58e   :  { %6268 = vmatprep.subr.bf16.mxu1 %v6144_v55  ;;  %v25416_v55 = vld [vmem:[#allocation20_spill] sm:$0xff] }
 0x58f   :  { %v21477_v43 = vpop.f32.mrf.mxu0  ;;  %v25417_v44 = vpack.c.bf16 %v25415_v27, %v25416_v55  ;;  %v21500_v27 = vpop.f32.mrf.mxu1  ;;  %v25423_v55 = vld [vmem:[#allocation13_spill] sm:$0xff] }
 0x591   :  { %v5852_v0 = vpop.f32.mrf.mxu0  ;;  %6269 = vmatpush2.bf16.msra.mxu1 %v6108_v54 }
 0x592   :  { %6270 = vmatprep.subr.bf16.mxu1 %v6135_v20  ;;  %v25420_v20 = vld [vmem:[#allocation7_spill] sm:$0xff] }
 0x593   :  { %v5854_v6 = vpop.f32.mrf.mxu0  ;;  %v25422_v57 = vpack.c.bf16 %v25420_v20, %v25421_v26  ;;  %v6111_v26 = vpack.c.bf16 %v21430_v38, %v21417_v52  ;;  %v21512_v20 = vpop.f32.mrf.mxu1  ;;  %v16714_v38 = vld [vmem:[%s25218_s7 + $0x28] ss:$20 sps:$4 sm:$0xff]  }
 0x595   :  { %v5856_v47 = vpop.f32.mrf.mxu0  ;;  %6271 = vmatpush2.bf16.msra.mxu1 %v25417_v44  ;;  %v25424_v44 = vld [vmem:[#allocation12_spill] sm:$0xff]  ;;  %v21523_v52 = vpop.f32.mrf.mxu1 }
 0x596   :  { %6272 = vmatprep.subr.bf16.mxu1 %v6126_v45  ;;  %v25425_v21 = vpack.c.bf16 %v25423_v55, %v25424_v44 }
 0x597   :  { %v5860_v50 = vpop.f32.mrf.mxu0 }
 0x599   :  { %v5862_v54 = vpop.f32.mrf.mxu0  ;;  %6273 = vmatpush2.bf16.msra.mxu1 %v25422_v57 }
 0x59a   :  { %6274 = vmatprep.subr.bf16.mxu1 %v6117_v12  ;;  %v6138_v12 = vpack.c.bf16 %v5856_v47, %v5852_v0  ;;  %v6093_v47 = vpack.c.bf16 %v21382_v14, %v21368_v59  ;;  %v6110_v59 = vpack.c.bf16 %v21424_v32, %v21411_v9  ;;  %v6119_v9 = vpack.c.bf16 %v21451_v17, %v21439_v23 }
 0x59b   :  { %v5864_v22 = vpop.f32.mrf.mxu0  ;;  %v6113_v23 = vpack.c.bf16 %v21432_v46, %v21419_v42  ;;  %v6095_v46 = vpack.c.bf16 %v21384_v51, %v21370_v60  ;;  %v6112_v51 = vpack.c.bf16 %v21426_v28, %v21413_v2  ;;  %v6121_v2 = vpack.c.bf16 %v21455_v49, %v21441_v30  ;;  %v25430_v28 = vld [vmem:[#allocation9_spill] sm:$0xff] }
 0x59c   :  { %v16727_v30 = vld [vmem:[%s25220_s9 + $0xe4] ss:$16 sps:$4 sm:$0xff]   ;;  %v16725_v49 = vld [vmem:[%s25220_s9 + $0xe0] ss:$16 sps:$4 sm:$0xff]  }
 0x59d   :  { %v5866_v45 = vpop.f32.mrf.mxu0  ;;  %6275 = vmatpush2.bf16.msra.mxu1 %v25425_v21  ;;  %v6102_v21 = vpack.c.bf16 %v21407_v18, %v21393_v3  ;;  %v6120_v3 = vpack.c.bf16 %v21457_v53, %v21445_v35  ;;  %v5969_v18 = vpop.f32.mrf.mxu1  ;;  %v6137_v35 = vpack.c.bf16 %v5854_v6, %v21477_v43  ;;  %v25427_v6 = vpack.c.bf16 %v21374_v7, %v21364_v10 }
 0x59e   :  { %v6147_v5 = vpack.c.bf16 %v5866_v45, %v5862_v54  ;;  %v6129_v54 = vpack.c.bf16 %v5846_v39, %v5842_v62  ;;  %v25426_v39 = vmov 0   ;;  %v6084_v45 = vpack.c.bf16 %v21358_v61, %v21345_v40 }
 0x59f   :  { %v21510_v57 = vpop.f32.mrf.mxu0  ;;  %v6128_v61 = vpack.c.bf16 %v21469_v48, %v21461_v4  ;;  %v25428_v48 = vpack.c.bf16 %v21350_v56, %v21341_v11  ;;  %v6140_v10 = vpack.c.bf16 %v5969_v18, %v21512_v20  ;;  %v6131_v11 = vpack.c.bf16 %v21492_v13, %v21481_v16  ;;  %v16717_v13 = vld [vmem:[%s25218_s7 + $0x10] ss:$20 sps:$4 sm:$0xff]  }
 0x5a0   :  { %6277 = vmatmul.mubr.bf16.vlgmr.msra.gmra.mxu1 %v16711_v19  ;;  %6297 = vmatprep.subr.bf16.mxu0 %v6147_v5  ;;  %v5973_v5 = vpop.f32.mrf.mxu1  ;;  %v6122_v20 = vpack.c.bf16 %v21465_v31, %v21447_v34  ;;  %v25429_v34 = vpack.c.bf16 %v21401_v1, %v21390_v8  ;;  %v25431_v31 = vld [vmem:[#allocation11_spill] sm:$0xff] }
 0x5a1   :  { %v21514_v41 = vpop.f32.mrf.mxu0  ;;  %6298 = vmatpush1.bf16.msra.mxu0 %v6111_v26  ;;  %6286 = vmatprep.mubr.bf16.mxu1 %v16716_v63  ;;  %v6146_v63 = vpack.c.bf16 %v5864_v22, %v5860_v50  ;;  %v25432_v16 = vpack.c.bf16 %v25430_v28, %v25431_v31  ;;  %v16723_v8 = vld [vmem:[%s25218_s7 + $0x34] ss:$20 sps:$4 sm:$0xff]   ;;  %v16721_v1 = vld [vmem:[%s25218_s7 + $0x30] ss:$20 sps:$4 sm:$0xff]  }
 0x5a2   :  { %6299 = vmatprep.subr.bf16.mxu0 %v6138_v12  ;;  %v5975_v53 = vpop.f32.mrf.mxu1  ;;  %v16733_v18 = vld [vmem:[%s25220_s9 + $0xc4] ss:$16 sps:$4 sm:$0xff]   ;;  %v16806_v28 = vld [vmem:[%s25220_s9 + $0x340] ss:$16 sps:$4 sm:$0xff]  }
 0x5a3   :  { %v21518_v55 = vpop.f32.mrf.mxu0  ;;  %v16811_v31 = vld [vmem:[%s25220_s9 + $0x124] ss:$16 sps:$4 sm:$0xff]  }
 0x5a4   :  { %v5977_v50 = vpop.f32.mrf.mxu1  ;;  %v6096_v56 = vpack.c.bf16 %v21518_v55, %v21510_v57  ;;  %v25433_v57 = vld [vmem:[#allocation19_spill] sm:$0xff] }
 0x5a5   :  { %v21525_v0 = vpop.f32.mrf.mxu0  ;;  %6300 = vmatpush1.bf16.msra.mxu0 %v6102_v21  ;;  %v6101_v21 = vpack.c.bf16 %v21399_v36, %v21388_v58  ;;  %v6148_v60 = vpack.c.bf16 %v5977_v50, %v5973_v5  ;;  %v16730_v55 = vld [vmem:[%s25220_s9 + $0x2e4] ss:$16 sps:$4 sm:$0xff]   ;;  %v16740_v5 = vld [vmem:[%s25220_s9 + $0x2a0] ss:$16 sps:$4 sm:$0xff]  }
 0x5a6   :  { %6301 = vmatprep.subr.bf16.mxu0 %v6129_v54  ;;  %v5979_v32 = vpop.f32.mrf.mxu1  ;;  %v16760_v50 = vld [vmem:[%s25220_s9 + $0x244] ss:$16 sps:$4 sm:$0xff]  }
 0x5a7   :  { %v16371_v19 = vpop.f32.mrf.mxu0  ;;  %v6149_v36 = vpack.c.bf16 %v5979_v32, %v5975_v53  ;;  %v16751_v53 = vld [vmem:[%s25220_s9 + $0x64] ss:$16 sps:$4 sm:$0xff]  }
 0x5a8   :  { %6287 = vmatmul.mubr.bf16.gmra.mxu1 %v16714_v38  ;;  %v16766_v32 = vld [vmem:[%s25220_s9 + $0x224] ss:$16 sps:$4 sm:$0xff]  }
 0x5a9   :  { %v6032_v62 = vpop.f32.mrf.mxu0  ;;  %6302 = vmatpush1.bf16.msra.mxu0 %v6093_v47  ;;  %6382 = vmatprep.mubr.bf16.mxu1 %v25426_v39 }
 0x5aa   :  { %6303 = vmatprep.subr.bf16.mxu0 %v6120_v3 }
 0x5ab   :  { %v16372_v44 = vpop.f32.mrf.mxu0 }
 0x5ac   :  { %v6114_v47 = vpack.c.bf16 %v16372_v44, %v16371_v19  ;;  %v6104_v19 = vpack.c.bf16 %v21409_v29, %v21395_v25  ;;  %v6087_v25 = vpack.c.bf16 %v21525_v0, %v21514_v41  ;;  %v6086_v29 = vpack.c.bf16 %v21360_v33, %v21347_v24  ;;  %v16724_v24 = vld [vmem:[%s25218_s7 + $0x38] ss:$20 sps:$4 sm:$0xff]   ;;  %v16731_v0 = vld [vmem:[%s25220_s9 + $0xc0] ss:$16 sps:$4 sm:$0xff]   ;;  %v16742_v44 = vld [vmem:[%s25220_s9 + $0x2a4] ss:$16 sps:$4 sm:$0xff]  }
 0x5ad   :  { %v6035_v26 = vpop.f32.mrf.mxu0  ;;  %6304 = vmatpush1.bf16.msra.mxu0 %v6084_v45  ;;  %v6139_v41 = vpack.c.bf16 %v21523_v52, %v21500_v27  ;;  %v6130_v33 = vpack.c.bf16 %v21485_v15, %v21473_v37  ;;  %v16718_v27 = vld [vmem:[%s25218_s7 + $0x8] ss:$20 sps:$4 sm:$0xff]   ;;  %v16728_v52 = vld [vmem:[%s25220_s9 + $0x2e0] ss:$16 sps:$4 sm:$0xff]   ;;  %v16739_v45 = vld [vmem:[%s25220_s9 + $0xa4] ss:$16 sps:$4 sm:$0xff]  }
 0x5ae   :  { %6305 = vmatprep.subr.bf16.mxu0 %v6146_v63  ;;  %v6105_v7 = vpack.c.bf16 %v6035_v26, %v6032_v62  ;;  %v25434_v37 = vld [vmem:[#allocation21_spill] sm:$0xff] }
 0x5af   :  { %v16375_v14 = vpop.f32.mrf.mxu0  ;;  %v25435_v15 = vpack.c.bf16 %v25433_v57, %v25434_v37  ;;  %v16734_v62 = vld [vmem:[%s25220_s9 + $0x2c0] ss:$16 sps:$4 sm:$0xff]   ;;  %v16745_v26 = vld [vmem:[%s25220_s9 + $0x84] ss:$16 sps:$4 sm:$0xff]  }
 0x5b0   :  { %v16737_v63 = vld [vmem:[%s25220_s9 + $0xa0] ss:$16 sps:$4 sm:$0xff]   ;;  %v16817_v37 = vld [vmem:[%s25220_s9 + $0x104] ss:$16 sps:$4 sm:$0xff]  }
 0x5b1   :  { %v6048_v12 = vpop.f32.mrf.mxu0  ;;  %6306 = vmatpush1.bf16.msra.mxu0 %v6110_v59  ;;  %v16748_v59 = vld [vmem:[%s25220_s9 + $0x284] ss:$16 sps:$4 sm:$0xff]   ;;  %v16812_v57 = vld [vmem:[%s25220_s9 + $0x320] ss:$16 sps:$4 sm:$0xff]  }
 0x5b2   :  { %6307 = vmatprep.subr.bf16.mxu0 %v6137_v35  ;;  %v16746_v35 = vld [vmem:[%s25220_s9 + $0x280] ss:$16 sps:$4 sm:$0xff]  }
 0x5b3   :  { %v16376_v40 = vpop.f32.mrf.mxu0 }
 0x5b4   :  { %v6132_v17 = vpack.c.bf16 %v16376_v40, %v16375_v14  ;;  %v16743_v14 = vld [vmem:[%s25220_s9 + $0x80] ss:$16 sps:$4 sm:$0xff]  }
 0x5b5   :  { %v6051_v22 = vpop.f32.mrf.mxu0  ;;  %6308 = vmatpush1.bf16.msra.mxu0 %v6101_v21  ;;  %v16749_v21 = vld [vmem:[%s25220_s9 + $0x60] ss:$16 sps:$4 sm:$0xff]  }
 0x5b6   :  { %6309 = vmatprep.subr.bf16.mxu0 %v6128_v61  ;;  %v6123_v42 = vpack.c.bf16 %v6051_v22, %v6048_v12  ;;  %v16754_v12 = vld [vmem:[%s25220_s9 + $0x264] ss:$16 sps:$4 sm:$0xff]   ;;  %v16752_v40 = vld [vmem:[%s25220_s9 + $0x260] ss:$16 sps:$4 sm:$0xff]  }
 0x5b7   :  { %v16379_v54 = vpop.f32.mrf.mxu0  ;;  %v16757_v61 = vld [vmem:[%s25220_s9 + $0x44] ss:$16 sps:$4 sm:$0xff]   ;;  %v16755_v22 = vld [vmem:[%s25220_s9 + $0x40] ss:$16 sps:$4 sm:$0xff]  }
 0x5b9   :  { %v6064_v43 = vpop.f32.mrf.mxu0  ;;  %6310 = vmatpush1.bf16.msra.mxu0 %v25427_v6  ;;  %v16764_v6 = vld [vmem:[%s25220_s9 + $0x220] ss:$16 sps:$4 sm:$0xff]  }
 0x5ba   :  { %6311 = vmatprep.subr.bf16.mxu0 %v6119_v9  ;;  %v16763_v9 = vld [vmem:[%s25220_s9 + $0x24] ss:$16 sps:$4 sm:$0xff]  }
 0x5bb   :  { %v16380_v58 = vpop.f32.mrf.mxu0 }
 0x5bc   :  { %v6150_v38 = vpack.c.bf16 %v16380_v58, %v16379_v54  ;;  %v16758_v54 = vld [vmem:[%s25220_s9 + $0x240] ss:$16 sps:$4 sm:$0xff]   ;;  %v16769_v58 = vld [vmem:[%s25220_s9 + $0x4] ss:$16 sps:$4 sm:$0xff]  }
 0x5bd   :  { %v6067_v4 = vpop.f32.mrf.mxu0  ;;  %6312 = vmatpush1.bf16.msra.mxu0 %v25428_v48  ;;  %v16778_v48 = vld [vmem:[%s25220_s9 + $0x3e4] ss:$16 sps:$4 sm:$0xff]  }
 0x5be   :  { %v6141_v3 = vpack.c.bf16 %v6067_v4, %v6064_v43  ;;  %6313 = vmatprep.subr.bf16.mxu0 %v6149_v36  ;;  %6358 = vmatprep.subr.bf16.mxu1 %v6150_v38  ;;  %v16761_v43 = vld [vmem:[%s25220_s9 + $0x20] ss:$16 sps:$4 sm:$0xff]   ;;  %v16772_v36 = vld [vmem:[%s25220_s9 + $0x204] ss:$16 sps:$4 sm:$0xff]  }
 0x5bf   :  { %6359 = vmatpush1.bf16.msra.mxu1 %v6114_v47  ;;  %v16767_v38 = vld [vmem:[%s25220_s9] ss:$16 sps:$4 sm:$0xff]   ;;  %v16775_v4 = vld [vmem:[%s25220_s9 + $0x1e4] ss:$16 sps:$4 sm:$0xff]  }
 0x5c0   :  { %6360 = vmatprep.subr.bf16.mxu1 %v6141_v3  ;;  %v16770_v47 = vld [vmem:[%s25220_s9 + $0x200] ss:$16 sps:$4 sm:$0xff]  }
 0x5c1   :  { %6314 = vmatpush2.bf16.msra.mxu0 %v6113_v23  ;;  %v16773_v3 = vld [vmem:[%s25220_s9 + $0x1e0] ss:$16 sps:$4 sm:$0xff]  }
 0x5c2   :  { %6315 = vmatprep.subr.bf16.mxu0 %v6140_v10  ;;  %v16776_v23 = vld [vmem:[%s25220_s9 + $0x3e0] ss:$16 sps:$4 sm:$0xff]   ;;  %v16781_v10 = vld [vmem:[%s25220_s9 + $0x1c4] ss:$16 sps:$4 sm:$0xff]  }
 0x5c3   :  { %6361 = vmatpush1.bf16.msra.mxu1 %v6105_v7  ;;  %v16784_v7 = vld [vmem:[%s25220_s9 + $0x3c4] ss:$16 sps:$4 sm:$0xff]  }
 0x5c4   :  { %6362 = vmatprep.subr.bf16.mxu1 %v6132_v17  ;;  %v16779_v17 = vld [vmem:[%s25220_s9 + $0x1c0] ss:$16 sps:$4 sm:$0xff]  }
 0x5c5   :  { %6316 = vmatpush2.bf16.msra.mxu0 %v6104_v19  ;;  %v16782_v19 = vld [vmem:[%s25220_s9 + $0x3c0] ss:$16 sps:$4 sm:$0xff]  }
 0x5c6   :  { %6317 = vmatprep.subr.bf16.mxu0 %v6131_v11  ;;  %v16787_v11 = vld [vmem:[%s25220_s9 + $0x1a4] ss:$16 sps:$4 sm:$0xff]  }
 0x5c7   :  { %6363 = vmatpush1.bf16.msra.mxu1 %v6096_v56  ;;  %v16790_v56 = vld [vmem:[%s25220_s9 + $0x3a4] ss:$16 sps:$4 sm:$0xff]  }
 0x5c8   :  { %6364 = vmatprep.subr.bf16.mxu1 %v6123_v42  ;;  %v16785_v42 = vld [vmem:[%s25220_s9 + $0x1a0] ss:$16 sps:$4 sm:$0xff]  }
 0x5c9   :  { %6318 = vmatpush2.bf16.msra.mxu0 %v6095_v46  ;;  %v16788_v46 = vld [vmem:[%s25220_s9 + $0x3a0] ss:$16 sps:$4 sm:$0xff]  }
 0x5ca   :  { %6319 = vmatprep.subr.bf16.mxu0 %v6122_v20  ;;  %v16793_v20 = vld [vmem:[%s25220_s9 + $0x184] ss:$16 sps:$4 sm:$0xff]  }
 0x5cb   :  { %6365 = vmatpush1.bf16.msra.mxu1 %v6087_v25  ;;  %v16796_v25 = vld [vmem:[%s25220_s9 + $0x384] ss:$16 sps:$4 sm:$0xff]  }
 0x5cc   :  { %12794 = vmatprep.subr.bf16.mxu1 %v16727_v30  ;;  %v16823_v30 = vld [vmem:[%s25220_s9 + $0x4e4] ss:$16 sps:$4 sm:$0xff]  }
 0x5cd   :  { %6320 = vmatpush2.bf16.msra.mxu0 %v6086_v29  ;;  %v16794_v29 = vld [vmem:[%s25220_s9 + $0x380] ss:$16 sps:$4 sm:$0xff]  }
 0x5ce   :  { %6321 = vmatprep.subr.bf16.mxu0 %v6148_v60  ;;  %15205 = vmatmul.mubr.msk.bf16.vlgmr.msra.gmra.mxu1 %vm6237_vm1, %v16717_v13  ;;  %v16791_v13 = vld [vmem:[%s25220_s9 + $0x180] ss:$16 sps:$4 sm:$0xff]   ;;  %v16799_v60 = vld [vmem:[%s25220_s9 + $0x164] ss:$16 sps:$4 sm:$0xff]  }
 0x5cf   :  { %6392 = vmatprep.mubr.bf16.mxu1 %v25426_v39  ;;  %12795 = vmatpush1.bf16.msra.mxu1 %v16725_v49  ;;  %v16736_v39 = vld [vmem:[%s25220_s9 + $0x2c4] ss:$16 sps:$4 sm:$0xff]  }
 0x5d0   :  { %12796 = vmatprep.subr.bf16.mxu1 %v16733_v18  ;;  %v16826_v49 = vld [vmem:[%s25220_s9 + $0x6e4] ss:$16 sps:$4 sm:$0xff]  }
 0x5d1   :  { %6322 = vmatpush2.bf16.msra.mxu0 %v6112_v51  ;;  %v16802_v51 = vld [vmem:[%s25220_s9 + $0x364] ss:$16 sps:$4 sm:$0xff]  }
 0x5d2   :  { %6323 = vmatprep.subr.bf16.mxu0 %v6139_v41  ;;  %v16797_v41 = vld [vmem:[%s25220_s9 + $0x160] ss:$16 sps:$4 sm:$0xff]  }
 0x5d3   :  { %12797 = vmatpush1.bf16.msra.mxu1 %v16731_v0 }
 0x5d4   :  { %12798 = vmatprep.subr.bf16.mxu1 %v16739_v45 }
 0x5d5   :  { %6324 = vmatpush2.bf16.msra.mxu0 %v25429_v34  ;;  %v16803_v34 = vld [vmem:[%s25220_s9 + $0x140] ss:$16 sps:$4 sm:$0xff]  }
 0x5d6   :  { %6325 = vmatprep.subr.bf16.mxu0 %v6130_v33  ;;  %15206 = vmatmul.mubr.msk.bf16.gmra.mxu1 %vm6237_vm1, %v16724_v24  ;;  %v16800_v24 = vld [vmem:[%s25220_s9 + $0x360] ss:$16 sps:$4 sm:$0xff]   ;;  %v16805_v33 = vld [vmem:[%s25220_s9 + $0x144] ss:$16 sps:$4 sm:$0xff]  }
 0x5d7   :  { %12799 = vmatpush1.bf16.msra.mxu1 %v16737_v63 }
 0x5d8   :  { %12800 = vmatprep.subr.bf16.mxu1 %v16745_v26  ;;  %v6170_v26 = vpop.permute.xlu0 %6169 }
 0x5d9   :  { %6326 = vmatpush2.bf16.msra.mxu0 %v25432_v16  ;;  %v16809_v16 = vld [vmem:[%s25220_s9 + $0x120] ss:$16 sps:$4 sm:$0xff]  }
 0x5da   :  { %6327 = vmatprep.subr.bf16.mxu0 %v6121_v2  ;;  %v16808_v2 = vld [vmem:[%s25220_s9 + $0x344] ss:$16 sps:$4 sm:$0xff]  }
 0x5db   :  { %12801 = vmatpush1.bf16.msra.mxu1 %v16743_v14 }
 0x5dc   :  { %12802 = vmatprep.subr.bf16.mxu1 %v16751_v53  ;;  %v6175_v53 = vpop.permute.xlu1 %6174 }
 0x5dd   :  { %6328 = vmatpush2.bf16.msra.mxu0 %v25435_v15  ;;  %v16815_v15 = vld [vmem:[%s25220_s9 + $0x100] ss:$16 sps:$4 sm:$0xff]  }
 0x5de   :  { %12835 = vmatprep.subr.bf16.mxu0 %v16730_v55 }
 0x5df   :  { %12803 = vmatpush1.bf16.msra.mxu1 %v16749_v21 }
 0x5e0   :  { %6330 = vmatmul.mubr.bf16.vlgmr.msra.gmra.mxu0 %v16718_v27  ;;  %12804 = vmatprep.subr.bf16.mxu1 %v16757_v61  ;;  %v16814_v27 = vld [vmem:[%s25220_s9 + $0x324] ss:$16 sps:$4 sm:$0xff]  }
 0x5e1   :  { %6339 = vmatprep.mubr.bf16.mxu0 %v16723_v8  ;;  %12836 = vmatpush1.bf16.msra.mxu0 %v16728_v52  ;;  %v16820_v8 = vld [vmem:[%s25220_s9 + $0x304] ss:$16 sps:$4 sm:$0xff]  }
 0x5e2   :  { %12837 = vmatprep.subr.bf16.mxu0 %v16736_v39 }
 0x5e3   :  { %12805 = vmatpush1.bf16.msra.mxu1 %v16755_v22 }
 0x5e4   :  { %12806 = vmatprep.subr.bf16.mxu1 %v16763_v9 }
 0x5e5   :  { %12838 = vmatpush1.bf16.msra.mxu0 %v16734_v62 }
 0x5e6   :  { %12839 = vmatprep.subr.bf16.mxu0 %v16742_v44 }
 0x5e7   :  { %12807 = vmatpush1.bf16.msra.mxu1 %v16761_v43 }
 0x5e8   :  { %6340 = vmatmul.mubr.bf16.gmra.mxu0 %v16721_v1  ;;  %12808 = vmatprep.subr.bf16.mxu1 %v16769_v58  ;;  %v16818_v1 = vld [vmem:[%s25220_s9 + $0x300] ss:$16 sps:$4 sm:$0xff]  }
 0x5e9   :  { %12840 = vmatpush1.bf16.msra.mxu0 %v16740_v5 }
 0x5ea   :  { %12841 = vmatprep.subr.bf16.mxu0 %v16748_v59 }
 0x5eb   :  { %12809 = vmatpush1.bf16.msra.mxu1 %v16767_v38 }
 0x5ec   :  { %12810 = vmatprep.subr.bf16.mxu1 %v16775_v4  ;;  %v21801_v4 = vpop.permute.xlu1 %6184 }
 0x5ed   :  { %12842 = vmatpush1.bf16.msra.mxu0 %v16746_v35 }
 0x5ee   :  { %12843 = vmatprep.subr.bf16.mxu0 %v16754_v12 }
 0x5ef   :  { %12811 = vmatpush2.bf16.msra.mxu1 %v16773_v3 }
 0x5f0   :  { %12812 = vmatprep.subr.bf16.mxu1 %v16781_v10 }
 0x5f1   :  { %12844 = vmatpush1.bf16.msra.mxu0 %v16752_v40 }
 0x5f2   :  { %12845 = vmatprep.subr.bf16.mxu0 %v16760_v50 }
 0x5f3   :  { %12813 = vmatpush2.bf16.msra.mxu1 %v16779_v17 }
 0x5f4   :  { %12814 = vmatprep.subr.bf16.mxu1 %v16787_v11 }
 0x5f5   :  { %12846 = vmatpush1.bf16.msra.mxu0 %v16758_v54 }
 0x5f6   :  { %12847 = vmatprep.subr.bf16.mxu0 %v16766_v32 }
 0x5f7   :  { %12815 = vmatpush2.bf16.msra.mxu1 %v16785_v42 }
 0x5f8   :  { %12816 = vmatprep.subr.bf16.mxu1 %v16793_v20 }
 0x5f9   :  { %12848 = vmatpush1.bf16.msra.mxu0 %v16764_v6 }
 0x5fa   :  { %12849 = vmatprep.subr.bf16.mxu0 %v16772_v36 }
 0x5fb   :  { %12817 = vmatpush2.bf16.msra.mxu1 %v16791_v13 }
 0x5fc   :  { %12818 = vmatprep.subr.bf16.mxu1 %v16799_v60 }
 0x5fd   :  { %12850 = vmatpush1.bf16.msra.mxu0 %v16770_v47  ;;  %v6180_v47 = vpop.permute.xlu0 %6179 }
 0x5fe   :  { %12851 = vmatprep.subr.bf16.mxu0 %v16778_v48 }
 0x5ff   :  { %12819 = vmatpush2.bf16.msra.mxu1 %v16797_v41 }
 0x600   :  { %12820 = vmatprep.subr.bf16.mxu1 %v16805_v33 }
 0x601   :  { %12852 = vmatpush2.bf16.msra.mxu0 %v16776_v23 }
 0x602   :  { %12853 = vmatprep.subr.bf16.mxu0 %v16784_v7 }
 0x603   :  { %12821 = vmatpush2.bf16.msra.mxu1 %v16803_v34 }
 0x604   :  { %12822 = vmatprep.subr.bf16.mxu1 %v16811_v31 }
 0x605   :  { %12854 = vmatpush2.bf16.msra.mxu0 %v16782_v19 }
 0x606   :  { %12855 = vmatprep.subr.bf16.mxu0 %v16790_v56 }
 0x607   :  { %12823 = vmatpush2.bf16.msra.mxu1 %v16809_v16  ;;  %v16821_v16 = vld [vmem:[%s25220_s9 + $0x4e0] ss:$16 sps:$4 sm:$0xff]  }
 0x608   :  { %12824 = vmatprep.subr.bf16.mxu1 %v16817_v37 }
 0x609   :  { %12856 = vmatpush2.bf16.msra.mxu0 %v16788_v46 }
 0x60a   :  { %12857 = vmatprep.subr.bf16.mxu0 %v16796_v25 }
 0x60b   :  { %12825 = vmatpush2.bf16.msra.mxu1 %v16815_v15 }
 0x60c   :  { %12876 = vmatprep.subr.bf16.mxu1 %v16823_v30 }
 0x60d   :  { %12858 = vmatpush2.bf16.msra.mxu0 %v16794_v29 }
 0x60e   :  { %12859 = vmatprep.subr.bf16.mxu0 %v16802_v51 }
 0x611   :  { %12860 = vmatpush2.bf16.msra.mxu0 %v16800_v24 }
 0x612   :  { %12861 = vmatprep.subr.bf16.mxu0 %v16808_v2 }
 0x615   :  { %12862 = vmatpush2.bf16.msra.mxu0 %v16806_v28 }
 0x616   :  { %12863 = vmatprep.subr.bf16.mxu0 %v16814_v27 }
 0x619   :  { %12864 = vmatpush2.bf16.msra.mxu0 %v16812_v57 }
 0x61a   :  { %12865 = vmatprep.subr.bf16.mxu0 %v16820_v8 }
 0x61d   :  { %12866 = vmatpush2.bf16.msra.mxu0 %v16818_v1 }
 0x61e   :  { %12917 = vmatprep.subr.bf16.mxu0 %v16826_v49 }
 0x660   :  { %v6278_v55 = vpop.f32.mrf.mxu1 }
 0x661   :  { %v6279_v14 = vadd.f32 %v6278_v55, %v6170_v26 }
 0x662   :  { %v6280_v52 = vpop.f32.mrf.mxu1 }
 0x663   :  { %v6281_v12 = vadd.f32 %v6280_v52, %v6170_v26  ;;  %v16832_v26 = vld [vmem:[%s25220_s9 + $0x6c4] ss:$16 sps:$4 sm:$0xff]  }
 0x664   :  { %v6282_v0 = vpop.f32.mrf.mxu1 }
 0x665   :  { %v6283_v50 = vadd.f32 %v6282_v0, %v6175_v53  ;;  %v16824_v0 = vld [vmem:[%s25220_s9 + $0x6e0] ss:$16 sps:$4 sm:$0xff]  }
 0x666   :  { %v6284_v18 = vpop.f32.mrf.mxu1 }
 0x667   :  { %v6285_v43 = vadd.f32 %v6284_v18, %v6175_v53 }
 0x668   :  { %v6288_v62 = vpop.f32.mrf.mxu1 }
 0x669   :  { %v6289_v7 = vadd.f32 %v6288_v62, %v6180_v47 }
 0x66a   :  { %v6290_v39 = vpop.f32.mrf.mxu1 }
 0x66b   :  { %v6291_v17 = vadd.f32 %v6290_v39, %v6180_v47 }
 0x66c   :  { %v6292_v45 = vpop.f32.mrf.mxu1 }
 0x66d   :  { %v6293_v19 = vadd.f32 %v6292_v45, %v21801_v4 }
 0x66e   :  { %v21797_v44 = vpop.f32.mrf.mxu1 }
 0x68e   :  { %v6384_v63 = vpop.f32.mrf.mxu1 }
 0x690   :  { %v6386_v5 = vpop.f32.mrf.mxu1 }
 0x692   :  { %v6388_v59 = vpop.f32.mrf.mxu1 }
 0x694   :  { %v6390_v61 = vpop.f32.mrf.mxu1 }
 0x696   :  { %v6394_v32 = vpop.f32.mrf.mxu1 }
 0x698   :  { %v6396_v56 = vpop.f32.mrf.mxu1 }
 0x69a   :  { %v6398_v27 = vpop.f32.mrf.mxu1 }
 0x6a0   :  { %v6331_v35 = vpop.f32.mrf.mxu0 }
 0x6a1   :  { %v6332_v21 = vadd.f32 %v6331_v35, %v6279_v14  ;;  %v16827_v35 = vld [vmem:[%s25220_s9 + $0x4c0] ss:$16 sps:$4 sm:$0xff]  }
 0x6a2   :  { %v6333_v40 = vpop.f32.mrf.mxu0 }
 0x6a3   :  { %v6385_v22 = vadd.f32 %v6384_v63, %v6332_v21  ;;  %v6334_v54 = vadd.f32 %v6333_v40, %v6281_v12  ;;  %v16835_v40 = vld [vmem:[%s25220_s9 + $0x4a4] ss:$16 sps:$4 sm:$0xff]  }
 0x6a4   :  { %v6335_v9 = vpop.f32.mrf.mxu0 }
 0x6a5   :  { %v21799_v6 = vmax.f32 %v6385_v22, 0.0  ;;  %v6387_v58 = vadd.f32 %v6386_v5, %v6334_v54  ;;  %v6336_v36 = vadd.f32 %v6335_v9, %v6283_v50  ;;  %v16829_v5 = vld [vmem:[%s25220_s9 + $0x4c4] ss:$16 sps:$4 sm:$0xff]   ;;  %v16830_v9 = vld [vmem:[%s25220_s9 + $0x6c0] ss:$16 sps:$4 sm:$0xff]  }
 0x6a6   :  { %v6337_v38 = vpop.f32.mrf.mxu0 }
 0x6a7   :  { %v21803_v48 = vmax.f32 %v6387_v58, 0.0  ;;  %v6389_v3 = vadd.f32 %v6388_v59, %v6336_v36  ;;  %v6338_v23 = vadd.f32 %v6337_v38, %v6285_v43  ;;  %v6412_v10 = vrot.slane %v21799_v6, 1  ;;  %v16838_v38 = vld [vmem:[%s25220_s9 + $0x6a4] ss:$16 sps:$4 sm:$0xff]  }
 0x6a8   :  { %v6341_v11 = vpop.f32.mrf.mxu0  ;;  %v6416_v42 = vrot.slane %v21799_v6, 3  ;;  %v6414_v25 = vrot.slane %v21799_v6, 2  ;;  %v6420_v13 = vrot.slane %v21799_v6, 5  ;;  %v6424_v28 = vrot.slane %v21799_v6, 7 }
 0x6a9   :  { %v6391_v46 = vadd.f32 %v6390_v61, %v6338_v23  ;;  %v6565_v20 = vsel %vm6563_vm2, %v6412_v10, %v21803_v48  ;;  %v6478_v51 = vrot.slane %v21803_v48, 7  ;;  %v15209_v41 = vrot.slane %v21803_v48, 10 }
 0x6aa   :  { %v6343_v29 = vpop.f32.mrf.mxu0  ;;  %v21812_v60 = vpack.c.bf16 %v6565_v20, %v6565_v20  ;;  %v15208_v24 = vrot.slane %v21803_v48, 9  ;;  %v21817_v33 = vmax.f32 %v6389_v3, 0.0  ;;  %v6342_v34 = vadd.f32 %v6341_v11, %v6289_v7 }
 0x6ab   :  { %v15211_v2 = vrot.slane %v21803_v48, 12  ;;  %v6564_v57 = vsel %vm6563_vm2, %v21799_v6, %v6478_v51  ;;  %v6567_v37 = vsel %vm6563_vm2, %v6416_v42, %v15209_v41  ;;  %v6509_v8 = vrot.slane %v6478_v51, 7  ;;  %v16836_v42 = vld [vmem:[%s25220_s9 + $0x6a0] ss:$16 sps:$4 sm:$0xff]  }
 0x6ac   :  { %v6345_v31 = vpop.f32.mrf.mxu0  ;;  %12826 = vmatprep.mubr.bf16.mxu1 %v21812_v60  ;;  %v6566_v15 = vsel %vm6563_vm2, %v6414_v25, %v15208_v24  ;;  %v21829_v1 = vmax.f32 %v6391_v46, 0.0  ;;  %v6344_v30 = vadd.f32 %v6343_v29, %v6291_v17  ;;  %v21831_v55 = vpack.c.bf16 %v6564_v57, %v6564_v57  ;;  %v16841_v17 = vld [vmem:[%s25220_s9 + $0x484] ss:$16 sps:$4 sm:$0xff]  }
 0x6ad   :  { %v6346_v49 = vadd.f32 %v6345_v31, %v6293_v19  ;;  %v21833_v52 = vpack.c.bf16 %v6567_v37, %v6567_v37  ;;  %v21838_v18 = vpack.c.bf16 %v6566_v15, %v6566_v15  ;;  %v6569_v62 = vsel %vm6563_vm2, %v6420_v13, %v15211_v2  ;;  %v16844_v29 = vld [vmem:[%s25220_s9 + $0x684] ss:$16 sps:$4 sm:$0xff]  }
 0x6ae   :  { %v6571_v39 = vsel %vm6563_vm2, %v6424_v28, %v6509_v8  ;;  %12827 = vmatmul.mubr.bf16.vlgmr.msra.gmra.mxu1 %v21831_v55  ;;  %v21845_v63 = vpack.c.bf16 %v6569_v62, %v6569_v62  ;;  %v6395_v59 = vadd.f32 %v6394_v32, %v6342_v34  ;;  %v6418_v53 = vrot.slane %v21799_v6, 4  ;;  %v6347_v54 = vpop.f32.mrf.mxu0  ;;  %v16839_v34 = vld [vmem:[%s25220_s9 + $0x480] ss:$16 sps:$4 sm:$0xff]   ;;  %v16847_v57 = vld [vmem:[%s25220_s9 + $0x464] ss:$16 sps:$4 sm:$0xff]  }
 0x6af   :  { %v21842_v45 = vadd.f32 %v6398_v27, %v6346_v49  ;;  %12867 = vmatprep.mubr.bf16.mxu0 %v21833_v52  ;;  %12877 = vmatpush1.bf16.msra.mxu1 %v16821_v16  ;;  %v21854_v14 = vpack.c.bf16 %v6571_v39, %v6571_v39  ;;  %v15210_v12 = vrot.slane %v21803_v48, 11  ;;  %v6397_v21 = vadd.f32 %v6396_v56, %v6344_v30  ;;  %v6400_v56 = vpop.f32.mrf.mxu1  ;;  %v16842_v8 = vld [vmem:[%s25220_s9 + $0x680] ss:$16 sps:$4 sm:$0xff]   ;;  %v16850_v49 = vld [vmem:[%s25220_s9 + $0x664] ss:$16 sps:$4 sm:$0xff]  }
 0x6b0   :  { %12868 = vmatmul.mubr.bf16.vlgmr.msra.gmra.mxu0 %v21838_v18  ;;  %12908 = vmatprep.mubr.bf16.mxu1 %v21845_v63  ;;  %v6422_v61 = vrot.slane %v21799_v6, 6  ;;  %v15212_v50 = vrot.slane %v21803_v48, 13  ;;  %v6427_v22 = vrot.slane %v21817_v33, 1  ;;  %v6431_v43 = vrot.slane %v21817_v33, 3 }
 0x6b1   :  { %12918 = vmatpush1.bf16.msra.mxu0 %v16824_v0  ;;  %12949 = vmatprep.mubr.bf16.mxu0 %v21854_v14  ;;  %v21874_v32 = vsel %vm6563_vm2, %v6418_v53, %v15210_v12  ;;  %v15215_v58 = vrot.slane %v21829_v1, 10  ;;  %v6486_v6 = vrot.slane %v21829_v1, 7  ;;  %v6295_v36 = vadd.f32 %v21797_v44, %v21801_v4  ;;  %v16833_v44 = vld [vmem:[%s25220_s9 + $0x4a0] ss:$16 sps:$4 sm:$0xff]  }
 0x6b2   :  { %12878 = vmatprep.subr.bf16.mxu1 %v16829_v5  ;;  %12919 = vmatprep.subr.bf16.mxu0 %v16832_v26  ;;  %v21885_v47 = vsel %vm6563_vm2, %v6422_v61, %v15212_v50  ;;  %v21889_v48 = vsel %vm6563_vm2, %v6427_v22, %v21829_v1  ;;  %v21891_v3 = vmax.f32 %v6395_v59, 0.0  ;;  %v21903_v10 = vmax.f32 %v6397_v21, 0.0  ;;  %v16845_v5 = vld [vmem:[%s25220_s9 + $0x460] ss:$16 sps:$4 sm:$0xff]  }
 0x6b3   :  { %12879 = vmatpush1.bf16.msra.mxu1 %v16827_v35  ;;  %v21897_v4 = vsel %vm6563_vm2, %v6431_v43, %v15215_v58  ;;  %v21901_v23 = vsel %vm6563_vm2, %v21817_v33, %v6486_v6  ;;  %v6348_v7 = vadd.f32 %v6347_v54, %v6295_v36  ;;  %v6429_v19 = vrot.slane %v21817_v33, 2  ;;  %v16848_v61 = vld [vmem:[%s25220_s9 + $0x660] ss:$16 sps:$4 sm:$0xff]  }
 0x6b4   :  { %12880 = vmatprep.subr.bf16.mxu1 %v16835_v40  ;;  %v15214_v11 = vrot.slane %v21829_v1, 9  ;;  %v6435_v46 = vrot.slane %v21817_v33, 5  ;;  %v15217_v20 = vrot.slane %v21829_v1, 12  ;;  %v6439_v25 = vrot.slane %v21817_v33, 7  ;;  %v16851_v36 = vld [vmem:[%s25220_s9 + $0x440] ss:$16 sps:$4 sm:$0xff]  }
 0x6b5   :  { %12920 = vmatpush1.bf16.msra.mxu0 %v16830_v9  ;;  %v6516_v13 = vrot.slane %v6486_v6, 7  ;;  %v6433_v41 = vrot.slane %v21817_v33, 4  ;;  %v15216_v24 = vrot.slane %v21829_v1, 11  ;;  %v6437_v31 = vrot.slane %v21817_v33, 6  ;;  %v16856_v9 = vld [vmem:[%s25220_s9 + $0x644] ss:$16 sps:$4 sm:$0xff]  }
 0x6b6   :  { %12921 = vmatprep.subr.bf16.mxu0 %v16838_v38  ;;  %v21920_v51 = vsel %vm6563_vm2, %v6429_v19, %v15214_v11  ;;  %v21928_v2 = vsel %vm6563_vm2, %v6435_v46, %v15217_v20  ;;  %v15218_v16 = vrot.slane %v21829_v1, 13  ;;  %v6401_v27 = vadd.f32 %v6400_v56, %v6348_v7  ;;  %v16859_v19 = vld [vmem:[%s25220_s9 + $0x424] ss:$16 sps:$4 sm:$0xff]  }
 0x6b7   :  { %12881 = vmatpush1.bf16.msra.mxu1 %v16833_v44  ;;  %v21931_v28 = vsel %vm6563_vm2, %v6439_v25, %v6516_v13  ;;  %v21939_v37 = vsel %vm6563_vm2, %v6433_v41, %v15216_v24  ;;  %v6442_v15 = vrot.slane %v21891_v3, 1  ;;  %v6446_v1 = vrot.slane %v21891_v3, 3  ;;  %v16862_v25 = vld [vmem:[%s25220_s9 + $0x624] ss:$16 sps:$4 sm:$0xff]  }
 0x6b8   :  { %12882 = vmatprep.subr.bf16.mxu1 %v16841_v17  ;;  %v21946_v33 = vsel %vm6563_vm2, %v6437_v31, %v15218_v16  ;;  %v15221_v30 = vrot.slane %v21903_v10, 10  ;;  %v6494_v62 = vrot.slane %v21903_v10, 7  ;;  %v21959_v39 = vmax.f32 %v21842_v45, 0.0  ;;  %v16853_v45 = vld [vmem:[%s25220_s9 + $0x444] ss:$16 sps:$4 sm:$0xff]  }
 0x6b9   :  { %12922 = vmatpush1.bf16.msra.mxu0 %v16836_v42  ;;  %v21955_v0 = vsel %vm6563_vm2, %v6442_v15, %v21903_v10  ;;  %v6444_v59 = vrot.slane %v21891_v3, 2  ;;  %v15220_v35 = vrot.slane %v21903_v10, 9  ;;  %v21969_v53 = vmax.f32 %v6401_v27, 0.0  ;;  %v16865_v31 = vld [vmem:[%s25220_s9 + $0x404] ss:$16 sps:$4 sm:$0xff]  }
 0x6ba   :  { %12923 = vmatprep.subr.bf16.mxu0 %v16844_v29  ;;  %v21965_v26 = vsel %vm6563_vm2, %v6446_v1, %v15221_v30  ;;  %v21976_v12 = vsel %vm6563_vm2, %v21891_v3, %v6494_v62  ;;  %v6450_v21 = vrot.slane %v21891_v3, 5  ;;  %v15223_v40 = vrot.slane %v21903_v10, 12  ;;  %v16857_v29 = vld [vmem:[%s25220_s9 + $0x420] ss:$16 sps:$4 sm:$0xff]  }
 0x6bb   :  { %12883 = vmatpush1.bf16.msra.mxu1 %v16839_v34  ;;  %v21984_v50 = vsel %vm6563_vm2, %v6444_v59, %v15220_v35  ;;  %v6454_v22 = vrot.slane %v21891_v3, 7  ;;  %v6523_v54 = vrot.slane %v6494_v62, 7  ;;  %v6448_v58 = vrot.slane %v21891_v3, 4  ;;  %v16868_v62 = vld [vmem:[%s25220_s9 + $0x604] ss:$16 sps:$4 sm:$0xff]  }
 0x6bc   :  { %12884 = vmatprep.subr.bf16.mxu1 %v16847_v57  ;;  %v21991_v43 = vsel %vm6563_vm2, %v6450_v21, %v15223_v40  ;;  %v15222_v6 = vrot.slane %v21903_v10, 11  ;;  %v6452_v44 = vrot.slane %v21891_v3, 6  ;;  %v15224_v7 = vrot.slane %v21903_v10, 13  ;;  %v16854_v3 = vld [vmem:[%s25220_s9 + $0x640] ss:$16 sps:$4 sm:$0xff]  }
 0x6bd   :  { %12924 = vmatpush1.bf16.msra.mxu0 %v16842_v8  ;;  %v21999_v38 = vsel %vm6563_vm2, %v6454_v22, %v6523_v54  ;;  %v6457_v17 = vrot.slane %v21959_v39, 1  ;;  %v6461_v56 = vrot.slane %v21959_v39, 3  ;;  %v15227_v42 = vrot.slane %v21969_v53, 10  ;;  %v16860_v8 = vld [vmem:[%s25220_s9 + $0x620] ss:$16 sps:$4 sm:$0xff]  }
 0x6be   :  { %12925 = vmatprep.subr.bf16.mxu0 %v16850_v49  ;;  %v22008_v11 = vsel %vm6563_vm2, %v6448_v58, %v15222_v6  ;;  %v22016_v10 = vsel %vm6563_vm2, %v6452_v44, %v15224_v7  ;;  %v6502_v20 = vrot.slane %v21969_v53, 7  ;;  %v6459_v24 = vrot.slane %v21959_v39, 2  ;;  %v16863_v35 = vld [vmem:[%s25220_s9 + $0x400] ss:$16 sps:$4 sm:$0xff]   ;;  %v16880_v6 = vld [vmem:[%s25220_s9 + $0x7c4] ss:$16 sps:$4 sm:$0xff]  }
 0x6bf   :  { %12885 = vmatpush1.bf16.msra.mxu1 %v16845_v5  ;;  %v22020_v46 = vsel %vm6563_vm2, %v6457_v17, %v21969_v53  ;;  %v22027_v13 = vsel %vm6563_vm2, %v6461_v56, %v15227_v42  ;;  %v15226_v34 = vrot.slane %v21969_v53, 9  ;;  %v6465_v16 = vrot.slane %v21959_v39, 5  ;;  %v16866_v22 = vld [vmem:[%s25220_s9 + $0x600] ss:$16 sps:$4 sm:$0xff]   ;;  %v16883_v44 = vld [vmem:[%s25220_s9 + $0x5a4] ss:$16 sps:$4 sm:$0xff]  }
 0x6c0   :  { %12886 = vmatprep.subr.bf16.mxu1 %v16853_v45  ;;  %v22034_v41 = vsel %vm6563_vm2, %v21959_v39, %v6502_v20  ;;  %v15229_v27 = vrot.slane %v21969_v53, 12  ;;  %v6469_v57 = vrot.slane %v21959_v39, 7  ;;  %v6530_v15 = vrot.slane %v6502_v20, 7  ;;  %v16872_v58 = vld [vmem:[%s25220_s9 + $0x7e0] ss:$16 sps:$4 sm:$0xff]  }
 0x6c1   :  { %12926 = vmatpush1.bf16.msra.mxu0 %v16848_v61  ;;  %v22048_v1 = vsel %vm6563_vm2, %v6459_v24, %v15226_v34  ;;  %v6463_v30 = vrot.slane %v21959_v39, 4  ;;  %v15228_v49 = vrot.slane %v21969_v53, 11  ;;  %v6467_v21 = vrot.slane %v21959_v39, 6  ;;  %v16871_v61 = vld [vmem:[%s25220_s9 + $0x5e4] ss:$16 sps:$4 sm:$0xff]  }
 0x6c2   :  { %12927 = vmatprep.subr.bf16.mxu0 %v16856_v9  ;;  %v22056_v5 = vsel %vm6563_vm2, %v6465_v16, %v15229_v27  ;;  %v22059_v59 = vsel %vm6563_vm2, %v6469_v57, %v6530_v15  ;;  %v15230_v40 = vrot.slane %v21969_v53, 13  ;;  %v16874_v39 = vld [vmem:[%s25220_s9 + $0x7e4] ss:$16 sps:$4 sm:$0xff]   ;;  %v16869_v53 = vld [vmem:[%s25220_s9 + $0x5e0] ss:$16 sps:$4 sm:$0xff]  }
 0x6c3   :  { %12887 = vmatpush1.bf16.msra.mxu1 %v16851_v36  ;;  %v22065_v45 = vsel %vm6563_vm2, %v6463_v30, %v15228_v49  ;;  %v16877_v9 = vld [vmem:[%s25220_s9 + $0x5c4] ss:$16 sps:$4 sm:$0xff]   ;;  %v16875_v36 = vld [vmem:[%s25220_s9 + $0x5c0] ss:$16 sps:$4 sm:$0xff]  }
 0x6c4   :  { %12888 = vmatprep.subr.bf16.mxu1 %v16859_v19  ;;  %v22076_v54 = vsel %vm6563_vm2, %v6467_v21, %v15230_v40  ;;  %v16878_v7 = vld [vmem:[%s25220_s9 + $0x7c0] ss:$16 sps:$4 sm:$0xff]   ;;  %v16886_v17 = vld [vmem:[%s25220_s9 + $0x7a4] ss:$16 sps:$4 sm:$0xff]  }
 0x6c5   :  { %12928 = vmatpush1.bf16.msra.mxu0 %v16854_v3  ;;  %v16881_v19 = vld [vmem:[%s25220_s9 + $0x5a0] ss:$16 sps:$4 sm:$0xff]   ;;  %v16889_v56 = vld [vmem:[%s25220_s9 + $0x584] ss:$16 sps:$4 sm:$0xff]  }
 0x6c6   :  { %12929 = vmatprep.subr.bf16.mxu0 %v16862_v25  ;;  %v16884_v42 = vld [vmem:[%s25220_s9 + $0x7a0] ss:$16 sps:$4 sm:$0xff]   ;;  %v16892_v3 = vld [vmem:[%s25220_s9 + $0x784] ss:$16 sps:$4 sm:$0xff]  }
 0x6c7   :  { %12889 = vmatpush1.bf16.msra.mxu1 %v16857_v29  ;;  %v16887_v20 = vld [vmem:[%s25220_s9 + $0x580] ss:$16 sps:$4 sm:$0xff]   ;;  %v16895_v25 = vld [vmem:[%s25220_s9 + $0x564] ss:$16 sps:$4 sm:$0xff]  }
 0x6c8   :  { %12890 = vmatprep.subr.bf16.mxu1 %v16865_v31  ;;  %v16890_v29 = vld [vmem:[%s25220_s9 + $0x780] ss:$16 sps:$4 sm:$0xff]   ;;  %v16898_v24 = vld [vmem:[%s25220_s9 + $0x764] ss:$16 sps:$4 sm:$0xff]  }
 0x6c9   :  { %12930 = vmatpush1.bf16.msra.mxu0 %v16860_v8  ;;  %v16893_v34 = vld [vmem:[%s25220_s9 + $0x560] ss:$16 sps:$4 sm:$0xff]   ;;  %v16901_v31 = vld [vmem:[%s25220_s9 + $0x544] ss:$16 sps:$4 sm:$0xff]  }
 0x6ca   :  { %12931 = vmatprep.subr.bf16.mxu0 %v16868_v62  ;;  %v16896_v16 = vld [vmem:[%s25220_s9 + $0x760] ss:$16 sps:$4 sm:$0xff]   ;;  %v16904_v27 = vld [vmem:[%s25220_s9 + $0x744] ss:$16 sps:$4 sm:$0xff]  }
 0x6cb   :  { %12891 = vmatpush1.bf16.msra.mxu1 %v16863_v35  ;;  %v16899_v57 = vld [vmem:[%s25220_s9 + $0x540] ss:$16 sps:$4 sm:$0xff]   ;;  %v16907_v15 = vld [vmem:[%s25220_s9 + $0x524] ss:$16 sps:$4 sm:$0xff]  }
 0x6cc   :  { %12892 = vmatprep.subr.bf16.mxu1 %v16871_v61  ;;  %v16902_v8 = vld [vmem:[%s25220_s9 + $0x740] ss:$16 sps:$4 sm:$0xff]   ;;  %v16910_v30 = vld [vmem:[%s25220_s9 + $0x724] ss:$16 sps:$4 sm:$0xff]  }
 0x6cd   :  { %12932 = vmatpush1.bf16.msra.mxu0 %v16866_v22  ;;  %v16905_v49 = vld [vmem:[%s25220_s9 + $0x520] ss:$16 sps:$4 sm:$0xff]   ;;  %v16913_v62 = vld [vmem:[%s25220_s9 + $0x504] ss:$16 sps:$4 sm:$0xff]  }
 0x6ce   :  { %12933 = vmatprep.subr.bf16.mxu0 %v16874_v39  ;;  %v16908_v35 = vld [vmem:[%s25220_s9 + $0x720] ss:$16 sps:$4 sm:$0xff]   ;;  %v16916_v21 = vld [vmem:[%s25220_s9 + $0x704] ss:$16 sps:$4 sm:$0xff]  }
 0x6cf   :  { %12893 = vmatpush2.bf16.msra.mxu1 %v16869_v53  ;;  %v16911_v40 = vld [vmem:[%s25220_s9 + $0x500] ss:$16 sps:$4 sm:$0xff]   ;;  %v16919_v61 = vld [vmem:[%s25220_s9 + $0x8e4] ss:$16 sps:$4 sm:$0xff]  }
 0x6d0   :  { %12894 = vmatprep.subr.bf16.mxu1 %v16877_v9  ;;  %v16914_v22 = vld [vmem:[%s25220_s9 + $0x700] ss:$16 sps:$4 sm:$0xff]   ;;  %v16922_v39 = vld [vmem:[%s25220_s9 + $0xae4] ss:$16 sps:$4 sm:$0xff]   ;;  %v22182_v9 = vpack.c.bf16 %v21874_v32, %v21874_v32  ;;  %v22197_v32 = vpack.c.bf16 %v21885_v47, %v21885_v47 }
 0x6d1   :  { %12934 = vmatpush2.bf16.msra.mxu0 %v16872_v58  ;;  %v16917_v53 = vld [vmem:[%s25220_s9 + $0x8e0] ss:$16 sps:$4 sm:$0xff]   ;;  %v16925_v58 = vld [vmem:[%s25220_s9 + $0x8c4] ss:$16 sps:$4 sm:$0xff]  }
 0x6d2   :  { %12935 = vmatprep.subr.bf16.mxu0 %v16880_v6  ;;  %v22189_v6 = vpack.c.bf16 %v21889_v48, %v21889_v48  ;;  %v22205_v48 = vpack.c.bf16 %v21897_v4, %v21897_v4  ;;  %v16931_v47 = vld [vmem:[%s25220_s9 + $0x8a4] ss:$16 sps:$4 sm:$0xff]  }
 0x6d3   :  { %12895 = vmatpush2.bf16.msra.mxu1 %v16875_v36  ;;  %v16920_v36 = vld [vmem:[%s25220_s9 + $0xae0] ss:$16 sps:$4 sm:$0xff]   ;;  %v16934_v4 = vld [vmem:[%s25220_s9 + $0xaa4] ss:$16 sps:$4 sm:$0xff]  }
 0x6d4   :  { %12896 = vmatprep.subr.bf16.mxu1 %v16883_v44  ;;  %v16928_v44 = vld [vmem:[%s25220_s9 + $0xac4] ss:$16 sps:$4 sm:$0xff]  }
 0x6d5   :  { %12936 = vmatpush2.bf16.msra.mxu0 %v16878_v7  ;;  %v16923_v7 = vld [vmem:[%s25220_s9 + $0x8c0] ss:$16 sps:$4 sm:$0xff]  }
 0x6d6   :  { %12937 = vmatprep.subr.bf16.mxu0 %v16886_v17  ;;  %v16926_v17 = vld [vmem:[%s25220_s9 + $0xac0] ss:$16 sps:$4 sm:$0xff]  }
 0x6d7   :  { %12897 = vmatpush2.bf16.msra.mxu1 %v16881_v19  ;;  %v16929_v19 = vld [vmem:[%s25220_s9 + $0x8a0] ss:$16 sps:$4 sm:$0xff]  }
 0x6d8   :  { %12898 = vmatprep.subr.bf16.mxu1 %v16889_v56  ;;  %v16937_v56 = vld [vmem:[%s25220_s9 + $0x884] ss:$16 sps:$4 sm:$0xff]  }
 0x6d9   :  { %12938 = vmatpush2.bf16.msra.mxu0 %v16884_v42  ;;  %v16932_v42 = vld [vmem:[%s25220_s9 + $0xaa0] ss:$16 sps:$4 sm:$0xff]  }
 0x6da   :  { %12939 = vmatprep.subr.bf16.mxu0 %v16892_v3  ;;  %v16940_v3 = vld [vmem:[%s25220_s9 + $0xa84] ss:$16 sps:$4 sm:$0xff]  }
 0x6db   :  { %12899 = vmatpush2.bf16.msra.mxu1 %v16887_v20  ;;  %v16935_v20 = vld [vmem:[%s25220_s9 + $0x880] ss:$16 sps:$4 sm:$0xff]  }
 0x6dc   :  { %12900 = vmatprep.subr.bf16.mxu1 %v16895_v25  ;;  %v16943_v25 = vld [vmem:[%s25220_s9 + $0x864] ss:$16 sps:$4 sm:$0xff]  }
 0x6dd   :  { %12940 = vmatpush2.bf16.msra.mxu0 %v16890_v29  ;;  %v16938_v29 = vld [vmem:[%s25220_s9 + $0xa80] ss:$16 sps:$4 sm:$0xff]  }
 0x6de   :  { %12941 = vmatprep.subr.bf16.mxu0 %v16898_v24  ;;  %v16946_v24 = vld [vmem:[%s25220_s9 + $0xa64] ss:$16 sps:$4 sm:$0xff]  }
 0x6df   :  { %12901 = vmatpush2.bf16.msra.mxu1 %v16893_v34  ;;  %v16941_v34 = vld [vmem:[%s25220_s9 + $0x860] ss:$16 sps:$4 sm:$0xff]  }
 0x6e0   :  { %12902 = vmatprep.subr.bf16.mxu1 %v16901_v31  ;;  %v16949_v31 = vld [vmem:[%s25220_s9 + $0x844] ss:$16 sps:$4 sm:$0xff]  }
 0x6e1   :  { %12942 = vmatpush2.bf16.msra.mxu0 %v16896_v16  ;;  %v16944_v16 = vld [vmem:[%s25220_s9 + $0xa60] ss:$16 sps:$4 sm:$0xff]  }
 0x6e2   :  { %12943 = vmatprep.subr.bf16.mxu0 %v16904_v27  ;;  %v16952_v27 = vld [vmem:[%s25220_s9 + $0xa44] ss:$16 sps:$4 sm:$0xff]  }
 0x6e3   :  { %12903 = vmatpush2.bf16.msra.mxu1 %v16899_v57  ;;  %v16947_v57 = vld [vmem:[%s25220_s9 + $0x840] ss:$16 sps:$4 sm:$0xff]  }
 0x6e4   :  { %12904 = vmatprep.subr.bf16.mxu1 %v16907_v15  ;;  %v16955_v15 = vld [vmem:[%s25220_s9 + $0x824] ss:$16 sps:$4 sm:$0xff]  }
 0x6e5   :  { %12944 = vmatpush2.bf16.msra.mxu0 %v16902_v8  ;;  %v16950_v8 = vld [vmem:[%s25220_s9 + $0xa40] ss:$16 sps:$4 sm:$0xff]  }
 0x6e6   :  { %12945 = vmatprep.subr.bf16.mxu0 %v16910_v30  ;;  %v16958_v30 = vld [vmem:[%s25220_s9 + $0xa24] ss:$16 sps:$4 sm:$0xff]  }
 0x6e7   :  { %12905 = vmatpush2.bf16.msra.mxu1 %v16905_v49  ;;  %v16953_v49 = vld [vmem:[%s25220_s9 + $0x820] ss:$16 sps:$4 sm:$0xff]  }
 0x6e8   :  { %12906 = vmatprep.subr.bf16.mxu1 %v16913_v62  ;;  %v16961_v62 = vld [vmem:[%s25220_s9 + $0x804] ss:$16 sps:$4 sm:$0xff]  }
 0x6e9   :  { %12946 = vmatpush2.bf16.msra.mxu0 %v16908_v35  ;;  %v16956_v35 = vld [vmem:[%s25220_s9 + $0xa20] ss:$16 sps:$4 sm:$0xff]  }
 0x6ea   :  { %12947 = vmatprep.subr.bf16.mxu0 %v16916_v21  ;;  %v16964_v21 = vld [vmem:[%s25220_s9 + $0xa04] ss:$16 sps:$4 sm:$0xff]  }
 0x6eb   :  { %12907 = vmatpush2.bf16.msra.mxu1 %v16911_v40  ;;  %v16959_v40 = vld [vmem:[%s25220_s9 + $0x800] ss:$16 sps:$4 sm:$0xff]  }
 0x6ec   :  { %12958 = vmatprep.subr.bf16.mxu1 %v16919_v61  ;;  %v16967_v61 = vld [vmem:[%s25220_s9 + $0x9e4] ss:$16 sps:$4 sm:$0xff]  }
 0x6ed   :  { %12948 = vmatpush2.bf16.msra.mxu0 %v16914_v22  ;;  %v16962_v22 = vld [vmem:[%s25220_s9 + $0xa00] ss:$16 sps:$4 sm:$0xff]  }
 0x6ee   :  { %12909 = vmatmul.mubr.bf16.vlgmr.msra.gmra.mxu1 %v22182_v9  ;;  %12999 = vmatprep.subr.bf16.mxu0 %v16922_v39  ;;  %v16970_v39 = vld [vmem:[%s25220_s9 + $0xbe4] ss:$16 sps:$4 sm:$0xff]  }
 0x6ef   :  { %12959 = vmatpush1.bf16.msra.mxu1 %v16917_v53  ;;  %12990 = vmatprep.mubr.bf16.mxu1 %v22189_v6  ;;  %v16965_v53 = vld [vmem:[%s25220_s9 + $0x9e0] ss:$16 sps:$4 sm:$0xff]  }
 0x6f0   :  { %12950 = vmatmul.mubr.bf16.vlgmr.msra.gmra.mxu0 %v22197_v32  ;;  %12960 = vmatprep.subr.bf16.mxu1 %v16925_v58  ;;  %v16973_v58 = vld [vmem:[%s25220_s9 + $0x9c4] ss:$16 sps:$4 sm:$0xff]  }
 0x6f1   :  { %13000 = vmatpush1.bf16.msra.mxu0 %v16920_v36  ;;  %13031 = vmatprep.mubr.bf16.mxu0 %v22205_v48  ;;  %v16968_v36 = vld [vmem:[%s25220_s9 + $0xbe0] ss:$16 sps:$4 sm:$0xff]  }
 0x6f2   :  { %13001 = vmatprep.subr.bf16.mxu0 %v16928_v44  ;;  %v16976_v44 = vld [vmem:[%s25220_s9 + $0xbc4] ss:$16 sps:$4 sm:$0xff]  }
 0x6f3   :  { %12961 = vmatpush1.bf16.msra.mxu1 %v16923_v7  ;;  %v16971_v7 = vld [vmem:[%s25220_s9 + $0x9c0] ss:$16 sps:$4 sm:$0xff]  }
 0x6f4   :  { %12962 = vmatprep.subr.bf16.mxu1 %v16931_v47  ;;  %v16979_v47 = vld [vmem:[%s25220_s9 + $0x9a4] ss:$16 sps:$4 sm:$0xff]  }
 0x6f5   :  { %13002 = vmatpush1.bf16.msra.mxu0 %v16926_v17  ;;  %v16974_v17 = vld [vmem:[%s25220_s9 + $0xbc0] ss:$16 sps:$4 sm:$0xff]  }
 0x6f6   :  { %13003 = vmatprep.subr.bf16.mxu0 %v16934_v4  ;;  %v16982_v4 = vld [vmem:[%s25220_s9 + $0xba4] ss:$16 sps:$4 sm:$0xff]  }
 0x6f7   :  { %12963 = vmatpush1.bf16.msra.mxu1 %v16929_v19  ;;  %v16977_v19 = vld [vmem:[%s25220_s9 + $0x9a0] ss:$16 sps:$4 sm:$0xff]  }
 0x6f8   :  { %12964 = vmatprep.subr.bf16.mxu1 %v16937_v56  ;;  %v16985_v56 = vld [vmem:[%s25220_s9 + $0x984] ss:$16 sps:$4 sm:$0xff]  }
 0x6f9   :  { %13004 = vmatpush1.bf16.msra.mxu0 %v16932_v42  ;;  %v16980_v42 = vld [vmem:[%s25220_s9 + $0xba0] ss:$16 sps:$4 sm:$0xff]  }
 0x6fa   :  { %13005 = vmatprep.subr.bf16.mxu0 %v16940_v3  ;;  %v16988_v3 = vld [vmem:[%s25220_s9 + $0xb84] ss:$16 sps:$4 sm:$0xff]  }
 0x6fb   :  { %12965 = vmatpush1.bf16.msra.mxu1 %v16935_v20  ;;  %v16983_v20 = vld [vmem:[%s25220_s9 + $0x980] ss:$16 sps:$4 sm:$0xff]  }
 0x6fc   :  { %12966 = vmatprep.subr.bf16.mxu1 %v16943_v25  ;;  %v16991_v25 = vld [vmem:[%s25220_s9 + $0x964] ss:$16 sps:$4 sm:$0xff]  }
 0x6fd   :  { %13006 = vmatpush1.bf16.msra.mxu0 %v16938_v29  ;;  %v16986_v29 = vld [vmem:[%s25220_s9 + $0xb80] ss:$16 sps:$4 sm:$0xff]  }
 0x6fe   :  { %13007 = vmatprep.subr.bf16.mxu0 %v16946_v24  ;;  %v16994_v24 = vld [vmem:[%s25220_s9 + $0xb64] ss:$16 sps:$4 sm:$0xff]  }
 0x6ff   :  { %12967 = vmatpush1.bf16.msra.mxu1 %v16941_v34  ;;  %v16989_v34 = vld [vmem:[%s25220_s9 + $0x960] ss:$16 sps:$4 sm:$0xff]  }
 0x700   :  { %12968 = vmatprep.subr.bf16.mxu1 %v16949_v31  ;;  %v16997_v31 = vld [vmem:[%s25220_s9 + $0x944] ss:$16 sps:$4 sm:$0xff]  }
 0x701   :  { %13008 = vmatpush1.bf16.msra.mxu0 %v16944_v16  ;;  %v16992_v16 = vld [vmem:[%s25220_s9 + $0xb60] ss:$16 sps:$4 sm:$0xff]  }
 0x702   :  { %13009 = vmatprep.subr.bf16.mxu0 %v16952_v27  ;;  %v17000_v27 = vld [vmem:[%s25220_s9 + $0xb44] ss:$16 sps:$4 sm:$0xff]  }
 0x703   :  { %12969 = vmatpush1.bf16.msra.mxu1 %v16947_v57  ;;  %v16995_v57 = vld [vmem:[%s25220_s9 + $0x940] ss:$16 sps:$4 sm:$0xff]  }
 0x704   :  { %12970 = vmatprep.subr.bf16.mxu1 %v16955_v15  ;;  %v17003_v15 = vld [vmem:[%s25220_s9 + $0x924] ss:$16 sps:$4 sm:$0xff]  }
 0x705   :  { %13010 = vmatpush1.bf16.msra.mxu0 %v16950_v8  ;;  %v16998_v8 = vld [vmem:[%s25220_s9 + $0xb40] ss:$16 sps:$4 sm:$0xff]  }
 0x706   :  { %13011 = vmatprep.subr.bf16.mxu0 %v16958_v30  ;;  %v17006_v30 = vld [vmem:[%s25220_s9 + $0xb24] ss:$16 sps:$4 sm:$0xff]  }
 0x707   :  { %12971 = vmatpush1.bf16.msra.mxu1 %v16953_v49  ;;  %v17001_v49 = vld [vmem:[%s25220_s9 + $0x920] ss:$16 sps:$4 sm:$0xff]  }
 0x708   :  { %12972 = vmatprep.subr.bf16.mxu1 %v16961_v62  ;;  %v17009_v62 = vld [vmem:[%s25220_s9 + $0x904] ss:$16 sps:$4 sm:$0xff]  }
 0x709   :  { %13012 = vmatpush1.bf16.msra.mxu0 %v16956_v35  ;;  %v17004_v35 = vld [vmem:[%s25220_s9 + $0xb20] ss:$16 sps:$4 sm:$0xff]  }
 0x70a   :  { %13013 = vmatprep.subr.bf16.mxu0 %v16964_v21  ;;  %v17012_v21 = vld [vmem:[%s25220_s9 + $0xb04] ss:$16 sps:$4 sm:$0xff]  }
 0x70b   :  { %12973 = vmatpush1.bf16.msra.mxu1 %v16959_v40  ;;  %v17007_v40 = vld [vmem:[%s25220_s9 + $0x900] ss:$16 sps:$4 sm:$0xff]  }
 0x70c   :  { %12974 = vmatprep.subr.bf16.mxu1 %v16967_v61  ;;  %v17015_v61 = vld [vmem:[%s25220_s9 + $0xce4] ss:$16 sps:$4 sm:$0xff]  }
 0x70d   :  { %13014 = vmatpush1.bf16.msra.mxu0 %v16962_v22  ;;  %v17010_v22 = vld [vmem:[%s25220_s9 + $0xb00] ss:$16 sps:$4 sm:$0xff]  }
 0x70e   :  { %13015 = vmatprep.subr.bf16.mxu0 %v16970_v39  ;;  %v17018_v39 = vld [vmem:[%s25220_s9 + $0xee4] ss:$16 sps:$4 sm:$0xff]  }
 0x70f   :  { %12975 = vmatpush2.bf16.msra.mxu1 %v16965_v53  ;;  %v17013_v53 = vld [vmem:[%s25220_s9 + $0xce0] ss:$16 sps:$4 sm:$0xff]  }
 0x710   :  { %12976 = vmatprep.subr.bf16.mxu1 %v16973_v58  ;;  %v22394_v58 = vpack.c.bf16 %v21901_v23, %v21901_v23  ;;  %v22409_v23 = vpack.c.bf16 %v21920_v51, %v21920_v51  ;;  %v17027_v51 = vld [vmem:[%s25220_s9 + $0xca4] ss:$16 sps:$4 sm:$0xff]  }
 0x711   :  { %13016 = vmatpush2.bf16.msra.mxu0 %v16968_v36  ;;  %v17021_v36 = vld [vmem:[%s25220_s9 + $0xcc4] ss:$16 sps:$4 sm:$0xff]  }
 0x712   :  { %13017 = vmatprep.subr.bf16.mxu0 %v16976_v44  ;;  %v22401_v44 = vpack.c.bf16 %v21928_v2, %v21928_v2  ;;  %v22417_v2 = vpack.c.bf16 %v21931_v28, %v21931_v28  ;;  %v17030_v28 = vld [vmem:[%s25220_s9 + $0xea4] ss:$16 sps:$4 sm:$0xff]  }
 0x713   :  { %12977 = vmatpush2.bf16.msra.mxu1 %v16971_v7  ;;  %v17016_v7 = vld [vmem:[%s25220_s9 + $0xee0] ss:$16 sps:$4 sm:$0xff]  }
 0x714   :  { %12978 = vmatprep.subr.bf16.mxu1 %v16979_v47  ;;  %v17024_v47 = vld [vmem:[%s25220_s9 + $0xec4] ss:$16 sps:$4 sm:$0xff]  }
 0x715   :  { %13018 = vmatpush2.bf16.msra.mxu0 %v16974_v17  ;;  %v17019_v17 = vld [vmem:[%s25220_s9 + $0xcc0] ss:$16 sps:$4 sm:$0xff]  }
 0x716   :  { %13019 = vmatprep.subr.bf16.mxu0 %v16982_v4  ;;  %v17022_v4 = vld [vmem:[%s25220_s9 + $0xec0] ss:$16 sps:$4 sm:$0xff]  }
 0x717   :  { %12979 = vmatpush2.bf16.msra.mxu1 %v16977_v19  ;;  %v17025_v19 = vld [vmem:[%s25220_s9 + $0xca0] ss:$16 sps:$4 sm:$0xff]  }
 0x718   :  { %12980 = vmatprep.subr.bf16.mxu1 %v16985_v56  ;;  %v17033_v56 = vld [vmem:[%s25220_s9 + $0xc84] ss:$16 sps:$4 sm:$0xff]  }
 0x719   :  { %13020 = vmatpush2.bf16.msra.mxu0 %v16980_v42  ;;  %v17028_v42 = vld [vmem:[%s25220_s9 + $0xea0] ss:$16 sps:$4 sm:$0xff]  }
 0x71a   :  { %13021 = vmatprep.subr.bf16.mxu0 %v16988_v3  ;;  %v17036_v3 = vld [vmem:[%s25220_s9 + $0xe84] ss:$16 sps:$4 sm:$0xff]  }
 0x71b   :  { %12981 = vmatpush2.bf16.msra.mxu1 %v16983_v20  ;;  %v17031_v20 = vld [vmem:[%s25220_s9 + $0xc80] ss:$16 sps:$4 sm:$0xff]  }
 0x71c   :  { %12982 = vmatprep.subr.bf16.mxu1 %v16991_v25  ;;  %v17039_v25 = vld [vmem:[%s25220_s9 + $0xc64] ss:$16 sps:$4 sm:$0xff]  }
 0x71d   :  { %13022 = vmatpush2.bf16.msra.mxu0 %v16986_v29  ;;  %v17034_v29 = vld [vmem:[%s25220_s9 + $0xe80] ss:$16 sps:$4 sm:$0xff]  }
 0x71e   :  { %13023 = vmatprep.subr.bf16.mxu0 %v16994_v24  ;;  %v17042_v24 = vld [vmem:[%s25220_s9 + $0xe64] ss:$16 sps:$4 sm:$0xff]  }
 0x71f   :  { %12983 = vmatpush2.bf16.msra.mxu1 %v16989_v34  ;;  %v17037_v34 = vld [vmem:[%s25220_s9 + $0xc60] ss:$16 sps:$4 sm:$0xff]  }
 0x720   :  { %12984 = vmatprep.subr.bf16.mxu1 %v16997_v31  ;;  %v17045_v31 = vld [vmem:[%s25220_s9 + $0xc44] ss:$16 sps:$4 sm:$0xff]  }
 0x721   :  { %13024 = vmatpush2.bf16.msra.mxu0 %v16992_v16  ;;  %v17040_v16 = vld [vmem:[%s25220_s9 + $0xe60] ss:$16 sps:$4 sm:$0xff]  }
 0x722   :  { %13025 = vmatprep.subr.bf16.mxu0 %v17000_v27  ;;  %v17048_v27 = vld [vmem:[%s25220_s9 + $0xe44] ss:$16 sps:$4 sm:$0xff]  }
 0x723   :  { %12985 = vmatpush2.bf16.msra.mxu1 %v16995_v57  ;;  %v17043_v57 = vld [vmem:[%s25220_s9 + $0xc40] ss:$16 sps:$4 sm:$0xff]  }
 0x724   :  { %12986 = vmatprep.subr.bf16.mxu1 %v17003_v15  ;;  %v17051_v15 = vld [vmem:[%s25220_s9 + $0xc24] ss:$16 sps:$4 sm:$0xff]  }
 0x725   :  { %13026 = vmatpush2.bf16.msra.mxu0 %v16998_v8  ;;  %v17046_v8 = vld [vmem:[%s25220_s9 + $0xe40] ss:$16 sps:$4 sm:$0xff]  }
 0x726   :  { %13027 = vmatprep.subr.bf16.mxu0 %v17006_v30  ;;  %v17054_v30 = vld [vmem:[%s25220_s9 + $0xe24] ss:$16 sps:$4 sm:$0xff]  }
 0x727   :  { %12987 = vmatpush2.bf16.msra.mxu1 %v17001_v49  ;;  %v17049_v49 = vld [vmem:[%s25220_s9 + $0xc20] ss:$16 sps:$4 sm:$0xff]  }
 0x728   :  { %12988 = vmatprep.subr.bf16.mxu1 %v17009_v62  ;;  %v17057_v62 = vld [vmem:[%s25220_s9 + $0xc04] ss:$16 sps:$4 sm:$0xff]  }
 0x729   :  { %13028 = vmatpush2.bf16.msra.mxu0 %v17004_v35  ;;  %v17052_v35 = vld [vmem:[%s25220_s9 + $0xe20] ss:$16 sps:$4 sm:$0xff]  }
 0x72a   :  { %13029 = vmatprep.subr.bf16.mxu0 %v17012_v21  ;;  %v17060_v21 = vld [vmem:[%s25220_s9 + $0xe04] ss:$16 sps:$4 sm:$0xff]  }
 0x72b   :  { %12989 = vmatpush2.bf16.msra.mxu1 %v17007_v40  ;;  %v17055_v40 = vld [vmem:[%s25220_s9 + $0xc00] ss:$16 sps:$4 sm:$0xff]  }
 0x72c   :  { %13040 = vmatprep.subr.bf16.mxu1 %v17015_v61  ;;  %v17063_v61 = vld [vmem:[%s25220_s9 + $0xde4] ss:$16 sps:$4 sm:$0xff]  }
 0x72d   :  { %13030 = vmatpush2.bf16.msra.mxu0 %v17010_v22  ;;  %v17058_v22 = vld [vmem:[%s25220_s9 + $0xe00] ss:$16 sps:$4 sm:$0xff]  }
 0x72e   :  { %12991 = vmatmul.mubr.bf16.vlgmr.msra.gmra.mxu1 %v22394_v58  ;;  %13081 = vmatprep.subr.bf16.mxu0 %v17018_v39  ;;  %v17066_v39 = vld [vmem:[%s25220_s9 + $0xfe4] ss:$16 sps:$4 sm:$0xff]  }
 0x72f   :  { %13041 = vmatpush1.bf16.msra.mxu1 %v17013_v53  ;;  %13072 = vmatprep.mubr.bf16.mxu1 %v22401_v44  ;;  %v17061_v53 = vld [vmem:[%s25220_s9 + $0xde0] ss:$16 sps:$4 sm:$0xff]  }
 0x730   :  { %13032 = vmatmul.mubr.bf16.vlgmr.msra.gmra.mxu0 %v22409_v23  ;;  %13042 = vmatprep.subr.bf16.mxu1 %v17021_v36  ;;  %v17069_v36 = vld [vmem:[%s25220_s9 + $0xdc4] ss:$16 sps:$4 sm:$0xff]  }
 0x731   :  { %13082 = vmatpush1.bf16.msra.mxu0 %v17016_v7  ;;  %13113 = vmatprep.mubr.bf16.mxu0 %v22417_v2  ;;  %v17064_v7 = vld [vmem:[%s25220_s9 + $0xfe0] ss:$16 sps:$4 sm:$0xff]  }
 0x732   :  { %13083 = vmatprep.subr.bf16.mxu0 %v17024_v47  ;;  %v17072_v47 = vld [vmem:[%s25220_s9 + $0xfc4] ss:$16 sps:$4 sm:$0xff]  }
 0x733   :  { %13043 = vmatpush1.bf16.msra.mxu1 %v17019_v17  ;;  %v17067_v17 = vld [vmem:[%s25220_s9 + $0xdc0] ss:$16 sps:$4 sm:$0xff]  }
 0x734   :  { %13044 = vmatprep.subr.bf16.mxu1 %v17027_v51  ;;  %v17075_v51 = vld [vmem:[%s25220_s9 + $0xda4] ss:$16 sps:$4 sm:$0xff]  }
 0x735   :  { %13084 = vmatpush1.bf16.msra.mxu0 %v17022_v4  ;;  %v17070_v4 = vld [vmem:[%s25220_s9 + $0xfc0] ss:$16 sps:$4 sm:$0xff]  }
 0x736   :  { %13085 = vmatprep.subr.bf16.mxu0 %v17030_v28  ;;  %v17078_v28 = vld [vmem:[%s25220_s9 + $0xfa4] ss:$16 sps:$4 sm:$0xff]  }
 0x737   :  { %13045 = vmatpush1.bf16.msra.mxu1 %v17025_v19  ;;  %v17073_v19 = vld [vmem:[%s25220_s9 + $0xda0] ss:$16 sps:$4 sm:$0xff]  }
 0x738   :  { %13046 = vmatprep.subr.bf16.mxu1 %v17033_v56  ;;  %v17081_v56 = vld [vmem:[%s25220_s9 + $0xd84] ss:$16 sps:$4 sm:$0xff]  }
 0x739   :  { %13086 = vmatpush1.bf16.msra.mxu0 %v17028_v42  ;;  %v17076_v42 = vld [vmem:[%s25220_s9 + $0xfa0] ss:$16 sps:$4 sm:$0xff]  }
 0x73a   :  { %13087 = vmatprep.subr.bf16.mxu0 %v17036_v3  ;;  %v17084_v3 = vld [vmem:[%s25220_s9 + $0xf84] ss:$16 sps:$4 sm:$0xff]  }
 0x73b   :  { %13047 = vmatpush1.bf16.msra.mxu1 %v17031_v20  ;;  %v17079_v20 = vld [vmem:[%s25220_s9 + $0xd80] ss:$16 sps:$4 sm:$0xff]  }
 0x73c   :  { %13048 = vmatprep.subr.bf16.mxu1 %v17039_v25  ;;  %v17087_v25 = vld [vmem:[%s25220_s9 + $0xd64] ss:$16 sps:$4 sm:$0xff]  }
 0x73d   :  { %13088 = vmatpush1.bf16.msra.mxu0 %v17034_v29  ;;  %v17082_v29 = vld [vmem:[%s25220_s9 + $0xf80] ss:$16 sps:$4 sm:$0xff]  }
 0x73e   :  { %13089 = vmatprep.subr.bf16.mxu0 %v17042_v24  ;;  %v17090_v24 = vld [vmem:[%s25220_s9 + $0xf64] ss:$16 sps:$4 sm:$0xff]  }
 0x73f   :  { %13049 = vmatpush1.bf16.msra.mxu1 %v17037_v34  ;;  %v17085_v34 = vld [vmem:[%s25220_s9 + $0xd60] ss:$16 sps:$4 sm:$0xff]  }
 0x740   :  { %13050 = vmatprep.subr.bf16.mxu1 %v17045_v31  ;;  %v17093_v31 = vld [vmem:[%s25220_s9 + $0xd44] ss:$16 sps:$4 sm:$0xff]  }
 0x741   :  { %13090 = vmatpush1.bf16.msra.mxu0 %v17040_v16  ;;  %v17088_v16 = vld [vmem:[%s25220_s9 + $0xf60] ss:$16 sps:$4 sm:$0xff]  }
 0x742   :  { %13091 = vmatprep.subr.bf16.mxu0 %v17048_v27  ;;  %v17096_v27 = vld [vmem:[%s25220_s9 + $0xf44] ss:$16 sps:$4 sm:$0xff]  }
 0x743   :  { %13051 = vmatpush1.bf16.msra.mxu1 %v17043_v57  ;;  %v17091_v57 = vld [vmem:[%s25220_s9 + $0xd40] ss:$16 sps:$4 sm:$0xff]  }
 0x744   :  { %13052 = vmatprep.subr.bf16.mxu1 %v17051_v15  ;;  %v7654_v15 = vlaneseq }
 0x745   :  { %13092 = vmatpush1.bf16.msra.mxu0 %v17046_v8  ;;  %v17099_v8 = vld [vmem:[%s25220_s9 + $0xd24] ss:$16 sps:$4 sm:$0xff]  }
 0x746   :  { %13093 = vmatprep.subr.bf16.mxu0 %v17054_v30  ;;  %v17094_v30 = vld [vmem:[%s25220_s9 + $0xf40] ss:$16 sps:$4 sm:$0xff]  }
 0x747   :  { %13053 = vmatpush1.bf16.msra.mxu1 %v17049_v49  ;;  %v17102_v49 = vld [vmem:[%s25220_s9 + $0xf24] ss:$16 sps:$4 sm:$0xff]  }
 0x748   :  { %13054 = vmatprep.subr.bf16.mxu1 %v17057_v62  ;;  %v17097_v62 = vld [vmem:[%s25220_s9 + $0xd20] ss:$16 sps:$4 sm:$0xff]  }
 0x749   :  { %13094 = vmatpush1.bf16.msra.mxu0 %v17052_v35  ;;  %v22581_v35 = vshrl.u32 %v7654_v15, 7 }
 0x74a   :  { %13095 = vmatprep.subr.bf16.mxu0 %v17060_v21  ;;  %v17105_v21 = vld [vmem:[%s25220_s9 + $0xd04] ss:$16 sps:$4 sm:$0xff]  }
 0x74b   :  { %13055 = vmatpush1.bf16.msra.mxu1 %v17055_v40  ;;  %v17100_v40 = vld [vmem:[%s25220_s9 + $0xf20] ss:$16 sps:$4 sm:$0xff]  }
 0x74c   :  { %13056 = vmatprep.subr.bf16.mxu1 %v17063_v61  ;;  %v17108_v61 = vld [vmem:[%s25220_s9 + $0xf04] ss:$16 sps:$4 sm:$0xff]  }
 0x74d   :  { %13096 = vmatpush1.bf16.msra.mxu0 %v17058_v22  ;;  %v17103_v22 = vld [vmem:[%s25220_s9 + $0xd00] ss:$16 sps:$4 sm:$0xff]  }
 0x74e   :  { %13097 = vmatprep.subr.bf16.mxu0 %v17066_v39  ;;  %v7656_v39 = vsub.s32 0, %v22581_v35 }
 0x74f   :  { %13057 = vmatpush2.bf16.msra.mxu1 %v17061_v53  ;;  %v17111_v53 = vld [vmem:[%s25220_s9 + $0x10e4] ss:$16 sps:$4 sm:$0xff]  }
 0x750   :  { %13058 = vmatprep.subr.bf16.mxu1 %v17069_v36  ;;  %v7652_v36 = vld [vmem:[%s25221_s10] sm:$0xf] }
 0x751   :  { %13098 = vmatpush2.bf16.msra.mxu0 %v17064_v7  ;;  %v17106_v7 = vld [vmem:[%s25220_s9 + $0xf00] ss:$16 sps:$4 sm:$0xff]  }
 0x752   :  { %13099 = vmatprep.subr.bf16.mxu0 %v17072_v47  ;;  %v7660_v47 = vsub.s32 1, %v22581_v35 }
 0x753   :  { %13059 = vmatpush2.bf16.msra.mxu1 %v17067_v17  ;;  %v17114_v17 = vld [vmem:[%s25220_s9 + $0x12e4] ss:$16 sps:$4 sm:$0xff]  }
 0x754   :  { %13060 = vmatprep.subr.bf16.mxu1 %v17075_v51  ;;  %v17109_v51 = vld [vmem:[%s25220_s9 + $0x10e0] ss:$16 sps:$4 sm:$0xff]  }
 0x755   :  { %13100 = vmatpush2.bf16.msra.mxu0 %v17070_v4  ;;  %v7657_v4 = vrot.slane %v7652_v36, %v7656_v39 }
 0x756   :  { %13101 = vmatprep.subr.bf16.mxu0 %v17078_v28  ;;  %v22614_v28 = vpack.c.bf16 %v21939_v37, %v21939_v37  ;;  %v22629_v37 = vpack.c.bf16 %v21946_v33, %v21946_v33 }
 0x757   :  { %13061 = vmatpush2.bf16.msra.mxu1 %v17073_v19  ;;  %v17117_v19 = vld [vmem:[%s25220_s9 + $0x10c4] ss:$16 sps:$4 sm:$0xff]  }
 0x758   :  { %13062 = vmatprep.subr.bf16.mxu1 %v17081_v56  ;;  %v22621_v56 = vpack.c.bf16 %v21955_v0, %v21955_v0  ;;  %v22637_v0 = vpack.c.bf16 %v21965_v26, %v21965_v26 }
 0x759   :  { %13102 = vmatpush2.bf16.msra.mxu0 %v17076_v42  ;;  %v17112_v42 = vld [vmem:[%s25220_s9 + $0x12e0] ss:$16 sps:$4 sm:$0xff]  }
 0x75a   :  { %13103 = vmatprep.subr.bf16.mxu0 %v17084_v3  ;;  %v7661_v3 = vrot.slane %v7652_v36, %v7660_v47  ;;  %v17127_v36 = vld [vmem:[%s25220_s9 + $0x1080] ss:$16 sps:$4 sm:$0xff]  }
 0x75b   :  { %13063 = vmatpush2.bf16.msra.mxu1 %v17079_v20  ;;  %v17130_v47 = vld [vmem:[%s25220_s9 + $0x1280] ss:$16 sps:$4 sm:$0xff]  }
 0x75c   :  { %13064 = vmatprep.subr.bf16.mxu1 %v17087_v25  ;;  %v17120_v25 = vld [vmem:[%s25220_s9 + $0x12c4] ss:$16 sps:$4 sm:$0xff]  }
 0x75d   :  { %13104 = vmatpush2.bf16.msra.mxu0 %v17082_v29 }
 0x75e   :  { %13105 = vmatprep.subr.bf16.mxu0 %v17090_v24  ;;  %v17115_v24 = vld [vmem:[%s25220_s9 + $0x10c0] ss:$16 sps:$4 sm:$0xff]  }
 0x75f   :  { %13065 = vmatpush2.bf16.msra.mxu1 %v17085_v34 }
 0x760   :  { %13066 = vmatprep.subr.bf16.mxu1 %v17093_v31  ;;  %v17123_v31 = vld [vmem:[%s25220_s9 + $0x10a4] ss:$16 sps:$4 sm:$0xff]  }
 0x761   :  { %13106 = vmatpush2.bf16.msra.mxu0 %v17088_v16 }
 0x762   :  { %13107 = vmatprep.subr.bf16.mxu0 %v17096_v27  ;;  %v17118_v27 = vld [vmem:[%s25220_s9 + $0x12c0] ss:$16 sps:$4 sm:$0xff]  }
 0x763   :  { %13067 = vmatpush2.bf16.msra.mxu1 %v17091_v57 }
 0x764   :  { %13068 = vmatprep.subr.bf16.mxu1 %v17099_v8 }
 0x765   :  { %13108 = vmatpush2.bf16.msra.mxu0 %v17094_v30  ;;  %v17126_v30 = vld [vmem:[%s25220_s9 + $0x12a4] ss:$16 sps:$4 sm:$0xff]  }
 0x766   :  { %13109 = vmatprep.subr.bf16.mxu0 %v17102_v49 }
 0x767   :  { %13069 = vmatpush2.bf16.msra.mxu1 %v17097_v62  ;;  %v17121_v62 = vld [vmem:[%s25220_s9 + $0x10a0] ss:$16 sps:$4 sm:$0xff]  }
 0x768   :  { %13070 = vmatprep.subr.bf16.mxu1 %v17105_v21 }
 0x769   :  { %13110 = vmatpush2.bf16.msra.mxu0 %v17100_v40 }
 0x76a   :  { %13111 = vmatprep.subr.bf16.mxu0 %v17108_v61  ;;  %v17129_v61 = vld [vmem:[%s25220_s9 + $0x1084] ss:$16 sps:$4 sm:$0xff]  }
 0x76b   :  { %13071 = vmatpush2.bf16.msra.mxu1 %v17103_v22  ;;  %v17124_v22 = vld [vmem:[%s25220_s9 + $0x12a0] ss:$16 sps:$4 sm:$0xff]  }
 0x76c   :  { %13122 = vmatprep.subr.bf16.mxu1 %v17111_v53  ;;  %v17132_v53 = vld [vmem:[%s25220_s9 + $0x1284] ss:$16 sps:$4 sm:$0xff]  }
 0x76d   :  { %13112 = vmatpush2.bf16.msra.mxu0 %v17106_v7  ;;  %v17135_v7 = vld [vmem:[%s25220_s9 + $0x1064] ss:$16 sps:$4 sm:$0xff]  }
 0x76e   :  { %13073 = vmatmul.mubr.bf16.vlgmr.msra.gmra.mxu1 %v22614_v28  ;;  %v12828_v20 = vpop.f32.mrf.mxu1  ;;  %13163 = vmatprep.subr.bf16.mxu0 %v17114_v17  ;;  %v17138_v17 = vld [vmem:[%s25220_s9 + $0x1264] ss:$16 sps:$4 sm:$0xff]  }
 0x76f   :  { %v12829_v29 = vadd.f32 %v12828_v20, %v7657_v4  ;;  %13123 = vmatpush1.bf16.msra.mxu1 %v17109_v51  ;;  %13154 = vmatprep.mubr.bf16.mxu1 %v22621_v56  ;;  %v17133_v51 = vld [vmem:[%s25220_s9 + $0x1060] ss:$16 sps:$4 sm:$0xff]   ;;  %v17141_v4 = vld [vmem:[%s25220_s9 + $0x1044] ss:$16 sps:$4 sm:$0xff]  }
 0x770   :  { %13114 = vmatmul.mubr.bf16.vlgmr.msra.gmra.mxu0 %v22629_v37  ;;  %v12869_v33 = vpop.f32.mrf.mxu0  ;;  %v12830_v34 = vpop.f32.mrf.mxu1  ;;  %13124 = vmatprep.subr.bf16.mxu1 %v17117_v19  ;;  %v17136_v19 = vld [vmem:[%s25220_s9 + $0x1260] ss:$16 sps:$4 sm:$0xff]   ;;  %v17147_v20 = vld [vmem:[%s25220_s9 + $0x1024] ss:$16 sps:$4 sm:$0xff]  }
 0x771   :  { %v22646_v16 = vadd.f32 %v12869_v33, %v12829_v29  ;;  %13164 = vmatpush1.bf16.msra.mxu0 %v17112_v42  ;;  %13195 = vmatprep.mubr.bf16.mxu0 %v22637_v0  ;;  %v12831_v26 = vadd.f32 %v12830_v34, %v7661_v3  ;;  %v17144_v42 = vld [vmem:[%s25220_s9 + $0x1244] ss:$16 sps:$4 sm:$0xff]   ;;  %v17139_v3 = vld [vmem:[%s25220_s9 + $0x1040] ss:$16 sps:$4 sm:$0xff]  }
 0x772   :  { %v12871_v57 = vpop.f32.mrf.mxu0  ;;  %v12832_v8 = vpop.f32.mrf.mxu1  ;;  %13165 = vmatprep.subr.bf16.mxu0 %v17120_v25  ;;  %v17142_v25 = vld [vmem:[%s25220_s9 + $0x1240] ss:$16 sps:$4 sm:$0xff]   ;;  %v17150_v29 = vld [vmem:[%s25220_s9 + $0x1224] ss:$16 sps:$4 sm:$0xff]  }
 0x773   :  { %v22655_v49 = vadd.f32 %v12871_v57, %v12831_v26  ;;  %13125 = vmatpush1.bf16.msra.mxu1 %v17115_v24  ;;  %v17145_v24 = vld [vmem:[%s25220_s9 + $0x1020] ss:$16 sps:$4 sm:$0xff]   ;;  %v17153_v33 = vld [vmem:[%s25220_s9 + $0x1004] ss:$16 sps:$4 sm:$0xff]  }
 0x774   :  { %v12873_v21 = vpop.f32.mrf.mxu0  ;;  %v12833_v40 = vpop.f32.mrf.mxu1  ;;  %13126 = vmatprep.subr.bf16.mxu1 %v17123_v31  ;;  %v17148_v34 = vld [vmem:[%s25220_s9 + $0x1220] ss:$16 sps:$4 sm:$0xff]   ;;  %v17156_v31 = vld [vmem:[%s25220_s9 + $0x1204] ss:$16 sps:$4 sm:$0xff]  }
 0x775   :  { %13166 = vmatpush1.bf16.msra.mxu0 %v17118_v27  ;;  %v17151_v26 = vld [vmem:[%s25220_s9 + $0x1000] ss:$16 sps:$4 sm:$0xff]   ;;  %v17159_v27 = vld [vmem:[%s25220_s9 + $0x11e4] ss:$16 sps:$4 sm:$0xff]  }
 0x776   :  { %v12874_v39 = vpop.f32.mrf.mxu0  ;;  %13167 = vmatprep.subr.bf16.mxu0 %v17126_v30  ;;  %v17154_v57 = vld [vmem:[%s25220_s9 + $0x1200] ss:$16 sps:$4 sm:$0xff]   ;;  %v17162_v8 = vld [vmem:[%s25220_s9 + $0x13e4] ss:$16 sps:$4 sm:$0xff]  }
 0x777   :  { %13127 = vmatpush1.bf16.msra.mxu1 %v17121_v62  ;;  %v17157_v30 = vld [vmem:[%s25220_s9 + $0x11e0] ss:$16 sps:$4 sm:$0xff]   ;;  %v17165_v62 = vld [vmem:[%s25220_s9 + $0x11c4] ss:$16 sps:$4 sm:$0xff]  }
 0x778   :  { %13128 = vmatprep.subr.bf16.mxu1 %v17129_v61  ;;  %v17160_v21 = vld [vmem:[%s25220_s9 + $0x13e0] ss:$16 sps:$4 sm:$0xff]   ;;  %v17168_v40 = vld [vmem:[%s25220_s9 + $0x13c4] ss:$16 sps:$4 sm:$0xff]  }
 0x779   :  { %13168 = vmatpush1.bf16.msra.mxu0 %v17124_v22  ;;  %v17163_v61 = vld [vmem:[%s25220_s9 + $0x11c0] ss:$16 sps:$4 sm:$0xff]   ;;  %v17171_v22 = vld [vmem:[%s25220_s9 + $0x11a4] ss:$16 sps:$4 sm:$0xff]  }
 0x77a   :  { %13169 = vmatprep.subr.bf16.mxu0 %v17132_v53  ;;  %v17166_v39 = vld [vmem:[%s25220_s9 + $0x13c0] ss:$16 sps:$4 sm:$0xff]   ;;  %v17174_v53 = vld [vmem:[%s25220_s9 + $0x13a4] ss:$16 sps:$4 sm:$0xff]  }
 0x77b   :  { %13129 = vmatpush1.bf16.msra.mxu1 %v17127_v36  ;;  %v17169_v36 = vld [vmem:[%s25220_s9 + $0x11a0] ss:$16 sps:$4 sm:$0xff]  }
 0x77c   :  { %13130 = vmatprep.subr.bf16.mxu1 %v17135_v7  ;;  %v17177_v7 = vld [vmem:[%s25220_s9 + $0x1184] ss:$16 sps:$4 sm:$0xff]  }
 0x77d   :  { %13170 = vmatpush1.bf16.msra.mxu0 %v17130_v47  ;;  %v17172_v47 = vld [vmem:[%s25220_s9 + $0x13a0] ss:$16 sps:$4 sm:$0xff]  }
 0x77e   :  { %13171 = vmatprep.subr.bf16.mxu0 %v17138_v17  ;;  %v17180_v17 = vld [vmem:[%s25220_s9 + $0x1384] ss:$16 sps:$4 sm:$0xff]  }
 0x77f   :  { %13131 = vmatpush1.bf16.msra.mxu1 %v17133_v51  ;;  %v17175_v51 = vld [vmem:[%s25220_s9 + $0x1180] ss:$16 sps:$4 sm:$0xff]  }
 0x780   :  { %13132 = vmatprep.subr.bf16.mxu1 %v17141_v4  ;;  %v17183_v4 = vld [vmem:[%s25220_s9 + $0x1164] ss:$16 sps:$4 sm:$0xff]  }
 0x781   :  { %13172 = vmatpush1.bf16.msra.mxu0 %v17136_v19  ;;  %v17178_v19 = vld [vmem:[%s25220_s9 + $0x1380] ss:$16 sps:$4 sm:$0xff]  }
 0x782   :  { %13173 = vmatprep.subr.bf16.mxu0 %v17144_v42  ;;  %v17186_v42 = vld [vmem:[%s25220_s9 + $0x1364] ss:$16 sps:$4 sm:$0xff]  }
 0x783   :  { %13133 = vmatpush1.bf16.msra.mxu1 %v17139_v3  ;;  %v17181_v3 = vld [vmem:[%s25220_s9 + $0x1160] ss:$16 sps:$4 sm:$0xff]  }
 0x784   :  { %13134 = vmatprep.subr.bf16.mxu1 %v17147_v20  ;;  %v17189_v20 = vld [vmem:[%s25220_s9 + $0x1144] ss:$16 sps:$4 sm:$0xff]  }
 0x785   :  { %13174 = vmatpush1.bf16.msra.mxu0 %v17142_v25  ;;  %v17184_v25 = vld [vmem:[%s25220_s9 + $0x1360] ss:$16 sps:$4 sm:$0xff]  }
 0x786   :  { %13175 = vmatprep.subr.bf16.mxu0 %v17150_v29  ;;  %v17192_v29 = vld [vmem:[%s25220_s9 + $0x1344] ss:$16 sps:$4 sm:$0xff]  }
 0x787   :  { %13135 = vmatpush1.bf16.msra.mxu1 %v17145_v24  ;;  %v17187_v24 = vld [vmem:[%s25220_s9 + $0x1140] ss:$16 sps:$4 sm:$0xff]  }
 0x788   :  { %13136 = vmatprep.subr.bf16.mxu1 %v17153_v33  ;;  %v17195_v33 = vld [vmem:[%s25220_s9 + $0x1124] ss:$16 sps:$4 sm:$0xff]  }
 0x789   :  { %13176 = vmatpush1.bf16.msra.mxu0 %v17148_v34  ;;  %v17190_v34 = vld [vmem:[%s25220_s9 + $0x1340] ss:$16 sps:$4 sm:$0xff]  }
 0x78a   :  { %13177 = vmatprep.subr.bf16.mxu0 %v17156_v31  ;;  %v17198_v31 = vld [vmem:[%s25220_s9 + $0x1324] ss:$16 sps:$4 sm:$0xff]  }
 0x78b   :  { %13137 = vmatpush1.bf16.msra.mxu1 %v17151_v26  ;;  %v17193_v26 = vld [vmem:[%s25220_s9 + $0x1120] ss:$16 sps:$4 sm:$0xff]  }
 0x78c   :  { %13138 = vmatprep.subr.bf16.mxu1 %v17159_v27  ;;  %v17201_v27 = vld [vmem:[%s25220_s9 + $0x1104] ss:$16 sps:$4 sm:$0xff]  }
 0x78d   :  { %13178 = vmatpush1.bf16.msra.mxu0 %v17154_v57  ;;  %v17196_v57 = vld [vmem:[%s25220_s9 + $0x1320] ss:$16 sps:$4 sm:$0xff]  }
 0x78e   :  { %13179 = vmatprep.subr.bf16.mxu0 %v17162_v8  ;;  %v17204_v8 = vld [vmem:[%s25220_s9 + $0x1304] ss:$16 sps:$4 sm:$0xff]  }
 0x78f   :  { %13139 = vmatpush2.bf16.msra.mxu1 %v17157_v30  ;;  %v17199_v30 = vld [vmem:[%s25220_s9 + $0x1100] ss:$16 sps:$4 sm:$0xff]  }
 0x790   :  { %13140 = vmatprep.subr.bf16.mxu1 %v17165_v62  ;;  %v17207_v62 = vld [vmem:[%s25220_s9 + $0x14e4] ss:$16 sps:$4 sm:$0xff]  }
 0x791   :  { %13180 = vmatpush2.bf16.msra.mxu0 %v17160_v21  ;;  %v17202_v21 = vld [vmem:[%s25220_s9 + $0x1300] ss:$16 sps:$4 sm:$0xff]  }
 0x792   :  { %13181 = vmatprep.subr.bf16.mxu0 %v17168_v40  ;;  %v17210_v40 = vld [vmem:[%s25220_s9 + $0x16e4] ss:$16 sps:$4 sm:$0xff]  }
 0x793   :  { %13141 = vmatpush2.bf16.msra.mxu1 %v17163_v61  ;;  %v17205_v61 = vld [vmem:[%s25220_s9 + $0x14e0] ss:$16 sps:$4 sm:$0xff]  }
 0x794   :  { %13142 = vmatprep.subr.bf16.mxu1 %v17171_v22  ;;  %v22830_v22 = vpack.c.bf16 %v21976_v12, %v21976_v12  ;;  %v22845_v12 = vpack.c.bf16 %v21984_v50, %v21984_v50 }
 0x795   :  { %13182 = vmatpush2.bf16.msra.mxu0 %v17166_v39  ;;  %v17213_v39 = vld [vmem:[%s25220_s9 + $0x14c4] ss:$16 sps:$4 sm:$0xff]  }
 0x796   :  { %13183 = vmatprep.subr.bf16.mxu0 %v17174_v53  ;;  %v22837_v53 = vpack.c.bf16 %v21991_v43, %v21991_v43  ;;  %v22854_v43 = vpack.c.bf16 %v21999_v38, %v21999_v38  ;;  %v17214_v38 = vld [vmem:[%s25220_s9 + $0x16c0] ss:$16 sps:$4 sm:$0xff]  }
 0x797   :  { %13143 = vmatpush2.bf16.msra.mxu1 %v17169_v36  ;;  %v17208_v36 = vld [vmem:[%s25220_s9 + $0x16e0] ss:$16 sps:$4 sm:$0xff]  }
 0x798   :  { %13144 = vmatprep.subr.bf16.mxu1 %v17177_v7 }
 0x799   :  { %13184 = vmatpush2.bf16.msra.mxu0 %v17172_v47  ;;  %v17216_v47 = vld [vmem:[%s25220_s9 + $0x16c4] ss:$16 sps:$4 sm:$0xff]  }
 0x79a   :  { %13185 = vmatprep.subr.bf16.mxu0 %v17180_v17 }
 0x79b   :  { %13145 = vmatpush2.bf16.msra.mxu1 %v17175_v51  ;;  %v17211_v51 = vld [vmem:[%s25220_s9 + $0x14c0] ss:$16 sps:$4 sm:$0xff]  }
 0x79c   :  { %13146 = vmatprep.subr.bf16.mxu1 %v17183_v4 }
 0x79d   :  { %13186 = vmatpush2.bf16.msra.mxu0 %v17178_v19 }
 0x79e   :  { %13187 = vmatprep.subr.bf16.mxu0 %v17186_v42 }
 0x79f   :  { %13147 = vmatpush2.bf16.msra.mxu1 %v17181_v3 }
 0x7a0   :  { %13148 = vmatprep.subr.bf16.mxu1 %v17189_v20 }
 0x7a1   :  { %13188 = vmatpush2.bf16.msra.mxu0 %v17184_v25  ;;  %v17222_v25 = vld [vmem:[%s25220_s9 + $0x16a4] ss:$16 sps:$4 sm:$0xff]  }
 0x7a2   :  { %13189 = vmatprep.subr.bf16.mxu0 %v17192_v29 }
 0x7a3   :  { %13149 = vmatpush2.bf16.msra.mxu1 %v17187_v24 }
 0x7a4   :  { %13150 = vmatprep.subr.bf16.mxu1 %v17195_v33 }
 0x7a5   :  { %13190 = vmatpush2.bf16.msra.mxu0 %v17190_v34  ;;  %v17225_v34 = vld [vmem:[%s25220_s9 + $0x1484] ss:$16 sps:$4 sm:$0xff]  }
 0x7a6   :  { %13191 = vmatprep.subr.bf16.mxu0 %v17198_v31  ;;  %v17220_v31 = vld [vmem:[%s25220_s9 + $0x16a0] ss:$16 sps:$4 sm:$0xff]  }
 0x7a7   :  { %13151 = vmatpush2.bf16.msra.mxu1 %v17193_v26 }
 0x7a8   :  { %13152 = vmatprep.subr.bf16.mxu1 %v17201_v27  ;;  %v17228_v27 = vld [vmem:[%s25220_s9 + $0x1684] ss:$16 sps:$4 sm:$0xff]  }
 0x7a9   :  { %13192 = vmatpush2.bf16.msra.mxu0 %v17196_v57  ;;  %v17223_v57 = vld [vmem:[%s25220_s9 + $0x1480] ss:$16 sps:$4 sm:$0xff]  }
 0x7aa   :  { %13193 = vmatprep.subr.bf16.mxu0 %v17204_v8  ;;  %v17231_v8 = vld [vmem:[%s25220_s9 + $0x1464] ss:$16 sps:$4 sm:$0xff]  }
 0x7ab   :  { %13153 = vmatpush2.bf16.msra.mxu1 %v17199_v30  ;;  %v17226_v30 = vld [vmem:[%s25220_s9 + $0x1680] ss:$16 sps:$4 sm:$0xff]  }
 0x7ac   :  { %13204 = vmatprep.subr.bf16.mxu1 %v17207_v62  ;;  %v17234_v62 = vld [vmem:[%s25220_s9 + $0x1664] ss:$16 sps:$4 sm:$0xff]  }
 0x7ad   :  { %13194 = vmatpush2.bf16.msra.mxu0 %v17202_v21  ;;  %v17229_v21 = vld [vmem:[%s25220_s9 + $0x1460] ss:$16 sps:$4 sm:$0xff]  }
 0x7ae   :  { %v12910_v7 = vpop.f32.mrf.mxu1  ;;  %13155 = vmatmul.mubr.bf16.vlgmr.msra.gmra.mxu1 %v22830_v22  ;;  %13245 = vmatprep.subr.bf16.mxu0 %v17210_v40  ;;  %v17237_v40 = vld [vmem:[%s25220_s9 + $0x1444] ss:$16 sps:$4 sm:$0xff]  }
 0x7af   :  { %v12911_v17 = vadd.f32 %v12910_v7, %v22646_v16  ;;  %13205 = vmatpush1.bf16.msra.mxu1 %v17205_v61  ;;  %13236 = vmatprep.mubr.bf16.mxu1 %v22837_v53  ;;  %v17219_v16 = vld [vmem:[%s25220_s9 + $0x14a4] ss:$16 sps:$4 sm:$0xff]   ;;  %v17232_v61 = vld [vmem:[%s25220_s9 + $0x1660] ss:$16 sps:$4 sm:$0xff]  }
 0x7b0   :  { %v12951_v50 = vpop.f32.mrf.mxu0  ;;  %13196 = vmatmul.mubr.bf16.vlgmr.msra.gmra.mxu0 %v22845_v12  ;;  %v12912_v4 = vpop.f32.mrf.mxu1  ;;  %13206 = vmatprep.subr.bf16.mxu1 %v17213_v39  ;;  %v17240_v39 = vld [vmem:[%s25220_s9 + $0x1644] ss:$16 sps:$4 sm:$0xff]  }
 0x7b1   :  { %v22863_v19 = vadd.f32 %v12951_v50, %v12911_v17  ;;  %v12913_v42 = vadd.f32 %v12912_v4, %v22655_v49  ;;  %13246 = vmatpush1.bf16.msra.mxu0 %v17208_v36  ;;  %13277 = vmatprep.mubr.bf16.mxu0 %v22854_v43  ;;  %v17217_v49 = vld [vmem:[%s25220_s9 + $0x14a0] ss:$16 sps:$4 sm:$0xff]   ;;  %v17243_v7 = vld [vmem:[%s25220_s9 + $0x1424] ss:$16 sps:$4 sm:$0xff]  }
 0x7b2   :  { %v12953_v3 = vpop.f32.mrf.mxu0  ;;  %v12914_v20 = vpop.f32.mrf.mxu1  ;;  %13247 = vmatprep.subr.bf16.mxu0 %v17216_v47  ;;  %v17235_v36 = vld [vmem:[%s25220_s9 + $0x1440] ss:$16 sps:$4 sm:$0xff]   ;;  %v17246_v17 = vld [vmem:[%s25220_s9 + $0x1624] ss:$16 sps:$4 sm:$0xff]  }
 0x7b3   :  { %v22873_v29 = vadd.f32 %v12953_v3, %v12913_v42  ;;  %13207 = vmatpush1.bf16.msra.mxu1 %v17211_v51  ;;  %v17238_v47 = vld [vmem:[%s25220_s9 + $0x1640] ss:$16 sps:$4 sm:$0xff]   ;;  %v17249_v50 = vld [vmem:[%s25220_s9 + $0x1404] ss:$16 sps:$4 sm:$0xff]  }
 0x7b4   :  { %v12955_v24 = vpop.f32.mrf.mxu0  ;;  %v12915_v33 = vpop.f32.mrf.mxu1  ;;  %13208 = vmatprep.subr.bf16.mxu1 %v17219_v16  ;;  %v17241_v51 = vld [vmem:[%s25220_s9 + $0x1420] ss:$16 sps:$4 sm:$0xff]   ;;  %v17252_v16 = vld [vmem:[%s25220_s9 + $0x1604] ss:$16 sps:$4 sm:$0xff]  }
 0x7b5   :  { %13248 = vmatpush1.bf16.msra.mxu0 %v17214_v38  ;;  %v17244_v4 = vld [vmem:[%s25220_s9 + $0x1620] ss:$16 sps:$4 sm:$0xff]   ;;  %v17255_v38 = vld [vmem:[%s25220_s9 + $0x15e4] ss:$16 sps:$4 sm:$0xff]  }
 0x7b6   :  { %v12956_v26 = vpop.f32.mrf.mxu0  ;;  %13249 = vmatprep.subr.bf16.mxu0 %v17222_v25  ;;  %v17247_v42 = vld [vmem:[%s25220_s9 + $0x1400] ss:$16 sps:$4 sm:$0xff]   ;;  %v17258_v20 = vld [vmem:[%s25220_s9 + $0x17e4] ss:$16 sps:$4 sm:$0xff]  }
 0x7b7   :  { %13209 = vmatpush1.bf16.msra.mxu1 %v17217_v49  ;;  %v17250_v3 = vld [vmem:[%s25220_s9 + $0x1600] ss:$16 sps:$4 sm:$0xff]   ;;  %v17261_v49 = vld [vmem:[%s25220_s9 + $0x15c4] ss:$16 sps:$4 sm:$0xff]  }
 0x7b8   :  { %13210 = vmatprep.subr.bf16.mxu1 %v17225_v34  ;;  %v17253_v25 = vld [vmem:[%s25220_s9 + $0x15e0] ss:$16 sps:$4 sm:$0xff]   ;;  %v17264_v33 = vld [vmem:[%s25220_s9 + $0x17c4] ss:$16 sps:$4 sm:$0xff]  }
 0x7b9   :  { %13250 = vmatpush1.bf16.msra.mxu0 %v17220_v31  ;;  %v17256_v24 = vld [vmem:[%s25220_s9 + $0x17e0] ss:$16 sps:$4 sm:$0xff]   ;;  %v17267_v31 = vld [vmem:[%s25220_s9 + $0x15a4] ss:$16 sps:$4 sm:$0xff]  }
 0x7ba   :  { %13251 = vmatprep.subr.bf16.mxu0 %v17228_v27  ;;  %v17259_v34 = vld [vmem:[%s25220_s9 + $0x15c0] ss:$16 sps:$4 sm:$0xff]   ;;  %v17270_v27 = vld [vmem:[%s25220_s9 + $0x17a4] ss:$16 sps:$4 sm:$0xff]  }
 0x7bb   :  { %13211 = vmatpush1.bf16.msra.mxu1 %v17223_v57  ;;  %v17262_v26 = vld [vmem:[%s25220_s9 + $0x17c0] ss:$16 sps:$4 sm:$0xff]  }
 0x7bc   :  { %13212 = vmatprep.subr.bf16.mxu1 %v17231_v8  ;;  %v17265_v57 = vld [vmem:[%s25220_s9 + $0x15a0] ss:$16 sps:$4 sm:$0xff]   ;;  %v17273_v8 = vld [vmem:[%s25220_s9 + $0x1584] ss:$16 sps:$4 sm:$0xff]  }
 0x7bd   :  { %13252 = vmatpush1.bf16.msra.mxu0 %v17226_v30  ;;  %v17268_v30 = vld [vmem:[%s25220_s9 + $0x17a0] ss:$16 sps:$4 sm:$0xff]  }
 0x7be   :  { %13253 = vmatprep.subr.bf16.mxu0 %v17234_v62  ;;  %v17276_v62 = vld [vmem:[%s25220_s9 + $0x1784] ss:$16 sps:$4 sm:$0xff]  }
 0x7bf   :  { %13213 = vmatpush1.bf16.msra.mxu1 %v17229_v21  ;;  %v17271_v21 = vld [vmem:[%s25220_s9 + $0x1580] ss:$16 sps:$4 sm:$0xff]  }
 0x7c0   :  { %13214 = vmatprep.subr.bf16.mxu1 %v17237_v40  ;;  %v17279_v40 = vld [vmem:[%s25220_s9 + $0x1564] ss:$16 sps:$4 sm:$0xff]  }
 0x7c1   :  { %13254 = vmatpush1.bf16.msra.mxu0 %v17232_v61  ;;  %v17274_v61 = vld [vmem:[%s25220_s9 + $0x1780] ss:$16 sps:$4 sm:$0xff]  }
 0x7c2   :  { %13255 = vmatprep.subr.bf16.mxu0 %v17240_v39  ;;  %v17282_v39 = vld [vmem:[%s25220_s9 + $0x1764] ss:$16 sps:$4 sm:$0xff]  }
 0x7c3   :  { %13215 = vmatpush1.bf16.msra.mxu1 %v17235_v36  ;;  %v17277_v36 = vld [vmem:[%s25220_s9 + $0x1560] ss:$16 sps:$4 sm:$0xff]  }
 0x7c4   :  { %13216 = vmatprep.subr.bf16.mxu1 %v17243_v7  ;;  %v17285_v7 = vld [vmem:[%s25220_s9 + $0x1544] ss:$16 sps:$4 sm:$0xff]  }
 0x7c5   :  { %13256 = vmatpush1.bf16.msra.mxu0 %v17238_v47  ;;  %v17280_v47 = vld [vmem:[%s25220_s9 + $0x1760] ss:$16 sps:$4 sm:$0xff]  }
 0x7c6   :  { %13257 = vmatprep.subr.bf16.mxu0 %v17246_v17  ;;  %v17288_v17 = vld [vmem:[%s25220_s9 + $0x1744] ss:$16 sps:$4 sm:$0xff]  }
 0x7c7   :  { %13217 = vmatpush1.bf16.msra.mxu1 %v17241_v51  ;;  %v17283_v51 = vld [vmem:[%s25220_s9 + $0x1540] ss:$16 sps:$4 sm:$0xff]  }
 0x7c8   :  { %13218 = vmatprep.subr.bf16.mxu1 %v17249_v50  ;;  %v17291_v50 = vld [vmem:[%s25220_s9 + $0x1524] ss:$16 sps:$4 sm:$0xff]  }
 0x7c9   :  { %13258 = vmatpush1.bf16.msra.mxu0 %v17244_v4  ;;  %v17286_v4 = vld [vmem:[%s25220_s9 + $0x1740] ss:$16 sps:$4 sm:$0xff]  }
 0x7ca   :  { %13259 = vmatprep.subr.bf16.mxu0 %v17252_v16  ;;  %v17294_v16 = vld [vmem:[%s25220_s9 + $0x1724] ss:$16 sps:$4 sm:$0xff]  }
 0x7cb   :  { %13219 = vmatpush1.bf16.msra.mxu1 %v17247_v42  ;;  %v17289_v42 = vld [vmem:[%s25220_s9 + $0x1520] ss:$16 sps:$4 sm:$0xff]  }
 0x7cc   :  { %13220 = vmatprep.subr.bf16.mxu1 %v17255_v38  ;;  %v17297_v38 = vld [vmem:[%s25220_s9 + $0x1504] ss:$16 sps:$4 sm:$0xff]  }
 0x7cd   :  { %13260 = vmatpush1.bf16.msra.mxu0 %v17250_v3  ;;  %v17292_v3 = vld [vmem:[%s25220_s9 + $0x1720] ss:$16 sps:$4 sm:$0xff]  }
 0x7ce   :  { %13261 = vmatprep.subr.bf16.mxu0 %v17258_v20  ;;  %v17300_v20 = vld [vmem:[%s25220_s9 + $0x1704] ss:$16 sps:$4 sm:$0xff]  }
 0x7cf   :  { %13221 = vmatpush2.bf16.msra.mxu1 %v17253_v25  ;;  %v17295_v25 = vld [vmem:[%s25220_s9 + $0x1500] ss:$16 sps:$4 sm:$0xff]  }
 0x7d0   :  { %13222 = vmatprep.subr.bf16.mxu1 %v17261_v49  ;;  %v17303_v49 = vld [vmem:[%s25220_s9 + $0x18e4] ss:$16 sps:$4 sm:$0xff]  }
 0x7d1   :  { %13262 = vmatpush2.bf16.msra.mxu0 %v17256_v24  ;;  %v17298_v24 = vld [vmem:[%s25220_s9 + $0x1700] ss:$16 sps:$4 sm:$0xff]  }
 0x7d2   :  { %13263 = vmatprep.subr.bf16.mxu0 %v17264_v33  ;;  %v17306_v33 = vld [vmem:[%s25220_s9 + $0x1ae4] ss:$16 sps:$4 sm:$0xff]  }
 0x7d3   :  { %13223 = vmatpush2.bf16.msra.mxu1 %v17259_v34  ;;  %v17301_v34 = vld [vmem:[%s25220_s9 + $0x18e0] ss:$16 sps:$4 sm:$0xff]  }
 0x7d4   :  { %13224 = vmatprep.subr.bf16.mxu1 %v17267_v31  ;;  %v23048_v31 = vpack.c.bf16 %v22008_v11, %v22008_v11  ;;  %v23063_v11 = vpack.c.bf16 %v22016_v10, %v22016_v10 }
 0x7d5   :  { %13264 = vmatpush2.bf16.msra.mxu0 %v17262_v26  ;;  %v17309_v26 = vld [vmem:[%s25220_s9 + $0x18c4] ss:$16 sps:$4 sm:$0xff]  }
 0x7d6   :  { %13265 = vmatprep.subr.bf16.mxu0 %v17270_v27  ;;  %v23055_v27 = vpack.c.bf16 %v22020_v46, %v22020_v46  ;;  %v23072_v46 = vpack.c.bf16 %v22027_v13, %v22027_v13  ;;  %v17310_v13 = vld [vmem:[%s25220_s9 + $0x1ac0] ss:$16 sps:$4 sm:$0xff]  }
 0x7d7   :  { %13225 = vmatpush2.bf16.msra.mxu1 %v17265_v57  ;;  %v17304_v57 = vld [vmem:[%s25220_s9 + $0x1ae0] ss:$16 sps:$4 sm:$0xff]  }
 0x7d8   :  { %13226 = vmatprep.subr.bf16.mxu1 %v17273_v8 }
 0x7d9   :  { %13266 = vmatpush2.bf16.msra.mxu0 %v17268_v30  ;;  %v17312_v30 = vld [vmem:[%s25220_s9 + $0x1ac4] ss:$16 sps:$4 sm:$0xff]  }
 0x7da   :  { %13267 = vmatprep.subr.bf16.mxu0 %v17276_v62 }
 0x7db   :  { %13227 = vmatpush2.bf16.msra.mxu1 %v17271_v21  ;;  %v17307_v21 = vld [vmem:[%s25220_s9 + $0x18c0] ss:$16 sps:$4 sm:$0xff]  }
 0x7dc   :  { %13228 = vmatprep.subr.bf16.mxu1 %v17279_v40 }
 0x7dd   :  { %13268 = vmatpush2.bf16.msra.mxu0 %v17274_v61 }
 0x7de   :  { %13269 = vmatprep.subr.bf16.mxu0 %v17282_v39 }
 0x7df   :  { %13229 = vmatpush2.bf16.msra.mxu1 %v17277_v36 }
 0x7e0   :  { %13230 = vmatprep.subr.bf16.mxu1 %v17285_v7 }
 0x7e1   :  { %13270 = vmatpush2.bf16.msra.mxu0 %v17280_v47  ;;  %v17318_v47 = vld [vmem:[%s25220_s9 + $0x1aa4] ss:$16 sps:$4 sm:$0xff]  }
 0x7e2   :  { %13271 = vmatprep.subr.bf16.mxu0 %v17288_v17 }
 0x7e3   :  { %13231 = vmatpush2.bf16.msra.mxu1 %v17283_v51 }
 0x7e4   :  { %13232 = vmatprep.subr.bf16.mxu1 %v17291_v50 }
 0x7e5   :  { %13272 = vmatpush2.bf16.msra.mxu0 %v17286_v4  ;;  %v17321_v4 = vld [vmem:[%s25220_s9 + $0x1884] ss:$16 sps:$4 sm:$0xff]  }
 0x7e6   :  { %13273 = vmatprep.subr.bf16.mxu0 %v17294_v16  ;;  %v17316_v16 = vld [vmem:[%s25220_s9 + $0x1aa0] ss:$16 sps:$4 sm:$0xff]  }
 0x7e7   :  { %13233 = vmatpush2.bf16.msra.mxu1 %v17289_v42 }
 0x7e8   :  { %13234 = vmatprep.subr.bf16.mxu1 %v17297_v38  ;;  %v17324_v38 = vld [vmem:[%s25220_s9 + $0x1a84] ss:$16 sps:$4 sm:$0xff]  }
 0x7e9   :  { %13274 = vmatpush2.bf16.msra.mxu0 %v17292_v3  ;;  %v17319_v3 = vld [vmem:[%s25220_s9 + $0x1880] ss:$16 sps:$4 sm:$0xff]  }
 0x7ea   :  { %13275 = vmatprep.subr.bf16.mxu0 %v17300_v20  ;;  %v17327_v20 = vld [vmem:[%s25220_s9 + $0x1864] ss:$16 sps:$4 sm:$0xff]  }
 0x7eb   :  { %13235 = vmatpush2.bf16.msra.mxu1 %v17295_v25  ;;  %v17322_v25 = vld [vmem:[%s25220_s9 + $0x1a80] ss:$16 sps:$4 sm:$0xff]  }
 0x7ec   :  { %13286 = vmatprep.subr.bf16.mxu1 %v17303_v49  ;;  %v17330_v49 = vld [vmem:[%s25220_s9 + $0x1a64] ss:$16 sps:$4 sm:$0xff]  }
 0x7ed   :  { %13276 = vmatpush2.bf16.msra.mxu0 %v17298_v24  ;;  %v17325_v24 = vld [vmem:[%s25220_s9 + $0x1860] ss:$16 sps:$4 sm:$0xff]  }
 0x7ee   :  { %v12992_v8 = vpop.f32.mrf.mxu1  ;;  %13237 = vmatmul.mubr.bf16.vlgmr.msra.gmra.mxu1 %v23048_v31  ;;  %13327 = vmatprep.subr.bf16.mxu0 %v17306_v33  ;;  %v17333_v33 = vld [vmem:[%s25220_s9 + $0x1844] ss:$16 sps:$4 sm:$0xff]  }
 0x7ef   :  { %v12993_v62 = vadd.f32 %v12992_v8, %v22863_v19  ;;  %13287 = vmatpush1.bf16.msra.mxu1 %v17301_v34  ;;  %13318 = vmatprep.mubr.bf16.mxu1 %v23055_v27  ;;  %v17315_v19 = vld [vmem:[%s25220_s9 + $0x18a4] ss:$16 sps:$4 sm:$0xff]   ;;  %v17328_v34 = vld [vmem:[%s25220_s9 + $0x1a60] ss:$16 sps:$4 sm:$0xff]  }
 0x7f0   :  { %v13033_v10 = vpop.f32.mrf.mxu0  ;;  %13278 = vmatmul.mubr.bf16.vlgmr.msra.gmra.mxu0 %v23063_v11  ;;  %v12994_v40 = vpop.f32.mrf.mxu1  ;;  %13288 = vmatprep.subr.bf16.mxu1 %v17309_v26  ;;  %v17336_v26 = vld [vmem:[%s25220_s9 + $0x1a44] ss:$16 sps:$4 sm:$0xff]  }
 0x7f1   :  { %v23081_v61 = vadd.f32 %v13033_v10, %v12993_v62  ;;  %v12995_v39 = vadd.f32 %v12994_v40, %v22873_v29  ;;  %13328 = vmatpush1.bf16.msra.mxu0 %v17304_v57  ;;  %13359 = vmatprep.mubr.bf16.mxu0 %v23072_v46  ;;  %v17313_v29 = vld [vmem:[%s25220_s9 + $0x18a0] ss:$16 sps:$4 sm:$0xff]   ;;  %v17339_v8 = vld [vmem:[%s25220_s9 + $0x1824] ss:$16 sps:$4 sm:$0xff]  }
 0x7f2   :  { %v13035_v36 = vpop.f32.mrf.mxu0  ;;  %v12996_v7 = vpop.f32.mrf.mxu1  ;;  %13329 = vmatprep.subr.bf16.mxu0 %v17312_v30  ;;  %v17331_v57 = vld [vmem:[%s25220_s9 + $0x1840] ss:$16 sps:$4 sm:$0xff]   ;;  %v17342_v62 = vld [vmem:[%s25220_s9 + $0x1a24] ss:$16 sps:$4 sm:$0xff]  }
 0x7f3   :  { %v23091_v17 = vadd.f32 %v13035_v36, %v12995_v39  ;;  %13289 = vmatpush1.bf16.msra.mxu1 %v17307_v21  ;;  %v17334_v30 = vld [vmem:[%s25220_s9 + $0x1a40] ss:$16 sps:$4 sm:$0xff]   ;;  %v17345_v10 = vld [vmem:[%s25220_s9 + $0x1804] ss:$16 sps:$4 sm:$0xff]  }
 0x7f4   :  { %v13037_v51 = vpop.f32.mrf.mxu0  ;;  %v12997_v50 = vpop.f32.mrf.mxu1  ;;  %13290 = vmatprep.subr.bf16.mxu1 %v17315_v19  ;;  %v17337_v21 = vld [vmem:[%s25220_s9 + $0x1820] ss:$16 sps:$4 sm:$0xff]   ;;  %v17348_v19 = vld [vmem:[%s25220_s9 + $0x1a04] ss:$16 sps:$4 sm:$0xff]  }
 0x7f5   :  { %13330 = vmatpush1.bf16.msra.mxu0 %v17310_v13  ;;  %v17340_v40 = vld [vmem:[%s25220_s9 + $0x1a20] ss:$16 sps:$4 sm:$0xff]   ;;  %v17351_v13 = vld [vmem:[%s25220_s9 + $0x19e4] ss:$16 sps:$4 sm:$0xff]  }
 0x7f6   :  { %v13038_v42 = vpop.f32.mrf.mxu0  ;;  %13331 = vmatprep.subr.bf16.mxu0 %v17318_v47  ;;  %v17343_v39 = vld [vmem:[%s25220_s9 + $0x1800] ss:$16 sps:$4 sm:$0xff]   ;;  %v17354_v7 = vld [vmem:[%s25220_s9 + $0x1be4] ss:$16 sps:$4 sm:$0xff]  }
 0x7f7   :  { %13291 = vmatpush1.bf16.msra.mxu1 %v17313_v29  ;;  %v17346_v36 = vld [vmem:[%s25220_s9 + $0x1a00] ss:$16 sps:$4 sm:$0xff]   ;;  %v17357_v29 = vld [vmem:[%s25220_s9 + $0x19c4] ss:$16 sps:$4 sm:$0xff]  }
 0x7f8   :  { %13292 = vmatprep.subr.bf16.mxu1 %v17321_v4  ;;  %v17349_v47 = vld [vmem:[%s25220_s9 + $0x19e0] ss:$16 sps:$4 sm:$0xff]   ;;  %v17360_v50 = vld [vmem:[%s25220_s9 + $0x1bc4] ss:$16 sps:$4 sm:$0xff]  }
 0x7f9   :  { %13332 = vmatpush1.bf16.msra.mxu0 %v17316_v16  ;;  %v17352_v51 = vld [vmem:[%s25220_s9 + $0x1be0] ss:$16 sps:$4 sm:$0xff]   ;;  %v17363_v16 = vld [vmem:[%s25220_s9 + $0x19a4] ss:$16 sps:$4 sm:$0xff]  }
 0x7fa   :  { %13333 = vmatprep.subr.bf16.mxu0 %v17324_v38  ;;  %v17355_v4 = vld [vmem:[%s25220_s9 + $0x19c0] ss:$16 sps:$4 sm:$0xff]   ;;  %v17366_v38 = vld [vmem:[%s25220_s9 + $0x1ba4] ss:$16 sps:$4 sm:$0xff]  }
 0x7fb   :  { %13293 = vmatpush1.bf16.msra.mxu1 %v17319_v3  ;;  %v17358_v42 = vld [vmem:[%s25220_s9 + $0x1bc0] ss:$16 sps:$4 sm:$0xff]  }
 0x7fc   :  { %13294 = vmatprep.subr.bf16.mxu1 %v17327_v20  ;;  %v17361_v3 = vld [vmem:[%s25220_s9 + $0x19a0] ss:$16 sps:$4 sm:$0xff]   ;;  %v17369_v20 = vld [vmem:[%s25220_s9 + $0x1984] ss:$16 sps:$4 sm:$0xff]  }
 0x7fd   :  { %13334 = vmatpush1.bf16.msra.mxu0 %v17322_v25  ;;  %v17364_v25 = vld [vmem:[%s25220_s9 + $0x1ba0] ss:$16 sps:$4 sm:$0xff]  }
 0x7fe   :  { %13335 = vmatprep.subr.bf16.mxu0 %v17330_v49  ;;  %v17372_v49 = vld [vmem:[%s25220_s9 + $0x1b84] ss:$16 sps:$4 sm:$0xff]  }
 0x7ff   :  { %13295 = vmatpush1.bf16.msra.mxu1 %v17325_v24  ;;  %v17367_v24 = vld [vmem:[%s25220_s9 + $0x1980] ss:$16 sps:$4 sm:$0xff]  }
 0x800   :  { %13296 = vmatprep.subr.bf16.mxu1 %v17333_v33  ;;  %v17375_v33 = vld [vmem:[%s25220_s9 + $0x1964] ss:$16 sps:$4 sm:$0xff]  }
 0x801   :  { %13336 = vmatpush1.bf16.msra.mxu0 %v17328_v34  ;;  %v17370_v34 = vld [vmem:[%s25220_s9 + $0x1b80] ss:$16 sps:$4 sm:$0xff]  }
 0x802   :  { %13337 = vmatprep.subr.bf16.mxu0 %v17336_v26  ;;  %v17378_v26 = vld [vmem:[%s25220_s9 + $0x1b64] ss:$16 sps:$4 sm:$0xff]  }
 0x803   :  { %13297 = vmatpush1.bf16.msra.mxu1 %v17331_v57  ;;  %v17373_v57 = vld [vmem:[%s25220_s9 + $0x1960] ss:$16 sps:$4 sm:$0xff]  }
 0x804   :  { %13298 = vmatprep.subr.bf16.mxu1 %v17339_v8  ;;  %v17381_v8 = vld [vmem:[%s25220_s9 + $0x1944] ss:$16 sps:$4 sm:$0xff]  }
 0x805   :  { %13338 = vmatpush1.bf16.msra.mxu0 %v17334_v30  ;;  %v17376_v30 = vld [vmem:[%s25220_s9 + $0x1b60] ss:$16 sps:$4 sm:$0xff]  }
 0x806   :  { %13339 = vmatprep.subr.bf16.mxu0 %v17342_v62  ;;  %v17384_v62 = vld [vmem:[%s25220_s9 + $0x1b44] ss:$16 sps:$4 sm:$0xff]  }
 0x807   :  { %13299 = vmatpush1.bf16.msra.mxu1 %v17337_v21  ;;  %v17379_v21 = vld [vmem:[%s25220_s9 + $0x1940] ss:$16 sps:$4 sm:$0xff]  }
 0x808   :  { %13300 = vmatprep.subr.bf16.mxu1 %v17345_v10  ;;  %v17387_v10 = vld [vmem:[%s25220_s9 + $0x1924] ss:$16 sps:$4 sm:$0xff]  }
 0x809   :  { %13340 = vmatpush1.bf16.msra.mxu0 %v17340_v40  ;;  %v17382_v40 = vld [vmem:[%s25220_s9 + $0x1b40] ss:$16 sps:$4 sm:$0xff]  }
 0x80a   :  { %13341 = vmatprep.subr.bf16.mxu0 %v17348_v19  ;;  %v17390_v19 = vld [vmem:[%s25220_s9 + $0x1b24] ss:$16 sps:$4 sm:$0xff]  }
 0x80b   :  { %13301 = vmatpush1.bf16.msra.mxu1 %v17343_v39  ;;  %v17385_v39 = vld [vmem:[%s25220_s9 + $0x1920] ss:$16 sps:$4 sm:$0xff]  }
 0x80c   :  { %13302 = vmatprep.subr.bf16.mxu1 %v17351_v13  ;;  %v17393_v13 = vld [vmem:[%s25220_s9 + $0x1904] ss:$16 sps:$4 sm:$0xff]  }
 0x80d   :  { %13342 = vmatpush1.bf16.msra.mxu0 %v17346_v36  ;;  %v17388_v36 = vld [vmem:[%s25220_s9 + $0x1b20] ss:$16 sps:$4 sm:$0xff]  }
 0x80e   :  { %13343 = vmatprep.subr.bf16.mxu0 %v17354_v7  ;;  %v17396_v7 = vld [vmem:[%s25220_s9 + $0x1b04] ss:$16 sps:$4 sm:$0xff]  }
 0x80f   :  { %13303 = vmatpush2.bf16.msra.mxu1 %v17349_v47  ;;  %v17391_v47 = vld [vmem:[%s25220_s9 + $0x1900] ss:$16 sps:$4 sm:$0xff]  }
 0x810   :  { %13304 = vmatprep.subr.bf16.mxu1 %v17357_v29  ;;  %v17399_v29 = vld [vmem:[%s25220_s9 + $0x1ce4] ss:$16 sps:$4 sm:$0xff]  }
 0x811   :  { %13344 = vmatpush2.bf16.msra.mxu0 %v17352_v51  ;;  %v17394_v51 = vld [vmem:[%s25220_s9 + $0x1b00] ss:$16 sps:$4 sm:$0xff]  }
 0x812   :  { %13345 = vmatprep.subr.bf16.mxu0 %v17360_v50  ;;  %v17402_v50 = vld [vmem:[%s25220_s9 + $0x1ee4] ss:$16 sps:$4 sm:$0xff]  }
 0x813   :  { %13305 = vmatpush2.bf16.msra.mxu1 %v17355_v4  ;;  %v17397_v4 = vld [vmem:[%s25220_s9 + $0x1ce0] ss:$16 sps:$4 sm:$0xff]  }
 0x814   :  { %13306 = vmatprep.subr.bf16.mxu1 %v17363_v16  ;;  %v23266_v16 = vpack.c.bf16 %v22034_v41, %v22034_v41  ;;  %v23281_v41 = vpack.c.bf16 %v22048_v1, %v22048_v1 }
 0x815   :  { %13346 = vmatpush2.bf16.msra.mxu0 %v17358_v42  ;;  %v17405_v42 = vld [vmem:[%s25220_s9 + $0x1cc4] ss:$16 sps:$4 sm:$0xff]  }
 0x816   :  { %13347 = vmatprep.subr.bf16.mxu0 %v17366_v38  ;;  %v23273_v38 = vpack.c.bf16 %v22056_v5, %v22056_v5  ;;  %v23290_v5 = vpack.c.bf16 %v22059_v59, %v22059_v59  ;;  %v17406_v59 = vld [vmem:[%s25220_s9 + $0x1ec0] ss:$16 sps:$4 sm:$0xff]  }
 0x817   :  { %13307 = vmatpush2.bf16.msra.mxu1 %v17361_v3  ;;  %v17400_v3 = vld [vmem:[%s25220_s9 + $0x1ee0] ss:$16 sps:$4 sm:$0xff]  }
 0x818   :  { %13308 = vmatprep.subr.bf16.mxu1 %v17369_v20 }
 0x819   :  { %13348 = vmatpush2.bf16.msra.mxu0 %v17364_v25  ;;  %v17408_v25 = vld [vmem:[%s25220_s9 + $0x1ec4] ss:$16 sps:$4 sm:$0xff]  }
 0x81a   :  { %13349 = vmatprep.subr.bf16.mxu0 %v17372_v49 }
 0x81b   :  { %13309 = vmatpush2.bf16.msra.mxu1 %v17367_v24  ;;  %v17403_v24 = vld [vmem:[%s25220_s9 + $0x1cc0] ss:$16 sps:$4 sm:$0xff]  }
 0x81c   :  { %13310 = vmatprep.subr.bf16.mxu1 %v17375_v33 }
 0x81d   :  { %13350 = vmatpush2.bf16.msra.mxu0 %v17370_v34 }
 0x81e   :  { %13351 = vmatprep.subr.bf16.mxu0 %v17378_v26 }
 0x81f   :  { %13311 = vmatpush2.bf16.msra.mxu1 %v17373_v57 }
 0x820   :  { %13312 = vmatprep.subr.bf16.mxu1 %v17381_v8 }
 0x821   :  { %13352 = vmatpush2.bf16.msra.mxu0 %v17376_v30  ;;  %v17414_v30 = vld [vmem:[%s25220_s9 + $0x1ea4] ss:$16 sps:$4 sm:$0xff]  }
 0x822   :  { %13353 = vmatprep.subr.bf16.mxu0 %v17384_v62 }
 0x823   :  { %13313 = vmatpush2.bf16.msra.mxu1 %v17379_v21 }
 0x824   :  { %13314 = vmatprep.subr.bf16.mxu1 %v17387_v10 }
 0x825   :  { %13354 = vmatpush2.bf16.msra.mxu0 %v17382_v40  ;;  %v17417_v40 = vld [vmem:[%s25220_s9 + $0x1c84] ss:$16 sps:$4 sm:$0xff]  }
 0x826   :  { %13355 = vmatprep.subr.bf16.mxu0 %v17390_v19  ;;  %v17412_v19 = vld [vmem:[%s25220_s9 + $0x1ea0] ss:$16 sps:$4 sm:$0xff]  }
 0x827   :  { %13315 = vmatpush2.bf16.msra.mxu1 %v17385_v39 }
 0x828   :  { %13316 = vmatprep.subr.bf16.mxu1 %v17393_v13  ;;  %v17420_v13 = vld [vmem:[%s25220_s9 + $0x1e84] ss:$16 sps:$4 sm:$0xff]  }
 0x829   :  { %13356 = vmatpush2.bf16.msra.mxu0 %v17388_v36  ;;  %v17415_v36 = vld [vmem:[%s25220_s9 + $0x1c80] ss:$16 sps:$4 sm:$0xff]  }
 0x82a   :  { %13357 = vmatprep.subr.bf16.mxu0 %v17396_v7  ;;  %v17423_v7 = vld [vmem:[%s25220_s9 + $0x1c64] ss:$16 sps:$4 sm:$0xff]  }
 0x82b   :  { %13317 = vmatpush2.bf16.msra.mxu1 %v17391_v47  ;;  %v17418_v47 = vld [vmem:[%s25220_s9 + $0x1e80] ss:$16 sps:$4 sm:$0xff]  }
 0x82c   :  { %13368 = vmatprep.subr.bf16.mxu1 %v17399_v29  ;;  %v17426_v29 = vld [vmem:[%s25220_s9 + $0x1e64] ss:$16 sps:$4 sm:$0xff]  }
 0x82d   :  { %13358 = vmatpush2.bf16.msra.mxu0 %v17394_v51  ;;  %v17421_v51 = vld [vmem:[%s25220_s9 + $0x1c60] ss:$16 sps:$4 sm:$0xff]  }
 0x82e   :  { %v13074_v20 = vpop.f32.mrf.mxu1  ;;  %13319 = vmatmul.mubr.bf16.vlgmr.msra.gmra.mxu1 %v23266_v16  ;;  %13409 = vmatprep.subr.bf16.mxu0 %v17402_v50  ;;  %v17429_v50 = vld [vmem:[%s25220_s9 + $0x1c44] ss:$16 sps:$4 sm:$0xff]  }
 0x82f   :  { %v13075_v49 = vadd.f32 %v13074_v20, %v23081_v61  ;;  %13369 = vmatpush1.bf16.msra.mxu1 %v17397_v4  ;;  %13400 = vmatprep.mubr.bf16.mxu1 %v23273_v38  ;;  %v17411_v61 = vld [vmem:[%s25220_s9 + $0x1ca4] ss:$16 sps:$4 sm:$0xff]   ;;  %v17424_v4 = vld [vmem:[%s25220_s9 + $0x1e60] ss:$16 sps:$4 sm:$0xff]  }
 0x830   :  { %v13115_v1 = vpop.f32.mrf.mxu0  ;;  %13360 = vmatmul.mubr.bf16.vlgmr.msra.gmra.mxu0 %v23281_v41  ;;  %v13076_v33 = vpop.f32.mrf.mxu1  ;;  %13370 = vmatprep.subr.bf16.mxu1 %v17405_v42  ;;  %v17432_v42 = vld [vmem:[%s25220_s9 + $0x1e44] ss:$16 sps:$4 sm:$0xff]  }
 0x831   :  { %v23299_v34 = vadd.f32 %v13115_v1, %v13075_v49  ;;  %v13077_v26 = vadd.f32 %v13076_v33, %v23091_v17  ;;  %13410 = vmatpush1.bf16.msra.mxu0 %v17400_v3  ;;  %13441 = vmatprep.mubr.bf16.mxu0 %v23290_v5  ;;  %v17409_v17 = vld [vmem:[%s25220_s9 + $0x1ca0] ss:$16 sps:$4 sm:$0xff]   ;;  %v17435_v20 = vld [vmem:[%s25220_s9 + $0x1c24] ss:$16 sps:$4 sm:$0xff]  }
 0x832   :  { %v13117_v57 = vpop.f32.mrf.mxu0  ;;  %v13078_v8 = vpop.f32.mrf.mxu1  ;;  %13411 = vmatprep.subr.bf16.mxu0 %v17408_v25  ;;  %v17427_v3 = vld [vmem:[%s25220_s9 + $0x1c40] ss:$16 sps:$4 sm:$0xff]   ;;  %v17438_v49 = vld [vmem:[%s25220_s9 + $0x1e24] ss:$16 sps:$4 sm:$0xff]  }
 0x833   :  { %v23309_v62 = vadd.f32 %v13117_v57, %v13077_v26  ;;  %13371 = vmatpush1.bf16.msra.mxu1 %v17403_v24  ;;  %v17430_v25 = vld [vmem:[%s25220_s9 + $0x1e40] ss:$16 sps:$4 sm:$0xff]   ;;  %v17441_v1 = vld [vmem:[%s25220_s9 + $0x1c04] ss:$16 sps:$4 sm:$0xff]  }
 0x834   :  { %v13119_v21 = vpop.f32.mrf.mxu0  ;;  %v13079_v10 = vpop.f32.mrf.mxu1  ;;  %13372 = vmatprep.subr.bf16.mxu1 %v17411_v61  ;;  %v17433_v24 = vld [vmem:[%s25220_s9 + $0x1c20] ss:$16 sps:$4 sm:$0xff]   ;;  %v17444_v61 = vld [vmem:[%s25220_s9 + $0x1e04] ss:$16 sps:$4 sm:$0xff]  }
 0x835   :  { %13412 = vmatpush1.bf16.msra.mxu0 %v17406_v59  ;;  %v17436_v33 = vld [vmem:[%s25220_s9 + $0x1e20] ss:$16 sps:$4 sm:$0xff]   ;;  %v17447_v59 = vld [vmem:[%s25220_s9 + $0x1de4] ss:$16 sps:$4 sm:$0xff]  }
 0x836   :  { %v13120_v39 = vpop.f32.mrf.mxu0  ;;  %13413 = vmatprep.subr.bf16.mxu0 %v17414_v30  ;;  %v17439_v26 = vld [vmem:[%s25220_s9 + $0x1c00] ss:$16 sps:$4 sm:$0xff]   ;;  %v17450_v8 = vld [vmem:[%s25220_s9 + $0x1fe4] ss:$16 sps:$4 sm:$0xff]  }
 0x837   :  { %13373 = vmatpush1.bf16.msra.mxu1 %v17409_v17  ;;  %v17442_v57 = vld [vmem:[%s25220_s9 + $0x1e00] ss:$16 sps:$4 sm:$0xff]   ;;  %v17453_v17 = vld [vmem:[%s25220_s9 + $0x1dc4] ss:$16 sps:$4 sm:$0xff]  }
 0x838   :  { %13374 = vmatprep.subr.bf16.mxu1 %v17417_v40  ;;  %v17445_v30 = vld [vmem:[%s25220_s9 + $0x1de0] ss:$16 sps:$4 sm:$0xff]   ;;  %v17456_v10 = vld [vmem:[%s25220_s9 + $0x1fc4] ss:$16 sps:$4 sm:$0xff]  }
 0x839   :  { %13414 = vmatpush1.bf16.msra.mxu0 %v17412_v19  ;;  %v17448_v21 = vld [vmem:[%s25220_s9 + $0x1fe0] ss:$16 sps:$4 sm:$0xff]   ;;  %v17459_v19 = vld [vmem:[%s25220_s9 + $0x1da4] ss:$16 sps:$4 sm:$0xff]  }
 0x83a   :  { %13415 = vmatprep.subr.bf16.mxu0 %v17420_v13  ;;  %v17451_v40 = vld [vmem:[%s25220_s9 + $0x1dc0] ss:$16 sps:$4 sm:$0xff]   ;;  %v17462_v13 = vld [vmem:[%s25220_s9 + $0x1fa4] ss:$16 sps:$4 sm:$0xff]  }
 0x83b   :  { %13375 = vmatpush1.bf16.msra.mxu1 %v17415_v36  ;;  %v17454_v39 = vld [vmem:[%s25220_s9 + $0x1fc0] ss:$16 sps:$4 sm:$0xff]  }
 0x83c   :  { %13376 = vmatprep.subr.bf16.mxu1 %v17423_v7  ;;  %v17457_v36 = vld [vmem:[%s25220_s9 + $0x1da0] ss:$16 sps:$4 sm:$0xff]   ;;  %v17465_v7 = vld [vmem:[%s25220_s9 + $0x1d84] ss:$16 sps:$4 sm:$0xff]  }
 0x83d   :  { %13416 = vmatpush1.bf16.msra.mxu0 %v17418_v47  ;;  %v17460_v47 = vld [vmem:[%s25220_s9 + $0x1fa0] ss:$16 sps:$4 sm:$0xff]  }
 0x83e   :  { %13417 = vmatprep.subr.bf16.mxu0 %v17426_v29  ;;  %v17468_v29 = vld [vmem:[%s25220_s9 + $0x1f84] ss:$16 sps:$4 sm:$0xff]  }
 0x83f   :  { %13377 = vmatpush1.bf16.msra.mxu1 %v17421_v51  ;;  %v17463_v51 = vld [vmem:[%s25220_s9 + $0x1d80] ss:$16 sps:$4 sm:$0xff]  }
 0x840   :  { %13378 = vmatprep.subr.bf16.mxu1 %v17429_v50  ;;  %v17471_v50 = vld [vmem:[%s25220_s9 + $0x1d64] ss:$16 sps:$4 sm:$0xff]  }
 0x841   :  { %13418 = vmatpush1.bf16.msra.mxu0 %v17424_v4  ;;  %v17466_v4 = vld [vmem:[%s25220_s9 + $0x1f80] ss:$16 sps:$4 sm:$0xff]  }
 0x842   :  { %13419 = vmatprep.subr.bf16.mxu0 %v17432_v42  ;;  %v17474_v42 = vld [vmem:[%s25220_s9 + $0x1f64] ss:$16 sps:$4 sm:$0xff]  }
 0x843   :  { %13379 = vmatpush1.bf16.msra.mxu1 %v17427_v3  ;;  %v17469_v3 = vld [vmem:[%s25220_s9 + $0x1d60] ss:$16 sps:$4 sm:$0xff]  }
 0x844   :  { %13380 = vmatprep.subr.bf16.mxu1 %v17435_v20  ;;  %v17477_v20 = vld [vmem:[%s25220_s9 + $0x1d44] ss:$16 sps:$4 sm:$0xff]  }
 0x845   :  { %13420 = vmatpush1.bf16.msra.mxu0 %v17430_v25  ;;  %v17472_v25 = vld [vmem:[%s25220_s9 + $0x1f60] ss:$16 sps:$4 sm:$0xff]  }
 0x846   :  { %13421 = vmatprep.subr.bf16.mxu0 %v17438_v49  ;;  %v17480_v49 = vld [vmem:[%s25220_s9 + $0x1f44] ss:$16 sps:$4 sm:$0xff]  }
 0x847   :  { %13381 = vmatpush1.bf16.msra.mxu1 %v17433_v24  ;;  %v17475_v24 = vld [vmem:[%s25220_s9 + $0x1d40] ss:$16 sps:$4 sm:$0xff]  }
 0x848   :  { %13382 = vmatprep.subr.bf16.mxu1 %v17441_v1  ;;  %v17483_v1 = vld [vmem:[%s25220_s9 + $0x1d24] ss:$16 sps:$4 sm:$0xff]  }
 0x849   :  { %13422 = vmatpush1.bf16.msra.mxu0 %v17436_v33  ;;  %v17478_v33 = vld [vmem:[%s25220_s9 + $0x1f40] ss:$16 sps:$4 sm:$0xff]  }
 0x84a   :  { %13423 = vmatprep.subr.bf16.mxu0 %v17444_v61  ;;  %v17486_v61 = vld [vmem:[%s25220_s9 + $0x1f24] ss:$16 sps:$4 sm:$0xff]  }
 0x84b   :  { %13383 = vmatpush1.bf16.msra.mxu1 %v17439_v26  ;;  %v17481_v26 = vld [vmem:[%s25220_s9 + $0x1d20] ss:$16 sps:$4 sm:$0xff]  }
 0x84c   :  { %13384 = vmatprep.subr.bf16.mxu1 %v17447_v59  ;;  %v17489_v59 = vld [vmem:[%s25220_s9 + $0x1d04] ss:$16 sps:$4 sm:$0xff]  }
 0x84d   :  { %13424 = vmatpush1.bf16.msra.mxu0 %v17442_v57  ;;  %v17484_v57 = vld [vmem:[%s25220_s9 + $0x1f20] ss:$16 sps:$4 sm:$0xff]  }
 0x84e   :  { %13425 = vmatprep.subr.bf16.mxu0 %v17450_v8  ;;  %v17492_v8 = vld [vmem:[%s25220_s9 + $0x1f04] ss:$16 sps:$4 sm:$0xff]  }
 0x84f   :  { %13385 = vmatpush2.bf16.msra.mxu1 %v17445_v30  ;;  %v17487_v30 = vld [vmem:[%s25220_s9 + $0x1d00] ss:$16 sps:$4 sm:$0xff]  }
 0x850   :  { %13386 = vmatprep.subr.bf16.mxu1 %v17453_v17  ;;  %v17495_v17 = vld [vmem:[%s25220_s9 + $0xec] ss:$16 sps:$4 sm:$0xff]  }
 0x851   :  { %13426 = vmatpush2.bf16.msra.mxu0 %v17448_v21  ;;  %v17490_v21 = vld [vmem:[%s25220_s9 + $0x1f00] ss:$16 sps:$4 sm:$0xff]  }
 0x852   :  { %13427 = vmatprep.subr.bf16.mxu0 %v17456_v10  ;;  %v17498_v10 = vld [vmem:[%s25220_s9 + $0x2ec] ss:$16 sps:$4 sm:$0xff]  }
 0x853   :  { %13387 = vmatpush2.bf16.msra.mxu1 %v17451_v40  ;;  %v17493_v40 = vld [vmem:[%s25220_s9 + $0xe8] ss:$16 sps:$4 sm:$0xff]  }
 0x854   :  { %13388 = vmatprep.subr.bf16.mxu1 %v17459_v19  ;;  %v23484_v19 = vpack.c.bf16 %v22065_v45, %v22065_v45  ;;  %v17504_v45 = vld [vmem:[%s25220_s9 + $0x2cc] ss:$16 sps:$4 sm:$0xff]  }
 0x855   :  { %13428 = vmatpush2.bf16.msra.mxu0 %v17454_v39  ;;  %v17501_v39 = vld [vmem:[%s25220_s9 + $0xcc] ss:$16 sps:$4 sm:$0xff]  }
 0x856   :  { %13429 = vmatprep.subr.bf16.mxu0 %v17462_v13  ;;  %v17496_v13 = vld [vmem:[%s25220_s9 + $0x2e8] ss:$16 sps:$4 sm:$0xff]  }
 0x857   :  { %13389 = vmatpush2.bf16.msra.mxu1 %v17457_v36 }
 0x858   :  { %13390 = vmatprep.subr.bf16.mxu1 %v17465_v7  ;;  %v23495_v7 = vpack.c.bf16 %v22076_v54, %v22076_v54  ;;  %v17507_v54 = vld [vmem:[%s25220_s9 + $0xac] ss:$16 sps:$4 sm:$0xff]  }
 0x859   :  { %13430 = vmatpush2.bf16.msra.mxu0 %v17460_v47 }
 0x85a   :  { %13431 = vmatprep.subr.bf16.mxu0 %v17468_v29  ;;  %v17499_v29 = vld [vmem:[%s25220_s9 + $0xc8] ss:$16 sps:$4 sm:$0xff]  }
 0x85b   :  { %13391 = vmatpush2.bf16.msra.mxu1 %v17463_v51 }
 0x85c   :  { %13392 = vmatprep.subr.bf16.mxu1 %v17471_v50 }
 0x85d   :  { %13432 = vmatpush2.bf16.msra.mxu0 %v17466_v4 }
 0x85e   :  { %13433 = vmatprep.subr.bf16.mxu0 %v17474_v42 }
 0x85f   :  { %13393 = vmatpush2.bf16.msra.mxu1 %v17469_v3 }
 0x860   :  { %13394 = vmatprep.subr.bf16.mxu1 %v17477_v20  ;;  %v17510_v20 = vld [vmem:[%s25220_s9 + $0x2ac] ss:$16 sps:$4 sm:$0xff]  }
 0x861   :  { %13434 = vmatpush2.bf16.msra.mxu0 %v17472_v25 }
 0x862   :  { %13435 = vmatprep.subr.bf16.mxu0 %v17480_v49 }
 0x863   :  { %13395 = vmatpush2.bf16.msra.mxu1 %v17475_v24  ;;  %v17513_v24 = vld [vmem:[%s25220_s9 + $0x8c] ss:$16 sps:$4 sm:$0xff]  }
 0x864   :  { %13396 = vmatprep.subr.bf16.mxu1 %v17483_v1  ;;  %v17508_v1 = vld [vmem:[%s25220_s9 + $0x2a8] ss:$16 sps:$4 sm:$0xff]  }
 0x865   :  { %13436 = vmatpush2.bf16.msra.mxu0 %v17478_v33 }
 0x866   :  { %13437 = vmatprep.subr.bf16.mxu0 %v17486_v61  ;;  %v17516_v61 = vld [vmem:[%s25220_s9 + $0x28c] ss:$16 sps:$4 sm:$0xff]  }
 0x867   :  { %13397 = vmatpush2.bf16.msra.mxu1 %v17481_v26  ;;  %v17511_v26 = vld [vmem:[%s25220_s9 + $0x88] ss:$16 sps:$4 sm:$0xff]  }
 0x868   :  { %13398 = vmatprep.subr.bf16.mxu1 %v17489_v59  ;;  %v17519_v59 = vld [vmem:[%s25220_s9 + $0x6c] ss:$16 sps:$4 sm:$0xff]  }
 0x869   :  { %13438 = vmatpush2.bf16.msra.mxu0 %v17484_v57  ;;  %v17514_v57 = vld [vmem:[%s25220_s9 + $0x288] ss:$16 sps:$4 sm:$0xff]  }
 0x86a   :  { %13439 = vmatprep.subr.bf16.mxu0 %v17492_v8  ;;  %v17522_v8 = vld [vmem:[%s25220_s9 + $0x26c] ss:$16 sps:$4 sm:$0xff]  }
 0x86b   :  { %13399 = vmatpush2.bf16.msra.mxu1 %v17487_v30  ;;  %v17517_v30 = vld [vmem:[%s25220_s9 + $0x68] ss:$16 sps:$4 sm:$0xff]  }
 0x86c   :  { %13450 = vmatprep.subr.bf16.mxu1 %v17495_v17  ;;  %v17525_v17 = vld [vmem:[%s25220_s9 + $0x4c] ss:$16 sps:$4 sm:$0xff]  }
 0x86d   :  { %13440 = vmatpush2.bf16.msra.mxu0 %v17490_v21  ;;  %v17520_v21 = vld [vmem:[%s25220_s9 + $0x268] ss:$16 sps:$4 sm:$0xff]  }
 0x86e   :  { %v13156_v36 = vpop.f32.mrf.mxu1  ;;  %13401 = vmatmul.mubr.bf16.vlgmr.msra.gmra.mxu1 %v23484_v19  ;;  %13491 = vmatprep.subr.bf16.mxu0 %v17498_v10  ;;  %v17528_v10 = vld [vmem:[%s25220_s9 + $0x24c] ss:$16 sps:$4 sm:$0xff]  }
 0x86f   :  { %v13157_v47 = vadd.f32 %v13156_v36, %v23299_v34  ;;  %13451 = vmatpush1.bf16.msra.mxu1 %v17493_v40  ;;  %13482 = vmatprep.mubr.bf16.mxu1 %v21812_v60  ;;  %v17502_v60 = vld [vmem:[%s25220_s9 + $0x2c8] ss:$16 sps:$4 sm:$0xff]   ;;  %v17534_v36 = vld [vmem:[%s25220_s9 + $0x22c] ss:$16 sps:$4 sm:$0xff]  }
 0x870   :  { %v13197_v51 = vpop.f32.mrf.mxu0  ;;  %13442 = vmatmul.mubr.bf16.vlgmr.msra.gmra.mxu0 %v23495_v7  ;;  %v13158_v50 = vpop.f32.mrf.mxu1  ;;  %13452 = vmatprep.subr.bf16.mxu1 %v17501_v39  ;;  %v17523_v40 = vld [vmem:[%s25220_s9 + $0x48] ss:$16 sps:$4 sm:$0xff]   ;;  %v17531_v39 = vld [vmem:[%s25220_s9 + $0x2c] ss:$16 sps:$4 sm:$0xff]  }
 0x871   :  { %v23509_v4 = vadd.f32 %v13197_v51, %v13157_v47  ;;  %v13159_v34 = vadd.f32 %v13158_v50, %v23309_v62  ;;  %13492 = vmatpush1.bf16.msra.mxu0 %v17496_v13  ;;  %13523 = vmatprep.mubr.bf16.mxu0 %v21833_v52  ;;  %v17505_v62 = vld [vmem:[%s25220_s9 + $0xa8] ss:$16 sps:$4 sm:$0xff]   ;;  %v17537_v47 = vld [vmem:[%s25220_s9 + $0xc] ss:$16 sps:$4 sm:$0xff]  }
 0x872   :  { %v13199_v42 = vpop.f32.mrf.mxu0  ;;  %v13160_v3 = vpop.f32.mrf.mxu1  ;;  %13493 = vmatprep.subr.bf16.mxu0 %v17504_v45  ;;  %v17526_v13 = vld [vmem:[%s25220_s9 + $0x248] ss:$16 sps:$4 sm:$0xff]   ;;  %v17540_v51 = vld [vmem:[%s25220_s9 + $0x20c] ss:$16 sps:$4 sm:$0xff]  }
 0x873   :  { %v23519_v25 = vadd.f32 %v13199_v42, %v13159_v34  ;;  %13453 = vmatpush1.bf16.msra.mxu1 %v17499_v29  ;;  %v17529_v45 = vld [vmem:[%s25220_s9 + $0x28] ss:$16 sps:$4 sm:$0xff]   ;;  %v17549_v3 = vld [vmem:[%s25220_s9 + $0x1cc] ss:$16 sps:$4 sm:$0xff]  }
 0x874   :  { %v13201_v49 = vpop.f32.mrf.mxu0  ;;  %v13161_v52 = vpop.f32.mrf.mxu1  ;;  %13454 = vmatprep.subr.bf16.mxu1 %v17507_v54  ;;  %v17532_v29 = vld [vmem:[%s25220_s9 + $0x228] ss:$16 sps:$4 sm:$0xff]   ;;  %v17543_v54 = vld [vmem:[%s25220_s9 + $0x1ec] ss:$16 sps:$4 sm:$0xff]  }
 0x875   :  { %13494 = vmatpush1.bf16.msra.mxu0 %v17502_v60  ;;  %v17535_v50 = vld [vmem:[%s25220_s9 + $0x8] ss:$16 sps:$4 sm:$0xff]   ;;  %v17546_v60 = vld [vmem:[%s25220_s9 + $0x3ec] ss:$16 sps:$4 sm:$0xff]  }
 0x876   :  { %v13202_v33 = vpop.f32.mrf.mxu0  ;;  %13495 = vmatprep.subr.bf16.mxu0 %v17510_v20  ;;  %v17538_v34 = vld [vmem:[%s25220_s9 + $0x208] ss:$16 sps:$4 sm:$0xff]   ;;  %v17555_v52 = vld [vmem:[%s25220_s9 + $0x1ac] ss:$16 sps:$4 sm:$0xff]  }
 0x877   :  { %13455 = vmatpush1.bf16.msra.mxu1 %v17505_v62  ;;  %v17541_v42 = vld [vmem:[%s25220_s9 + $0x1e8] ss:$16 sps:$4 sm:$0xff]   ;;  %v17552_v62 = vld [vmem:[%s25220_s9 + $0x3cc] ss:$16 sps:$4 sm:$0xff]  }
 0x878   :  { %13456 = vmatprep.subr.bf16.mxu1 %v17513_v24  ;;  %v17544_v20 = vld [vmem:[%s25220_s9 + $0x3e8] ss:$16 sps:$4 sm:$0xff]  }
 0x879   :  { %13496 = vmatpush1.bf16.msra.mxu0 %v17508_v1  ;;  %v17547_v49 = vld [vmem:[%s25220_s9 + $0x1c8] ss:$16 sps:$4 sm:$0xff]   ;;  %v17558_v1 = vld [vmem:[%s25220_s9 + $0x3ac] ss:$16 sps:$4 sm:$0xff]  }
 0x87a   :  { %13497 = vmatprep.subr.bf16.mxu0 %v17516_v61  ;;  %v17550_v24 = vld [vmem:[%s25220_s9 + $0x3c8] ss:$16 sps:$4 sm:$0xff]   ;;  %v17561_v61 = vld [vmem:[%s25220_s9 + $0x18c] ss:$16 sps:$4 sm:$0xff]  }
 0x87b   :  { %13457 = vmatpush1.bf16.msra.mxu1 %v17511_v26  ;;  %v17553_v33 = vld [vmem:[%s25220_s9 + $0x1a8] ss:$16 sps:$4 sm:$0xff]  }
 0x87c   :  { %13458 = vmatprep.subr.bf16.mxu1 %v17519_v59  ;;  %v17556_v26 = vld [vmem:[%s25220_s9 + $0x3a8] ss:$16 sps:$4 sm:$0xff]   ;;  %v17564_v59 = vld [vmem:[%s25220_s9 + $0x38c] ss:$16 sps:$4 sm:$0xff]  }
 0x87d   :  { %13498 = vmatpush1.bf16.msra.mxu0 %v17514_v57  ;;  %v17559_v57 = vld [vmem:[%s25220_s9 + $0x188] ss:$16 sps:$4 sm:$0xff]  }
 0x87e   :  { %13499 = vmatprep.subr.bf16.mxu0 %v17522_v8  ;;  %v17567_v8 = vld [vmem:[%s25220_s9 + $0x16c] ss:$16 sps:$4 sm:$0xff]  }
 0x87f   :  { %13459 = vmatpush1.bf16.msra.mxu1 %v17517_v30  ;;  %v17562_v30 = vld [vmem:[%s25220_s9 + $0x388] ss:$16 sps:$4 sm:$0xff]  }
 0x880   :  { %13460 = vmatprep.subr.bf16.mxu1 %v17525_v17  ;;  %v17570_v17 = vld [vmem:[%s25220_s9 + $0x36c] ss:$16 sps:$4 sm:$0xff]  }
 0x881   :  { %13500 = vmatpush1.bf16.msra.mxu0 %v17520_v21  ;;  %v17565_v21 = vld [vmem:[%s25220_s9 + $0x168] ss:$16 sps:$4 sm:$0xff]  }
 0x882   :  { %13501 = vmatprep.subr.bf16.mxu0 %v17528_v10  ;;  %v17573_v10 = vld [vmem:[%s25220_s9 + $0x14c] ss:$16 sps:$4 sm:$0xff]  }
 0x883   :  { %13461 = vmatpush1.bf16.msra.mxu1 %v17523_v40  ;;  %v17568_v40 = vld [vmem:[%s25220_s9 + $0x368] ss:$16 sps:$4 sm:$0xff]  }
 0x884   :  { %13462 = vmatprep.subr.bf16.mxu1 %v17531_v39  ;;  %v17576_v39 = vld [vmem:[%s25220_s9 + $0x34c] ss:$16 sps:$4 sm:$0xff]  }
 0x885   :  { %13502 = vmatpush1.bf16.msra.mxu0 %v17526_v13  ;;  %v17571_v13 = vld [vmem:[%s25220_s9 + $0x148] ss:$16 sps:$4 sm:$0xff]  }
 0x886   :  { %13503 = vmatprep.subr.bf16.mxu0 %v17534_v36  ;;  %v17579_v36 = vld [vmem:[%s25220_s9 + $0x12c] ss:$16 sps:$4 sm:$0xff]  }
 0x887   :  { %13463 = vmatpush1.bf16.msra.mxu1 %v17529_v45  ;;  %v17574_v45 = vld [vmem:[%s25220_s9 + $0x348] ss:$16 sps:$4 sm:$0xff]  }
 0x888   :  { %13464 = vmatprep.subr.bf16.mxu1 %v17537_v47  ;;  %v17582_v47 = vld [vmem:[%s25220_s9 + $0x32c] ss:$16 sps:$4 sm:$0xff]  }
 0x889   :  { %13504 = vmatpush1.bf16.msra.mxu0 %v17532_v29  ;;  %v17577_v29 = vld [vmem:[%s25220_s9 + $0x128] ss:$16 sps:$4 sm:$0xff]  }
 0x88a   :  { %13505 = vmatprep.subr.bf16.mxu0 %v17540_v51  ;;  %v17585_v51 = vld [vmem:[%s25220_s9 + $0x10c] ss:$16 sps:$4 sm:$0xff]  }
 0x88b   :  { %13465 = vmatpush1.bf16.msra.mxu1 %v17535_v50  ;;  %v17580_v50 = vld [vmem:[%s25220_s9 + $0x328] ss:$16 sps:$4 sm:$0xff]  }
 0x88c   :  { %13466 = vmatprep.subr.bf16.mxu1 %v17543_v54  ;;  %v17588_v54 = vld [vmem:[%s25220_s9 + $0x30c] ss:$16 sps:$4 sm:$0xff]  }
 0x88d   :  { %13506 = vmatpush1.bf16.msra.mxu0 %v17538_v34  ;;  %v17583_v34 = vld [vmem:[%s25220_s9 + $0x108] ss:$16 sps:$4 sm:$0xff]  }
 0x88e   :  { %13507 = vmatprep.subr.bf16.mxu0 %v17546_v60  ;;  %v17591_v60 = vld [vmem:[%s25220_s9 + $0x4ec] ss:$16 sps:$4 sm:$0xff]  }
 0x88f   :  { %13467 = vmatpush2.bf16.msra.mxu1 %v17541_v42  ;;  %v17586_v42 = vld [vmem:[%s25220_s9 + $0x308] ss:$16 sps:$4 sm:$0xff]  }
 0x890   :  { %13468 = vmatprep.subr.bf16.mxu1 %v17549_v3  ;;  %v17594_v3 = vld [vmem:[%s25220_s9 + $0x6ec] ss:$16 sps:$4 sm:$0xff]  }
 0x891   :  { %13508 = vmatpush2.bf16.msra.mxu0 %v17544_v20  ;;  %v17589_v20 = vld [vmem:[%s25220_s9 + $0x4e8] ss:$16 sps:$4 sm:$0xff]  }
 0x892   :  { %13509 = vmatprep.subr.bf16.mxu0 %v17552_v62  ;;  %v17597_v62 = vld [vmem:[%s25220_s9 + $0x4cc] ss:$16 sps:$4 sm:$0xff]  }
 0x893   :  { %13469 = vmatpush2.bf16.msra.mxu1 %v17547_v49  ;;  %v17592_v49 = vld [vmem:[%s25220_s9 + $0x6e8] ss:$16 sps:$4 sm:$0xff]  }
 0x894   :  { %13470 = vmatprep.subr.bf16.mxu1 %v17555_v52 }
 0x895   :  { %13510 = vmatpush2.bf16.msra.mxu0 %v17550_v24  ;;  %v17600_v24 = vld [vmem:[%s25220_s9 + $0x6cc] ss:$16 sps:$4 sm:$0xff]  }
 0x896   :  { %13511 = vmatprep.subr.bf16.mxu0 %v17558_v1 }
 0x897   :  { %13471 = vmatpush2.bf16.msra.mxu1 %v17553_v33  ;;  %v17595_v33 = vld [vmem:[%s25220_s9 + $0x4c8] ss:$16 sps:$4 sm:$0xff]  }
 0x898   :  { %13472 = vmatprep.subr.bf16.mxu1 %v17561_v61 }
 0x899   :  { %13512 = vmatpush2.bf16.msra.mxu0 %v17556_v26 }
 0x89a   :  { %13513 = vmatprep.subr.bf16.mxu0 %v17564_v59 }
 0x89b   :  { %13473 = vmatpush2.bf16.msra.mxu1 %v17559_v57 }
 0x89c   :  { %13474 = vmatprep.subr.bf16.mxu1 %v17567_v8 }
 0x89d   :  { %13514 = vmatpush2.bf16.msra.mxu0 %v17562_v30 }
 0x89e   :  { %13515 = vmatprep.subr.bf16.mxu0 %v17570_v17 }
 0x89f   :  { %13475 = vmatpush2.bf16.msra.mxu1 %v17565_v21  ;;  %v17609_v21 = vld [vmem:[%s25220_s9 + $0x48c] ss:$16 sps:$4 sm:$0xff]  }
 0x8a0   :  { %13476 = vmatprep.subr.bf16.mxu1 %v17573_v10  ;;  %v17604_v10 = vld [vmem:[%s25220_s9 + $0x6a8] ss:$16 sps:$4 sm:$0xff]  }
 0x8a1   :  { %13516 = vmatpush2.bf16.msra.mxu0 %v17568_v40 }
 0x8a2   :  { %13517 = vmatprep.subr.bf16.mxu0 %v17576_v39  ;;  %v17612_v39 = vld [vmem:[%s25220_s9 + $0x68c] ss:$16 sps:$4 sm:$0xff]  }
 0x8a3   :  { %13477 = vmatpush2.bf16.msra.mxu1 %v17571_v13  ;;  %v17607_v13 = vld [vmem:[%s25220_s9 + $0x488] ss:$16 sps:$4 sm:$0xff]  }
 0x8a4   :  { %13478 = vmatprep.subr.bf16.mxu1 %v17579_v36  ;;  %v17615_v36 = vld [vmem:[%s25220_s9 + $0x46c] ss:$16 sps:$4 sm:$0xff]  }
 0x8a5   :  { %13518 = vmatpush2.bf16.msra.mxu0 %v17574_v45  ;;  %v17610_v45 = vld [vmem:[%s25220_s9 + $0x688] ss:$16 sps:$4 sm:$0xff]  }
 0x8a6   :  { %13519 = vmatprep.subr.bf16.mxu0 %v17582_v47  ;;  %v17618_v47 = vld [vmem:[%s25220_s9 + $0x66c] ss:$16 sps:$4 sm:$0xff]  }
 0x8a7   :  { %13479 = vmatpush2.bf16.msra.mxu1 %v17577_v29  ;;  %v17613_v29 = vld [vmem:[%s25220_s9 + $0x468] ss:$16 sps:$4 sm:$0xff]  }
 0x8a8   :  { %13480 = vmatprep.subr.bf16.mxu1 %v17585_v51  ;;  %v17621_v51 = vld [vmem:[%s25220_s9 + $0x44c] ss:$16 sps:$4 sm:$0xff]  }
 0x8a9   :  { %13520 = vmatpush2.bf16.msra.mxu0 %v17580_v50  ;;  %v17616_v50 = vld [vmem:[%s25220_s9 + $0x668] ss:$16 sps:$4 sm:$0xff]  }
 0x8aa   :  { %13521 = vmatprep.subr.bf16.mxu0 %v17588_v54  ;;  %v17624_v54 = vld [vmem:[%s25220_s9 + $0x64c] ss:$16 sps:$4 sm:$0xff]  }
 0x8ab   :  { %13481 = vmatpush2.bf16.msra.mxu1 %v17583_v34  ;;  %v17619_v34 = vld [vmem:[%s25220_s9 + $0x448] ss:$16 sps:$4 sm:$0xff]  }
 0x8ac   :  { %13532 = vmatprep.subr.bf16.mxu1 %v17591_v60  ;;  %v17627_v60 = vld [vmem:[%s25220_s9 + $0x42c] ss:$16 sps:$4 sm:$0xff]  }
 0x8ad   :  { %13522 = vmatpush2.bf16.msra.mxu0 %v17586_v42  ;;  %v17622_v42 = vld [vmem:[%s25220_s9 + $0x648] ss:$16 sps:$4 sm:$0xff]  }
 0x8ae   :  { %v13238_v52 = vpop.f32.mrf.mxu1  ;;  %13483 = vmatmul.mubr.bf16.vlgmr.msra.gmra.mxu1 %v21831_v55  ;;  %13573 = vmatprep.subr.bf16.mxu0 %v17594_v3  ;;  %v17603_v55 = vld [vmem:[%s25220_s9 + $0x4ac] ss:$16 sps:$4 sm:$0xff]  }
 0x8af   :  { %v13239_v1 = vadd.f32 %v13238_v52, %v23509_v4  ;;  %13533 = vmatpush1.bf16.msra.mxu1 %v17589_v20  ;;  %13564 = vmatprep.mubr.bf16.mxu1 %v21845_v63  ;;  %v17598_v63 = vld [vmem:[%s25220_s9 + $0x6c8] ss:$16 sps:$4 sm:$0xff]   ;;  %v17630_v3 = vld [vmem:[%s25220_s9 + $0x62c] ss:$16 sps:$4 sm:$0xff]  }
 0x8b0   :  { %v13279_v61 = vpop.f32.mrf.mxu0  ;;  %13524 = vmatmul.mubr.bf16.vlgmr.msra.gmra.mxu0 %v21838_v18  ;;  %v13240_v26 = vpop.f32.mrf.mxu1  ;;  %13534 = vmatprep.subr.bf16.mxu1 %v17597_v62  ;;  %v17606_v18 = vld [vmem:[%s25220_s9 + $0x6ac] ss:$16 sps:$4 sm:$0xff]   ;;  %v17625_v20 = vld [vmem:[%s25220_s9 + $0x428] ss:$16 sps:$4 sm:$0xff]  }
 0x8b1   :  { %v23711_v59 = vadd.f32 %v13279_v61, %v13239_v1  ;;  %v13241_v4 = vadd.f32 %v13240_v26, %v23519_v25  ;;  %13574 = vmatpush1.bf16.msra.mxu0 %v17592_v49  ;;  %13605 = vmatprep.mubr.bf16.mxu0 %v21854_v14  ;;  %v17601_v25 = vld [vmem:[%s25220_s9 + $0x4a8] ss:$16 sps:$4 sm:$0xff]   ;;  %v17633_v62 = vld [vmem:[%s25220_s9 + $0x40c] ss:$16 sps:$4 sm:$0xff]  }
 0x8b2   :  { %v13281_v57 = vpop.f32.mrf.mxu0  ;;  %v13242_v8 = vpop.f32.mrf.mxu1  ;;  %13575 = vmatprep.subr.bf16.mxu0 %v17600_v24  ;;  %v17628_v49 = vld [vmem:[%s25220_s9 + $0x628] ss:$16 sps:$4 sm:$0xff]   ;;  %v17636_v52 = vld [vmem:[%s25220_s9 + $0x60c] ss:$16 sps:$4 sm:$0xff]  }
 0x8b3   :  { %v23721_v30 = vadd.f32 %v13281_v57, %v13241_v4  ;;  %13535 = vmatpush1.bf16.msra.mxu1 %v17595_v33  ;;  %v17631_v24 = vld [vmem:[%s25220_s9 + $0x408] ss:$16 sps:$4 sm:$0xff]   ;;  %v17639_v1 = vld [vmem:[%s25220_s9 + $0x5ec] ss:$16 sps:$4 sm:$0xff]  }
 0x8b4   :  { %v13283_v17 = vpop.f32.mrf.mxu0  ;;  %v13243_v14 = vpop.f32.mrf.mxu1  ;;  %13536 = vmatprep.subr.bf16.mxu1 %v17603_v55  ;;  %v17634_v33 = vld [vmem:[%s25220_s9 + $0x608] ss:$16 sps:$4 sm:$0xff]   ;;  %v17642_v61 = vld [vmem:[%s25220_s9 + $0x7ec] ss:$16 sps:$4 sm:$0xff]  }
 0x8b5   :  { %13576 = vmatpush1.bf16.msra.mxu0 %v17598_v63  ;;  %v17637_v26 = vld [vmem:[%s25220_s9 + $0x5e8] ss:$16 sps:$4 sm:$0xff]   ;;  %v17645_v55 = vld [vmem:[%s25220_s9 + $0x5cc] ss:$16 sps:$4 sm:$0xff]  }
 0x8b6   :  { %v13284_v40 = vpop.f32.mrf.mxu0  ;;  %13577 = vmatprep.subr.bf16.mxu0 %v17606_v18  ;;  %v17640_v4 = vld [vmem:[%s25220_s9 + $0x7e8] ss:$16 sps:$4 sm:$0xff]   ;;  %v17648_v63 = vld [vmem:[%s25220_s9 + $0x7cc] ss:$16 sps:$4 sm:$0xff]  }
 0x8b7   :  { %13537 = vmatpush1.bf16.msra.mxu1 %v17601_v25  ;;  %v17643_v57 = vld [vmem:[%s25220_s9 + $0x5c8] ss:$16 sps:$4 sm:$0xff]   ;;  %v17651_v8 = vld [vmem:[%s25220_s9 + $0x5ac] ss:$16 sps:$4 sm:$0xff]  }
 0x8b8   :  { %13538 = vmatprep.subr.bf16.mxu1 %v17609_v21  ;;  %v17646_v18 = vld [vmem:[%s25220_s9 + $0x7c8] ss:$16 sps:$4 sm:$0xff]   ;;  %v17654_v25 = vld [vmem:[%s25220_s9 + $0x7ac] ss:$16 sps:$4 sm:$0xff]  }
 0x8b9   :  { %13578 = vmatpush1.bf16.msra.mxu0 %v17604_v10  ;;  %v17649_v17 = vld [vmem:[%s25220_s9 + $0x5a8] ss:$16 sps:$4 sm:$0xff]   ;;  %v17657_v14 = vld [vmem:[%s25220_s9 + $0x58c] ss:$16 sps:$4 sm:$0xff]  }
 0x8ba   :  { %13579 = vmatprep.subr.bf16.mxu0 %v17612_v39  ;;  %v17652_v21 = vld [vmem:[%s25220_s9 + $0x7a8] ss:$16 sps:$4 sm:$0xff]   ;;  %v17660_v10 = vld [vmem:[%s25220_s9 + $0x78c] ss:$16 sps:$4 sm:$0xff]  }
 0x8bb   :  { %13539 = vmatpush1.bf16.msra.mxu1 %v17607_v13  ;;  %v17655_v40 = vld [vmem:[%s25220_s9 + $0x588] ss:$16 sps:$4 sm:$0xff]   ;;  %v17663_v39 = vld [vmem:[%s25220_s9 + $0x56c] ss:$16 sps:$4 sm:$0xff]  }
 0x8bc   :  { %13540 = vmatprep.subr.bf16.mxu1 %v17615_v36  ;;  %v17658_v13 = vld [vmem:[%s25220_s9 + $0x788] ss:$16 sps:$4 sm:$0xff]   ;;  %v17666_v36 = vld [vmem:[%s25220_s9 + $0x76c] ss:$16 sps:$4 sm:$0xff]  }
 0x8bd   :  { %13580 = vmatpush1.bf16.msra.mxu0 %v17610_v45  ;;  %v17661_v45 = vld [vmem:[%s25220_s9 + $0x568] ss:$16 sps:$4 sm:$0xff]  }
 0x8be   :  { %13581 = vmatprep.subr.bf16.mxu0 %v17618_v47  ;;  %v17669_v47 = vld [vmem:[%s25220_s9 + $0x54c] ss:$16 sps:$4 sm:$0xff]  }
 0x8bf   :  { %13541 = vmatpush1.bf16.msra.mxu1 %v17613_v29  ;;  %v17664_v29 = vld [vmem:[%s25220_s9 + $0x768] ss:$16 sps:$4 sm:$0xff]  }
 0x8c0   :  { %13542 = vmatprep.subr.bf16.mxu1 %v17621_v51  ;;  %v17672_v51 = vld [vmem:[%s25220_s9 + $0x74c] ss:$16 sps:$4 sm:$0xff]  }
 0x8c1   :  { %13582 = vmatpush1.bf16.msra.mxu0 %v17616_v50  ;;  %v17667_v50 = vld [vmem:[%s25220_s9 + $0x548] ss:$16 sps:$4 sm:$0xff]  }
 0x8c2   :  { %13583 = vmatprep.subr.bf16.mxu0 %v17624_v54  ;;  %v17675_v54 = vld [vmem:[%s25220_s9 + $0x52c] ss:$16 sps:$4 sm:$0xff]  }
 0x8c3   :  { %13543 = vmatpush1.bf16.msra.mxu1 %v17619_v34  ;;  %v17670_v34 = vld [vmem:[%s25220_s9 + $0x748] ss:$16 sps:$4 sm:$0xff]  }
 0x8c4   :  { %13544 = vmatprep.subr.bf16.mxu1 %v17627_v60  ;;  %v17678_v60 = vld [vmem:[%s25220_s9 + $0x72c] ss:$16 sps:$4 sm:$0xff]  }
 0x8c5   :  { %13584 = vmatpush1.bf16.msra.mxu0 %v17622_v42  ;;  %v17673_v42 = vld [vmem:[%s25220_s9 + $0x528] ss:$16 sps:$4 sm:$0xff]  }
 0x8c6   :  { %13585 = vmatprep.subr.bf16.mxu0 %v17630_v3  ;;  %v17681_v3 = vld [vmem:[%s25220_s9 + $0x50c] ss:$16 sps:$4 sm:$0xff]  }
 0x8c7   :  { %13545 = vmatpush1.bf16.msra.mxu1 %v17625_v20  ;;  %v17676_v20 = vld [vmem:[%s25220_s9 + $0x728] ss:$16 sps:$4 sm:$0xff]  }
 0x8c8   :  { %13546 = vmatprep.subr.bf16.mxu1 %v17633_v62  ;;  %v17684_v62 = vld [vmem:[%s25220_s9 + $0x70c] ss:$16 sps:$4 sm:$0xff]  }
 0x8c9   :  { %13586 = vmatpush1.bf16.msra.mxu0 %v17628_v49  ;;  %v17679_v49 = vld [vmem:[%s25220_s9 + $0x508] ss:$16 sps:$4 sm:$0xff]  }
 0x8ca   :  { %13587 = vmatprep.subr.bf16.mxu0 %v17636_v52  ;;  %v17687_v52 = vld [vmem:[%s25220_s9 + $0x8ec] ss:$16 sps:$4 sm:$0xff]  }
 0x8cb   :  { %13547 = vmatpush1.bf16.msra.mxu1 %v17631_v24  ;;  %v17682_v24 = vld [vmem:[%s25220_s9 + $0x708] ss:$16 sps:$4 sm:$0xff]  }
 0x8cc   :  { %13548 = vmatprep.subr.bf16.mxu1 %v17639_v1  ;;  %v17690_v1 = vld [vmem:[%s25220_s9 + $0xaec] ss:$16 sps:$4 sm:$0xff]  }
 0x8cd   :  { %13588 = vmatpush1.bf16.msra.mxu0 %v17634_v33  ;;  %v17685_v33 = vld [vmem:[%s25220_s9 + $0x8e8] ss:$16 sps:$4 sm:$0xff]  }
 0x8ce   :  { %13589 = vmatprep.subr.bf16.mxu0 %v17642_v61  ;;  %v17693_v61 = vld [vmem:[%s25220_s9 + $0x8cc] ss:$16 sps:$4 sm:$0xff]  }
 0x8cf   :  { %13549 = vmatpush2.bf16.msra.mxu1 %v17637_v26  ;;  %v17688_v26 = vld [vmem:[%s25220_s9 + $0xae8] ss:$16 sps:$4 sm:$0xff]  }
 0x8d0   :  { %13550 = vmatprep.subr.bf16.mxu1 %v17645_v55 }
 0x8d1   :  { %13590 = vmatpush2.bf16.msra.mxu0 %v17640_v4  ;;  %v17696_v4 = vld [vmem:[%s25220_s9 + $0xacc] ss:$16 sps:$4 sm:$0xff]  }
 0x8d2   :  { %13591 = vmatprep.subr.bf16.mxu0 %v17648_v63 }
 0x8d3   :  { %13551 = vmatpush2.bf16.msra.mxu1 %v17643_v57  ;;  %v17691_v57 = vld [vmem:[%s25220_s9 + $0x8c8] ss:$16 sps:$4 sm:$0xff]  }
 0x8d4   :  { %13552 = vmatprep.subr.bf16.mxu1 %v17651_v8 }
 0x8d5   :  { %13592 = vmatpush2.bf16.msra.mxu0 %v17646_v18 }
 0x8d6   :  { %13593 = vmatprep.subr.bf16.mxu0 %v17654_v25 }
 0x8d7   :  { %13553 = vmatpush2.bf16.msra.mxu1 %v17649_v17 }
 0x8d8   :  { %13554 = vmatprep.subr.bf16.mxu1 %v17657_v14 }
 0x8d9   :  { %13594 = vmatpush2.bf16.msra.mxu0 %v17652_v21 }
 0x8da   :  { %13595 = vmatprep.subr.bf16.mxu0 %v17660_v10 }
 0x8db   :  { %13555 = vmatpush2.bf16.msra.mxu1 %v17655_v40  ;;  %v17705_v40 = vld [vmem:[%s25220_s9 + $0x88c] ss:$16 sps:$4 sm:$0xff]  }
 0x8dc   :  { %13556 = vmatprep.subr.bf16.mxu1 %v17663_v39  ;;  %v17700_v39 = vld [vmem:[%s25220_s9 + $0xaa8] ss:$16 sps:$4 sm:$0xff]  }
 0x8dd   :  { %13596 = vmatpush2.bf16.msra.mxu0 %v17658_v13 }
 0x8de   :  { %13597 = vmatprep.subr.bf16.mxu0 %v17666_v36  ;;  %v17708_v36 = vld [vmem:[%s25220_s9 + $0xa8c] ss:$16 sps:$4 sm:$0xff]  }
 0x8df   :  { %13557 = vmatpush2.bf16.msra.mxu1 %v17661_v45  ;;  %v17703_v45 = vld [vmem:[%s25220_s9 + $0x888] ss:$16 sps:$4 sm:$0xff]  }
 0x8e0   :  { %13558 = vmatprep.subr.bf16.mxu1 %v17669_v47  ;;  %v17711_v47 = vld [vmem:[%s25220_s9 + $0x86c] ss:$16 sps:$4 sm:$0xff]  }
 0x8e1   :  { %13598 = vmatpush2.bf16.msra.mxu0 %v17664_v29  ;;  %v17706_v29 = vld [vmem:[%s25220_s9 + $0xa88] ss:$16 sps:$4 sm:$0xff]  }
 0x8e2   :  { %13599 = vmatprep.subr.bf16.mxu0 %v17672_v51  ;;  %v17714_v51 = vld [vmem:[%s25220_s9 + $0xa6c] ss:$16 sps:$4 sm:$0xff]  }
 0x8e3   :  { %13559 = vmatpush2.bf16.msra.mxu1 %v17667_v50  ;;  %v17709_v50 = vld [vmem:[%s25220_s9 + $0x868] ss:$16 sps:$4 sm:$0xff]  }
 0x8e4   :  { %13560 = vmatprep.subr.bf16.mxu1 %v17675_v54  ;;  %v17717_v54 = vld [vmem:[%s25220_s9 + $0x84c] ss:$16 sps:$4 sm:$0xff]  }
 0x8e5   :  { %13600 = vmatpush2.bf16.msra.mxu0 %v17670_v34  ;;  %v17712_v34 = vld [vmem:[%s25220_s9 + $0xa68] ss:$16 sps:$4 sm:$0xff]  }
 0x8e6   :  { %13601 = vmatprep.subr.bf16.mxu0 %v17678_v60  ;;  %v17720_v60 = vld [vmem:[%s25220_s9 + $0xa4c] ss:$16 sps:$4 sm:$0xff]  }
 0x8e7   :  { %13561 = vmatpush2.bf16.msra.mxu1 %v17673_v42  ;;  %v17715_v42 = vld [vmem:[%s25220_s9 + $0x848] ss:$16 sps:$4 sm:$0xff]  }
 0x8e8   :  { %13562 = vmatprep.subr.bf16.mxu1 %v17681_v3  ;;  %v17723_v3 = vld [vmem:[%s25220_s9 + $0x82c] ss:$16 sps:$4 sm:$0xff]  }
 0x8e9   :  { %13602 = vmatpush2.bf16.msra.mxu0 %v17676_v20  ;;  %v17718_v20 = vld [vmem:[%s25220_s9 + $0xa48] ss:$16 sps:$4 sm:$0xff]  }
 0x8ea   :  { %13603 = vmatprep.subr.bf16.mxu0 %v17684_v62  ;;  %v17726_v62 = vld [vmem:[%s25220_s9 + $0xa2c] ss:$16 sps:$4 sm:$0xff]  }
 0x8eb   :  { %13563 = vmatpush2.bf16.msra.mxu1 %v17679_v49  ;;  %v17721_v49 = vld [vmem:[%s25220_s9 + $0x828] ss:$16 sps:$4 sm:$0xff]  }
 0x8ec   :  { %13614 = vmatprep.subr.bf16.mxu1 %v17687_v52  ;;  %v17729_v52 = vld [vmem:[%s25220_s9 + $0x80c] ss:$16 sps:$4 sm:$0xff]  }
 0x8ed   :  { %13604 = vmatpush2.bf16.msra.mxu0 %v17682_v24  ;;  %v17724_v24 = vld [vmem:[%s25220_s9 + $0xa28] ss:$16 sps:$4 sm:$0xff]  }
 0x8ee   :  { %v13320_v55 = vpop.f32.mrf.mxu1  ;;  %13565 = vmatmul.mubr.bf16.vlgmr.msra.gmra.mxu1 %v22182_v9  ;;  %13655 = vmatprep.subr.bf16.mxu0 %v17690_v1  ;;  %v17699_v9 = vld [vmem:[%s25220_s9 + $0x8ac] ss:$16 sps:$4 sm:$0xff]  }
 0x8ef   :  { %v13321_v63 = vadd.f32 %v13320_v55, %v23711_v59  ;;  %13615 = vmatpush1.bf16.msra.mxu1 %v17685_v33  ;;  %13646 = vmatprep.mubr.bf16.mxu1 %v22189_v6  ;;  %v17694_v6 = vld [vmem:[%s25220_s9 + $0xac8] ss:$16 sps:$4 sm:$0xff]   ;;  %v17732_v1 = vld [vmem:[%s25220_s9 + $0xa0c] ss:$16 sps:$4 sm:$0xff]  }
 0x8f0   :  { %v13361_v8 = vpop.f32.mrf.mxu0  ;;  %13606 = vmatmul.mubr.bf16.vlgmr.msra.gmra.mxu0 %v22197_v32  ;;  %v13322_v18 = vpop.f32.mrf.mxu1  ;;  %13616 = vmatprep.subr.bf16.mxu1 %v17693_v61  ;;  %v17702_v32 = vld [vmem:[%s25220_s9 + $0xaac] ss:$16 sps:$4 sm:$0xff]   ;;  %v17727_v33 = vld [vmem:[%s25220_s9 + $0x808] ss:$16 sps:$4 sm:$0xff]  }
 0x8f1   :  { %v23913_v25 = vadd.f32 %v13361_v8, %v13321_v63  ;;  %v13323_v59 = vadd.f32 %v13322_v18, %v23721_v30  ;;  %13656 = vmatpush1.bf16.msra.mxu0 %v17688_v26  ;;  %13687 = vmatprep.mubr.bf16.mxu0 %v22205_v48  ;;  %v17697_v30 = vld [vmem:[%s25220_s9 + $0x8a8] ss:$16 sps:$4 sm:$0xff]   ;;  %v17735_v61 = vld [vmem:[%s25220_s9 + $0x9ec] ss:$16 sps:$4 sm:$0xff]  }
 0x8f2   :  { %v13363_v17 = vpop.f32.mrf.mxu0  ;;  %v13324_v14 = vpop.f32.mrf.mxu1  ;;  %13657 = vmatprep.subr.bf16.mxu0 %v17696_v4  ;;  %v17730_v26 = vld [vmem:[%s25220_s9 + $0xa08] ss:$16 sps:$4 sm:$0xff]   ;;  %v17738_v55 = vld [vmem:[%s25220_s9 + $0xbec] ss:$16 sps:$4 sm:$0xff]  }
 0x8f3   :  { %v23923_v21 = vadd.f32 %v13363_v17, %v13323_v59  ;;  %13617 = vmatpush1.bf16.msra.mxu1 %v17691_v57  ;;  %v17733_v4 = vld [vmem:[%s25220_s9 + $0x9e8] ss:$16 sps:$4 sm:$0xff]   ;;  %v17741_v63 = vld [vmem:[%s25220_s9 + $0x9cc] ss:$16 sps:$4 sm:$0xff]  }
 0x8f4   :  { %v13365_v10 = vpop.f32.mrf.mxu0  ;;  %v13325_v48 = vpop.f32.mrf.mxu1  ;;  %13618 = vmatprep.subr.bf16.mxu1 %v17699_v9  ;;  %v17736_v57 = vld [vmem:[%s25220_s9 + $0xbe8] ss:$16 sps:$4 sm:$0xff]   ;;  %v17744_v8 = vld [vmem:[%s25220_s9 + $0xbcc] ss:$16 sps:$4 sm:$0xff]  }
 0x8f5   :  { %13658 = vmatpush1.bf16.msra.mxu0 %v17694_v6  ;;  %v17739_v18 = vld [vmem:[%s25220_s9 + $0x9c8] ss:$16 sps:$4 sm:$0xff]   ;;  %v17747_v9 = vld [vmem:[%s25220_s9 + $0x9ac] ss:$16 sps:$4 sm:$0xff]  }
 0x8f6   :  { %v13366_v13 = vpop.f32.mrf.mxu0  ;;  %13659 = vmatprep.subr.bf16.mxu0 %v17702_v32  ;;  %v17742_v59 = vld [vmem:[%s25220_s9 + $0xbc8] ss:$16 sps:$4 sm:$0xff]   ;;  %v17750_v6 = vld [vmem:[%s25220_s9 + $0xbac] ss:$16 sps:$4 sm:$0xff]  }
 0x8f7   :  { %13619 = vmatpush1.bf16.msra.mxu1 %v17697_v30  ;;  %v17745_v17 = vld [vmem:[%s25220_s9 + $0x9a8] ss:$16 sps:$4 sm:$0xff]   ;;  %v17753_v14 = vld [vmem:[%s25220_s9 + $0x98c] ss:$16 sps:$4 sm:$0xff]  }
 0x8f8   :  { %13620 = vmatprep.subr.bf16.mxu1 %v17705_v40  ;;  %v17748_v32 = vld [vmem:[%s25220_s9 + $0xba8] ss:$16 sps:$4 sm:$0xff]   ;;  %v17756_v30 = vld [vmem:[%s25220_s9 + $0xb8c] ss:$16 sps:$4 sm:$0xff]  }
 0x8f9   :  { %13660 = vmatpush1.bf16.msra.mxu0 %v17700_v39  ;;  %v17751_v10 = vld [vmem:[%s25220_s9 + $0x988] ss:$16 sps:$4 sm:$0xff]   ;;  %v17759_v48 = vld [vmem:[%s25220_s9 + $0x96c] ss:$16 sps:$4 sm:$0xff]  }
 0x8fa   :  { %13661 = vmatprep.subr.bf16.mxu0 %v17708_v36  ;;  %v17754_v40 = vld [vmem:[%s25220_s9 + $0xb88] ss:$16 sps:$4 sm:$0xff]   ;;  %v17762_v39 = vld [vmem:[%s25220_s9 + $0xb6c] ss:$16 sps:$4 sm:$0xff]  }
 0x8fb   :  { %13621 = vmatpush1.bf16.msra.mxu1 %v17703_v45  ;;  %v17757_v13 = vld [vmem:[%s25220_s9 + $0x968] ss:$16 sps:$4 sm:$0xff]   ;;  %v17765_v36 = vld [vmem:[%s25220_s9 + $0x94c] ss:$16 sps:$4 sm:$0xff]  }
 0x8fc   :  { %13622 = vmatprep.subr.bf16.mxu1 %v17711_v47  ;;  %v17760_v45 = vld [vmem:[%s25220_s9 + $0xb68] ss:$16 sps:$4 sm:$0xff]   ;;  %v17768_v47 = vld [vmem:[%s25220_s9 + $0xb4c] ss:$16 sps:$4 sm:$0xff]  }
 0x8fd   :  { %13662 = vmatpush1.bf16.msra.mxu0 %v17706_v29  ;;  %v17763_v29 = vld [vmem:[%s25220_s9 + $0x948] ss:$16 sps:$4 sm:$0xff]  }
 0x8fe   :  { %13663 = vmatprep.subr.bf16.mxu0 %v17714_v51  ;;  %v17771_v51 = vld [vmem:[%s25220_s9 + $0x92c] ss:$16 sps:$4 sm:$0xff]  }
 0x8ff   :  { %13623 = vmatpush1.bf16.msra.mxu1 %v17709_v50  ;;  %v17766_v50 = vld [vmem:[%s25220_s9 + $0xb48] ss:$16 sps:$4 sm:$0xff]  }
 0x900   :  { %13624 = vmatprep.subr.bf16.mxu1 %v17717_v54  ;;  %v17774_v54 = vld [vmem:[%s25220_s9 + $0xb2c] ss:$16 sps:$4 sm:$0xff]  }
 0x901   :  { %13664 = vmatpush1.bf16.msra.mxu0 %v17712_v34  ;;  %v17769_v34 = vld [vmem:[%s25220_s9 + $0x928] ss:$16 sps:$4 sm:$0xff]  }
 0x902   :  { %13665 = vmatprep.subr.bf16.mxu0 %v17720_v60  ;;  %v17777_v60 = vld [vmem:[%s25220_s9 + $0x90c] ss:$16 sps:$4 sm:$0xff]  }
 0x903   :  { %13625 = vmatpush1.bf16.msra.mxu1 %v17715_v42  ;;  %v17772_v42 = vld [vmem:[%s25220_s9 + $0xb28] ss:$16 sps:$4 sm:$0xff]  }
 0x904   :  { %13626 = vmatprep.subr.bf16.mxu1 %v17723_v3  ;;  %v17780_v3 = vld [vmem:[%s25220_s9 + $0xb0c] ss:$16 sps:$4 sm:$0xff]  }
 0x905   :  { %13666 = vmatpush1.bf16.msra.mxu0 %v17718_v20  ;;  %v17775_v20 = vld [vmem:[%s25220_s9 + $0x908] ss:$16 sps:$4 sm:$0xff]  }
 0x906   :  { %13667 = vmatprep.subr.bf16.mxu0 %v17726_v62  ;;  %v17783_v62 = vld [vmem:[%s25220_s9 + $0xcec] ss:$16 sps:$4 sm:$0xff]  }
 0x907   :  { %13627 = vmatpush1.bf16.msra.mxu1 %v17721_v49  ;;  %v17778_v49 = vld [vmem:[%s25220_s9 + $0xb08] ss:$16 sps:$4 sm:$0xff]  }
 0x908   :  { %13628 = vmatprep.subr.bf16.mxu1 %v17729_v52  ;;  %v17786_v52 = vld [vmem:[%s25220_s9 + $0xeec] ss:$16 sps:$4 sm:$0xff]  }
 0x909   :  { %13668 = vmatpush1.bf16.msra.mxu0 %v17724_v24  ;;  %v17781_v24 = vld [vmem:[%s25220_s9 + $0xce8] ss:$16 sps:$4 sm:$0xff]  }
 0x90a   :  { %13669 = vmatprep.subr.bf16.mxu0 %v17732_v1  ;;  %v17789_v1 = vld [vmem:[%s25220_s9 + $0xccc] ss:$16 sps:$4 sm:$0xff]  }
 0x90b   :  { %13629 = vmatpush1.bf16.msra.mxu1 %v17727_v33  ;;  %v17784_v33 = vld [vmem:[%s25220_s9 + $0xee8] ss:$16 sps:$4 sm:$0xff]  }
 0x90c   :  { %13630 = vmatprep.subr.bf16.mxu1 %v17735_v61 }
 0x90d   :  { %13670 = vmatpush1.bf16.msra.mxu0 %v17730_v26  ;;  %v17792_v26 = vld [vmem:[%s25220_s9 + $0xecc] ss:$16 sps:$4 sm:$0xff]  }
 0x90e   :  { %13671 = vmatprep.subr.bf16.mxu0 %v17738_v55 }
 0x90f   :  { %13631 = vmatpush2.bf16.msra.mxu1 %v17733_v4  ;;  %v17787_v4 = vld [vmem:[%s25220_s9 + $0xcc8] ss:$16 sps:$4 sm:$0xff]  }
 0x910   :  { %13632 = vmatprep.subr.bf16.mxu1 %v17741_v63 }
 0x911   :  { %13672 = vmatpush2.bf16.msra.mxu0 %v17736_v57 }
 0x912   :  { %13673 = vmatprep.subr.bf16.mxu0 %v17744_v8 }
 0x913   :  { %13633 = vmatpush2.bf16.msra.mxu1 %v17739_v18 }
 0x914   :  { %13634 = vmatprep.subr.bf16.mxu1 %v17747_v9 }
 0x915   :  { %13674 = vmatpush2.bf16.msra.mxu0 %v17742_v59 }
 0x916   :  { %13675 = vmatprep.subr.bf16.mxu0 %v17750_v6 }
 0x917   :  { %13635 = vmatpush2.bf16.msra.mxu1 %v17745_v17  ;;  %v17801_v17 = vld [vmem:[%s25220_s9 + $0xc8c] ss:$16 sps:$4 sm:$0xff]  }
 0x918   :  { %13636 = vmatprep.subr.bf16.mxu1 %v17753_v14  ;;  %v17796_v14 = vld [vmem:[%s25220_s9 + $0xea8] ss:$16 sps:$4 sm:$0xff]  }
 0x919   :  { %13676 = vmatpush2.bf16.msra.mxu0 %v17748_v32 }
 0x91a   :  { %13677 = vmatprep.subr.bf16.mxu0 %v17756_v30  ;;  %v17804_v30 = vld [vmem:[%s25220_s9 + $0xe8c] ss:$16 sps:$4 sm:$0xff]  }
 0x91b   :  { %13637 = vmatpush2.bf16.msra.mxu1 %v17751_v10  ;;  %v17799_v10 = vld [vmem:[%s25220_s9 + $0xc88] ss:$16 sps:$4 sm:$0xff]  }
 0x91c   :  { %13638 = vmatprep.subr.bf16.mxu1 %v17759_v48  ;;  %v17807_v48 = vld [vmem:[%s25220_s9 + $0xc6c] ss:$16 sps:$4 sm:$0xff]  }
 0x91d   :  { %13678 = vmatpush2.bf16.msra.mxu0 %v17754_v40  ;;  %v17802_v40 = vld [vmem:[%s25220_s9 + $0xe88] ss:$16 sps:$4 sm:$0xff]  }
 0x91e   :  { %13679 = vmatprep.subr.bf16.mxu0 %v17762_v39  ;;  %v17810_v39 = vld [vmem:[%s25220_s9 + $0xe6c] ss:$16 sps:$4 sm:$0xff]  }
 0x91f   :  { %13639 = vmatpush2.bf16.msra.mxu1 %v17757_v13  ;;  %v17805_v13 = vld [vmem:[%s25220_s9 + $0xc68] ss:$16 sps:$4 sm:$0xff]  }
 0x920   :  { %13640 = vmatprep.subr.bf16.mxu1 %v17765_v36  ;;  %v17813_v36 = vld [vmem:[%s25220_s9 + $0xc4c] ss:$16 sps:$4 sm:$0xff]  }
 0x921   :  { %13680 = vmatpush2.bf16.msra.mxu0 %v17760_v45  ;;  %v17808_v45 = vld [vmem:[%s25220_s9 + $0xe68] ss:$16 sps:$4 sm:$0xff]  }
 0x922   :  { %13681 = vmatprep.subr.bf16.mxu0 %v17768_v47  ;;  %v17816_v47 = vld [vmem:[%s25220_s9 + $0xe4c] ss:$16 sps:$4 sm:$0xff]  }
 0x923   :  { %13641 = vmatpush2.bf16.msra.mxu1 %v17763_v29  ;;  %v17811_v29 = vld [vmem:[%s25220_s9 + $0xc48] ss:$16 sps:$4 sm:$0xff]  }
 0x924   :  { %13642 = vmatprep.subr.bf16.mxu1 %v17771_v51  ;;  %v17819_v51 = vld [vmem:[%s25220_s9 + $0xc2c] ss:$16 sps:$4 sm:$0xff]  }
 0x925   :  { %13682 = vmatpush2.bf16.msra.mxu0 %v17766_v50  ;;  %v17814_v50 = vld [vmem:[%s25220_s9 + $0xe48] ss:$16 sps:$4 sm:$0xff]  }
 0x926   :  { %13683 = vmatprep.subr.bf16.mxu0 %v17774_v54  ;;  %v17822_v54 = vld [vmem:[%s25220_s9 + $0xe2c] ss:$16 sps:$4 sm:$0xff]  }
 0x927   :  { %13643 = vmatpush2.bf16.msra.mxu1 %v17769_v34  ;;  %v17817_v34 = vld [vmem:[%s25220_s9 + $0xc28] ss:$16 sps:$4 sm:$0xff]  }
 0x928   :  { %13644 = vmatprep.subr.bf16.mxu1 %v17777_v60  ;;  %v17825_v60 = vld [vmem:[%s25220_s9 + $0xc0c] ss:$16 sps:$4 sm:$0xff]  }
 0x929   :  { %13684 = vmatpush2.bf16.msra.mxu0 %v17772_v42  ;;  %v17820_v42 = vld [vmem:[%s25220_s9 + $0xe28] ss:$16 sps:$4 sm:$0xff]  }
 0x92a   :  { %13685 = vmatprep.subr.bf16.mxu0 %v17780_v3  ;;  %v17828_v3 = vld [vmem:[%s25220_s9 + $0xe0c] ss:$16 sps:$4 sm:$0xff]  }
 0x92b   :  { %13645 = vmatpush2.bf16.msra.mxu1 %v17775_v20  ;;  %v17823_v20 = vld [vmem:[%s25220_s9 + $0xc08] ss:$16 sps:$4 sm:$0xff]  }
 0x92c   :  { %13696 = vmatprep.subr.bf16.mxu1 %v17783_v62  ;;  %v17831_v62 = vld [vmem:[%s25220_s9 + $0xdec] ss:$16 sps:$4 sm:$0xff]  }
 0x92d   :  { %13686 = vmatpush2.bf16.msra.mxu0 %v17778_v49  ;;  %v17826_v49 = vld [vmem:[%s25220_s9 + $0xe08] ss:$16 sps:$4 sm:$0xff]  }
 0x92e   :  { %v13402_v61 = vpop.f32.mrf.mxu1  ;;  %13647 = vmatmul.mubr.bf16.vlgmr.msra.gmra.mxu1 %v22394_v58  ;;  %13737 = vmatprep.subr.bf16.mxu0 %v17786_v52  ;;  %v17795_v58 = vld [vmem:[%s25220_s9 + $0xcac] ss:$16 sps:$4 sm:$0xff]  }
 0x92f   :  { %v13403_v55 = vadd.f32 %v13402_v61, %v23913_v25  ;;  %13697 = vmatpush1.bf16.msra.mxu1 %v17781_v24  ;;  %13728 = vmatprep.mubr.bf16.mxu1 %v22401_v44  ;;  %v17790_v44 = vld [vmem:[%s25220_s9 + $0xec8] ss:$16 sps:$4 sm:$0xff]   ;;  %v17834_v52 = vld [vmem:[%s25220_s9 + $0xfec] ss:$16 sps:$4 sm:$0xff]  }
 0x930   :  { %v13443_v63 = vpop.f32.mrf.mxu0  ;;  %13688 = vmatmul.mubr.bf16.vlgmr.msra.gmra.mxu0 %v22409_v23  ;;  %v13404_v57 = vpop.f32.mrf.mxu1  ;;  %13698 = vmatprep.subr.bf16.mxu1 %v17789_v1  ;;  %v17798_v23 = vld [vmem:[%s25220_s9 + $0xeac] ss:$16 sps:$4 sm:$0xff]   ;;  %v17829_v24 = vld [vmem:[%s25220_s9 + $0xde8] ss:$16 sps:$4 sm:$0xff]  }
 0x931   :  { %v24115_v8 = vadd.f32 %v13443_v63, %v13403_v55  ;;  %v13405_v25 = vadd.f32 %v13404_v57, %v23923_v21  ;;  %13738 = vmatpush1.bf16.msra.mxu0 %v17784_v33  ;;  %13769 = vmatprep.mubr.bf16.mxu0 %v22417_v2  ;;  %v17793_v21 = vld [vmem:[%s25220_s9 + $0xca8] ss:$16 sps:$4 sm:$0xff]   ;;  %v17837_v1 = vld [vmem:[%s25220_s9 + $0xdcc] ss:$16 sps:$4 sm:$0xff]  }
 0x932   :  { %v13445_v18 = vpop.f32.mrf.mxu0  ;;  %v13406_v9 = vpop.f32.mrf.mxu1  ;;  %13739 = vmatprep.subr.bf16.mxu0 %v17792_v26  ;;  %v17832_v33 = vld [vmem:[%s25220_s9 + $0xfe8] ss:$16 sps:$4 sm:$0xff]   ;;  %v17840_v61 = vld [vmem:[%s25220_s9 + $0xfcc] ss:$16 sps:$4 sm:$0xff]  }
 0x933   :  { %v24125_v59 = vadd.f32 %v13445_v18, %v13405_v25  ;;  %13699 = vmatpush1.bf16.msra.mxu1 %v17787_v4  ;;  %v17835_v26 = vld [vmem:[%s25220_s9 + $0xdc8] ss:$16 sps:$4 sm:$0xff]   ;;  %v17843_v55 = vld [vmem:[%s25220_s9 + $0xdac] ss:$16 sps:$4 sm:$0xff]  }
 0x934   :  { %v13447_v6 = vpop.f32.mrf.mxu0  ;;  %v13407_v2 = vpop.f32.mrf.mxu1  ;;  %13700 = vmatprep.subr.bf16.mxu1 %v17795_v58  ;;  %v17838_v4 = vld [vmem:[%s25220_s9 + $0xfc8] ss:$16 sps:$4 sm:$0xff]   ;;  %v17846_v63 = vld [vmem:[%s25220_s9 + $0xfac] ss:$16 sps:$4 sm:$0xff]  }
 0x935   :  { %13740 = vmatpush1.bf16.msra.mxu0 %v17790_v44  ;;  %v17841_v57 = vld [vmem:[%s25220_s9 + $0xda8] ss:$16 sps:$4 sm:$0xff]   ;;  %v17849_v58 = vld [vmem:[%s25220_s9 + $0xd8c] ss:$16 sps:$4 sm:$0xff]  }
 0x936   :  { %v13448_v32 = vpop.f32.mrf.mxu0  ;;  %13741 = vmatprep.subr.bf16.mxu0 %v17798_v23  ;;  %v17844_v25 = vld [vmem:[%s25220_s9 + $0xfa8] ss:$16 sps:$4 sm:$0xff]   ;;  %v17852_v44 = vld [vmem:[%s25220_s9 + $0xf8c] ss:$16 sps:$4 sm:$0xff]  }
 0x937   :  { %13701 = vmatpush1.bf16.msra.mxu1 %v17793_v21  ;;  %v17847_v18 = vld [vmem:[%s25220_s9 + $0xd88] ss:$16 sps:$4 sm:$0xff]   ;;  %v17855_v9 = vld [vmem:[%s25220_s9 + $0xd6c] ss:$16 sps:$4 sm:$0xff]  }
 0x938   :  { %13702 = vmatprep.subr.bf16.mxu1 %v17801_v17  ;;  %v17850_v23 = vld [vmem:[%s25220_s9 + $0xf88] ss:$16 sps:$4 sm:$0xff]   ;;  %v17858_v21 = vld [vmem:[%s25220_s9 + $0xf6c] ss:$16 sps:$4 sm:$0xff]  }
 0x939   :  { %13742 = vmatpush1.bf16.msra.mxu0 %v17796_v14  ;;  %v17853_v6 = vld [vmem:[%s25220_s9 + $0xd68] ss:$16 sps:$4 sm:$0xff]   ;;  %v17861_v2 = vld [vmem:[%s25220_s9 + $0xd4c] ss:$16 sps:$4 sm:$0xff]  }
 0x93a   :  { %13743 = vmatprep.subr.bf16.mxu0 %v17804_v30  ;;  %v17856_v17 = vld [vmem:[%s25220_s9 + $0xf68] ss:$16 sps:$4 sm:$0xff]   ;;  %v17864_v14 = vld [vmem:[%s25220_s9 + $0xf4c] ss:$16 sps:$4 sm:$0xff]  }
 0x93b   :  { %13703 = vmatpush1.bf16.msra.mxu1 %v17799_v10  ;;  %v17859_v32 = vld [vmem:[%s25220_s9 + $0xd48] ss:$16 sps:$4 sm:$0xff]   ;;  %v17867_v30 = vld [vmem:[%s25220_s9 + $0xd2c] ss:$16 sps:$4 sm:$0xff]  }
 0x93c   :  { %13704 = vmatprep.subr.bf16.mxu1 %v17807_v48  ;;  %v17862_v10 = vld [vmem:[%s25220_s9 + $0xf48] ss:$16 sps:$4 sm:$0xff]   ;;  %v17870_v48 = vld [vmem:[%s25220_s9 + $0xf2c] ss:$16 sps:$4 sm:$0xff]  }
 0x93d   :  { %13744 = vmatpush1.bf16.msra.mxu0 %v17802_v40  ;;  %v17865_v40 = vld [vmem:[%s25220_s9 + $0xd28] ss:$16 sps:$4 sm:$0xff]  }
 0x93e   :  { %13745 = vmatprep.subr.bf16.mxu0 %v17810_v39  ;;  %v17873_v39 = vld [vmem:[%s25220_s9 + $0xd0c] ss:$16 sps:$4 sm:$0xff]  }
 0x93f   :  { %13705 = vmatpush1.bf16.msra.mxu1 %v17805_v13  ;;  %v17868_v13 = vld [vmem:[%s25220_s9 + $0xf28] ss:$16 sps:$4 sm:$0xff]  }
 0x940   :  { %13706 = vmatprep.subr.bf16.mxu1 %v17813_v36  ;;  %v17876_v36 = vld [vmem:[%s25220_s9 + $0xf0c] ss:$16 sps:$4 sm:$0xff]  }
 0x941   :  { %13746 = vmatpush1.bf16.msra.mxu0 %v17808_v45  ;;  %v17871_v45 = vld [vmem:[%s25220_s9 + $0xd08] ss:$16 sps:$4 sm:$0xff]  }
 0x942   :  { %13747 = vmatprep.subr.bf16.mxu0 %v17816_v47  ;;  %v7664_v47 = vsub.s32 2, %v22581_v35 }
 0x943   :  { %13707 = vmatpush1.bf16.msra.mxu1 %v17811_v29  ;;  %v17879_v29 = vld [vmem:[%s25220_s9 + $0x10ec] ss:$16 sps:$4 sm:$0xff]  }
 0x944   :  { %13708 = vmatprep.subr.bf16.mxu1 %v17819_v51  ;;  %v17874_v51 = vld [vmem:[%s25220_s9 + $0xf08] ss:$16 sps:$4 sm:$0xff]  }
 0x945   :  { %13748 = vmatpush1.bf16.msra.mxu0 %v17814_v50  ;;  %v7668_v50 = vsub.s32 3, %v22581_v35  ;;  %v17885_v35 = vld [vmem:[%s25220_s9 + $0x10cc] ss:$16 sps:$4 sm:$0xff]  }
 0x946   :  { %13749 = vmatprep.subr.bf16.mxu0 %v17822_v54  ;;  %v17882_v54 = vld [vmem:[%s25220_s9 + $0x12ec] ss:$16 sps:$4 sm:$0xff]  }
 0x947   :  { %13709 = vmatpush1.bf16.msra.mxu1 %v17817_v34  ;;  %v18299_v34 = vld [vmem:[%s25221_s10] sm:$0xf] }
 0x948   :  { %13710 = vmatprep.subr.bf16.mxu1 %v17825_v60  ;;  %v7665_v60 = vrot.slane %v18299_v34, %v7664_v47  ;;  %v17924_v47 = vld [vmem:[%s25220_s9 + $0x120c] ss:$16 sps:$4 sm:$0xff]  }
 0x949   :  { %13750 = vmatpush1.bf16.msra.mxu0 %v17820_v42  ;;  %v17877_v42 = vld [vmem:[%s25220_s9 + $0x10e8] ss:$16 sps:$4 sm:$0xff]  }
 0x94a   :  { %13751 = vmatprep.subr.bf16.mxu0 %v17828_v3  ;;  %v17880_v3 = vld [vmem:[%s25220_s9 + $0x12e8] ss:$16 sps:$4 sm:$0xff]  }
 0x94b   :  { %13711 = vmatpush1.bf16.msra.mxu1 %v17823_v20  ;;  %v7669_v20 = vrot.slane %v18299_v34, %v7668_v50  ;;  %v17922_v50 = vld [vmem:[%s25220_s9 + $0x1208] ss:$16 sps:$4 sm:$0xff]  }
 0x94c   :  { %13712 = vmatprep.subr.bf16.mxu1 %v17831_v62  ;;  %v17925_v34 = vld [vmem:[%s25220_s9 + $0x11e8] ss:$16 sps:$4 sm:$0xff]  }
 0x94d   :  { %13752 = vmatpush1.bf16.msra.mxu0 %v17826_v49  ;;  %v17888_v49 = vld [vmem:[%s25220_s9 + $0x12cc] ss:$16 sps:$4 sm:$0xff]  }
 0x94e   :  { %13753 = vmatprep.subr.bf16.mxu0 %v17834_v52 }
 0x94f   :  { %13713 = vmatpush2.bf16.msra.mxu1 %v17829_v24  ;;  %v17883_v24 = vld [vmem:[%s25220_s9 + $0x10c8] ss:$16 sps:$4 sm:$0xff]  }
 0x950   :  { %13714 = vmatprep.subr.bf16.mxu1 %v17837_v1 }
 0x951   :  { %13754 = vmatpush2.bf16.msra.mxu0 %v17832_v33 }
 0x952   :  { %13755 = vmatprep.subr.bf16.mxu0 %v17840_v61 }
 0x953   :  { %13715 = vmatpush2.bf16.msra.mxu1 %v17835_v26 }
 0x954   :  { %13716 = vmatprep.subr.bf16.mxu1 %v17843_v55 }
 0x955   :  { %13756 = vmatpush2.bf16.msra.mxu0 %v17838_v4 }
 0x956   :  { %13757 = vmatprep.subr.bf16.mxu0 %v17846_v63 }
 0x957   :  { %13717 = vmatpush2.bf16.msra.mxu1 %v17841_v57  ;;  %v17889_v57 = vld [vmem:[%s25220_s9 + $0x10a8] ss:$16 sps:$4 sm:$0xff]  }
 0x958   :  { %13718 = vmatprep.subr.bf16.mxu1 %v17849_v58 }
 0x959   :  { %13758 = vmatpush2.bf16.msra.mxu0 %v17844_v25  ;;  %v17897_v25 = vld [vmem:[%s25220_s9 + $0x108c] ss:$16 sps:$4 sm:$0xff]  }
 0x95a   :  { %13759 = vmatprep.subr.bf16.mxu0 %v17852_v44  ;;  %v17892_v44 = vld [vmem:[%s25220_s9 + $0x12a8] ss:$16 sps:$4 sm:$0xff]  }
 0x95b   :  { %13719 = vmatpush2.bf16.msra.mxu1 %v17847_v18 }
 0x95c   :  { %13720 = vmatprep.subr.bf16.mxu1 %v17855_v9  ;;  %v17900_v9 = vld [vmem:[%s25220_s9 + $0x128c] ss:$16 sps:$4 sm:$0xff]  }
 0x95d   :  { %13760 = vmatpush2.bf16.msra.mxu0 %v17850_v23  ;;  %v17895_v23 = vld [vmem:[%s25220_s9 + $0x1088] ss:$16 sps:$4 sm:$0xff]  }
 0x95e   :  { %13761 = vmatprep.subr.bf16.mxu0 %v17858_v21  ;;  %v17903_v21 = vld [vmem:[%s25220_s9 + $0x106c] ss:$16 sps:$4 sm:$0xff]  }
 0x95f   :  { %13721 = vmatpush2.bf16.msra.mxu1 %v17853_v6  ;;  %v17898_v6 = vld [vmem:[%s25220_s9 + $0x1288] ss:$16 sps:$4 sm:$0xff]  }
 0x960   :  { %13722 = vmatprep.subr.bf16.mxu1 %v17861_v2  ;;  %v17906_v2 = vld [vmem:[%s25220_s9 + $0x126c] ss:$16 sps:$4 sm:$0xff]  }
 0x961   :  { %13762 = vmatpush2.bf16.msra.mxu0 %v17856_v17  ;;  %v17901_v17 = vld [vmem:[%s25220_s9 + $0x1068] ss:$16 sps:$4 sm:$0xff]  }
 0x962   :  { %13763 = vmatprep.subr.bf16.mxu0 %v17864_v14  ;;  %v17909_v14 = vld [vmem:[%s25220_s9 + $0x104c] ss:$16 sps:$4 sm:$0xff]  }
 0x963   :  { %13723 = vmatpush2.bf16.msra.mxu1 %v17859_v32  ;;  %v17904_v32 = vld [vmem:[%s25220_s9 + $0x1268] ss:$16 sps:$4 sm:$0xff]  }
 0x964   :  { %13724 = vmatprep.subr.bf16.mxu1 %v17867_v30  ;;  %v17912_v30 = vld [vmem:[%s25220_s9 + $0x124c] ss:$16 sps:$4 sm:$0xff]  }
 0x965   :  { %13764 = vmatpush2.bf16.msra.mxu0 %v17862_v10  ;;  %v17907_v10 = vld [vmem:[%s25220_s9 + $0x1048] ss:$16 sps:$4 sm:$0xff]  }
 0x966   :  { %13765 = vmatprep.subr.bf16.mxu0 %v17870_v48  ;;  %v17915_v48 = vld [vmem:[%s25220_s9 + $0x102c] ss:$16 sps:$4 sm:$0xff]  }
 0x967   :  { %13725 = vmatpush2.bf16.msra.mxu1 %v17865_v40  ;;  %v17910_v40 = vld [vmem:[%s25220_s9 + $0x1248] ss:$16 sps:$4 sm:$0xff]  }
 0x968   :  { %13726 = vmatprep.subr.bf16.mxu1 %v17873_v39  ;;  %v17918_v39 = vld [vmem:[%s25220_s9 + $0x122c] ss:$16 sps:$4 sm:$0xff]  }
 0x969   :  { %13766 = vmatpush2.bf16.msra.mxu0 %v17868_v13  ;;  %v17913_v13 = vld [vmem:[%s25220_s9 + $0x1028] ss:$16 sps:$4 sm:$0xff]  }
 0x96a   :  { %13767 = vmatprep.subr.bf16.mxu0 %v17876_v36  ;;  %v17921_v36 = vld [vmem:[%s25220_s9 + $0x100c] ss:$16 sps:$4 sm:$0xff]  }
 0x96b   :  { %13727 = vmatpush2.bf16.msra.mxu1 %v17871_v45  ;;  %v17916_v45 = vld [vmem:[%s25220_s9 + $0x1228] ss:$16 sps:$4 sm:$0xff]  }
 0x96c   :  { %13778 = vmatprep.subr.bf16.mxu1 %v17879_v29  ;;  %v17919_v29 = vld [vmem:[%s25220_s9 + $0x1008] ss:$16 sps:$4 sm:$0xff]  }
 0x96d   :  { %13768 = vmatpush2.bf16.msra.mxu0 %v17874_v51  ;;  %v17927_v51 = vld [vmem:[%s25220_s9 + $0x11ec] ss:$16 sps:$4 sm:$0xff]  }
 0x96e   :  { %v13484_v62 = vpop.f32.mrf.mxu1  ;;  %13729 = vmatmul.mubr.bf16.vlgmr.msra.gmra.mxu1 %v22614_v28  ;;  %13819 = vmatprep.subr.bf16.mxu0 %v17882_v54  ;;  %v17891_v28 = vld [vmem:[%s25220_s9 + $0x10ac] ss:$16 sps:$4 sm:$0xff]  }
 0x96f   :  { %v13485_v52 = vadd.f32 %v13484_v62, %v7665_v60  ;;  %13779 = vmatpush1.bf16.msra.mxu1 %v17877_v42  ;;  %13810 = vmatprep.mubr.bf16.mxu1 %v22621_v56  ;;  %v17886_v56 = vld [vmem:[%s25220_s9 + $0x12c8] ss:$16 sps:$4 sm:$0xff]   ;;  %v17930_v54 = vld [vmem:[%s25220_s9 + $0x13ec] ss:$16 sps:$4 sm:$0xff]  }
 0x970   :  { %v13525_v1 = vpop.f32.mrf.mxu0  ;;  %13770 = vmatmul.mubr.bf16.vlgmr.msra.gmra.mxu0 %v22629_v37  ;;  %v13486_v33 = vpop.f32.mrf.mxu1  ;;  %13780 = vmatprep.subr.bf16.mxu1 %v17885_v35  ;;  %v17894_v37 = vld [vmem:[%s25220_s9 + $0x12ac] ss:$16 sps:$4 sm:$0xff]   ;;  %v17928_v42 = vld [vmem:[%s25220_s9 + $0x13e8] ss:$16 sps:$4 sm:$0xff]  }
 0x971   :  { %v24321_v61 = vadd.f32 %v13525_v1, %v13485_v52  ;;  %v13487_v26 = vadd.f32 %v13486_v33, %v7669_v20  ;;  %13820 = vmatpush1.bf16.msra.mxu0 %v17880_v3  ;;  %13851 = vmatprep.mubr.bf16.mxu0 %v22637_v0  ;;  %v17933_v60 = vld [vmem:[%s25220_s9 + $0x11cc] ss:$16 sps:$4 sm:$0xff]   ;;  %v17931_v3 = vld [vmem:[%s25220_s9 + $0x11c8] ss:$16 sps:$4 sm:$0xff]  }
 0x972   :  { %v13527_v55 = vpop.f32.mrf.mxu0  ;;  %v13488_v4 = vpop.f32.mrf.mxu1  ;;  %13821 = vmatprep.subr.bf16.mxu0 %v17888_v49  ;;  %v17936_v35 = vld [vmem:[%s25220_s9 + $0x13cc] ss:$16 sps:$4 sm:$0xff]   ;;  %v17934_v62 = vld [vmem:[%s25220_s9 + $0x13c8] ss:$16 sps:$4 sm:$0xff]  }
 0x973   :  { %v24330_v63 = vadd.f32 %v13527_v55, %v13487_v26  ;;  %13781 = vmatpush1.bf16.msra.mxu1 %v17883_v24  ;;  %v17939_v20 = vld [vmem:[%s25220_s9 + $0x11ac] ss:$16 sps:$4 sm:$0xff]   ;;  %v17937_v52 = vld [vmem:[%s25220_s9 + $0x11a8] ss:$16 sps:$4 sm:$0xff]  }
 0x974   :  { %v13529_v58 = vpop.f32.mrf.mxu0  ;;  %v13489_v0 = vpop.f32.mrf.mxu1  ;;  %13782 = vmatprep.subr.bf16.mxu1 %v17891_v28  ;;  %v17942_v49 = vld [vmem:[%s25220_s9 + $0x13ac] ss:$16 sps:$4 sm:$0xff]   ;;  %v17940_v1 = vld [vmem:[%s25220_s9 + $0x13a8] ss:$16 sps:$4 sm:$0xff]  }
 0x975   :  { %13822 = vmatpush1.bf16.msra.mxu0 %v17886_v56  ;;  %v17945_v24 = vld [vmem:[%s25220_s9 + $0x118c] ss:$16 sps:$4 sm:$0xff]   ;;  %v17943_v28 = vld [vmem:[%s25220_s9 + $0x1188] ss:$16 sps:$4 sm:$0xff]  }
 0x976   :  { %v13530_v18 = vpop.f32.mrf.mxu0  ;;  %13823 = vmatprep.subr.bf16.mxu0 %v17894_v37  ;;  %v17948_v33 = vld [vmem:[%s25220_s9 + $0x138c] ss:$16 sps:$4 sm:$0xff]   ;;  %v17946_v56 = vld [vmem:[%s25220_s9 + $0x1388] ss:$16 sps:$4 sm:$0xff]  }
 0x977   :  { %13783 = vmatpush1.bf16.msra.mxu1 %v17889_v57  ;;  %v17951_v26 = vld [vmem:[%s25220_s9 + $0x116c] ss:$16 sps:$4 sm:$0xff]   ;;  %v17949_v4 = vld [vmem:[%s25220_s9 + $0x1168] ss:$16 sps:$4 sm:$0xff]  }
 0x978   :  { %13784 = vmatprep.subr.bf16.mxu1 %v17897_v25  ;;  %v17954_v55 = vld [vmem:[%s25220_s9 + $0x136c] ss:$16 sps:$4 sm:$0xff]   ;;  %v17952_v57 = vld [vmem:[%s25220_s9 + $0x1368] ss:$16 sps:$4 sm:$0xff]  }
 0x979   :  { %13824 = vmatpush1.bf16.msra.mxu0 %v17892_v44  ;;  %v17957_v37 = vld [vmem:[%s25220_s9 + $0x114c] ss:$16 sps:$4 sm:$0xff]   ;;  %v17955_v0 = vld [vmem:[%s25220_s9 + $0x1148] ss:$16 sps:$4 sm:$0xff]  }
 0x97a   :  { %13825 = vmatprep.subr.bf16.mxu0 %v17900_v9  ;;  %v17960_v58 = vld [vmem:[%s25220_s9 + $0x134c] ss:$16 sps:$4 sm:$0xff]   ;;  %v17958_v44 = vld [vmem:[%s25220_s9 + $0x1348] ss:$16 sps:$4 sm:$0xff]  }
 0x97b   :  { %13785 = vmatpush1.bf16.msra.mxu1 %v17895_v23  ;;  %v17963_v25 = vld [vmem:[%s25220_s9 + $0x112c] ss:$16 sps:$4 sm:$0xff]   ;;  %v17961_v9 = vld [vmem:[%s25220_s9 + $0x1128] ss:$16 sps:$4 sm:$0xff]  }
 0x97c   :  { %13786 = vmatprep.subr.bf16.mxu1 %v17903_v21  ;;  %v17966_v18 = vld [vmem:[%s25220_s9 + $0x132c] ss:$16 sps:$4 sm:$0xff]   ;;  %v17964_v21 = vld [vmem:[%s25220_s9 + $0x1328] ss:$16 sps:$4 sm:$0xff]  }
 0x97d   :  { %13826 = vmatpush1.bf16.msra.mxu0 %v17898_v6  ;;  %v17969_v23 = vld [vmem:[%s25220_s9 + $0x110c] ss:$16 sps:$4 sm:$0xff]  }
 0x97e   :  { %13827 = vmatprep.subr.bf16.mxu0 %v17906_v2  ;;  %v17972_v6 = vld [vmem:[%s25220_s9 + $0x130c] ss:$16 sps:$4 sm:$0xff]   ;;  %v17967_v2 = vld [vmem:[%s25220_s9 + $0x1108] ss:$16 sps:$4 sm:$0xff]  }
 0x97f   :  { %13787 = vmatpush1.bf16.msra.mxu1 %v17901_v17  ;;  %v17975_v17 = vld [vmem:[%s25220_s9 + $0x14ec] ss:$16 sps:$4 sm:$0xff]  }
 0x980   :  { %13788 = vmatprep.subr.bf16.mxu1 %v17909_v14  ;;  %v17970_v14 = vld [vmem:[%s25220_s9 + $0x1308] ss:$16 sps:$4 sm:$0xff]  }
 0x981   :  { %13828 = vmatpush1.bf16.msra.mxu0 %v17904_v32  ;;  %v17978_v32 = vld [vmem:[%s25220_s9 + $0x16ec] ss:$16 sps:$4 sm:$0xff]  }
 0x982   :  { %13829 = vmatprep.subr.bf16.mxu0 %v17912_v30  ;;  %v17973_v30 = vld [vmem:[%s25220_s9 + $0x14e8] ss:$16 sps:$4 sm:$0xff]  }
 0x983   :  { %13789 = vmatpush1.bf16.msra.mxu1 %v17907_v10  ;;  %v17981_v10 = vld [vmem:[%s25220_s9 + $0x14cc] ss:$16 sps:$4 sm:$0xff]  }
 0x984   :  { %13790 = vmatprep.subr.bf16.mxu1 %v17915_v48  ;;  %v17976_v48 = vld [vmem:[%s25220_s9 + $0x16e8] ss:$16 sps:$4 sm:$0xff]  }
 0x985   :  { %13830 = vmatpush1.bf16.msra.mxu0 %v17910_v40 }
 0x986   :  { %13831 = vmatprep.subr.bf16.mxu0 %v17918_v39  ;;  %v17984_v39 = vld [vmem:[%s25220_s9 + $0x16cc] ss:$16 sps:$4 sm:$0xff]  }
 0x987   :  { %13791 = vmatpush1.bf16.msra.mxu1 %v17913_v13 }
 0x988   :  { %13792 = vmatprep.subr.bf16.mxu1 %v17921_v36  ;;  %v17979_v36 = vld [vmem:[%s25220_s9 + $0x14c8] ss:$16 sps:$4 sm:$0xff]  }
 0x989   :  { %13832 = vmatpush1.bf16.msra.mxu0 %v17916_v45 }
 0x98a   :  { %13833 = vmatprep.subr.bf16.mxu0 %v17924_v47 }
 0x98b   :  { %13793 = vmatpush1.bf16.msra.mxu1 %v17919_v29 }
 0x98c   :  { %13794 = vmatprep.subr.bf16.mxu1 %v17927_v51 }
 0x98d   :  { %13834 = vmatpush1.bf16.msra.mxu0 %v17922_v50 }
 0x98e   :  { %13835 = vmatprep.subr.bf16.mxu0 %v17930_v54 }
 0x98f   :  { %13795 = vmatpush2.bf16.msra.mxu1 %v17925_v34 }
 0x990   :  { %13796 = vmatprep.subr.bf16.mxu1 %v17933_v60  ;;  %v17993_v60 = vld [vmem:[%s25220_s9 + $0x148c] ss:$16 sps:$4 sm:$0xff]  }
 0x991   :  { %13836 = vmatpush2.bf16.msra.mxu0 %v17928_v42  ;;  %v17988_v42 = vld [vmem:[%s25220_s9 + $0x16a8] ss:$16 sps:$4 sm:$0xff]  }
 0x992   :  { %13837 = vmatprep.subr.bf16.mxu0 %v17936_v35 }
 0x993   :  { %13797 = vmatpush2.bf16.msra.mxu1 %v17931_v3  ;;  %v17996_v3 = vld [vmem:[%s25220_s9 + $0x168c] ss:$16 sps:$4 sm:$0xff]  }
 0x994   :  { %13798 = vmatprep.subr.bf16.mxu1 %v17939_v20  ;;  %v17991_v20 = vld [vmem:[%s25220_s9 + $0x1488] ss:$16 sps:$4 sm:$0xff]  }
 0x995   :  { %13838 = vmatpush2.bf16.msra.mxu0 %v17934_v62  ;;  %v17999_v62 = vld [vmem:[%s25220_s9 + $0x146c] ss:$16 sps:$4 sm:$0xff]  }
 0x996   :  { %13839 = vmatprep.subr.bf16.mxu0 %v17942_v49  ;;  %v17994_v49 = vld [vmem:[%s25220_s9 + $0x1688] ss:$16 sps:$4 sm:$0xff]  }
 0x997   :  { %13799 = vmatpush2.bf16.msra.mxu1 %v17937_v52  ;;  %v18002_v52 = vld [vmem:[%s25220_s9 + $0x166c] ss:$16 sps:$4 sm:$0xff]  }
 0x998   :  { %13800 = vmatprep.subr.bf16.mxu1 %v17945_v24  ;;  %v17997_v24 = vld [vmem:[%s25220_s9 + $0x1468] ss:$16 sps:$4 sm:$0xff]  }
 0x999   :  { %13840 = vmatpush2.bf16.msra.mxu0 %v17940_v1  ;;  %v18005_v1 = vld [vmem:[%s25220_s9 + $0x144c] ss:$16 sps:$4 sm:$0xff]  }
 0x99a   :  { %13841 = vmatprep.subr.bf16.mxu0 %v17948_v33  ;;  %v18000_v33 = vld [vmem:[%s25220_s9 + $0x1668] ss:$16 sps:$4 sm:$0xff]  }
 0x99b   :  { %13801 = vmatpush2.bf16.msra.mxu1 %v17943_v28  ;;  %v18008_v28 = vld [vmem:[%s25220_s9 + $0x164c] ss:$16 sps:$4 sm:$0xff]  }
 0x99c   :  { %13802 = vmatprep.subr.bf16.mxu1 %v17951_v26  ;;  %v18003_v26 = vld [vmem:[%s25220_s9 + $0x1448] ss:$16 sps:$4 sm:$0xff]  }
 0x99d   :  { %13842 = vmatpush2.bf16.msra.mxu0 %v17946_v56  ;;  %v18011_v56 = vld [vmem:[%s25220_s9 + $0x142c] ss:$16 sps:$4 sm:$0xff]  }
 0x99e   :  { %13843 = vmatprep.subr.bf16.mxu0 %v17954_v55  ;;  %v18006_v55 = vld [vmem:[%s25220_s9 + $0x1648] ss:$16 sps:$4 sm:$0xff]  }
 0x99f   :  { %13803 = vmatpush2.bf16.msra.mxu1 %v17949_v4  ;;  %v18014_v4 = vld [vmem:[%s25220_s9 + $0x162c] ss:$16 sps:$4 sm:$0xff]  }
 0x9a0   :  { %13804 = vmatprep.subr.bf16.mxu1 %v17957_v37  ;;  %v18009_v37 = vld [vmem:[%s25220_s9 + $0x1428] ss:$16 sps:$4 sm:$0xff]  }
 0x9a1   :  { %13844 = vmatpush2.bf16.msra.mxu0 %v17952_v57  ;;  %v18017_v57 = vld [vmem:[%s25220_s9 + $0x140c] ss:$16 sps:$4 sm:$0xff]  }
 0x9a2   :  { %13845 = vmatprep.subr.bf16.mxu0 %v17960_v58  ;;  %v18012_v58 = vld [vmem:[%s25220_s9 + $0x1628] ss:$16 sps:$4 sm:$0xff]  }
 0x9a3   :  { %13805 = vmatpush2.bf16.msra.mxu1 %v17955_v0  ;;  %v18020_v0 = vld [vmem:[%s25220_s9 + $0x160c] ss:$16 sps:$4 sm:$0xff]  }
 0x9a4   :  { %13806 = vmatprep.subr.bf16.mxu1 %v17963_v25  ;;  %v18015_v25 = vld [vmem:[%s25220_s9 + $0x1408] ss:$16 sps:$4 sm:$0xff]  }
 0x9a5   :  { %13846 = vmatpush2.bf16.msra.mxu0 %v17958_v44  ;;  %v18023_v44 = vld [vmem:[%s25220_s9 + $0x15ec] ss:$16 sps:$4 sm:$0xff]  }
 0x9a6   :  { %13847 = vmatprep.subr.bf16.mxu0 %v17966_v18  ;;  %v18018_v18 = vld [vmem:[%s25220_s9 + $0x1608] ss:$16 sps:$4 sm:$0xff]  }
 0x9a7   :  { %13807 = vmatpush2.bf16.msra.mxu1 %v17961_v9  ;;  %v18026_v9 = vld [vmem:[%s25220_s9 + $0x17ec] ss:$16 sps:$4 sm:$0xff]  }
 0x9a8   :  { %13808 = vmatprep.subr.bf16.mxu1 %v17969_v23  ;;  %v18021_v23 = vld [vmem:[%s25220_s9 + $0x15e8] ss:$16 sps:$4 sm:$0xff]  }
 0x9a9   :  { %13848 = vmatpush2.bf16.msra.mxu0 %v17964_v21  ;;  %v18029_v21 = vld [vmem:[%s25220_s9 + $0x15cc] ss:$16 sps:$4 sm:$0xff]  }
 0x9aa   :  { %13849 = vmatprep.subr.bf16.mxu0 %v17972_v6  ;;  %v18024_v6 = vld [vmem:[%s25220_s9 + $0x17e8] ss:$16 sps:$4 sm:$0xff]  }
 0x9ab   :  { %13809 = vmatpush2.bf16.msra.mxu1 %v17967_v2  ;;  %v18032_v2 = vld [vmem:[%s25220_s9 + $0x17cc] ss:$16 sps:$4 sm:$0xff]  }
 0x9ac   :  { %13860 = vmatprep.subr.bf16.mxu1 %v17975_v17  ;;  %v18027_v17 = vld [vmem:[%s25220_s9 + $0x15c8] ss:$16 sps:$4 sm:$0xff]  }
 0x9ad   :  { %13850 = vmatpush2.bf16.msra.mxu0 %v17970_v14  ;;  %v18035_v14 = vld [vmem:[%s25220_s9 + $0x15ac] ss:$16 sps:$4 sm:$0xff]  }
 0x9ae   :  { %v13566_v40 = vpop.f32.mrf.mxu1  ;;  %13811 = vmatmul.mubr.bf16.vlgmr.msra.gmra.mxu1 %v22830_v22  ;;  %13901 = vmatprep.subr.bf16.mxu0 %v17978_v32  ;;  %v17987_v22 = vld [vmem:[%s25220_s9 + $0x14ac] ss:$16 sps:$4 sm:$0xff]   ;;  %v18030_v32 = vld [vmem:[%s25220_s9 + $0x17c8] ss:$16 sps:$4 sm:$0xff]  }
 0x9af   :  { %v13567_v13 = vadd.f32 %v13566_v40, %v24321_v61  ;;  %13861 = vmatpush1.bf16.msra.mxu1 %v17973_v30  ;;  %13892 = vmatprep.mubr.bf16.mxu1 %v22837_v53  ;;  %v17982_v53 = vld [vmem:[%s25220_s9 + $0x16c8] ss:$16 sps:$4 sm:$0xff]   ;;  %v18038_v30 = vld [vmem:[%s25220_s9 + $0x17ac] ss:$16 sps:$4 sm:$0xff]  }
 0x9b0   :  { %v13607_v45 = vpop.f32.mrf.mxu0  ;;  %13852 = vmatmul.mubr.bf16.vlgmr.msra.gmra.mxu0 %v22845_v12  ;;  %v13568_v47 = vpop.f32.mrf.mxu1  ;;  %13862 = vmatprep.subr.bf16.mxu1 %v17981_v10  ;;  %v17990_v12 = vld [vmem:[%s25220_s9 + $0x16ac] ss:$16 sps:$4 sm:$0xff]   ;;  %v18033_v10 = vld [vmem:[%s25220_s9 + $0x15a8] ss:$16 sps:$4 sm:$0xff]  }
 0x9b1   :  { %v24522_v29 = vadd.f32 %v13607_v45, %v13567_v13  ;;  %v13569_v61 = vadd.f32 %v13568_v47, %v24330_v63  ;;  %13902 = vmatpush1.bf16.msra.mxu0 %v17976_v48  ;;  %13933 = vmatprep.mubr.bf16.mxu0 %v22854_v43  ;;  %v17985_v63 = vld [vmem:[%s25220_s9 + $0x14a8] ss:$16 sps:$4 sm:$0xff]   ;;  %v18041_v48 = vld [vmem:[%s25220_s9 + $0x158c] ss:$16 sps:$4 sm:$0xff]  }
 0x9b2   :  { %v13609_v51 = vpop.f32.mrf.mxu0  ;;  %v13570_v50 = vpop.f32.mrf.mxu1  ;;  %13903 = vmatprep.subr.bf16.mxu0 %v17984_v39  ;;  %v18036_v40 = vld [vmem:[%s25220_s9 + $0x17a8] ss:$16 sps:$4 sm:$0xff]   ;;  %v18044_v39 = vld [vmem:[%s25220_s9 + $0x178c] ss:$16 sps:$4 sm:$0xff]  }
 0x9b3   :  { %v24532_v54 = vadd.f32 %v13609_v51, %v13569_v61  ;;  %13863 = vmatpush1.bf16.msra.mxu1 %v17979_v36  ;;  %v18039_v13 = vld [vmem:[%s25220_s9 + $0x1588] ss:$16 sps:$4 sm:$0xff]   ;;  %v18047_v36 = vld [vmem:[%s25220_s9 + $0x156c] ss:$16 sps:$4 sm:$0xff]  }
 0x9b4   :  { %v13611_v34 = vpop.f32.mrf.mxu0  ;;  %v13571_v43 = vpop.f32.mrf.mxu1  ;;  %13864 = vmatprep.subr.bf16.mxu1 %v17987_v22  ;;  %v18042_v45 = vld [vmem:[%s25220_s9 + $0x1788] ss:$16 sps:$4 sm:$0xff]   ;;  %v18050_v47 = vld [vmem:[%s25220_s9 + $0x176c] ss:$16 sps:$4 sm:$0xff]  }
 0x9b5   :  { %13904 = vmatpush1.bf16.msra.mxu0 %v17982_v53  ;;  %v18045_v22 = vld [vmem:[%s25220_s9 + $0x1568] ss:$16 sps:$4 sm:$0xff]   ;;  %v18053_v61 = vld [vmem:[%s25220_s9 + $0x154c] ss:$16 sps:$4 sm:$0xff]  }
 0x9b6   :  { %v13612_v35 = vpop.f32.mrf.mxu0  ;;  %13905 = vmatprep.subr.bf16.mxu0 %v17990_v12  ;;  %v18048_v53 = vld [vmem:[%s25220_s9 + $0x1768] ss:$16 sps:$4 sm:$0xff]   ;;  %v18056_v51 = vld [vmem:[%s25220_s9 + $0x174c] ss:$16 sps:$4 sm:$0xff]  }
 0x9b7   :  { %13865 = vmatpush1.bf16.msra.mxu1 %v17985_v63  ;;  %v18051_v50 = vld [vmem:[%s25220_s9 + $0x1548] ss:$16 sps:$4 sm:$0xff]   ;;  %v18059_v12 = vld [vmem:[%s25220_s9 + $0x152c] ss:$16 sps:$4 sm:$0xff]  }
 0x9b8   :  { %13866 = vmatprep.subr.bf16.mxu1 %v17993_v60  ;;  %v18054_v63 = vld [vmem:[%s25220_s9 + $0x1748] ss:$16 sps:$4 sm:$0xff]   ;;  %v18062_v34 = vld [vmem:[%s25220_s9 + $0x172c] ss:$16 sps:$4 sm:$0xff]  }
 0x9b9   :  { %13906 = vmatpush1.bf16.msra.mxu0 %v17988_v42  ;;  %v18057_v43 = vld [vmem:[%s25220_s9 + $0x1528] ss:$16 sps:$4 sm:$0xff]   ;;  %v18065_v60 = vld [vmem:[%s25220_s9 + $0x150c] ss:$16 sps:$4 sm:$0xff]  }
 0x9ba   :  { %13907 = vmatprep.subr.bf16.mxu0 %v17996_v3  ;;  %v18060_v42 = vld [vmem:[%s25220_s9 + $0x1728] ss:$16 sps:$4 sm:$0xff]   ;;  %v18068_v35 = vld [vmem:[%s25220_s9 + $0x170c] ss:$16 sps:$4 sm:$0xff]  }
 0x9bb   :  { %13867 = vmatpush1.bf16.msra.mxu1 %v17991_v20  ;;  %v18063_v3 = vld [vmem:[%s25220_s9 + $0x1508] ss:$16 sps:$4 sm:$0xff]   ;;  %v18071_v20 = vld [vmem:[%s25220_s9 + $0x18ec] ss:$16 sps:$4 sm:$0xff]  }
 0x9bc   :  { %13868 = vmatprep.subr.bf16.mxu1 %v17999_v62  ;;  %v18066_v62 = vld [vmem:[%s25220_s9 + $0x1708] ss:$16 sps:$4 sm:$0xff]  }
 0x9bd   :  { %13908 = vmatpush1.bf16.msra.mxu0 %v17994_v49  ;;  %v18074_v49 = vld [vmem:[%s25220_s9 + $0x1aec] ss:$16 sps:$4 sm:$0xff]  }
 0x9be   :  { %13909 = vmatprep.subr.bf16.mxu0 %v18002_v52  ;;  %v18069_v52 = vld [vmem:[%s25220_s9 + $0x18e8] ss:$16 sps:$4 sm:$0xff]  }
 0x9bf   :  { %13869 = vmatpush1.bf16.msra.mxu1 %v17997_v24  ;;  %v18077_v24 = vld [vmem:[%s25220_s9 + $0x18cc] ss:$16 sps:$4 sm:$0xff]  }
 0x9c0   :  { %13870 = vmatprep.subr.bf16.mxu1 %v18005_v1  ;;  %v18072_v1 = vld [vmem:[%s25220_s9 + $0x1ae8] ss:$16 sps:$4 sm:$0xff]  }
 0x9c1   :  { %13910 = vmatpush1.bf16.msra.mxu0 %v18000_v33 }
 0x9c2   :  { %13911 = vmatprep.subr.bf16.mxu0 %v18008_v28  ;;  %v18080_v28 = vld [vmem:[%s25220_s9 + $0x1acc] ss:$16 sps:$4 sm:$0xff]  }
 0x9c3   :  { %13871 = vmatpush1.bf16.msra.mxu1 %v18003_v26 }
 0x9c4   :  { %13872 = vmatprep.subr.bf16.mxu1 %v18011_v56  ;;  %v18075_v56 = vld [vmem:[%s25220_s9 + $0x18c8] ss:$16 sps:$4 sm:$0xff]  }
 0x9c5   :  { %13912 = vmatpush1.bf16.msra.mxu0 %v18006_v55 }
 0x9c6   :  { %13913 = vmatprep.subr.bf16.mxu0 %v18014_v4 }
 0x9c7   :  { %13873 = vmatpush1.bf16.msra.mxu1 %v18009_v37 }
 0x9c8   :  { %13874 = vmatprep.subr.bf16.mxu1 %v18017_v57 }
 0x9c9   :  { %13914 = vmatpush1.bf16.msra.mxu0 %v18012_v58 }
 0x9ca   :  { %13915 = vmatprep.subr.bf16.mxu0 %v18020_v0 }
 0x9cb   :  { %13875 = vmatpush1.bf16.msra.mxu1 %v18015_v25 }
 0x9cc   :  { %13876 = vmatprep.subr.bf16.mxu1 %v18023_v44  ;;  %v18089_v44 = vld [vmem:[%s25220_s9 + $0x188c] ss:$16 sps:$4 sm:$0xff]  }
 0x9cd   :  { %13916 = vmatpush1.bf16.msra.mxu0 %v18018_v18  ;;  %v18084_v18 = vld [vmem:[%s25220_s9 + $0x1aa8] ss:$16 sps:$4 sm:$0xff]  }
 0x9ce   :  { %13917 = vmatprep.subr.bf16.mxu0 %v18026_v9 }
 0x9cf   :  { %13877 = vmatpush2.bf16.msra.mxu1 %v18021_v23  ;;  %v18092_v23 = vld [vmem:[%s25220_s9 + $0x1a8c] ss:$16 sps:$4 sm:$0xff]  }
 0x9d0   :  { %13878 = vmatprep.subr.bf16.mxu1 %v18029_v21  ;;  %v18087_v21 = vld [vmem:[%s25220_s9 + $0x1888] ss:$16 sps:$4 sm:$0xff]  }
 0x9d1   :  { %13918 = vmatpush2.bf16.msra.mxu0 %v18024_v6  ;;  %v18095_v6 = vld [vmem:[%s25220_s9 + $0x186c] ss:$16 sps:$4 sm:$0xff]  }
 0x9d2   :  { %13919 = vmatprep.subr.bf16.mxu0 %v18032_v2  ;;  %v18090_v2 = vld [vmem:[%s25220_s9 + $0x1a88] ss:$16 sps:$4 sm:$0xff]  }
 0x9d3   :  { %13879 = vmatpush2.bf16.msra.mxu1 %v18027_v17  ;;  %v18098_v17 = vld [vmem:[%s25220_s9 + $0x1a6c] ss:$16 sps:$4 sm:$0xff]  }
 0x9d4   :  { %13880 = vmatprep.subr.bf16.mxu1 %v18035_v14  ;;  %v18093_v14 = vld [vmem:[%s25220_s9 + $0x1868] ss:$16 sps:$4 sm:$0xff]  }
 0x9d5   :  { %13920 = vmatpush2.bf16.msra.mxu0 %v18030_v32  ;;  %v18101_v32 = vld [vmem:[%s25220_s9 + $0x184c] ss:$16 sps:$4 sm:$0xff]  }
 0x9d6   :  { %13921 = vmatprep.subr.bf16.mxu0 %v18038_v30  ;;  %v18096_v30 = vld [vmem:[%s25220_s9 + $0x1a68] ss:$16 sps:$4 sm:$0xff]  }
 0x9d7   :  { %13881 = vmatpush2.bf16.msra.mxu1 %v18033_v10  ;;  %v18104_v10 = vld [vmem:[%s25220_s9 + $0x1a4c] ss:$16 sps:$4 sm:$0xff]  }
 0x9d8   :  { %13882 = vmatprep.subr.bf16.mxu1 %v18041_v48  ;;  %v18099_v48 = vld [vmem:[%s25220_s9 + $0x1848] ss:$16 sps:$4 sm:$0xff]  }
 0x9d9   :  { %13922 = vmatpush2.bf16.msra.mxu0 %v18036_v40  ;;  %v18107_v40 = vld [vmem:[%s25220_s9 + $0x182c] ss:$16 sps:$4 sm:$0xff]  }
 0x9da   :  { %13923 = vmatprep.subr.bf16.mxu0 %v18044_v39  ;;  %v18102_v39 = vld [vmem:[%s25220_s9 + $0x1a48] ss:$16 sps:$4 sm:$0xff]  }
 0x9db   :  { %13883 = vmatpush2.bf16.msra.mxu1 %v18039_v13  ;;  %v18110_v13 = vld [vmem:[%s25220_s9 + $0x1a2c] ss:$16 sps:$4 sm:$0xff]  }
 0x9dc   :  { %13884 = vmatprep.subr.bf16.mxu1 %v18047_v36  ;;  %v18105_v36 = vld [vmem:[%s25220_s9 + $0x1828] ss:$16 sps:$4 sm:$0xff]  }
 0x9dd   :  { %13924 = vmatpush2.bf16.msra.mxu0 %v18042_v45  ;;  %v18113_v45 = vld [vmem:[%s25220_s9 + $0x180c] ss:$16 sps:$4 sm:$0xff]  }
 0x9de   :  { %13925 = vmatprep.subr.bf16.mxu0 %v18050_v47  ;;  %v18108_v47 = vld [vmem:[%s25220_s9 + $0x1a28] ss:$16 sps:$4 sm:$0xff]  }
 0x9df   :  { %13885 = vmatpush2.bf16.msra.mxu1 %v18045_v22  ;;  %v18116_v22 = vld [vmem:[%s25220_s9 + $0x1a0c] ss:$16 sps:$4 sm:$0xff]  }
 0x9e0   :  { %13886 = vmatprep.subr.bf16.mxu1 %v18053_v61  ;;  %v18111_v61 = vld [vmem:[%s25220_s9 + $0x1808] ss:$16 sps:$4 sm:$0xff]  }
 0x9e1   :  { %13926 = vmatpush2.bf16.msra.mxu0 %v18048_v53  ;;  %v18119_v53 = vld [vmem:[%s25220_s9 + $0x19ec] ss:$16 sps:$4 sm:$0xff]  }
 0x9e2   :  { %13927 = vmatprep.subr.bf16.mxu0 %v18056_v51  ;;  %v18114_v51 = vld [vmem:[%s25220_s9 + $0x1a08] ss:$16 sps:$4 sm:$0xff]  }
 0x9e3   :  { %13887 = vmatpush2.bf16.msra.mxu1 %v18051_v50  ;;  %v18122_v50 = vld [vmem:[%s25220_s9 + $0x1bec] ss:$16 sps:$4 sm:$0xff]  }
 0x9e4   :  { %13888 = vmatprep.subr.bf16.mxu1 %v18059_v12  ;;  %v18117_v12 = vld [vmem:[%s25220_s9 + $0x19e8] ss:$16 sps:$4 sm:$0xff]  }
 0x9e5   :  { %13928 = vmatpush2.bf16.msra.mxu0 %v18054_v63  ;;  %v18125_v63 = vld [vmem:[%s25220_s9 + $0x19cc] ss:$16 sps:$4 sm:$0xff]  }
 0x9e6   :  { %13929 = vmatprep.subr.bf16.mxu0 %v18062_v34  ;;  %v18120_v34 = vld [vmem:[%s25220_s9 + $0x1be8] ss:$16 sps:$4 sm:$0xff]  }
 0x9e7   :  { %13889 = vmatpush2.bf16.msra.mxu1 %v18057_v43  ;;  %v18128_v43 = vld [vmem:[%s25220_s9 + $0x1bcc] ss:$16 sps:$4 sm:$0xff]  }
 0x9e8   :  { %13890 = vmatprep.subr.bf16.mxu1 %v18065_v60  ;;  %v18123_v60 = vld [vmem:[%s25220_s9 + $0x19c8] ss:$16 sps:$4 sm:$0xff]  }
 0x9e9   :  { %13930 = vmatpush2.bf16.msra.mxu0 %v18060_v42  ;;  %v18131_v42 = vld [vmem:[%s25220_s9 + $0x19ac] ss:$16 sps:$4 sm:$0xff]  }
 0x9ea   :  { %13931 = vmatprep.subr.bf16.mxu0 %v18068_v35  ;;  %v18126_v35 = vld [vmem:[%s25220_s9 + $0x1bc8] ss:$16 sps:$4 sm:$0xff]  }
 0x9eb   :  { %13891 = vmatpush2.bf16.msra.mxu1 %v18063_v3  ;;  %v18134_v3 = vld [vmem:[%s25220_s9 + $0x1bac] ss:$16 sps:$4 sm:$0xff]  }
 0x9ec   :  { %13942 = vmatprep.subr.bf16.mxu1 %v18071_v20  ;;  %v18129_v20 = vld [vmem:[%s25220_s9 + $0x19a8] ss:$16 sps:$4 sm:$0xff]  }
 0x9ed   :  { %13932 = vmatpush2.bf16.msra.mxu0 %v18066_v62  ;;  %v18137_v62 = vld [vmem:[%s25220_s9 + $0x198c] ss:$16 sps:$4 sm:$0xff]  }
 0x9ee   :  { %v13648_v33 = vpop.f32.mrf.mxu1  ;;  %13893 = vmatmul.mubr.bf16.vlgmr.msra.gmra.mxu1 %v23048_v31  ;;  %13983 = vmatprep.subr.bf16.mxu0 %v18074_v49  ;;  %v18083_v31 = vld [vmem:[%s25220_s9 + $0x18ac] ss:$16 sps:$4 sm:$0xff]   ;;  %v18132_v49 = vld [vmem:[%s25220_s9 + $0x1ba8] ss:$16 sps:$4 sm:$0xff]  }
 0x9ef   :  { %v13649_v26 = vadd.f32 %v13648_v33, %v24522_v29  ;;  %13943 = vmatpush1.bf16.msra.mxu1 %v18069_v52  ;;  %13974 = vmatprep.mubr.bf16.mxu1 %v23055_v27  ;;  %v18078_v27 = vld [vmem:[%s25220_s9 + $0x1ac8] ss:$16 sps:$4 sm:$0xff]   ;;  %v18140_v52 = vld [vmem:[%s25220_s9 + $0x1b8c] ss:$16 sps:$4 sm:$0xff]  }
 0x9f0   :  { %v13689_v55 = vpop.f32.mrf.mxu0  ;;  %13934 = vmatmul.mubr.bf16.vlgmr.msra.gmra.mxu0 %v23063_v11  ;;  %v13650_v4 = vpop.f32.mrf.mxu1  ;;  %13944 = vmatprep.subr.bf16.mxu1 %v18077_v24  ;;  %v18086_v11 = vld [vmem:[%s25220_s9 + $0x1aac] ss:$16 sps:$4 sm:$0xff]   ;;  %v18135_v24 = vld [vmem:[%s25220_s9 + $0x1988] ss:$16 sps:$4 sm:$0xff]  }
 0x9f1   :  { %v24724_v37 = vadd.f32 %v13689_v55, %v13649_v26  ;;  %v13651_v29 = vadd.f32 %v13650_v4, %v24532_v54  ;;  %13984 = vmatpush1.bf16.msra.mxu0 %v18072_v1  ;;  %14015 = vmatprep.mubr.bf16.mxu0 %v23072_v46  ;;  %v18081_v54 = vld [vmem:[%s25220_s9 + $0x18a8] ss:$16 sps:$4 sm:$0xff]   ;;  %v18143_v1 = vld [vmem:[%s25220_s9 + $0x196c] ss:$16 sps:$4 sm:$0xff]  }
 0x9f2   :  { %v13691_v57 = vpop.f32.mrf.mxu0  ;;  %v13652_v58 = vpop.f32.mrf.mxu1  ;;  %13985 = vmatprep.subr.bf16.mxu0 %v18080_v28  ;;  %v18138_v33 = vld [vmem:[%s25220_s9 + $0x1b88] ss:$16 sps:$4 sm:$0xff]   ;;  %v18146_v28 = vld [vmem:[%s25220_s9 + $0x1b6c] ss:$16 sps:$4 sm:$0xff]  }
 0x9f3   :  { %v24734_v0 = vadd.f32 %v13691_v57, %v13651_v29  ;;  %13945 = vmatpush1.bf16.msra.mxu1 %v18075_v56  ;;  %v18141_v26 = vld [vmem:[%s25220_s9 + $0x1968] ss:$16 sps:$4 sm:$0xff]   ;;  %v18149_v56 = vld [vmem:[%s25220_s9 + $0x194c] ss:$16 sps:$4 sm:$0xff]  }
 0x9f4   :  { %v13693_v25 = vpop.f32.mrf.mxu0  ;;  %v13653_v46 = vpop.f32.mrf.mxu1  ;;  %13946 = vmatprep.subr.bf16.mxu1 %v18083_v31  ;;  %v18144_v55 = vld [vmem:[%s25220_s9 + $0x1b68] ss:$16 sps:$4 sm:$0xff]   ;;  %v18152_v4 = vld [vmem:[%s25220_s9 + $0x1b4c] ss:$16 sps:$4 sm:$0xff]  }
 0x9f5   :  { %13986 = vmatpush1.bf16.msra.mxu0 %v18078_v27  ;;  %v18147_v31 = vld [vmem:[%s25220_s9 + $0x1948] ss:$16 sps:$4 sm:$0xff]   ;;  %v18155_v29 = vld [vmem:[%s25220_s9 + $0x192c] ss:$16 sps:$4 sm:$0xff]  }
 0x9f6   :  { %v13694_v9 = vpop.f32.mrf.mxu0  ;;  %13987 = vmatprep.subr.bf16.mxu0 %v18086_v11  ;;  %v18150_v27 = vld [vmem:[%s25220_s9 + $0x1b48] ss:$16 sps:$4 sm:$0xff]   ;;  %v18158_v57 = vld [vmem:[%s25220_s9 + $0x1b2c] ss:$16 sps:$4 sm:$0xff]  }
 0x9f7   :  { %13947 = vmatpush1.bf16.msra.mxu1 %v18081_v54  ;;  %v18153_v58 = vld [vmem:[%s25220_s9 + $0x1928] ss:$16 sps:$4 sm:$0xff]   ;;  %v18161_v11 = vld [vmem:[%s25220_s9 + $0x190c] ss:$16 sps:$4 sm:$0xff]  }
 0x9f8   :  { %13948 = vmatprep.subr.bf16.mxu1 %v18089_v44  ;;  %v18156_v54 = vld [vmem:[%s25220_s9 + $0x1b28] ss:$16 sps:$4 sm:$0xff]   ;;  %v18164_v25 = vld [vmem:[%s25220_s9 + $0x1b0c] ss:$16 sps:$4 sm:$0xff]  }
 0x9f9   :  { %13988 = vmatpush1.bf16.msra.mxu0 %v18084_v18  ;;  %v18159_v46 = vld [vmem:[%s25220_s9 + $0x1908] ss:$16 sps:$4 sm:$0xff]   ;;  %v18167_v44 = vld [vmem:[%s25220_s9 + $0x1cec] ss:$16 sps:$4 sm:$0xff]  }
 0x9fa   :  { %13989 = vmatprep.subr.bf16.mxu0 %v18092_v23  ;;  %v18162_v18 = vld [vmem:[%s25220_s9 + $0x1b08] ss:$16 sps:$4 sm:$0xff]   ;;  %v18170_v9 = vld [vmem:[%s25220_s9 + $0x1eec] ss:$16 sps:$4 sm:$0xff]  }
 0x9fb   :  { %13949 = vmatpush1.bf16.msra.mxu1 %v18087_v21  ;;  %v18165_v23 = vld [vmem:[%s25220_s9 + $0x1ce8] ss:$16 sps:$4 sm:$0xff]   ;;  %v18173_v21 = vld [vmem:[%s25220_s9 + $0x1ccc] ss:$16 sps:$4 sm:$0xff]  }
 0x9fc   :  { %13950 = vmatprep.subr.bf16.mxu1 %v18095_v6  ;;  %v18168_v6 = vld [vmem:[%s25220_s9 + $0x1ee8] ss:$16 sps:$4 sm:$0xff]  }
 0x9fd   :  { %13990 = vmatpush1.bf16.msra.mxu0 %v18090_v2 }
 0x9fe   :  { %13991 = vmatprep.subr.bf16.mxu0 %v18098_v17  ;;  %v18176_v17 = vld [vmem:[%s25220_s9 + $0x1ecc] ss:$16 sps:$4 sm:$0xff]  }
 0x9ff   :  { %13951 = vmatpush1.bf16.msra.mxu1 %v18093_v14 }
 0xa00   :  { %13952 = vmatprep.subr.bf16.mxu1 %v18101_v32  ;;  %v18171_v32 = vld [vmem:[%s25220_s9 + $0x1cc8] ss:$16 sps:$4 sm:$0xff]  }
 0xa01   :  { %13992 = vmatpush1.bf16.msra.mxu0 %v18096_v30 }
 0xa02   :  { %13993 = vmatprep.subr.bf16.mxu0 %v18104_v10 }
 0xa03   :  { %13953 = vmatpush1.bf16.msra.mxu1 %v18099_v48 }
 0xa04   :  { %13954 = vmatprep.subr.bf16.mxu1 %v18107_v40 }
 0xa05   :  { %13994 = vmatpush1.bf16.msra.mxu0 %v18102_v39 }
 0xa06   :  { %13995 = vmatprep.subr.bf16.mxu0 %v18110_v13 }
 0xa07   :  { %13955 = vmatpush1.bf16.msra.mxu1 %v18105_v36 }
 0xa08   :  { %13956 = vmatprep.subr.bf16.mxu1 %v18113_v45  ;;  %v18185_v45 = vld [vmem:[%s25220_s9 + $0x1c8c] ss:$16 sps:$4 sm:$0xff]  }
 0xa09   :  { %13996 = vmatpush1.bf16.msra.mxu0 %v18108_v47  ;;  %v18180_v47 = vld [vmem:[%s25220_s9 + $0x1ea8] ss:$16 sps:$4 sm:$0xff]  }
 0xa0a   :  { %13997 = vmatprep.subr.bf16.mxu0 %v18116_v22 }
 0xa0b   :  { %13957 = vmatpush1.bf16.msra.mxu1 %v18111_v61  ;;  %v18188_v61 = vld [vmem:[%s25220_s9 + $0x1e8c] ss:$16 sps:$4 sm:$0xff]  }
 0xa0c   :  { %13958 = vmatprep.subr.bf16.mxu1 %v18119_v53  ;;  %v18183_v53 = vld [vmem:[%s25220_s9 + $0x1c88] ss:$16 sps:$4 sm:$0xff]  }
 0xa0d   :  { %13998 = vmatpush1.bf16.msra.mxu0 %v18114_v51  ;;  %v18191_v51 = vld [vmem:[%s25220_s9 + $0x1c6c] ss:$16 sps:$4 sm:$0xff]  }
 0xa0e   :  { %13999 = vmatprep.subr.bf16.mxu0 %v18122_v50  ;;  %v18186_v50 = vld [vmem:[%s25220_s9 + $0x1e88] ss:$16 sps:$4 sm:$0xff]  }
 0xa0f   :  { %13959 = vmatpush2.bf16.msra.mxu1 %v18117_v12  ;;  %v18194_v12 = vld [vmem:[%s25220_s9 + $0x1e6c] ss:$16 sps:$4 sm:$0xff]  }
 0xa10   :  { %13960 = vmatprep.subr.bf16.mxu1 %v18125_v63  ;;  %v18189_v63 = vld [vmem:[%s25220_s9 + $0x1c68] ss:$16 sps:$4 sm:$0xff]  }
 0xa11   :  { %14000 = vmatpush2.bf16.msra.mxu0 %v18120_v34  ;;  %v18197_v34 = vld [vmem:[%s25220_s9 + $0x1c4c] ss:$16 sps:$4 sm:$0xff]  }
 0xa12   :  { %14001 = vmatprep.subr.bf16.mxu0 %v18128_v43  ;;  %v18192_v43 = vld [vmem:[%s25220_s9 + $0x1e68] ss:$16 sps:$4 sm:$0xff]  }
 0xa13   :  { %13961 = vmatpush2.bf16.msra.mxu1 %v18123_v60  ;;  %v18200_v60 = vld [vmem:[%s25220_s9 + $0x1e4c] ss:$16 sps:$4 sm:$0xff]  }
 0xa14   :  { %13962 = vmatprep.subr.bf16.mxu1 %v18131_v42  ;;  %v18195_v42 = vld [vmem:[%s25220_s9 + $0x1c48] ss:$16 sps:$4 sm:$0xff]  }
 0xa15   :  { %14002 = vmatpush2.bf16.msra.mxu0 %v18126_v35  ;;  %v18203_v35 = vld [vmem:[%s25220_s9 + $0x1c2c] ss:$16 sps:$4 sm:$0xff]  }
 0xa16   :  { %14003 = vmatprep.subr.bf16.mxu0 %v18134_v3  ;;  %v18198_v3 = vld [vmem:[%s25220_s9 + $0x1e48] ss:$16 sps:$4 sm:$0xff]  }
 0xa17   :  { %13963 = vmatpush2.bf16.msra.mxu1 %v18129_v20  ;;  %v18206_v20 = vld [vmem:[%s25220_s9 + $0x1e2c] ss:$16 sps:$4 sm:$0xff]  }
 0xa18   :  { %13964 = vmatprep.subr.bf16.mxu1 %v18137_v62  ;;  %v18201_v62 = vld [vmem:[%s25220_s9 + $0x1c28] ss:$16 sps:$4 sm:$0xff]  }
 0xa19   :  { %14004 = vmatpush2.bf16.msra.mxu0 %v18132_v49  ;;  %v18209_v49 = vld [vmem:[%s25220_s9 + $0x1c0c] ss:$16 sps:$4 sm:$0xff]  }
 0xa1a   :  { %14005 = vmatprep.subr.bf16.mxu0 %v18140_v52  ;;  %v18204_v52 = vld [vmem:[%s25220_s9 + $0x1e28] ss:$16 sps:$4 sm:$0xff]  }
 0xa1b   :  { %13965 = vmatpush2.bf16.msra.mxu1 %v18135_v24  ;;  %v18212_v24 = vld [vmem:[%s25220_s9 + $0x1e0c] ss:$16 sps:$4 sm:$0xff]  }
 0xa1c   :  { %13966 = vmatprep.subr.bf16.mxu1 %v18143_v1  ;;  %v18207_v1 = vld [vmem:[%s25220_s9 + $0x1c08] ss:$16 sps:$4 sm:$0xff]  }
 0xa1d   :  { %14006 = vmatpush2.bf16.msra.mxu0 %v18138_v33  ;;  %v18215_v33 = vld [vmem:[%s25220_s9 + $0x1dec] ss:$16 sps:$4 sm:$0xff]  }
 0xa1e   :  { %14007 = vmatprep.subr.bf16.mxu0 %v18146_v28  ;;  %v18210_v28 = vld [vmem:[%s25220_s9 + $0x1e08] ss:$16 sps:$4 sm:$0xff]  }
 0xa1f   :  { %13967 = vmatpush2.bf16.msra.mxu1 %v18141_v26  ;;  %v18218_v26 = vld [vmem:[%s25220_s9 + $0x1fec] ss:$16 sps:$4 sm:$0xff]  }
 0xa20   :  { %13968 = vmatprep.subr.bf16.mxu1 %v18149_v56  ;;  %v18213_v56 = vld [vmem:[%s25220_s9 + $0x1de8] ss:$16 sps:$4 sm:$0xff]  }
 0xa21   :  { %14008 = vmatpush2.bf16.msra.mxu0 %v18144_v55  ;;  %v18221_v55 = vld [vmem:[%s25220_s9 + $0x1dcc] ss:$16 sps:$4 sm:$0xff]  }
 0xa22   :  { %14009 = vmatprep.subr.bf16.mxu0 %v18152_v4  ;;  %v18216_v4 = vld [vmem:[%s25220_s9 + $0x1fe8] ss:$16 sps:$4 sm:$0xff]  }
 0xa23   :  { %13969 = vmatpush2.bf16.msra.mxu1 %v18147_v31  ;;  %v18224_v31 = vld [vmem:[%s25220_s9 + $0x1fcc] ss:$16 sps:$4 sm:$0xff]  }
 0xa24   :  { %13970 = vmatprep.subr.bf16.mxu1 %v18155_v29  ;;  %v18219_v29 = vld [vmem:[%s25220_s9 + $0x1dc8] ss:$16 sps:$4 sm:$0xff]  }
 0xa25   :  { %14010 = vmatpush2.bf16.msra.mxu0 %v18150_v27  ;;  %v18227_v27 = vld [vmem:[%s25220_s9 + $0x1dac] ss:$16 sps:$4 sm:$0xff]  }
 0xa26   :  { %14011 = vmatprep.subr.bf16.mxu0 %v18158_v57  ;;  %v18222_v57 = vld [vmem:[%s25220_s9 + $0x1fc8] ss:$16 sps:$4 sm:$0xff]  }
 0xa27   :  { %13971 = vmatpush2.bf16.msra.mxu1 %v18153_v58  ;;  %v18230_v58 = vld [vmem:[%s25220_s9 + $0x1fac] ss:$16 sps:$4 sm:$0xff]  }
 0xa28   :  { %13972 = vmatprep.subr.bf16.mxu1 %v18161_v11  ;;  %v18225_v11 = vld [vmem:[%s25220_s9 + $0x1da8] ss:$16 sps:$4 sm:$0xff]  }
 0xa29   :  { %14012 = vmatpush2.bf16.msra.mxu0 %v18156_v54  ;;  %v18233_v54 = vld [vmem:[%s25220_s9 + $0x1d8c] ss:$16 sps:$4 sm:$0xff]  }
 0xa2a   :  { %14013 = vmatprep.subr.bf16.mxu0 %v18164_v25  ;;  %v18228_v25 = vld [vmem:[%s25220_s9 + $0x1fa8] ss:$16 sps:$4 sm:$0xff]  }
 0xa2b   :  { %13973 = vmatpush2.bf16.msra.mxu1 %v18159_v46  ;;  %v18236_v46 = vld [vmem:[%s25220_s9 + $0x1f8c] ss:$16 sps:$4 sm:$0xff]  }
 0xa2c   :  { %14024 = vmatprep.subr.bf16.mxu1 %v18167_v44  ;;  %v18231_v44 = vld [vmem:[%s25220_s9 + $0x1d88] ss:$16 sps:$4 sm:$0xff]  }
 0xa2d   :  { %14014 = vmatpush2.bf16.msra.mxu0 %v18162_v18  ;;  %v18239_v18 = vld [vmem:[%s25220_s9 + $0x1d6c] ss:$16 sps:$4 sm:$0xff]  }
 0xa2e   :  { %v13730_v2 = vpop.f32.mrf.mxu1  ;;  %13975 = vmatmul.mubr.bf16.vlgmr.msra.gmra.mxu1 %v23266_v16  ;;  %14065 = vmatprep.subr.bf16.mxu0 %v18170_v9  ;;  %v18179_v16 = vld [vmem:[%s25220_s9 + $0x1cac] ss:$16 sps:$4 sm:$0xff]   ;;  %v18234_v9 = vld [vmem:[%s25220_s9 + $0x1f88] ss:$16 sps:$4 sm:$0xff]  }
 0xa2f   :  { %v13731_v14 = vadd.f32 %v13730_v2, %v24724_v37  ;;  %14025 = vmatpush1.bf16.msra.mxu1 %v18165_v23  ;;  %14056 = vmatprep.mubr.bf16.mxu1 %v23273_v38  ;;  %v18174_v38 = vld [vmem:[%s25220_s9 + $0x1ec8] ss:$16 sps:$4 sm:$0xff]   ;;  %v18242_v23 = vld [vmem:[%s25220_s9 + $0x1f6c] ss:$16 sps:$4 sm:$0xff]  }
 0xa30   :  { %v13771_v30 = vpop.f32.mrf.mxu0  ;;  %14016 = vmatmul.mubr.bf16.vlgmr.msra.gmra.mxu0 %v23281_v41  ;;  %v13732_v10 = vpop.f32.mrf.mxu1  ;;  %14026 = vmatprep.subr.bf16.mxu1 %v18173_v21  ;;  %v18182_v41 = vld [vmem:[%s25220_s9 + $0x1eac] ss:$16 sps:$4 sm:$0xff]   ;;  %v18237_v21 = vld [vmem:[%s25220_s9 + $0x1d68] ss:$16 sps:$4 sm:$0xff]  }
 0xa31   :  { %v24926_v48 = vadd.f32 %v13771_v30, %v13731_v14  ;;  %v13733_v37 = vadd.f32 %v13732_v10, %v24734_v0  ;;  %14066 = vmatpush1.bf16.msra.mxu0 %v18168_v6  ;;  %14097 = vmatprep.mubr.bf16.mxu0 %v23290_v5  ;;  %v18177_v0 = vld [vmem:[%s25220_s9 + $0x1ca8] ss:$16 sps:$4 sm:$0xff]   ;;  %v18245_v6 = vld [vmem:[%s25220_s9 + $0x1d4c] ss:$16 sps:$4 sm:$0xff]  }
 0xa32   :  { %v13773_v40 = vpop.f32.mrf.mxu0  ;;  %v13734_v39 = vpop.f32.mrf.mxu1  ;;  %14067 = vmatprep.subr.bf16.mxu0 %v18176_v17  ;;  %v18240_v2 = vld [vmem:[%s25220_s9 + $0x1f68] ss:$16 sps:$4 sm:$0xff]   ;;  %v18248_v17 = vld [vmem:[%s25220_s9 + $0x1f4c] ss:$16 sps:$4 sm:$0xff]  }
 0xa33   :  { %v24936_v13 = vadd.f32 %v13773_v40, %v13733_v37  ;;  %14027 = vmatpush1.bf16.msra.mxu1 %v18171_v32  ;;  %v18243_v14 = vld [vmem:[%s25220_s9 + $0x1d48] ss:$16 sps:$4 sm:$0xff]   ;;  %v18251_v32 = vld [vmem:[%s25220_s9 + $0x1d2c] ss:$16 sps:$4 sm:$0xff]  }
 0xa34   :  { %v13775_v36 = vpop.f32.mrf.mxu0  ;;  %v13735_v5 = vpop.f32.mrf.mxu1  ;;  %14028 = vmatprep.subr.bf16.mxu1 %v18179_v16  ;;  %v18246_v30 = vld [vmem:[%s25220_s9 + $0x1f48] ss:$16 sps:$4 sm:$0xff]   ;;  %v18254_v10 = vld [vmem:[%s25220_s9 + $0x1f2c] ss:$16 sps:$4 sm:$0xff]  }
 0xa35   :  { %14068 = vmatpush1.bf16.msra.mxu0 %v18174_v38  ;;  %v18249_v16 = vld [vmem:[%s25220_s9 + $0x1d28] ss:$16 sps:$4 sm:$0xff]   ;;  %v18257_v37 = vld [vmem:[%s25220_s9 + $0x1d0c] ss:$16 sps:$4 sm:$0xff]   ;;  %v18263_v5 = vld [vmem:[%s25222_s11 + $0x70] sm:$0xff]  }
 0xa36   :  { %v13776_v22 = vpop.f32.mrf.mxu0  ;;  %14069 = vmatprep.subr.bf16.mxu0 %v18182_v41  ;;  %v18252_v38 = vld [vmem:[%s25220_s9 + $0x1f28] ss:$16 sps:$4 sm:$0xff]   ;;  %v18260_v40 = vld [vmem:[%s25220_s9 + $0x1f0c] ss:$16 sps:$4 sm:$0xff]  }
 0xa37   :  { %14029 = vmatpush1.bf16.msra.mxu1 %v18177_v0  ;;  %v18255_v39 = vld [vmem:[%s25220_s9 + $0x1d08] ss:$16 sps:$4 sm:$0xff]  }
 0xa38   :  { %14030 = vmatprep.subr.bf16.mxu1 %v18185_v45  ;;  %v18261_v41 = vld [vmem:[%s25222_s11 + $0x78] sm:$0xff]   ;;  %v14107_v45 = vpack.c.bf16 %v24125_v59, %v24125_v59  ;;  %v18265_v59 = vld [vmem:[%s25222_s11 + $0x68] sm:$0xff]  }
 0xa39   :  { %14070 = vmatpush1.bf16.msra.mxu0 %v18180_v47  ;;  %v18258_v0 = vld [vmem:[%s25220_s9 + $0x1f08] ss:$16 sps:$4 sm:$0xff]  }
 0xa3a   :  { %14071 = vmatprep.subr.bf16.mxu0 %v18188_v61  ;;  %v18262_v36 = vld [vmem:[%s25222_s11 + $0x38] sm:$0xff]   ;;  %v18264_v61 = vld [vmem:[%s25222_s11 + $0x30] sm:$0xff]  }
 0xa3b   :  { %14031 = vmatpush1.bf16.msra.mxu1 %v18183_v53 }
 0xa3c   :  { %14032 = vmatprep.subr.bf16.mxu1 %v18191_v51 }
 0xa3d   :  { %14072 = vmatpush1.bf16.msra.mxu0 %v18186_v50 }
 0xa3e   :  { %14073 = vmatprep.subr.bf16.mxu0 %v18194_v12 }
 0xa3f   :  { %14033 = vmatpush1.bf16.msra.mxu1 %v18189_v63 }
 0xa40   :  { %14034 = vmatprep.subr.bf16.mxu1 %v18197_v34  ;;  %v18266_v34 = vld [vmem:[%s25222_s11 + $0x28] sm:$0xff]  }
 0xa41   :  { %14074 = vmatpush1.bf16.msra.mxu0 %v18192_v43 }
 0xa42   :  { %14075 = vmatprep.subr.bf16.mxu0 %v18200_v60 }
 0xa43   :  { %14035 = vmatpush1.bf16.msra.mxu1 %v18195_v42 }
 0xa44   :  { %14036 = vmatprep.subr.bf16.mxu1 %v18203_v35  ;;  %v18269_v35 = vld [vmem:[%s25222_s11 + $0x58] sm:$0xff]  }
 0xa45   :  { %14076 = vmatpush1.bf16.msra.mxu0 %v18198_v3  ;;  %v18270_v3 = vld [vmem:[%s25222_s11 + $0x18] sm:$0xff]  }
 0xa46   :  { %14077 = vmatprep.subr.bf16.mxu0 %v18206_v20  ;;  %v18271_v20 = vld [vmem:[%s25222_s11 + $0x50] sm:$0xff]  }
 0xa47   :  { %14037 = vmatpush1.bf16.msra.mxu1 %v18201_v62  ;;  %v18272_v62 = vld [vmem:[%s25222_s11 + $0x10] sm:$0xff]  }
 0xa48   :  { %14038 = vmatprep.subr.bf16.mxu1 %v18209_v49  ;;  %v18273_v49 = vld [vmem:[%s25222_s11 + $0x48] sm:$0xff]  }
 0xa49   :  { %14078 = vmatpush1.bf16.msra.mxu0 %v18204_v52  ;;  %v18274_v52 = vld [vmem:[%s25222_s11 + $0x8] sm:$0xff]  }
 0xa4a   :  { %14079 = vmatprep.subr.bf16.mxu0 %v18212_v24  ;;  %v18275_v24 = vld [vmem:[%s25222_s11 + $0x40] sm:$0xff]  }
 0xa4b   :  { %14039 = vmatpush1.bf16.msra.mxu1 %v18207_v1  ;;  %v18276_v1 = vld [vmem:[%s25222_s11] sm:$0xff]  }
 0xa4c   :  { %14040 = vmatprep.subr.bf16.mxu1 %v18215_v33  ;;  %v18277_v33 = vld [vmem:[%s25222_s11 + $0xf8] sm:$0xff]  }
 0xa4d   :  { %14080 = vmatpush1.bf16.msra.mxu0 %v18210_v28  ;;  %v18278_v28 = vld [vmem:[%s25222_s11 + $0xb8] sm:$0xff]  }
 0xa4e   :  { %14081 = vmatprep.subr.bf16.mxu0 %v18218_v26  ;;  %v14106_v26 = vpack.c.bf16 %v24115_v8, %v24115_v8  ;;  %v18282_v8 = vld [vmem:[%s25222_s11 + $0xa8] sm:$0xff]  }
 0xa4f   :  { %14041 = vmatpush2.bf16.msra.mxu1 %v18213_v56  ;;  %v18279_v56 = vld [vmem:[%s25222_s11 + $0xf0] sm:$0xff]  }
 0xa50   :  { %14042 = vmatprep.subr.bf16.mxu1 %v18221_v55  ;;  %v18280_v55 = vld [vmem:[%s25222_s11 + $0xb0] sm:$0xff]  }
 0xa51   :  { %14082 = vmatpush2.bf16.msra.mxu0 %v18216_v4  ;;  %v18281_v4 = vld [vmem:[%s25222_s11 + $0xe8] sm:$0xff]  }
 0xa52   :  { %14083 = vmatprep.subr.bf16.mxu0 %v18224_v31  ;;  %v18283_v31 = vld [vmem:[%s25222_s11 + $0xe0] sm:$0xff]  }
 0xa53   :  { %14043 = vmatpush2.bf16.msra.mxu1 %v18219_v29  ;;  %v18284_v29 = vld [vmem:[%s25222_s11 + $0xa0] sm:$0xff]  }
 0xa54   :  { %14044 = vmatprep.subr.bf16.mxu1 %v18227_v27  ;;  %v18285_v27 = vld [vmem:[%s25222_s11 + $0xd8] sm:$0xff]  }
 0xa55   :  { %14084 = vmatpush2.bf16.msra.mxu0 %v18222_v57  ;;  %v18286_v57 = vld [vmem:[%s25222_s11 + $0x98] sm:$0xff]  }
 0xa56   :  { %14085 = vmatprep.subr.bf16.mxu0 %v18230_v58  ;;  %v18287_v58 = vld [vmem:[%s25222_s11 + $0xd0] sm:$0xff]  }
 0xa57   :  { %14045 = vmatpush2.bf16.msra.mxu1 %v18225_v11  ;;  %v18288_v11 = vld [vmem:[%s25222_s11 + $0x90] sm:$0xff]  }
 0xa58   :  { %14046 = vmatprep.subr.bf16.mxu1 %v18233_v54 }
 0xa59   :  { %14086 = vmatpush2.bf16.msra.mxu0 %v18228_v25 }
 0xa5a   :  { %14087 = vmatprep.subr.bf16.mxu0 %v18236_v46 }
 0xa5b   :  { %14047 = vmatpush2.bf16.msra.mxu1 %v18231_v44 }
 0xa5c   :  { %14048 = vmatprep.subr.bf16.mxu1 %v18239_v18 }
 0xa5d   :  { %14088 = vmatpush2.bf16.msra.mxu0 %v18234_v9 }
 0xa5e   :  { %14089 = vmatprep.subr.bf16.mxu0 %v18242_v23 }
 0xa5f   :  { %14049 = vmatpush2.bf16.msra.mxu1 %v18237_v21 }
 0xa60   :  { %14050 = vmatprep.subr.bf16.mxu1 %v18245_v6 }
 0xa61   :  { %14090 = vmatpush2.bf16.msra.mxu0 %v18240_v2  ;;  %v18289_v2 = vld [vmem:[%s25222_s11 + $0xc8] sm:$0xff]  }
 0xa62   :  { %14091 = vmatprep.subr.bf16.mxu0 %v18248_v17 }
 0xa63   :  { %14051 = vmatpush2.bf16.msra.mxu1 %v18243_v14 }
 0xa64   :  { %14052 = vmatprep.subr.bf16.mxu1 %v18251_v32  ;;  %v18290_v32 = vld [vmem:[%s25222_s11 + $0x88] sm:$0xff]  }
 0xa65   :  { %14092 = vmatpush2.bf16.msra.mxu0 %v18246_v30  ;;  %v18291_v30 = vld [vmem:[%s25222_s11 + $0xc0] sm:$0xff]  }
 0xa66   :  { %14093 = vmatprep.subr.bf16.mxu0 %v18254_v10 }
 0xa67   :  { %14053 = vmatpush2.bf16.msra.mxu1 %v18249_v16  ;;  %v18292_v16 = vld [vmem:[%s25222_s11 + $0x80] sm:$0xff]  }
 0xa68   :  { %14054 = vmatprep.subr.bf16.mxu1 %v18257_v37 }
 0xa69   :  { %14094 = vmatpush2.bf16.msra.mxu0 %v18252_v38 }
 0xa6a   :  { %14095 = vmatprep.subr.bf16.mxu0 %v18260_v40 }
 0xa6b   :  { %14055 = vmatpush2.bf16.msra.mxu1 %v18255_v39 }
 0xa6c   :  { %16305 = vmatprep.subr.bf16.mxu1 %v18261_v41 }
 0xa6d   :  { %14096 = vmatpush2.bf16.msra.mxu0 %v18258_v0 }
 0xa6e   :  { %v13812_v47 = vpop.f32.mrf.mxu1  ;;  %14057 = vmatmul.mubr.bf16.vlgmr.msra.gmra.mxu1 %v23484_v19 }
 0xa6f   :  { %v13813_v22 = vadd.f32 %v13812_v47, %v24926_v48  ;;  %16306 = vmatpush3.bf16.msra.mxu1 %v18262_v36  ;;  %14405 = vmatprep.mubr.bf16.mxu1 %v14107_v45 }
 0xa70   :  { %v13853_v53 = vpop.f32.mrf.mxu0  ;;  %14098 = vmatmul.mubr.bf16.vlgmr.msra.gmra.mxu0 %v23495_v7  ;;  %v13814_v51 = vpop.f32.mrf.mxu1  ;;  %16307 = vmatprep.subr.bf16.mxu1 %v18263_v5  ;;  %v18267_v7 = vld [vmem:[%s25222_s11 + $0x60] sm:$0xff]  }
 0xa71   :  { %v13854_v50 = vadd.f32 %v13853_v53, %v13813_v22  ;;  %v13815_v19 = vadd.f32 %v13814_v51, %v24936_v13  ;;  %v18268_v13 = vld [vmem:[%s25222_s11 + $0x20] sm:$0xff]  }
 0xa72   :  { %v13855_v12 = vpop.f32.mrf.mxu0  ;;  %v13816_v48 = vpop.f32.mrf.mxu1 }
 0xa73   :  { %v13856_v63 = vadd.f32 %v13855_v12, %v13815_v19  ;;  %16308 = vmatpush3.bf16.msra.mxu1 %v18264_v61 }
 0xa74   :  { %v13857_v43 = vpop.f32.mrf.mxu0  ;;  %v13817_v60 = vpop.f32.mrf.mxu1  ;;  %16309 = vmatprep.subr.bf16.mxu1 %v18265_v59 }
 0xa76   :  { %v13858_v42 = vpop.f32.mrf.mxu0 }
 0xa77   :  { %16310 = vmatpush3.bf16.msra.mxu1 %v18266_v34 }
 0xa78   :  { %16311 = vmatprep.subr.bf16.mxu1 %v18267_v7 }
 0xa7b   :  { %16312 = vmatpush3.bf16.msra.mxu1 %v18268_v13 }
 0xa7c   :  { %16313 = vmatprep.subr.bf16.mxu1 %v18269_v35 }
 0xa7f   :  { %16314 = vmatpush3.bf16.msra.mxu1 %v18270_v3 }
 0xa80   :  { %16315 = vmatprep.subr.bf16.mxu1 %v18271_v20 }
 0xa83   :  { %16316 = vmatpush3.bf16.msra.mxu1 %v18272_v62 }
 0xa84   :  { %16317 = vmatprep.subr.bf16.mxu1 %v18273_v49 }
 0xa87   :  { %16318 = vmatpush3.bf16.msra.mxu1 %v18274_v52  ;;  %v16255_v52 = vld [vmem:[%s25223_s12] ss:$0 sm:$0xff]  ;;  %s18300_s12 = scalar_lea.vmem %s14472_s20, 32 }
 0xa88   :  { %16319 = vmatprep.subr.bf16.mxu1 %v18275_v24  ;;  %p18301_p0 = scmp.ne.s32.totalorder %s14472_s20, %s18300_s12  ;;  %p18306_p2 = scmp.lt.s32.totalorder %s18300_s12, %s18300_s12 }
 0xa8a   :  { %p18307_p3 = por %p18306_p2, %p18305_p1 }
 0xa8b   :  { %16320 = vmatpush3.bf16.msra.mxu1 %v18276_v1 }
 0xa8c   :  { %16327 = vmatprep.subr.bf16.mxu1 %v18277_v33  ;;  %p18308_p4 = pnand %p18307_p3, %p18301_p0 }
 0xa8e   :  { %14406 = vmatmul.mubr.bf16.vlgmr.msra.gmra.mxu1 %v14106_v26 }
 0xa8f   :  { %16328 = vmatpush3.bf16.msra.mxu1 %v18278_v28 }
 0xa90   :  { %16329 = vmatprep.subr.bf16.mxu1 %v18279_v56 }
 0xa93   :  { %16330 = vmatpush3.bf16.msra.mxu1 %v18280_v55 }
 0xa94   :  { %16331 = vmatprep.subr.bf16.mxu1 %v18281_v4 }
 0xa97   :  { %16332 = vmatpush3.bf16.msra.mxu1 %v18282_v8 }
 0xa98   :  { %16333 = vmatprep.subr.bf16.mxu1 %v18283_v31 }
 0xa9b   :  { %16334 = vmatpush3.bf16.msra.mxu1 %v18284_v29  ;;  %v14454_v29 = vand.u32 127, %v7654_v15 }
 0xa9c   :  { %16335 = vmatprep.subr.bf16.mxu1 %v18285_v27 }
 0xa9d   :  { %vm14455_vm3 = vcmp.eq.s32.totalorder %v14454_v29, 0 }
 0xa9f   :  { %16336 = vmatpush3.bf16.msra.mxu1 %v18286_v57 }
 0xaa0   :  { %16337 = vmatprep.subr.bf16.mxu1 %v18287_v58 }
 0xaa3   :  { %16338 = vmatpush3.bf16.msra.mxu1 %v18288_v11 }
 0xaa4   :  { %16339 = vmatprep.subr.bf16.mxu1 %v18289_v2 }
 0xaa7   :  { %16340 = vmatpush3.bf16.msra.mxu1 %v18290_v32 }
 0xaa8   :  { %16341 = vmatprep.subr.bf16.mxu1 %v18291_v30 }
 0xaab   :  { %16342 = vmatpush3.bf16.msra.mxu1 %v18292_v16 }
 0xaae   :  { %v13894_v54 = vpop.f32.mrf.mxu1 }
 0xaaf   :  { %v13895_v25 = vadd.f32 %v13894_v54, %v13854_v50 }
 0xab0   :  { %v13935_v46 = vpop.f32.mrf.mxu0  ;;  %v13896_v44 = vpop.f32.mrf.mxu1 }
 0xab1   :  { %v13936_v18 = vadd.f32 %v13935_v46, %v13895_v25  ;;  %v13897_v9 = vadd.f32 %v13896_v44, %v13856_v63 }
 0xab2   :  { %v13937_v23 = vpop.f32.mrf.mxu0  ;;  %v13898_v21 = vpop.f32.mrf.mxu1 }
 0xab3   :  { %v13938_v6 = vadd.f32 %v13937_v23, %v13897_v9 }
 0xab4   :  { %v13939_v17 = vpop.f32.mrf.mxu0  ;;  %v13899_v14 = vpop.f32.mrf.mxu1 }
 0xab6   :  { %v13940_v10 = vpop.f32.mrf.mxu0 }
 0xaee   :  { %v13976_v37 = vpop.f32.mrf.mxu1 }
 0xaef   :  { %v13977_v45 = vadd.f32 %v13976_v37, %v13936_v18 }
 0xaf0   :  { %v14017_v38 = vpop.f32.mrf.mxu0  ;;  %v13978_v40 = vpop.f32.mrf.mxu1 }
 0xaf1   :  { %v13979_v47 = vadd.f32 %v13978_v40, %v13938_v6  ;;  %v14018_v22 = vadd.f32 %v14017_v38, %v13977_v45 }
 0xaf2   :  { %v14019_v39 = vpop.f32.mrf.mxu0  ;;  %v13980_v41 = vpop.f32.mrf.mxu1 }
 0xaf3   :  { %v14020_v53 = vadd.f32 %v14019_v39, %v13979_v47 }
 0xaf4   :  { %v14021_v0 = vpop.f32.mrf.mxu0  ;;  %v13981_v36 = vpop.f32.mrf.mxu1 }
 0xaf6   :  { %v14022_v5 = vpop.f32.mrf.mxu0 }
 0xb2e   :  { %v14058_v61 = vpop.f32.mrf.mxu1 }
 0xb2f   :  { %v14059_v51 = vadd.f32 %v14058_v61, %v14018_v22 }
 0xb30   :  { %v14099_v59 = vpop.f32.mrf.mxu0  ;;  %v14060_v50 = vpop.f32.mrf.mxu1 }
 0xb31   :  { %v14061_v19 = vadd.f32 %v14060_v50, %v14020_v53  ;;  %v14100_v12 = vadd.f32 %v14099_v59, %v14059_v51 }
 0xb32   :  { %v14101_v48 = vpop.f32.mrf.mxu0  ;;  %v14062_v63 = vpop.f32.mrf.mxu1 }
 0xb33   :  { %v14102_v34 = vadd.f32 %v14101_v48, %v14061_v19  ;;  %v14108_v42 = vpack.c.bf16 %v14100_v12, %v14100_v12 }
 0xb34   :  { %v14103_v43 = vpop.f32.mrf.mxu0  ;;  %v14063_v60 = vpop.f32.mrf.mxu1 }
 0xb35   :  { %v14109_v7 = vpack.c.bf16 %v14102_v34, %v14102_v34 }
 0xb36   :  { %v14104_v13 = vpop.f32.mrf.mxu0 }
 0xb37   :  { %14445 = vmatprep.mubr.bf16.mxu1 %v14109_v7 }
 0xb38   :  { %14446 = vmatmul.mubr.bf16.vlgmr.msra.gmra.mxu1 %v14108_v42 }
 0xb4e   :  { %v16321_v35 = vpop.f32.mrf.mxu1 }
 0xb50   :  { %v16322_v3 = vpop.f32.mrf.mxu1 }
 0xb51   :  { %v16323_v20 = vadd.f32 %v16322_v3, %v16321_v35 }
 0xb52   :  { %v16324_v62 = vpop.f32.mrf.mxu1 }
 0xb53   :  { %v14408_v33 = vadd.f32 %v16323_v20, %v16255_v52 }
 0xb54   :  { %v16325_v49 = vpop.f32.mrf.mxu1 }
 0xbf8   :  { %v16343_v24 = vpop.f32.mrf.mxu1 }
 0xbfa   :  { %v16344_v1 = vpop.f32.mrf.mxu1 }
 0xbfb   :  { %v16345_v28 = vadd.f32 %v16344_v1, %v16343_v24 }
 0xbfc   :  { %v16346_v26 = vpop.f32.mrf.mxu1 }
 0xbfd   :  { %v14448_v56 = vadd.f32 %v16345_v28, %v14408_v33 }
 0xbfe   :  { %v16347_v55 = vpop.f32.mrf.mxu1 }
 0xbff   :  { %v16288_v4 = vmul.f32 -1.442695, %v14448_v56 }
 0xc01   :  { %18293 = vpow2.f32 %v16288_v4 }
 0xc02   :  { %18295 = vtanh.f32 %v14448_v56 }
 0xc0e   :  { %v18294_v8 = vpop.eup %18293 }
 0xc0f   :  { %v14460_v31 = vadd.f32 1.0, %v18294_v8  ;;  %v18296_v27 = vpop.eup %18295 }
 0xc11   :  { %18297 = vrcp.f32 %v14460_v31 }
 0xc1e   :  { %v18298_v57 = vpop.eup %18297 }
 0xc1f   :  { %v14463_v58 = vsel %vm14455_vm3, %v18296_v27, %v18298_v57 }
 0xc20   :  { %14464 = vst [vmem:[#allocation2] sm:$0x3] %v14463_v58 }
 0xc21   :  { %18311 = shalt.err (!%p18308_p4)
}
 0xc22   :  { %14474 = dma.vmem_to_hbm [thread:$0]  %s14472_s20, 32, %s25224_s13, [#allocation3]  }
 0xc23   :  { %18320 = dma.done.wait [#allocation3], 32  }
 0xc24   :  { %18321 = vsyncadd [#allocation3], 4294967264 }
 0xc25   :  { %14478 = vsyncpa [#allocation3], 1 }

</bundles_post_ra>
